<compile_context>
chip_gen: v6e
topology: v6e:2x2x1
jax: 0.10.0
libtpu: 0.0.40
codegen_flags: <defaults>
</compile_context>

<pallas_src>
import functools

import jax
import jax.numpy as jnp
from jax import lax
from jax.experimental import pallas as pl
from jax.experimental.pallas import tpu as pltpu


# ---------------------------------------------------------------------------
# Fused Pallas kernel (whole network, one image per grid step)
# ---------------------------------------------------------------------------

def _deepcon_kernel(x_ref, mask_ref,
                    in_scale_ref, in_shift_ref, in_w_ref, in_b_ref,
                    blk_scale_ref, blk_shift_ref, blk_wa_ref, blk_ba_ref,
                    blk_wb_ref, blk_bb_ref,
                    out_scale_ref, out_shift_ref, out_w_ref, out_b_ref,
                    o_ref, *, Wp, P, dils):
    # Layout: (channels, P) -- channels on sublanes, flattened zero-padded
    # spatial (length P, a multiple of 128) on lanes.
    mask = mask_ref[...]                      # (1, P): 1 inside LxL, 0 in halo

    def shift_flat(a, s):
        # out[:, p] = a[:, (p + s) mod P]; interior p never wraps, halo/tail
        # positions get junk that is masked before the next conv.
        if s == 0:
            return a
        return pltpu.roll(a, shift=(-s) % P, axis=1)

    def conv3x3(a, get_w, bias, d):
        # a: (C, P) with zero halo.  9 lane shifts -> 9 small MXU dots
        # accumulated in f32 registers (no im2col scratch).
        acc = None
        for ky in range(3):
            for kx in range(3):
                s = d * ((ky - 1) * Wp + (kx - 1))
                part = jnp.dot(get_w(ky * 3 + kx), shift_flat(a, s),
                               preferred_element_type=jnp.float32)
                acc = part if acc is None else acc + part
        return acc + bias                     # (Cout, P); halo garbage is OK

    def bn_relu_mask(h, scale, shift):
        # Fold the halo re-zeroing into the elementwise pass (full-lane VPU).
        return jnp.maximum(h * scale + shift, 0.0) * mask

    # ---- input block: BN -> ReLU -> 1x1 conv (K = 8, tiny) -----------------
    a0 = bn_relu_mask(x_ref[0], in_scale_ref[...], in_shift_ref[...])
    h = jnp.dot(in_w_ref[...], a0,
                preferred_element_type=jnp.float32) + in_b_ref[...]

    # ---- mid blocks ---------------------------------------------------------
    for i, d in enumerate(dils):
        a1 = bn_relu_mask(h, blk_scale_ref[i], blk_shift_ref[i])
        t = conv3x3(a1, lambda tap, i=i: blk_wa_ref[i, tap], blk_ba_ref[i], 1)
        a2 = jnp.maximum(t, 0.0) * mask       # Dropout(0.3) == identity (eval)
        h = conv3x3(a2, lambda tap, i=i: blk_wb_ref[i, tap], blk_bb_ref[i], d)

    # ---- output block: BN -> ReLU -> 3x3 conv (Cout=1, rows padded to 8) ---
    a3 = bn_relu_mask(h, out_scale_ref[...], out_shift_ref[...])
    y = conv3x3(a3, lambda tap: out_w_ref[tap], out_b_ref[...], 1)   # (8, P)
    o_ref[0] = y[0:1, :].astype(o_ref.dtype)  # store only the real logit row


def deepcon_forward_pallas(x_nchw, params):
    """(N, n_channels, L, L) float32 -> (N, 1, L, L) float32."""
    x = x_nchw.astype(jnp.float32)
    N, Cin, H, W = x.shape
    Cw = params['in_w'].shape[1]
    blocks = params['blocks']
    nb = len(blocks)
    dils = tuple(int(b['d']) for b in blocks)
    Dm = max(dils + (1,))
    Hp, Wp = H + 2 * Dm, W + 2 * Dm
    P = ((Hp * Wp + 127) // 128) * 128        # flat padded spatial, lane-aligned
    Cin_pad = 8                               # sublane-align the input channels
    Cout_pad = 8                              # final Cout=1 padded for the dot

    # ---- input: NCHW -> zero-padded, flattened, lane-dense (N, Cin_pad, P) --
    xp = jnp.pad(x, ((0, 0), (0, Cin_pad - Cin), (Dm, Dm), (Dm, Dm)))
    x_flat = jnp.pad(xp.reshape(N, Cin_pad, Hp * Wp),
                     ((0, 0), (0, 0), (0, P - Hp * Wp)))

    # ---- interior mask: 1 inside the LxL image, 0 in halo / alignment tail --
    idx = jnp.arange(P, dtype=jnp.int32)
    r, c = idx // Wp, idx % Wp
    mask = ((idx < Hp * Wp) & (r >= Dm) & (r < Dm + H)
            & (c >= Dm) & (c < Dm + W)).astype(jnp.float32).reshape(1, P)

    # ---- parameter packing (pure wrapper glue) ------------------------------
    def col(v, rows):                         # (1, C) -> (rows, 1), zero-padded
        v = v.reshape(-1, 1)
        return jnp.pad(v, ((0, rows - v.shape[0]), (0, 0)))

    def conv_w_taps(w):                       # (3, 3, cin, cout) -> (9, cout, cin)
        return jnp.transpose(w.reshape(9, w.shape[2], w.shape[3]), (0, 2, 1))

    in_scale = col(params['in_scale'], Cin_pad)
    in_shift = col(params['in_shift'], Cin_pad)
    in_w = jnp.pad(params['in_w'].T, ((0, 0), (0, Cin_pad - Cin)))   # (Cw, 8)
    in_b = params['in_b'].reshape(Cw, 1)

    blk_scale = jnp.stack([col(b['scale'], Cw) for b in blocks])
    blk_shift = jnp.stack([col(b['shift'], Cw) for b in blocks])
    blk_wa = jnp.stack([conv_w_taps(b['wa']) for b in blocks])       # (nb,9,Cw,Cw)
    blk_ba = jnp.stack([col(b['ba'], Cw) for b in blocks])
    blk_wb = jnp.stack([conv_w_taps(b['wb']) for b in blocks])
    blk_bb = jnp.stack([col(b['bb'], Cw) for b in blocks])

    out_scale = col(params['out_scale'], Cw)
    out_shift = col(params['out_shift'], Cw)
    out_w = jnp.pad(conv_w_taps(params['out_w']),
                    ((0, 0), (0, Cout_pad - 1), (0, 0)))             # (9, 8, Cw)
    out_b = col(params['out_b'], Cout_pad)

    # ---- scoped-VMEM budget: double-buffered blocks + params + live acts ----
    block_bytes = 4 * (Cin_pad * P + P)
    param_bytes = 4 * (P + 2 * Cin_pad + Cw * (Cin_pad + 3)
                       + nb * (2 * 9 * Cw * Cw + 4 * Cw)
                       + 9 * Cout_pad * Cw + Cout_pad)
    live_bytes = 4 * 8 * Cw * P               # in-flight activations / spill
    vmem_limit = int(min(max(2 * block_bytes + 2 * param_bytes + live_bytes,
                             32 * 1024 * 1024), 48 * 1024 * 1024))

    kernel = functools.partial(_deepcon_kernel, Wp=Wp, P=P, dils=dils)

    def full(shape):
        nd = len(shape)
        return pl.BlockSpec(shape, lambda n, _nd=nd: (0,) * _nd)

    out = pl.pallas_call(
        kernel,
        out_shape=jax.ShapeDtypeStruct((N, 1, P), jnp.float32),
        grid=(N,),
        in_specs=[
            pl.BlockSpec((1, Cin_pad, P), lambda n: (n, 0, 0)),
            full((1, P)),
            full((Cin_pad, 1)), full((Cin_pad, 1)),
            full((Cw, Cin_pad)), full((Cw, 1)),
            full((nb, Cw, 1)), full((nb, Cw, 1)),
            full((nb, 9, Cw, Cw)), full((nb, Cw, 1)),
            full((nb, 9, Cw, Cw)), full((nb, Cw, 1)),
            full((Cw, 1)), full((Cw, 1)),
            full((9, Cout_pad, Cw)), full((Cout_pad, 1)),
        ],
        out_specs=pl.BlockSpec((1, 1, P), lambda n: (n, 0, 0)),
        compiler_params=pltpu.CompilerParams(
            dimension_semantics=("parallel",),
            vmem_limit_bytes=vmem_limit),
    )(x_flat, mask,
      in_scale, in_shift, in_w, in_b,
      blk_scale, blk_shift, blk_wa, blk_ba, blk_wb, blk_bb,
      out_scale, out_shift, out_w, out_b)

    # Extract the interior of the flat padded logit map -> (N, 1, H, W) NCHW.
    y = out[:, 0, :Hp * Wp].reshape(N, Hp, Wp)[:, Dm:Dm + H, Dm:Dm + W]
    return y[:, None, :, :]


# ---------------------------------------------------------------------------
# Parameters (deterministic, synthetic)
# ---------------------------------------------------------------------------

def _fold_bn(gamma, beta, mean, var, eps=1e-5):
    scale = gamma / jnp.sqrt(var + eps)
    shift = beta - mean * scale
    return scale.reshape(1, -1), shift.reshape(1, -1)


def init_params(key, n_channels, width, num_blocks):
    keys = iter(jax.random.split(key, 16 + 10 * num_blocks))

    def bn(c):
        gamma = 0.5 + jax.random.uniform(next(keys), (c,), jnp.float32)
        beta = 0.1 * jax.random.normal(next(keys), (c,), jnp.float32)
        mean = 0.1 * jax.random.normal(next(keys), (c,), jnp.float32)
        var = 0.5 + jax.random.uniform(next(keys), (c,), jnp.float32)
        return _fold_bn(gamma, beta, mean, var)

    def conv_w(kh, kw, cin, cout):
        w = 0.1 * jax.random.normal(next(keys), (kh, kw, cin, cout),
                                    jnp.float32)
        b = 0.1 * jax.random.normal(next(keys), (1, cout), jnp.float32)
        return w, b

    params = {}
    params['in_scale'], params['in_shift'] = bn(n_channels)
    w_in, params['in_b'] = conv_w(1, 1, n_channels, width)
    params['in_w'] = w_in.reshape(n_channels, width)

    blocks = []
    d = 1
    for _ in range(num_blocks):
        scale, shift = bn(width)
        wa, ba = conv_w(3, 3, width, width)
        wb, bb = conv_w(3, 3, width, width)
        blocks.append(dict(scale=scale, shift=shift, wa=wa, ba=ba,
                           wb=wb, bb=bb, d=d))
        d = 2 if d == 1 else (4 if d == 2 else 1)
    params['blocks'] = blocks

    params['out_scale'], params['out_shift'] = bn(width)
    params['out_w'], params['out_b'] = conv_w(3, 3, width, 1)
    return params


# ---------------------------------------------------------------------------
# Pure-JAX reference
# ---------------------------------------------------------------------------

def _conv2d_ref(x, w, b, dilation):
    d = dilation
    pad = ((w.shape[0] - 1) // 2) * d
    y = lax.conv_general_dilated(
        x, w, window_strides=(1, 1),
        padding=[(pad, pad), (pad, pad)],
        rhs_dilation=(d, d),
        dimension_numbers=('NHWC', 'HWIO', 'NHWC'))
    return y + b.reshape(1, 1, 1, -1)


def deepcon_forward_ref(x_nchw, params):
    x = jnp.transpose(x_nchw, (0, 2, 3, 1)).astype(jnp.float32)

    def bn_relu(v, scale, shift):
        return jnp.maximum(v * scale.reshape(1, 1, 1, -1)
                           + shift.reshape(1, 1, 1, -1), 0.0)

    cin, cout = params['in_w'].shape
    h = _conv2d_ref(bn_relu(x, params['in_scale'], params['in_shift']),
                    params['in_w'].reshape(1, 1, cin, cout),
                    params['in_b'], 1)
    for blk in params['blocks']:
        t = _conv2d_ref(bn_relu(h, blk['scale'], blk['shift']),
                        blk['wa'], blk['ba'], 1)
        h = _conv2d_ref(jnp.maximum(t, 0.0), blk['wb'], blk['bb'], blk['d'])
    y = _conv2d_ref(bn_relu(h, params['out_scale'], params['out_shift']),
                    params['out_w'], params['out_b'], 1)
    return jnp.transpose(y, (0, 3, 1, 2))


# ---------------------------------------------------------------------------

if __name__ == "__main__":
    N, n_channels, L = 2, 4, 16          # input (N, n_channels, L, L)
    width, num_blocks = 16, 3            # exercises dilation rates 1, 2, 4

    key = jax.random.PRNGKey(0)
    pkey, xkey = jax.random.split(key)
    params = init_params(pkey, n_channels, width, num_blocks)
    x = jax.random.normal(xkey, (N, n_channels, L, L), jnp.float32)

    y = deepcon_forward_pallas(x, params)
    y = jax.block_until_ready(y)
    assert y.shape == (N, 1, L, L), y.shape

    y_ref = deepcon_forward_ref(x, params)
    max_err = float(jnp.max(jnp.abs(y - y_ref)))
    assert max_err < 1e-3, f"mismatch vs reference: max_err={max_err}"

    print("KERNEL_OK")
</pallas_src>

<mosaic_0001>
module attributes {stable_mosaic.version = 11 : i64} {
  func.func @_deepcon_kernel(%arg0: i32, %arg1: memref<1x8x640xf32, #tpu.memory_space<vmem>>, %arg2: memref<1x640xf32, #tpu.memory_space<vmem>>, %arg3: memref<8x1xf32, #tpu.memory_space<vmem>>, %arg4: memref<8x1xf32, #tpu.memory_space<vmem>>, %arg5: memref<16x8xf32, #tpu.memory_space<vmem>>, %arg6: memref<16x1xf32, #tpu.memory_space<vmem>>, %arg7: memref<3x16x1xf32, #tpu.memory_space<vmem>>, %arg8: memref<3x16x1xf32, #tpu.memory_space<vmem>>, %arg9: memref<3x9x16x16xf32, #tpu.memory_space<vmem>>, %arg10: memref<3x16x1xf32, #tpu.memory_space<vmem>>, %arg11: memref<3x9x16x16xf32, #tpu.memory_space<vmem>>, %arg12: memref<3x16x1xf32, #tpu.memory_space<vmem>>, %arg13: memref<16x1xf32, #tpu.memory_space<vmem>>, %arg14: memref<16x1xf32, #tpu.memory_space<vmem>>, %arg15: memref<9x8x16xf32, #tpu.memory_space<vmem>>, %arg16: memref<8x1xf32, #tpu.memory_space<vmem>>, %arg17: memref<1x1x640xf32, #tpu.memory_space<vmem>>) attributes {dimension_semantics = [#tpu.dimension_semantics<parallel>], iteration_bounds = array<i64: 2>, scalar_prefetch = 0 : i64, scratch_operands = 0 : i64, tpu.core_type = #tpu.core_type<tc>, window_params = [{transform_indices = @transform_0, window_bounds = array<i64: 1, 8, 640>}, {pipeline_mode = #tpu.pipeline_mode<synchronous>, transform_indices = @transform_1, window_bounds = array<i64: 1, 640>}, {pipeline_mode = #tpu.pipeline_mode<synchronous>, transform_indices = @transform_2, window_bounds = array<i64: 8, 1>}, {pipeline_mode = #tpu.pipeline_mode<synchronous>, transform_indices = @transform_3, window_bounds = array<i64: 8, 1>}, {pipeline_mode = #tpu.pipeline_mode<synchronous>, transform_indices = @transform_4, window_bounds = array<i64: 16, 8>}, {pipeline_mode = #tpu.pipeline_mode<synchronous>, transform_indices = @transform_5, window_bounds = array<i64: 16, 1>}, {pipeline_mode = #tpu.pipeline_mode<synchronous>, transform_indices = @transform_6, window_bounds = array<i64: 3, 16, 1>}, {pipeline_mode = #tpu.pipeline_mode<synchronous>, transform_indices = @transform_7, window_bounds = array<i64: 3, 16, 1>}, {pipeline_mode = #tpu.pipeline_mode<synchronous>, transform_indices = @transform_8, window_bounds = array<i64: 3, 9, 16, 16>}, {pipeline_mode = #tpu.pipeline_mode<synchronous>, transform_indices = @transform_9, window_bounds = array<i64: 3, 16, 1>}, {pipeline_mode = #tpu.pipeline_mode<synchronous>, transform_indices = @transform_10, window_bounds = array<i64: 3, 9, 16, 16>}, {pipeline_mode = #tpu.pipeline_mode<synchronous>, transform_indices = @transform_11, window_bounds = array<i64: 3, 16, 1>}, {pipeline_mode = #tpu.pipeline_mode<synchronous>, transform_indices = @transform_12, window_bounds = array<i64: 16, 1>}, {pipeline_mode = #tpu.pipeline_mode<synchronous>, transform_indices = @transform_13, window_bounds = array<i64: 16, 1>}, {pipeline_mode = #tpu.pipeline_mode<synchronous>, transform_indices = @transform_14, window_bounds = array<i64: 9, 8, 16>}, {pipeline_mode = #tpu.pipeline_mode<synchronous>, transform_indices = @transform_15, window_bounds = array<i64: 8, 1>}, {transform_indices = @transform_16, window_bounds = array<i64: 1, 1, 640>}]} {
    %c0 = arith.constant 0 : index
    %c0_0 = arith.constant 0 : index
    %0 = vector.load %arg2[%c0, %c0_0] : memref<1x640xf32, #tpu.memory_space<vmem>>, vector<1x640xf32>
    %c0_1 = arith.constant 0 : index
    %c0_2 = arith.constant 0 : index
    %c0_3 = arith.constant 0 : index
    %1 = vector.load %arg1[%c0_1, %c0_2, %c0_3] : memref<1x8x640xf32, #tpu.memory_space<vmem>>, vector<1x8x640xf32>
    %2 = vector.shape_cast %1 : vector<1x8x640xf32> to vector<8x640xf32>
    %c0_4 = arith.constant 0 : index
    %c0_5 = arith.constant 0 : index
    %3 = vector.load %arg3[%c0_4, %c0_5] : memref<8x1xf32, #tpu.memory_space<vmem>>, vector<8x1xf32>
    %c0_6 = arith.constant 0 : index
    %c0_7 = arith.constant 0 : index
    %4 = vector.load %arg4[%c0_6, %c0_7] : memref<8x1xf32, #tpu.memory_space<vmem>>, vector<8x1xf32>
    %5 = vector.broadcast %3 : vector<8x1xf32> to vector<8x640xf32>
    %6 = arith.mulf %2, %5 : vector<8x640xf32>
    %7 = vector.broadcast %4 : vector<8x1xf32> to vector<8x640xf32>
    %8 = arith.addf %6, %7 : vector<8x640xf32>
    %cst = arith.constant 0.000000e+00 : f32
    %9 = vector.broadcast %cst : f32 to vector<8x640xf32>
    %10 = arith.maximumf %8, %9 : vector<8x640xf32>
    %11 = vector.broadcast %0 : vector<1x640xf32> to vector<8x640xf32>
    %12 = arith.mulf %10, %11 : vector<8x640xf32>
    %c0_8 = arith.constant 0 : index
    %c0_9 = arith.constant 0 : index
    %13 = vector.load %arg5[%c0_8, %c0_9] : memref<16x8xf32, #tpu.memory_space<vmem>>, vector<16x8xf32>
    %cst_10 = arith.constant dense<0.000000e+00> : vector<16x640xf32>
    %14 = tpu.matmul %13, %12, %cst_10 {dimension_numbers = #tpu.dot_dimension_numbers<[1], [0], [0], [1], [0, 0, 1, 1], [], []>} : vector<16x8xf32>, vector<8x640xf32>, vector<16x640xf32> -> vector<16x640xf32>
    %c0_11 = arith.constant 0 : index
    %c0_12 = arith.constant 0 : index
    %15 = vector.load %arg6[%c0_11, %c0_12] : memref<16x1xf32, #tpu.memory_space<vmem>>, vector<16x1xf32>
    %16 = vector.broadcast %15 : vector<16x1xf32> to vector<16x640xf32>
    %17 = arith.addf %14, %16 : vector<16x640xf32>
    %c0_13 = arith.constant 0 : index
    %c0_14 = arith.constant 0 : index
    %c0_15 = arith.constant 0 : index
    %18 = vector.load %arg7[%c0_13, %c0_14, %c0_15] : memref<3x16x1xf32, #tpu.memory_space<vmem>>, vector<1x16x1xf32>
    %19 = vector.shape_cast %18 : vector<1x16x1xf32> to vector<16x1xf32>
    %c0_16 = arith.constant 0 : index
    %c0_17 = arith.constant 0 : index
    %c0_18 = arith.constant 0 : index
    %20 = vector.load %arg8[%c0_16, %c0_17, %c0_18] : memref<3x16x1xf32, #tpu.memory_space<vmem>>, vector<1x16x1xf32>
    %21 = vector.shape_cast %20 : vector<1x16x1xf32> to vector<16x1xf32>
    %22 = vector.broadcast %19 : vector<16x1xf32> to vector<16x640xf32>
    %23 = arith.mulf %17, %22 : vector<16x640xf32>
    %24 = vector.broadcast %21 : vector<16x1xf32> to vector<16x640xf32>
    %25 = arith.addf %23, %24 : vector<16x640xf32>
    %cst_19 = arith.constant 0.000000e+00 : f32
    %26 = vector.broadcast %cst_19 : f32 to vector<16x640xf32>
    %27 = arith.maximumf %25, %26 : vector<16x640xf32>
    %28 = vector.broadcast %0 : vector<1x640xf32> to vector<16x640xf32>
    %29 = arith.mulf %27, %28 : vector<16x640xf32>
    %c0_20 = arith.constant 0 : index
    %c0_21 = arith.constant 0 : index
    %c0_22 = arith.constant 0 : index
    %30 = vector.load %arg10[%c0_20, %c0_21, %c0_22] : memref<3x16x1xf32, #tpu.memory_space<vmem>>, vector<1x16x1xf32>
    %31 = vector.shape_cast %30 : vector<1x16x1xf32> to vector<16x1xf32>
    %c0_23 = arith.constant 0 : index
    %c0_24 = arith.constant 0 : index
    %c0_25 = arith.constant 0 : index
    %c0_26 = arith.constant 0 : index
    %32 = vector.load %arg9[%c0_23, %c0_24, %c0_25, %c0_26] : memref<3x9x16x16xf32, #tpu.memory_space<vmem>>, vector<1x1x16x16xf32>
    %33 = vector.shape_cast %32 : vector<1x1x16x16xf32> to vector<16x16xf32>
    %c25_i32 = arith.constant 25 : i32
    %34 = tpu.dynamic_rotate %29 by %c25_i32 dim 1 : vector<16x640xf32>, i32 -> vector<16x640xf32>
    %cst_27 = arith.constant dense<0.000000e+00> : vector<16x640xf32>
    %35 = tpu.matmul %33, %34, %cst_27 {dimension_numbers = #tpu.dot_dimension_numbers<[1], [0], [0], [1], [0, 0, 1, 1], [], []>} : vector<16x16xf32>, vector<16x640xf32>, vector<16x640xf32> -> vector<16x640xf32>
    %c0_28 = arith.constant 0 : index
    %c1 = arith.constant 1 : index
    %c0_29 = arith.constant 0 : index
    %c0_30 = arith.constant 0 : index
    %36 = vector.load %arg9[%c0_28, %c1, %c0_29, %c0_30] : memref<3x9x16x16xf32, #tpu.memory_space<vmem>>, vector<1x1x16x16xf32>
    %37 = vector.shape_cast %36 : vector<1x1x16x16xf32> to vector<16x16xf32>
    %c24_i32 = arith.constant 24 : i32
    %38 = tpu.dynamic_rotate %29 by %c24_i32 dim 1 : vector<16x640xf32>, i32 -> vector<16x640xf32>
    %cst_31 = arith.constant dense<0.000000e+00> : vector<16x640xf32>
    %39 = tpu.matmul %37, %38, %cst_31 {dimension_numbers = #tpu.dot_dimension_numbers<[1], [0], [0], [1], [0, 0, 1, 1], [], []>} : vector<16x16xf32>, vector<16x640xf32>, vector<16x640xf32> -> vector<16x640xf32>
    %40 = arith.addf %35, %39 : vector<16x640xf32>
    %c0_32 = arith.constant 0 : index
    %c2 = arith.constant 2 : index
    %c0_33 = arith.constant 0 : index
    %c0_34 = arith.constant 0 : index
    %41 = vector.load %arg9[%c0_32, %c2, %c0_33, %c0_34] : memref<3x9x16x16xf32, #tpu.memory_space<vmem>>, vector<1x1x16x16xf32>
    %42 = vector.shape_cast %41 : vector<1x1x16x16xf32> to vector<16x16xf32>
    %c23_i32 = arith.constant 23 : i32
    %43 = tpu.dynamic_rotate %29 by %c23_i32 dim 1 : vector<16x640xf32>, i32 -> vector<16x640xf32>
    %cst_35 = arith.constant dense<0.000000e+00> : vector<16x640xf32>
    %44 = tpu.matmul %42, %43, %cst_35 {dimension_numbers = #tpu.dot_dimension_numbers<[1], [0], [0], [1], [0, 0, 1, 1], [], []>} : vector<16x16xf32>, vector<16x640xf32>, vector<16x640xf32> -> vector<16x640xf32>
    %45 = arith.addf %40, %44 : vector<16x640xf32>
    %c0_36 = arith.constant 0 : index
    %c3 = arith.constant 3 : index
    %c0_37 = arith.constant 0 : index
    %c0_38 = arith.constant 0 : index
    %46 = vector.load %arg9[%c0_36, %c3, %c0_37, %c0_38] : memref<3x9x16x16xf32, #tpu.memory_space<vmem>>, vector<1x1x16x16xf32>
    %47 = vector.shape_cast %46 : vector<1x1x16x16xf32> to vector<16x16xf32>
    %c1_i32 = arith.constant 1 : i32
    %48 = tpu.dynamic_rotate %29 by %c1_i32 dim 1 : vector<16x640xf32>, i32 -> vector<16x640xf32>
    %cst_39 = arith.constant dense<0.000000e+00> : vector<16x640xf32>
    %49 = tpu.matmul %47, %48, %cst_39 {dimension_numbers = #tpu.dot_dimension_numbers<[1], [0], [0], [1], [0, 0, 1, 1], [], []>} : vector<16x16xf32>, vector<16x640xf32>, vector<16x640xf32> -> vector<16x640xf32>
    %50 = arith.addf %45, %49 : vector<16x640xf32>
    %c0_40 = arith.constant 0 : index
    %c4 = arith.constant 4 : index
    %c0_41 = arith.constant 0 : index
    %c0_42 = arith.constant 0 : index
    %51 = vector.load %arg9[%c0_40, %c4, %c0_41, %c0_42] : memref<3x9x16x16xf32, #tpu.memory_space<vmem>>, vector<1x1x16x16xf32>
    %52 = vector.shape_cast %51 : vector<1x1x16x16xf32> to vector<16x16xf32>
    %cst_43 = arith.constant dense<0.000000e+00> : vector<16x640xf32>
    %53 = tpu.matmul %52, %29, %cst_43 {dimension_numbers = #tpu.dot_dimension_numbers<[1], [0], [0], [1], [0, 0, 1, 1], [], []>} : vector<16x16xf32>, vector<16x640xf32>, vector<16x640xf32> -> vector<16x640xf32>
    %54 = arith.addf %50, %53 : vector<16x640xf32>
    %c0_44 = arith.constant 0 : index
    %c5 = arith.constant 5 : index
    %c0_45 = arith.constant 0 : index
    %c0_46 = arith.constant 0 : index
    %55 = vector.load %arg9[%c0_44, %c5, %c0_45, %c0_46] : memref<3x9x16x16xf32, #tpu.memory_space<vmem>>, vector<1x1x16x16xf32>
    %56 = vector.shape_cast %55 : vector<1x1x16x16xf32> to vector<16x16xf32>
    %c639_i32 = arith.constant 639 : i32
    %57 = tpu.dynamic_rotate %29 by %c639_i32 dim 1 : vector<16x640xf32>, i32 -> vector<16x640xf32>
    %cst_47 = arith.constant dense<0.000000e+00> : vector<16x640xf32>
    %58 = tpu.matmul %56, %57, %cst_47 {dimension_numbers = #tpu.dot_dimension_numbers<[1], [0], [0], [1], [0, 0, 1, 1], [], []>} : vector<16x16xf32>, vector<16x640xf32>, vector<16x640xf32> -> vector<16x640xf32>
    %59 = arith.addf %54, %58 : vector<16x640xf32>
    %c0_48 = arith.constant 0 : index
    %c6 = arith.constant 6 : index
    %c0_49 = arith.constant 0 : index
    %c0_50 = arith.constant 0 : index
    %60 = vector.load %arg9[%c0_48, %c6, %c0_49, %c0_50] : memref<3x9x16x16xf32, #tpu.memory_space<vmem>>, vector<1x1x16x16xf32>
    %61 = vector.shape_cast %60 : vector<1x1x16x16xf32> to vector<16x16xf32>
    %c617_i32 = arith.constant 617 : i32
    %62 = tpu.dynamic_rotate %29 by %c617_i32 dim 1 : vector<16x640xf32>, i32 -> vector<16x640xf32>
    %cst_51 = arith.constant dense<0.000000e+00> : vector<16x640xf32>
    %63 = tpu.matmul %61, %62, %cst_51 {dimension_numbers = #tpu.dot_dimension_numbers<[1], [0], [0], [1], [0, 0, 1, 1], [], []>} : vector<16x16xf32>, vector<16x640xf32>, vector<16x640xf32> -> vector<16x640xf32>
    %64 = arith.addf %59, %63 : vector<16x640xf32>
    %c0_52 = arith.constant 0 : index
    %c7 = arith.constant 7 : index
    %c0_53 = arith.constant 0 : index
    %c0_54 = arith.constant 0 : index
    %65 = vector.load %arg9[%c0_52, %c7, %c0_53, %c0_54] : memref<3x9x16x16xf32, #tpu.memory_space<vmem>>, vector<1x1x16x16xf32>
    %66 = vector.shape_cast %65 : vector<1x1x16x16xf32> to vector<16x16xf32>
    %c616_i32 = arith.constant 616 : i32
    %67 = tpu.dynamic_rotate %29 by %c616_i32 dim 1 : vector<16x640xf32>, i32 -> vector<16x640xf32>
    %cst_55 = arith.constant dense<0.000000e+00> : vector<16x640xf32>
    %68 = tpu.matmul %66, %67, %cst_55 {dimension_numbers = #tpu.dot_dimension_numbers<[1], [0], [0], [1], [0, 0, 1, 1], [], []>} : vector<16x16xf32>, vector<16x640xf32>, vector<16x640xf32> -> vector<16x640xf32>
    %69 = arith.addf %64, %68 : vector<16x640xf32>
    %c0_56 = arith.constant 0 : index
    %c8 = arith.constant 8 : index
    %c0_57 = arith.constant 0 : index
    %c0_58 = arith.constant 0 : index
    %70 = vector.load %arg9[%c0_56, %c8, %c0_57, %c0_58] : memref<3x9x16x16xf32, #tpu.memory_space<vmem>>, vector<1x1x16x16xf32>
    %71 = vector.shape_cast %70 : vector<1x1x16x16xf32> to vector<16x16xf32>
    %c615_i32 = arith.constant 615 : i32
    %72 = tpu.dynamic_rotate %29 by %c615_i32 dim 1 : vector<16x640xf32>, i32 -> vector<16x640xf32>
    %cst_59 = arith.constant dense<0.000000e+00> : vector<16x640xf32>
    %73 = tpu.matmul %71, %72, %cst_59 {dimension_numbers = #tpu.dot_dimension_numbers<[1], [0], [0], [1], [0, 0, 1, 1], [], []>} : vector<16x16xf32>, vector<16x640xf32>, vector<16x640xf32> -> vector<16x640xf32>
    %74 = arith.addf %69, %73 : vector<16x640xf32>
    %75 = vector.broadcast %31 : vector<16x1xf32> to vector<16x640xf32>
    %76 = arith.addf %74, %75 : vector<16x640xf32>
    %cst_60 = arith.constant 0.000000e+00 : f32
    %77 = vector.broadcast %cst_60 : f32 to vector<16x640xf32>
    %78 = arith.maximumf %76, %77 : vector<16x640xf32>
    %79 = vector.broadcast %0 : vector<1x640xf32> to vector<16x640xf32>
    %80 = arith.mulf %78, %79 : vector<16x640xf32>
    %c0_61 = arith.constant 0 : index
    %c0_62 = arith.constant 0 : index
    %c0_63 = arith.constant 0 : index
    %81 = vector.load %arg12[%c0_61, %c0_62, %c0_63] : memref<3x16x1xf32, #tpu.memory_space<vmem>>, vector<1x16x1xf32>
    %82 = vector.shape_cast %81 : vector<1x16x1xf32> to vector<16x1xf32>
    %c0_64 = arith.constant 0 : index
    %c0_65 = arith.constant 0 : index
    %c0_66 = arith.constant 0 : index
    %c0_67 = arith.constant 0 : index
    %83 = vector.load %arg11[%c0_64, %c0_65, %c0_66, %c0_67] : memref<3x9x16x16xf32, #tpu.memory_space<vmem>>, vector<1x1x16x16xf32>
    %84 = vector.shape_cast %83 : vector<1x1x16x16xf32> to vector<16x16xf32>
    %c25_i32_68 = arith.constant 25 : i32
    %85 = tpu.dynamic_rotate %80 by %c25_i32_68 dim 1 : vector<16x640xf32>, i32 -> vector<16x640xf32>
    %cst_69 = arith.constant dense<0.000000e+00> : vector<16x640xf32>
    %86 = tpu.matmul %84, %85, %cst_69 {dimension_numbers = #tpu.dot_dimension_numbers<[1], [0], [0], [1], [0, 0, 1, 1], [], []>} : vector<16x16xf32>, vector<16x640xf32>, vector<16x640xf32> -> vector<16x640xf32>
    %c0_70 = arith.constant 0 : index
    %c1_71 = arith.constant 1 : index
    %c0_72 = arith.constant 0 : index
    %c0_73 = arith.constant 0 : index
    %87 = vector.load %arg11[%c0_70, %c1_71, %c0_72, %c0_73] : memref<3x9x16x16xf32, #tpu.memory_space<vmem>>, vector<1x1x16x16xf32>
    %88 = vector.shape_cast %87 : vector<1x1x16x16xf32> to vector<16x16xf32>
    %c24_i32_74 = arith.constant 24 : i32
    %89 = tpu.dynamic_rotate %80 by %c24_i32_74 dim 1 : vector<16x640xf32>, i32 -> vector<16x640xf32>
    %cst_75 = arith.constant dense<0.000000e+00> : vector<16x640xf32>
    %90 = tpu.matmul %88, %89, %cst_75 {dimension_numbers = #tpu.dot_dimension_numbers<[1], [0], [0], [1], [0, 0, 1, 1], [], []>} : vector<16x16xf32>, vector<16x640xf32>, vector<16x640xf32> -> vector<16x640xf32>
    %91 = arith.addf %86, %90 : vector<16x640xf32>
    %c0_76 = arith.constant 0 : index
    %c2_77 = arith.constant 2 : index
    %c0_78 = arith.constant 0 : index
    %c0_79 = arith.constant 0 : index
    %92 = vector.load %arg11[%c0_76, %c2_77, %c0_78, %c0_79] : memref<3x9x16x16xf32, #tpu.memory_space<vmem>>, vector<1x1x16x16xf32>
    %93 = vector.shape_cast %92 : vector<1x1x16x16xf32> to vector<16x16xf32>
    %c23_i32_80 = arith.constant 23 : i32
    %94 = tpu.dynamic_rotate %80 by %c23_i32_80 dim 1 : vector<16x640xf32>, i32 -> vector<16x640xf32>
    %cst_81 = arith.constant dense<0.000000e+00> : vector<16x640xf32>
    %95 = tpu.matmul %93, %94, %cst_81 {dimension_numbers = #tpu.dot_dimension_numbers<[1], [0], [0], [1], [0, 0, 1, 1], [], []>} : vector<16x16xf32>, vector<16x640xf32>, vector<16x640xf32> -> vector<16x640xf32>
    %96 = arith.addf %91, %95 : vector<16x640xf32>
    %c0_82 = arith.constant 0 : index
    %c3_83 = arith.constant 3 : index
    %c0_84 = arith.constant 0 : index
    %c0_85 = arith.constant 0 : index
    %97 = vector.load %arg11[%c0_82, %c3_83, %c0_84, %c0_85] : memref<3x9x16x16xf32, #tpu.memory_space<vmem>>, vector<1x1x16x16xf32>
    %98 = vector.shape_cast %97 : vector<1x1x16x16xf32> to vector<16x16xf32>
    %c1_i32_86 = arith.constant 1 : i32
    %99 = tpu.dynamic_rotate %80 by %c1_i32_86 dim 1 : vector<16x640xf32>, i32 -> vector<16x640xf32>
    %cst_87 = arith.constant dense<0.000000e+00> : vector<16x640xf32>
    %100 = tpu.matmul %98, %99, %cst_87 {dimension_numbers = #tpu.dot_dimension_numbers<[1], [0], [0], [1], [0, 0, 1, 1], [], []>} : vector<16x16xf32>, vector<16x640xf32>, vector<16x640xf32> -> vector<16x640xf32>
    %101 = arith.addf %96, %100 : vector<16x640xf32>
    %c0_88 = arith.constant 0 : index
    %c4_89 = arith.constant 4 : index
    %c0_90 = arith.constant 0 : index
    %c0_91 = arith.constant 0 : index
    %102 = vector.load %arg11[%c0_88, %c4_89, %c0_90, %c0_91] : memref<3x9x16x16xf32, #tpu.memory_space<vmem>>, vector<1x1x16x16xf32>
    %103 = vector.shape_cast %102 : vector<1x1x16x16xf32> to vector<16x16xf32>
    %cst_92 = arith.constant dense<0.000000e+00> : vector<16x640xf32>
    %104 = tpu.matmul %103, %80, %cst_92 {dimension_numbers = #tpu.dot_dimension_numbers<[1], [0], [0], [1], [0, 0, 1, 1], [], []>} : vector<16x16xf32>, vector<16x640xf32>, vector<16x640xf32> -> vector<16x640xf32>
    %105 = arith.addf %101, %104 : vector<16x640xf32>
    %c0_93 = arith.constant 0 : index
    %c5_94 = arith.constant 5 : index
    %c0_95 = arith.constant 0 : index
    %c0_96 = arith.constant 0 : index
    %106 = vector.load %arg11[%c0_93, %c5_94, %c0_95, %c0_96] : memref<3x9x16x16xf32, #tpu.memory_space<vmem>>, vector<1x1x16x16xf32>
    %107 = vector.shape_cast %106 : vector<1x1x16x16xf32> to vector<16x16xf32>
    %c639_i32_97 = arith.constant 639 : i32
    %108 = tpu.dynamic_rotate %80 by %c639_i32_97 dim 1 : vector<16x640xf32>, i32 -> vector<16x640xf32>
    %cst_98 = arith.constant dense<0.000000e+00> : vector<16x640xf32>
    %109 = tpu.matmul %107, %108, %cst_98 {dimension_numbers = #tpu.dot_dimension_numbers<[1], [0], [0], [1], [0, 0, 1, 1], [], []>} : vector<16x16xf32>, vector<16x640xf32>, vector<16x640xf32> -> vector<16x640xf32>
    %110 = arith.addf %105, %109 : vector<16x640xf32>
    %c0_99 = arith.constant 0 : index
    %c6_100 = arith.constant 6 : index
    %c0_101 = arith.constant 0 : index
    %c0_102 = arith.constant 0 : index
    %111 = vector.load %arg11[%c0_99, %c6_100, %c0_101, %c0_102] : memref<3x9x16x16xf32, #tpu.memory_space<vmem>>, vector<1x1x16x16xf32>
    %112 = vector.shape_cast %111 : vector<1x1x16x16xf32> to vector<16x16xf32>
    %c617_i32_103 = arith.constant 617 : i32
    %113 = tpu.dynamic_rotate %80 by %c617_i32_103 dim 1 : vector<16x640xf32>, i32 -> vector<16x640xf32>
    %cst_104 = arith.constant dense<0.000000e+00> : vector<16x640xf32>
    %114 = tpu.matmul %112, %113, %cst_104 {dimension_numbers = #tpu.dot_dimension_numbers<[1], [0], [0], [1], [0, 0, 1, 1], [], []>} : vector<16x16xf32>, vector<16x640xf32>, vector<16x640xf32> -> vector<16x640xf32>
    %115 = arith.addf %110, %114 : vector<16x640xf32>
    %c0_105 = arith.constant 0 : index
    %c7_106 = arith.constant 7 : index
    %c0_107 = arith.constant 0 : index
    %c0_108 = arith.constant 0 : index
    %116 = vector.load %arg11[%c0_105, %c7_106, %c0_107, %c0_108] : memref<3x9x16x16xf32, #tpu.memory_space<vmem>>, vector<1x1x16x16xf32>
    %117 = vector.shape_cast %116 : vector<1x1x16x16xf32> to vector<16x16xf32>
    %c616_i32_109 = arith.constant 616 : i32
    %118 = tpu.dynamic_rotate %80 by %c616_i32_109 dim 1 : vector<16x640xf32>, i32 -> vector<16x640xf32>
    %cst_110 = arith.constant dense<0.000000e+00> : vector<16x640xf32>
    %119 = tpu.matmul %117, %118, %cst_110 {dimension_numbers = #tpu.dot_dimension_numbers<[1], [0], [0], [1], [0, 0, 1, 1], [], []>} : vector<16x16xf32>, vector<16x640xf32>, vector<16x640xf32> -> vector<16x640xf32>
    %120 = arith.addf %115, %119 : vector<16x640xf32>
    %c0_111 = arith.constant 0 : index
    %c8_112 = arith.constant 8 : index
    %c0_113 = arith.constant 0 : index
    %c0_114 = arith.constant 0 : index
    %121 = vector.load %arg11[%c0_111, %c8_112, %c0_113, %c0_114] : memref<3x9x16x16xf32, #tpu.memory_space<vmem>>, vector<1x1x16x16xf32>
    %122 = vector.shape_cast %121 : vector<1x1x16x16xf32> to vector<16x16xf32>
    %c615_i32_115 = arith.constant 615 : i32
    %123 = tpu.dynamic_rotate %80 by %c615_i32_115 dim 1 : vector<16x640xf32>, i32 -> vector<16x640xf32>
    %cst_116 = arith.constant dense<0.000000e+00> : vector<16x640xf32>
    %124 = tpu.matmul %122, %123, %cst_116 {dimension_numbers = #tpu.dot_dimension_numbers<[1], [0], [0], [1], [0, 0, 1, 1], [], []>} : vector<16x16xf32>, vector<16x640xf32>, vector<16x640xf32> -> vector<16x640xf32>
    %125 = arith.addf %120, %124 : vector<16x640xf32>
    %126 = vector.broadcast %82 : vector<16x1xf32> to vector<16x640xf32>
    %127 = arith.addf %125, %126 : vector<16x640xf32>
    %c1_117 = arith.constant 1 : index
    %c0_118 = arith.constant 0 : index
    %c0_119 = arith.constant 0 : index
    %128 = vector.load %arg7[%c1_117, %c0_118, %c0_119] : memref<3x16x1xf32, #tpu.memory_space<vmem>>, vector<1x16x1xf32>
    %129 = vector.shape_cast %128 : vector<1x16x1xf32> to vector<16x1xf32>
    %c1_120 = arith.constant 1 : index
    %c0_121 = arith.constant 0 : index
    %c0_122 = arith.constant 0 : index
    %130 = vector.load %arg8[%c1_120, %c0_121, %c0_122] : memref<3x16x1xf32, #tpu.memory_space<vmem>>, vector<1x16x1xf32>
    %131 = vector.shape_cast %130 : vector<1x16x1xf32> to vector<16x1xf32>
    %132 = vector.broadcast %129 : vector<16x1xf32> to vector<16x640xf32>
    %133 = arith.mulf %127, %132 : vector<16x640xf32>
    %134 = vector.broadcast %131 : vector<16x1xf32> to vector<16x640xf32>
    %135 = arith.addf %133, %134 : vector<16x640xf32>
    %cst_123 = arith.constant 0.000000e+00 : f32
    %136 = vector.broadcast %cst_123 : f32 to vector<16x640xf32>
    %137 = arith.maximumf %135, %136 : vector<16x640xf32>
    %138 = vector.broadcast %0 : vector<1x640xf32> to vector<16x640xf32>
    %139 = arith.mulf %137, %138 : vector<16x640xf32>
    %c1_124 = arith.constant 1 : index
    %c0_125 = arith.constant 0 : index
    %c0_126 = arith.constant 0 : index
    %140 = vector.load %arg10[%c1_124, %c0_125, %c0_126] : memref<3x16x1xf32, #tpu.memory_space<vmem>>, vector<1x16x1xf32>
    %141 = vector.shape_cast %140 : vector<1x16x1xf32> to vector<16x1xf32>
    %c1_127 = arith.constant 1 : index
    %c0_128 = arith.constant 0 : index
    %c0_129 = arith.constant 0 : index
    %c0_130 = arith.constant 0 : index
    %142 = vector.load %arg9[%c1_127, %c0_128, %c0_129, %c0_130] : memref<3x9x16x16xf32, #tpu.memory_space<vmem>>, vector<1x1x16x16xf32>
    %143 = vector.shape_cast %142 : vector<1x1x16x16xf32> to vector<16x16xf32>
    %c25_i32_131 = arith.constant 25 : i32
    %144 = tpu.dynamic_rotate %139 by %c25_i32_131 dim 1 : vector<16x640xf32>, i32 -> vector<16x640xf32>
    %cst_132 = arith.constant dense<0.000000e+00> : vector<16x640xf32>
    %145 = tpu.matmul %143, %144, %cst_132 {dimension_numbers = #tpu.dot_dimension_numbers<[1], [0], [0], [1], [0, 0, 1, 1], [], []>} : vector<16x16xf32>, vector<16x640xf32>, vector<16x640xf32> -> vector<16x640xf32>
    %c1_133 = arith.constant 1 : index
    %c1_134 = arith.constant 1 : index
    %c0_135 = arith.constant 0 : index
    %c0_136 = arith.constant 0 : index
    %146 = vector.load %arg9[%c1_133, %c1_134, %c0_135, %c0_136] : memref<3x9x16x16xf32, #tpu.memory_space<vmem>>, vector<1x1x16x16xf32>
    %147 = vector.shape_cast %146 : vector<1x1x16x16xf32> to vector<16x16xf32>
    %c24_i32_137 = arith.constant 24 : i32
    %148 = tpu.dynamic_rotate %139 by %c24_i32_137 dim 1 : vector<16x640xf32>, i32 -> vector<16x640xf32>
    %cst_138 = arith.constant dense<0.000000e+00> : vector<16x640xf32>
    %149 = tpu.matmul %147, %148, %cst_138 {dimension_numbers = #tpu.dot_dimension_numbers<[1], [0], [0], [1], [0, 0, 1, 1], [], []>} : vector<16x16xf32>, vector<16x640xf32>, vector<16x640xf32> -> vector<16x640xf32>
    %150 = arith.addf %145, %149 : vector<16x640xf32>
    %c1_139 = arith.constant 1 : index
    %c2_140 = arith.constant 2 : index
    %c0_141 = arith.constant 0 : index
    %c0_142 = arith.constant 0 : index
    %151 = vector.load %arg9[%c1_139, %c2_140, %c0_141, %c0_142] : memref<3x9x16x16xf32, #tpu.memory_space<vmem>>, vector<1x1x16x16xf32>
    %152 = vector.shape_cast %151 : vector<1x1x16x16xf32> to vector<16x16xf32>
    %c23_i32_143 = arith.constant 23 : i32
    %153 = tpu.dynamic_rotate %139 by %c23_i32_143 dim 1 : vector<16x640xf32>, i32 -> vector<16x640xf32>
    %cst_144 = arith.constant dense<0.000000e+00> : vector<16x640xf32>
    %154 = tpu.matmul %152, %153, %cst_144 {dimension_numbers = #tpu.dot_dimension_numbers<[1], [0], [0], [1], [0, 0, 1, 1], [], []>} : vector<16x16xf32>, vector<16x640xf32>, vector<16x640xf32> -> vector<16x640xf32>
    %155 = arith.addf %150, %154 : vector<16x640xf32>
    %c1_145 = arith.constant 1 : index
    %c3_146 = arith.constant 3 : index
    %c0_147 = arith.constant 0 : index
    %c0_148 = arith.constant 0 : index
    %156 = vector.load %arg9[%c1_145, %c3_146, %c0_147, %c0_148] : memref<3x9x16x16xf32, #tpu.memory_space<vmem>>, vector<1x1x16x16xf32>
    %157 = vector.shape_cast %156 : vector<1x1x16x16xf32> to vector<16x16xf32>
    %c1_i32_149 = arith.constant 1 : i32
    %158 = tpu.dynamic_rotate %139 by %c1_i32_149 dim 1 : vector<16x640xf32>, i32 -> vector<16x640xf32>
    %cst_150 = arith.constant dense<0.000000e+00> : vector<16x640xf32>
    %159 = tpu.matmul %157, %158, %cst_150 {dimension_numbers = #tpu.dot_dimension_numbers<[1], [0], [0], [1], [0, 0, 1, 1], [], []>} : vector<16x16xf32>, vector<16x640xf32>, vector<16x640xf32> -> vector<16x640xf32>
    %160 = arith.addf %155, %159 : vector<16x640xf32>
    %c1_151 = arith.constant 1 : index
    %c4_152 = arith.constant 4 : index
    %c0_153 = arith.constant 0 : index
    %c0_154 = arith.constant 0 : index
    %161 = vector.load %arg9[%c1_151, %c4_152, %c0_153, %c0_154] : memref<3x9x16x16xf32, #tpu.memory_space<vmem>>, vector<1x1x16x16xf32>
    %162 = vector.shape_cast %161 : vector<1x1x16x16xf32> to vector<16x16xf32>
    %cst_155 = arith.constant dense<0.000000e+00> : vector<16x640xf32>
    %163 = tpu.matmul %162, %139, %cst_155 {dimension_numbers = #tpu.dot_dimension_numbers<[1], [0], [0], [1], [0, 0, 1, 1], [], []>} : vector<16x16xf32>, vector<16x640xf32>, vector<16x640xf32> -> vector<16x640xf32>
    %164 = arith.addf %160, %163 : vector<16x640xf32>
    %c1_156 = arith.constant 1 : index
    %c5_157 = arith.constant 5 : index
    %c0_158 = arith.constant 0 : index
    %c0_159 = arith.constant 0 : index
    %165 = vector.load %arg9[%c1_156, %c5_157, %c0_158, %c0_159] : memref<3x9x16x16xf32, #tpu.memory_space<vmem>>, vector<1x1x16x16xf32>
    %166 = vector.shape_cast %165 : vector<1x1x16x16xf32> to vector<16x16xf32>
    %c639_i32_160 = arith.constant 639 : i32
    %167 = tpu.dynamic_rotate %139 by %c639_i32_160 dim 1 : vector<16x640xf32>, i32 -> vector<16x640xf32>
    %cst_161 = arith.constant dense<0.000000e+00> : vector<16x640xf32>
    %168 = tpu.matmul %166, %167, %cst_161 {dimension_numbers = #tpu.dot_dimension_numbers<[1], [0], [0], [1], [0, 0, 1, 1], [], []>} : vector<16x16xf32>, vector<16x640xf32>, vector<16x640xf32> -> vector<16x640xf32>
    %169 = arith.addf %164, %168 : vector<16x640xf32>
    %c1_162 = arith.constant 1 : index
    %c6_163 = arith.constant 6 : index
    %c0_164 = arith.constant 0 : index
    %c0_165 = arith.constant 0 : index
    %170 = vector.load %arg9[%c1_162, %c6_163, %c0_164, %c0_165] : memref<3x9x16x16xf32, #tpu.memory_space<vmem>>, vector<1x1x16x16xf32>
    %171 = vector.shape_cast %170 : vector<1x1x16x16xf32> to vector<16x16xf32>
    %c617_i32_166 = arith.constant 617 : i32
    %172 = tpu.dynamic_rotate %139 by %c617_i32_166 dim 1 : vector<16x640xf32>, i32 -> vector<16x640xf32>
    %cst_167 = arith.constant dense<0.000000e+00> : vector<16x640xf32>
    %173 = tpu.matmul %171, %172, %cst_167 {dimension_numbers = #tpu.dot_dimension_numbers<[1], [0], [0], [1], [0, 0, 1, 1], [], []>} : vector<16x16xf32>, vector<16x640xf32>, vector<16x640xf32> -> vector<16x640xf32>
    %174 = arith.addf %169, %173 : vector<16x640xf32>
    %c1_168 = arith.constant 1 : index
    %c7_169 = arith.constant 7 : index
    %c0_170 = arith.constant 0 : index
    %c0_171 = arith.constant 0 : index
    %175 = vector.load %arg9[%c1_168, %c7_169, %c0_170, %c0_171] : memref<3x9x16x16xf32, #tpu.memory_space<vmem>>, vector<1x1x16x16xf32>
    %176 = vector.shape_cast %175 : vector<1x1x16x16xf32> to vector<16x16xf32>
    %c616_i32_172 = arith.constant 616 : i32
    %177 = tpu.dynamic_rotate %139 by %c616_i32_172 dim 1 : vector<16x640xf32>, i32 -> vector<16x640xf32>
    %cst_173 = arith.constant dense<0.000000e+00> : vector<16x640xf32>
    %178 = tpu.matmul %176, %177, %cst_173 {dimension_numbers = #tpu.dot_dimension_numbers<[1], [0], [0], [1], [0, 0, 1, 1], [], []>} : vector<16x16xf32>, vector<16x640xf32>, vector<16x640xf32> -> vector<16x640xf32>
    %179 = arith.addf %174, %178 : vector<16x640xf32>
    %c1_174 = arith.constant 1 : index
    %c8_175 = arith.constant 8 : index
    %c0_176 = arith.constant 0 : index
    %c0_177 = arith.constant 0 : index
    %180 = vector.load %arg9[%c1_174, %c8_175, %c0_176, %c0_177] : memref<3x9x16x16xf32, #tpu.memory_space<vmem>>, vector<1x1x16x16xf32>
    %181 = vector.shape_cast %180 : vector<1x1x16x16xf32> to vector<16x16xf32>
    %c615_i32_178 = arith.constant 615 : i32
    %182 = tpu.dynamic_rotate %139 by %c615_i32_178 dim 1 : vector<16x640xf32>, i32 -> vector<16x640xf32>
    %cst_179 = arith.constant dense<0.000000e+00> : vector<16x640xf32>
    %183 = tpu.matmul %181, %182, %cst_179 {dimension_numbers = #tpu.dot_dimension_numbers<[1], [0], [0], [1], [0, 0, 1, 1], [], []>} : vector<16x16xf32>, vector<16x640xf32>, vector<16x640xf32> -> vector<16x640xf32>
    %184 = arith.addf %179, %183 : vector<16x640xf32>
    %185 = vector.broadcast %141 : vector<16x1xf32> to vector<16x640xf32>
    %186 = arith.addf %184, %185 : vector<16x640xf32>
    %cst_180 = arith.constant 0.000000e+00 : f32
    %187 = vector.broadcast %cst_180 : f32 to vector<16x640xf32>
    %188 = arith.maximumf %186, %187 : vector<16x640xf32>
    %189 = vector.broadcast %0 : vector<1x640xf32> to vector<16x640xf32>
    %190 = arith.mulf %188, %189 : vector<16x640xf32>
    %c1_181 = arith.constant 1 : index
    %c0_182 = arith.constant 0 : index
    %c0_183 = arith.constant 0 : index
    %191 = vector.load %arg12[%c1_181, %c0_182, %c0_183] : memref<3x16x1xf32, #tpu.memory_space<vmem>>, vector<1x16x1xf32>
    %192 = vector.shape_cast %191 : vector<1x16x1xf32> to vector<16x1xf32>
    %c1_184 = arith.constant 1 : index
    %c0_185 = arith.constant 0 : index
    %c0_186 = arith.constant 0 : index
    %c0_187 = arith.constant 0 : index
    %193 = vector.load %arg11[%c1_184, %c0_185, %c0_186, %c0_187] : memref<3x9x16x16xf32, #tpu.memory_space<vmem>>, vector<1x1x16x16xf32>
    %194 = vector.shape_cast %193 : vector<1x1x16x16xf32> to vector<16x16xf32>
    %c50_i32 = arith.constant 50 : i32
    %195 = tpu.dynamic_rotate %190 by %c50_i32 dim 1 : vector<16x640xf32>, i32 -> vector<16x640xf32>
    %cst_188 = arith.constant dense<0.000000e+00> : vector<16x640xf32>
    %196 = tpu.matmul %194, %195, %cst_188 {dimension_numbers = #tpu.dot_dimension_numbers<[1], [0], [0], [1], [0, 0, 1, 1], [], []>} : vector<16x16xf32>, vector<16x640xf32>, vector<16x640xf32> -> vector<16x640xf32>
    %c1_189 = arith.constant 1 : index
    %c1_190 = arith.constant 1 : index
    %c0_191 = arith.constant 0 : index
    %c0_192 = arith.constant 0 : index
    %197 = vector.load %arg11[%c1_189, %c1_190, %c0_191, %c0_192] : memref<3x9x16x16xf32, #tpu.memory_space<vmem>>, vector<1x1x16x16xf32>
    %198 = vector.shape_cast %197 : vector<1x1x16x16xf32> to vector<16x16xf32>
    %c48_i32 = arith.constant 48 : i32
    %199 = tpu.dynamic_rotate %190 by %c48_i32 dim 1 : vector<16x640xf32>, i32 -> vector<16x640xf32>
    %cst_193 = arith.constant dense<0.000000e+00> : vector<16x640xf32>
    %200 = tpu.matmul %198, %199, %cst_193 {dimension_numbers = #tpu.dot_dimension_numbers<[1], [0], [0], [1], [0, 0, 1, 1], [], []>} : vector<16x16xf32>, vector<16x640xf32>, vector<16x640xf32> -> vector<16x640xf32>
    %201 = arith.addf %196, %200 : vector<16x640xf32>
    %c1_194 = arith.constant 1 : index
    %c2_195 = arith.constant 2 : index
    %c0_196 = arith.constant 0 : index
    %c0_197 = arith.constant 0 : index
    %202 = vector.load %arg11[%c1_194, %c2_195, %c0_196, %c0_197] : memref<3x9x16x16xf32, #tpu.memory_space<vmem>>, vector<1x1x16x16xf32>
    %203 = vector.shape_cast %202 : vector<1x1x16x16xf32> to vector<16x16xf32>
    %c46_i32 = arith.constant 46 : i32
    %204 = tpu.dynamic_rotate %190 by %c46_i32 dim 1 : vector<16x640xf32>, i32 -> vector<16x640xf32>
    %cst_198 = arith.constant dense<0.000000e+00> : vector<16x640xf32>
    %205 = tpu.matmul %203, %204, %cst_198 {dimension_numbers = #tpu.dot_dimension_numbers<[1], [0], [0], [1], [0, 0, 1, 1], [], []>} : vector<16x16xf32>, vector<16x640xf32>, vector<16x640xf32> -> vector<16x640xf32>
    %206 = arith.addf %201, %205 : vector<16x640xf32>
    %c1_199 = arith.constant 1 : index
    %c3_200 = arith.constant 3 : index
    %c0_201 = arith.constant 0 : index
    %c0_202 = arith.constant 0 : index
    %207 = vector.load %arg11[%c1_199, %c3_200, %c0_201, %c0_202] : memref<3x9x16x16xf32, #tpu.memory_space<vmem>>, vector<1x1x16x16xf32>
    %208 = vector.shape_cast %207 : vector<1x1x16x16xf32> to vector<16x16xf32>
    %c2_i32 = arith.constant 2 : i32
    %209 = tpu.dynamic_rotate %190 by %c2_i32 dim 1 : vector<16x640xf32>, i32 -> vector<16x640xf32>
    %cst_203 = arith.constant dense<0.000000e+00> : vector<16x640xf32>
    %210 = tpu.matmul %208, %209, %cst_203 {dimension_numbers = #tpu.dot_dimension_numbers<[1], [0], [0], [1], [0, 0, 1, 1], [], []>} : vector<16x16xf32>, vector<16x640xf32>, vector<16x640xf32> -> vector<16x640xf32>
    %211 = arith.addf %206, %210 : vector<16x640xf32>
    %c1_204 = arith.constant 1 : index
    %c4_205 = arith.constant 4 : index
    %c0_206 = arith.constant 0 : index
    %c0_207 = arith.constant 0 : index
    %212 = vector.load %arg11[%c1_204, %c4_205, %c0_206, %c0_207] : memref<3x9x16x16xf32, #tpu.memory_space<vmem>>, vector<1x1x16x16xf32>
    %213 = vector.shape_cast %212 : vector<1x1x16x16xf32> to vector<16x16xf32>
    %cst_208 = arith.constant dense<0.000000e+00> : vector<16x640xf32>
    %214 = tpu.matmul %213, %190, %cst_208 {dimension_numbers = #tpu.dot_dimension_numbers<[1], [0], [0], [1], [0, 0, 1, 1], [], []>} : vector<16x16xf32>, vector<16x640xf32>, vector<16x640xf32> -> vector<16x640xf32>
    %215 = arith.addf %211, %214 : vector<16x640xf32>
    %c1_209 = arith.constant 1 : index
    %c5_210 = arith.constant 5 : index
    %c0_211 = arith.constant 0 : index
    %c0_212 = arith.constant 0 : index
    %216 = vector.load %arg11[%c1_209, %c5_210, %c0_211, %c0_212] : memref<3x9x16x16xf32, #tpu.memory_space<vmem>>, vector<1x1x16x16xf32>
    %217 = vector.shape_cast %216 : vector<1x1x16x16xf32> to vector<16x16xf32>
    %c638_i32 = arith.constant 638 : i32
    %218 = tpu.dynamic_rotate %190 by %c638_i32 dim 1 : vector<16x640xf32>, i32 -> vector<16x640xf32>
    %cst_213 = arith.constant dense<0.000000e+00> : vector<16x640xf32>
    %219 = tpu.matmul %217, %218, %cst_213 {dimension_numbers = #tpu.dot_dimension_numbers<[1], [0], [0], [1], [0, 0, 1, 1], [], []>} : vector<16x16xf32>, vector<16x640xf32>, vector<16x640xf32> -> vector<16x640xf32>
    %220 = arith.addf %215, %219 : vector<16x640xf32>
    %c1_214 = arith.constant 1 : index
    %c6_215 = arith.constant 6 : index
    %c0_216 = arith.constant 0 : index
    %c0_217 = arith.constant 0 : index
    %221 = vector.load %arg11[%c1_214, %c6_215, %c0_216, %c0_217] : memref<3x9x16x16xf32, #tpu.memory_space<vmem>>, vector<1x1x16x16xf32>
    %222 = vector.shape_cast %221 : vector<1x1x16x16xf32> to vector<16x16xf32>
    %c594_i32 = arith.constant 594 : i32
    %223 = tpu.dynamic_rotate %190 by %c594_i32 dim 1 : vector<16x640xf32>, i32 -> vector<16x640xf32>
    %cst_218 = arith.constant dense<0.000000e+00> : vector<16x640xf32>
    %224 = tpu.matmul %222, %223, %cst_218 {dimension_numbers = #tpu.dot_dimension_numbers<[1], [0], [0], [1], [0, 0, 1, 1], [], []>} : vector<16x16xf32>, vector<16x640xf32>, vector<16x640xf32> -> vector<16x640xf32>
    %225 = arith.addf %220, %224 : vector<16x640xf32>
    %c1_219 = arith.constant 1 : index
    %c7_220 = arith.constant 7 : index
    %c0_221 = arith.constant 0 : index
    %c0_222 = arith.constant 0 : index
    %226 = vector.load %arg11[%c1_219, %c7_220, %c0_221, %c0_222] : memref<3x9x16x16xf32, #tpu.memory_space<vmem>>, vector<1x1x16x16xf32>
    %227 = vector.shape_cast %226 : vector<1x1x16x16xf32> to vector<16x16xf32>
    %c592_i32 = arith.constant 592 : i32
    %228 = tpu.dynamic_rotate %190 by %c592_i32 dim 1 : vector<16x640xf32>, i32 -> vector<16x640xf32>
    %cst_223 = arith.constant dense<0.000000e+00> : vector<16x640xf32>
    %229 = tpu.matmul %227, %228, %cst_223 {dimension_numbers = #tpu.dot_dimension_numbers<[1], [0], [0], [1], [0, 0, 1, 1], [], []>} : vector<16x16xf32>, vector<16x640xf32>, vector<16x640xf32> -> vector<16x640xf32>
    %230 = arith.addf %225, %229 : vector<16x640xf32>
    %c1_224 = arith.constant 1 : index
    %c8_225 = arith.constant 8 : index
    %c0_226 = arith.constant 0 : index
    %c0_227 = arith.constant 0 : index
    %231 = vector.load %arg11[%c1_224, %c8_225, %c0_226, %c0_227] : memref<3x9x16x16xf32, #tpu.memory_space<vmem>>, vector<1x1x16x16xf32>
    %232 = vector.shape_cast %231 : vector<1x1x16x16xf32> to vector<16x16xf32>
    %c590_i32 = arith.constant 590 : i32
    %233 = tpu.dynamic_rotate %190 by %c590_i32 dim 1 : vector<16x640xf32>, i32 -> vector<16x640xf32>
    %cst_228 = arith.constant dense<0.000000e+00> : vector<16x640xf32>
    %234 = tpu.matmul %232, %233, %cst_228 {dimension_numbers = #tpu.dot_dimension_numbers<[1], [0], [0], [1], [0, 0, 1, 1], [], []>} : vector<16x16xf32>, vector<16x640xf32>, vector<16x640xf32> -> vector<16x640xf32>
    %235 = arith.addf %230, %234 : vector<16x640xf32>
    %236 = vector.broadcast %192 : vector<16x1xf32> to vector<16x640xf32>
    %237 = arith.addf %235, %236 : vector<16x640xf32>
    %c2_229 = arith.constant 2 : index
    %c0_230 = arith.constant 0 : index
    %c0_231 = arith.constant 0 : index
    %238 = vector.load %arg7[%c2_229, %c0_230, %c0_231] : memref<3x16x1xf32, #tpu.memory_space<vmem>>, vector<1x16x1xf32>
    %239 = vector.shape_cast %238 : vector<1x16x1xf32> to vector<16x1xf32>
    %c2_232 = arith.constant 2 : index
    %c0_233 = arith.constant 0 : index
    %c0_234 = arith.constant 0 : index
    %240 = vector.load %arg8[%c2_232, %c0_233, %c0_234] : memref<3x16x1xf32, #tpu.memory_space<vmem>>, vector<1x16x1xf32>
    %241 = vector.shape_cast %240 : vector<1x16x1xf32> to vector<16x1xf32>
    %242 = vector.broadcast %239 : vector<16x1xf32> to vector<16x640xf32>
    %243 = arith.mulf %237, %242 : vector<16x640xf32>
    %244 = vector.broadcast %241 : vector<16x1xf32> to vector<16x640xf32>
    %245 = arith.addf %243, %244 : vector<16x640xf32>
    %cst_235 = arith.constant 0.000000e+00 : f32
    %246 = vector.broadcast %cst_235 : f32 to vector<16x640xf32>
    %247 = arith.maximumf %245, %246 : vector<16x640xf32>
    %248 = vector.broadcast %0 : vector<1x640xf32> to vector<16x640xf32>
    %249 = arith.mulf %247, %248 : vector<16x640xf32>
    %c2_236 = arith.constant 2 : index
    %c0_237 = arith.constant 0 : index
    %c0_238 = arith.constant 0 : index
    %250 = vector.load %arg10[%c2_236, %c0_237, %c0_238] : memref<3x16x1xf32, #tpu.memory_space<vmem>>, vector<1x16x1xf32>
    %251 = vector.shape_cast %250 : vector<1x16x1xf32> to vector<16x1xf32>
    %c2_239 = arith.constant 2 : index
    %c0_240 = arith.constant 0 : index
    %c0_241 = arith.constant 0 : index
    %c0_242 = arith.constant 0 : index
    %252 = vector.load %arg9[%c2_239, %c0_240, %c0_241, %c0_242] : memref<3x9x16x16xf32, #tpu.memory_space<vmem>>, vector<1x1x16x16xf32>
    %253 = vector.shape_cast %252 : vector<1x1x16x16xf32> to vector<16x16xf32>
    %c25_i32_243 = arith.constant 25 : i32
    %254 = tpu.dynamic_rotate %249 by %c25_i32_243 dim 1 : vector<16x640xf32>, i32 -> vector<16x640xf32>
    %cst_244 = arith.constant dense<0.000000e+00> : vector<16x640xf32>
    %255 = tpu.matmul %253, %254, %cst_244 {dimension_numbers = #tpu.dot_dimension_numbers<[1], [0], [0], [1], [0, 0, 1, 1], [], []>} : vector<16x16xf32>, vector<16x640xf32>, vector<16x640xf32> -> vector<16x640xf32>
    %c2_245 = arith.constant 2 : index
    %c1_246 = arith.constant 1 : index
    %c0_247 = arith.constant 0 : index
    %c0_248 = arith.constant 0 : index
    %256 = vector.load %arg9[%c2_245, %c1_246, %c0_247, %c0_248] : memref<3x9x16x16xf32, #tpu.memory_space<vmem>>, vector<1x1x16x16xf32>
    %257 = vector.shape_cast %256 : vector<1x1x16x16xf32> to vector<16x16xf32>
    %c24_i32_249 = arith.constant 24 : i32
    %258 = tpu.dynamic_rotate %249 by %c24_i32_249 dim 1 : vector<16x640xf32>, i32 -> vector<16x640xf32>
    %cst_250 = arith.constant dense<0.000000e+00> : vector<16x640xf32>
    %259 = tpu.matmul %257, %258, %cst_250 {dimension_numbers = #tpu.dot_dimension_numbers<[1], [0], [0], [1], [0, 0, 1, 1], [], []>} : vector<16x16xf32>, vector<16x640xf32>, vector<16x640xf32> -> vector<16x640xf32>
    %260 = arith.addf %255, %259 : vector<16x640xf32>
    %c2_251 = arith.constant 2 : index
    %c2_252 = arith.constant 2 : index
    %c0_253 = arith.constant 0 : index
    %c0_254 = arith.constant 0 : index
    %261 = vector.load %arg9[%c2_251, %c2_252, %c0_253, %c0_254] : memref<3x9x16x16xf32, #tpu.memory_space<vmem>>, vector<1x1x16x16xf32>
    %262 = vector.shape_cast %261 : vector<1x1x16x16xf32> to vector<16x16xf32>
    %c23_i32_255 = arith.constant 23 : i32
    %263 = tpu.dynamic_rotate %249 by %c23_i32_255 dim 1 : vector<16x640xf32>, i32 -> vector<16x640xf32>
    %cst_256 = arith.constant dense<0.000000e+00> : vector<16x640xf32>
    %264 = tpu.matmul %262, %263, %cst_256 {dimension_numbers = #tpu.dot_dimension_numbers<[1], [0], [0], [1], [0, 0, 1, 1], [], []>} : vector<16x16xf32>, vector<16x640xf32>, vector<16x640xf32> -> vector<16x640xf32>
    %265 = arith.addf %260, %264 : vector<16x640xf32>
    %c2_257 = arith.constant 2 : index
    %c3_258 = arith.constant 3 : index
    %c0_259 = arith.constant 0 : index
    %c0_260 = arith.constant 0 : index
    %266 = vector.load %arg9[%c2_257, %c3_258, %c0_259, %c0_260] : memref<3x9x16x16xf32, #tpu.memory_space<vmem>>, vector<1x1x16x16xf32>
    %267 = vector.shape_cast %266 : vector<1x1x16x16xf32> to vector<16x16xf32>
    %c1_i32_261 = arith.constant 1 : i32
    %268 = tpu.dynamic_rotate %249 by %c1_i32_261 dim 1 : vector<16x640xf32>, i32 -> vector<16x640xf32>
    %cst_262 = arith.constant dense<0.000000e+00> : vector<16x640xf32>
    %269 = tpu.matmul %267, %268, %cst_262 {dimension_numbers = #tpu.dot_dimension_numbers<[1], [0], [0], [1], [0, 0, 1, 1], [], []>} : vector<16x16xf32>, vector<16x640xf32>, vector<16x640xf32> -> vector<16x640xf32>
    %270 = arith.addf %265, %269 : vector<16x640xf32>
    %c2_263 = arith.constant 2 : index
    %c4_264 = arith.constant 4 : index
    %c0_265 = arith.constant 0 : index
    %c0_266 = arith.constant 0 : index
    %271 = vector.load %arg9[%c2_263, %c4_264, %c0_265, %c0_266] : memref<3x9x16x16xf32, #tpu.memory_space<vmem>>, vector<1x1x16x16xf32>
    %272 = vector.shape_cast %271 : vector<1x1x16x16xf32> to vector<16x16xf32>
    %cst_267 = arith.constant dense<0.000000e+00> : vector<16x640xf32>
    %273 = tpu.matmul %272, %249, %cst_267 {dimension_numbers = #tpu.dot_dimension_numbers<[1], [0], [0], [1], [0, 0, 1, 1], [], []>} : vector<16x16xf32>, vector<16x640xf32>, vector<16x640xf32> -> vector<16x640xf32>
    %274 = arith.addf %270, %273 : vector<16x640xf32>
    %c2_268 = arith.constant 2 : index
    %c5_269 = arith.constant 5 : index
    %c0_270 = arith.constant 0 : index
    %c0_271 = arith.constant 0 : index
    %275 = vector.load %arg9[%c2_268, %c5_269, %c0_270, %c0_271] : memref<3x9x16x16xf32, #tpu.memory_space<vmem>>, vector<1x1x16x16xf32>
    %276 = vector.shape_cast %275 : vector<1x1x16x16xf32> to vector<16x16xf32>
    %c639_i32_272 = arith.constant 639 : i32
    %277 = tpu.dynamic_rotate %249 by %c639_i32_272 dim 1 : vector<16x640xf32>, i32 -> vector<16x640xf32>
    %cst_273 = arith.constant dense<0.000000e+00> : vector<16x640xf32>
    %278 = tpu.matmul %276, %277, %cst_273 {dimension_numbers = #tpu.dot_dimension_numbers<[1], [0], [0], [1], [0, 0, 1, 1], [], []>} : vector<16x16xf32>, vector<16x640xf32>, vector<16x640xf32> -> vector<16x640xf32>
    %279 = arith.addf %274, %278 : vector<16x640xf32>
    %c2_274 = arith.constant 2 : index
    %c6_275 = arith.constant 6 : index
    %c0_276 = arith.constant 0 : index
    %c0_277 = arith.constant 0 : index
    %280 = vector.load %arg9[%c2_274, %c6_275, %c0_276, %c0_277] : memref<3x9x16x16xf32, #tpu.memory_space<vmem>>, vector<1x1x16x16xf32>
    %281 = vector.shape_cast %280 : vector<1x1x16x16xf32> to vector<16x16xf32>
    %c617_i32_278 = arith.constant 617 : i32
    %282 = tpu.dynamic_rotate %249 by %c617_i32_278 dim 1 : vector<16x640xf32>, i32 -> vector<16x640xf32>
    %cst_279 = arith.constant dense<0.000000e+00> : vector<16x640xf32>
    %283 = tpu.matmul %281, %282, %cst_279 {dimension_numbers = #tpu.dot_dimension_numbers<[1], [0], [0], [1], [0, 0, 1, 1], [], []>} : vector<16x16xf32>, vector<16x640xf32>, vector<16x640xf32> -> vector<16x640xf32>
    %284 = arith.addf %279, %283 : vector<16x640xf32>
    %c2_280 = arith.constant 2 : index
    %c7_281 = arith.constant 7 : index
    %c0_282 = arith.constant 0 : index
    %c0_283 = arith.constant 0 : index
    %285 = vector.load %arg9[%c2_280, %c7_281, %c0_282, %c0_283] : memref<3x9x16x16xf32, #tpu.memory_space<vmem>>, vector<1x1x16x16xf32>
    %286 = vector.shape_cast %285 : vector<1x1x16x16xf32> to vector<16x16xf32>
    %c616_i32_284 = arith.constant 616 : i32
    %287 = tpu.dynamic_rotate %249 by %c616_i32_284 dim 1 : vector<16x640xf32>, i32 -> vector<16x640xf32>
    %cst_285 = arith.constant dense<0.000000e+00> : vector<16x640xf32>
    %288 = tpu.matmul %286, %287, %cst_285 {dimension_numbers = #tpu.dot_dimension_numbers<[1], [0], [0], [1], [0, 0, 1, 1], [], []>} : vector<16x16xf32>, vector<16x640xf32>, vector<16x640xf32> -> vector<16x640xf32>
    %289 = arith.addf %284, %288 : vector<16x640xf32>
    %c2_286 = arith.constant 2 : index
    %c8_287 = arith.constant 8 : index
    %c0_288 = arith.constant 0 : index
    %c0_289 = arith.constant 0 : index
    %290 = vector.load %arg9[%c2_286, %c8_287, %c0_288, %c0_289] : memref<3x9x16x16xf32, #tpu.memory_space<vmem>>, vector<1x1x16x16xf32>
    %291 = vector.shape_cast %290 : vector<1x1x16x16xf32> to vector<16x16xf32>
    %c615_i32_290 = arith.constant 615 : i32
    %292 = tpu.dynamic_rotate %249 by %c615_i32_290 dim 1 : vector<16x640xf32>, i32 -> vector<16x640xf32>
    %cst_291 = arith.constant dense<0.000000e+00> : vector<16x640xf32>
    %293 = tpu.matmul %291, %292, %cst_291 {dimension_numbers = #tpu.dot_dimension_numbers<[1], [0], [0], [1], [0, 0, 1, 1], [], []>} : vector<16x16xf32>, vector<16x640xf32>, vector<16x640xf32> -> vector<16x640xf32>
    %294 = arith.addf %289, %293 : vector<16x640xf32>
    %295 = vector.broadcast %251 : vector<16x1xf32> to vector<16x640xf32>
    %296 = arith.addf %294, %295 : vector<16x640xf32>
    %cst_292 = arith.constant 0.000000e+00 : f32
    %297 = vector.broadcast %cst_292 : f32 to vector<16x640xf32>
    %298 = arith.maximumf %296, %297 : vector<16x640xf32>
    %299 = vector.broadcast %0 : vector<1x640xf32> to vector<16x640xf32>
    %300 = arith.mulf %298, %299 : vector<16x640xf32>
    %c2_293 = arith.constant 2 : index
    %c0_294 = arith.constant 0 : index
    %c0_295 = arith.constant 0 : index
    %301 = vector.load %arg12[%c2_293, %c0_294, %c0_295] : memref<3x16x1xf32, #tpu.memory_space<vmem>>, vector<1x16x1xf32>
    %302 = vector.shape_cast %301 : vector<1x16x1xf32> to vector<16x1xf32>
    %c2_296 = arith.constant 2 : index
    %c0_297 = arith.constant 0 : index
    %c0_298 = arith.constant 0 : index
    %c0_299 = arith.constant 0 : index
    %303 = vector.load %arg11[%c2_296, %c0_297, %c0_298, %c0_299] : memref<3x9x16x16xf32, #tpu.memory_space<vmem>>, vector<1x1x16x16xf32>
    %304 = vector.shape_cast %303 : vector<1x1x16x16xf32> to vector<16x16xf32>
    %c100_i32 = arith.constant 100 : i32
    %305 = tpu.dynamic_rotate %300 by %c100_i32 dim 1 : vector<16x640xf32>, i32 -> vector<16x640xf32>
    %cst_300 = arith.constant dense<0.000000e+00> : vector<16x640xf32>
    %306 = tpu.matmul %304, %305, %cst_300 {dimension_numbers = #tpu.dot_dimension_numbers<[1], [0], [0], [1], [0, 0, 1, 1], [], []>} : vector<16x16xf32>, vector<16x640xf32>, vector<16x640xf32> -> vector<16x640xf32>
    %c2_301 = arith.constant 2 : index
    %c1_302 = arith.constant 1 : index
    %c0_303 = arith.constant 0 : index
    %c0_304 = arith.constant 0 : index
    %307 = vector.load %arg11[%c2_301, %c1_302, %c0_303, %c0_304] : memref<3x9x16x16xf32, #tpu.memory_space<vmem>>, vector<1x1x16x16xf32>
    %308 = vector.shape_cast %307 : vector<1x1x16x16xf32> to vector<16x16xf32>
    %c96_i32 = arith.constant 96 : i32
    %309 = tpu.dynamic_rotate %300 by %c96_i32 dim 1 : vector<16x640xf32>, i32 -> vector<16x640xf32>
    %cst_305 = arith.constant dense<0.000000e+00> : vector<16x640xf32>
    %310 = tpu.matmul %308, %309, %cst_305 {dimension_numbers = #tpu.dot_dimension_numbers<[1], [0], [0], [1], [0, 0, 1, 1], [], []>} : vector<16x16xf32>, vector<16x640xf32>, vector<16x640xf32> -> vector<16x640xf32>
    %311 = arith.addf %306, %310 : vector<16x640xf32>
    %c2_306 = arith.constant 2 : index
    %c2_307 = arith.constant 2 : index
    %c0_308 = arith.constant 0 : index
    %c0_309 = arith.constant 0 : index
    %312 = vector.load %arg11[%c2_306, %c2_307, %c0_308, %c0_309] : memref<3x9x16x16xf32, #tpu.memory_space<vmem>>, vector<1x1x16x16xf32>
    %313 = vector.shape_cast %312 : vector<1x1x16x16xf32> to vector<16x16xf32>
    %c92_i32 = arith.constant 92 : i32
    %314 = tpu.dynamic_rotate %300 by %c92_i32 dim 1 : vector<16x640xf32>, i32 -> vector<16x640xf32>
    %cst_310 = arith.constant dense<0.000000e+00> : vector<16x640xf32>
    %315 = tpu.matmul %313, %314, %cst_310 {dimension_numbers = #tpu.dot_dimension_numbers<[1], [0], [0], [1], [0, 0, 1, 1], [], []>} : vector<16x16xf32>, vector<16x640xf32>, vector<16x640xf32> -> vector<16x640xf32>
    %316 = arith.addf %311, %315 : vector<16x640xf32>
    %c2_311 = arith.constant 2 : index
    %c3_312 = arith.constant 3 : index
    %c0_313 = arith.constant 0 : index
    %c0_314 = arith.constant 0 : index
    %317 = vector.load %arg11[%c2_311, %c3_312, %c0_313, %c0_314] : memref<3x9x16x16xf32, #tpu.memory_space<vmem>>, vector<1x1x16x16xf32>
    %318 = vector.shape_cast %317 : vector<1x1x16x16xf32> to vector<16x16xf32>
    %c4_i32 = arith.constant 4 : i32
    %319 = tpu.dynamic_rotate %300 by %c4_i32 dim 1 : vector<16x640xf32>, i32 -> vector<16x640xf32>
    %cst_315 = arith.constant dense<0.000000e+00> : vector<16x640xf32>
    %320 = tpu.matmul %318, %319, %cst_315 {dimension_numbers = #tpu.dot_dimension_numbers<[1], [0], [0], [1], [0, 0, 1, 1], [], []>} : vector<16x16xf32>, vector<16x640xf32>, vector<16x640xf32> -> vector<16x640xf32>
    %321 = arith.addf %316, %320 : vector<16x640xf32>
    %c2_316 = arith.constant 2 : index
    %c4_317 = arith.constant 4 : index
    %c0_318 = arith.constant 0 : index
    %c0_319 = arith.constant 0 : index
    %322 = vector.load %arg11[%c2_316, %c4_317, %c0_318, %c0_319] : memref<3x9x16x16xf32, #tpu.memory_space<vmem>>, vector<1x1x16x16xf32>
    %323 = vector.shape_cast %322 : vector<1x1x16x16xf32> to vector<16x16xf32>
    %cst_320 = arith.constant dense<0.000000e+00> : vector<16x640xf32>
    %324 = tpu.matmul %323, %300, %cst_320 {dimension_numbers = #tpu.dot_dimension_numbers<[1], [0], [0], [1], [0, 0, 1, 1], [], []>} : vector<16x16xf32>, vector<16x640xf32>, vector<16x640xf32> -> vector<16x640xf32>
    %325 = arith.addf %321, %324 : vector<16x640xf32>
    %c2_321 = arith.constant 2 : index
    %c5_322 = arith.constant 5 : index
    %c0_323 = arith.constant 0 : index
    %c0_324 = arith.constant 0 : index
    %326 = vector.load %arg11[%c2_321, %c5_322, %c0_323, %c0_324] : memref<3x9x16x16xf32, #tpu.memory_space<vmem>>, vector<1x1x16x16xf32>
    %327 = vector.shape_cast %326 : vector<1x1x16x16xf32> to vector<16x16xf32>
    %c636_i32 = arith.constant 636 : i32
    %328 = tpu.dynamic_rotate %300 by %c636_i32 dim 1 : vector<16x640xf32>, i32 -> vector<16x640xf32>
    %cst_325 = arith.constant dense<0.000000e+00> : vector<16x640xf32>
    %329 = tpu.matmul %327, %328, %cst_325 {dimension_numbers = #tpu.dot_dimension_numbers<[1], [0], [0], [1], [0, 0, 1, 1], [], []>} : vector<16x16xf32>, vector<16x640xf32>, vector<16x640xf32> -> vector<16x640xf32>
    %330 = arith.addf %325, %329 : vector<16x640xf32>
    %c2_326 = arith.constant 2 : index
    %c6_327 = arith.constant 6 : index
    %c0_328 = arith.constant 0 : index
    %c0_329 = arith.constant 0 : index
    %331 = vector.load %arg11[%c2_326, %c6_327, %c0_328, %c0_329] : memref<3x9x16x16xf32, #tpu.memory_space<vmem>>, vector<1x1x16x16xf32>
    %332 = vector.shape_cast %331 : vector<1x1x16x16xf32> to vector<16x16xf32>
    %c548_i32 = arith.constant 548 : i32
    %333 = tpu.dynamic_rotate %300 by %c548_i32 dim 1 : vector<16x640xf32>, i32 -> vector<16x640xf32>
    %cst_330 = arith.constant dense<0.000000e+00> : vector<16x640xf32>
    %334 = tpu.matmul %332, %333, %cst_330 {dimension_numbers = #tpu.dot_dimension_numbers<[1], [0], [0], [1], [0, 0, 1, 1], [], []>} : vector<16x16xf32>, vector<16x640xf32>, vector<16x640xf32> -> vector<16x640xf32>
    %335 = arith.addf %330, %334 : vector<16x640xf32>
    %c2_331 = arith.constant 2 : index
    %c7_332 = arith.constant 7 : index
    %c0_333 = arith.constant 0 : index
    %c0_334 = arith.constant 0 : index
    %336 = vector.load %arg11[%c2_331, %c7_332, %c0_333, %c0_334] : memref<3x9x16x16xf32, #tpu.memory_space<vmem>>, vector<1x1x16x16xf32>
    %337 = vector.shape_cast %336 : vector<1x1x16x16xf32> to vector<16x16xf32>
    %c544_i32 = arith.constant 544 : i32
    %338 = tpu.dynamic_rotate %300 by %c544_i32 dim 1 : vector<16x640xf32>, i32 -> vector<16x640xf32>
    %cst_335 = arith.constant dense<0.000000e+00> : vector<16x640xf32>
    %339 = tpu.matmul %337, %338, %cst_335 {dimension_numbers = #tpu.dot_dimension_numbers<[1], [0], [0], [1], [0, 0, 1, 1], [], []>} : vector<16x16xf32>, vector<16x640xf32>, vector<16x640xf32> -> vector<16x640xf32>
    %340 = arith.addf %335, %339 : vector<16x640xf32>
    %c2_336 = arith.constant 2 : index
    %c8_337 = arith.constant 8 : index
    %c0_338 = arith.constant 0 : index
    %c0_339 = arith.constant 0 : index
    %341 = vector.load %arg11[%c2_336, %c8_337, %c0_338, %c0_339] : memref<3x9x16x16xf32, #tpu.memory_space<vmem>>, vector<1x1x16x16xf32>
    %342 = vector.shape_cast %341 : vector<1x1x16x16xf32> to vector<16x16xf32>
    %c540_i32 = arith.constant 540 : i32
    %343 = tpu.dynamic_rotate %300 by %c540_i32 dim 1 : vector<16x640xf32>, i32 -> vector<16x640xf32>
    %cst_340 = arith.constant dense<0.000000e+00> : vector<16x640xf32>
    %344 = tpu.matmul %342, %343, %cst_340 {dimension_numbers = #tpu.dot_dimension_numbers<[1], [0], [0], [1], [0, 0, 1, 1], [], []>} : vector<16x16xf32>, vector<16x640xf32>, vector<16x640xf32> -> vector<16x640xf32>
    %345 = arith.addf %340, %344 : vector<16x640xf32>
    %346 = vector.broadcast %302 : vector<16x1xf32> to vector<16x640xf32>
    %347 = arith.addf %345, %346 : vector<16x640xf32>
    %c0_341 = arith.constant 0 : index
    %c0_342 = arith.constant 0 : index
    %348 = vector.load %arg13[%c0_341, %c0_342] : memref<16x1xf32, #tpu.memory_space<vmem>>, vector<16x1xf32>
    %c0_343 = arith.constant 0 : index
    %c0_344 = arith.constant 0 : index
    %349 = vector.load %arg14[%c0_343, %c0_344] : memref<16x1xf32, #tpu.memory_space<vmem>>, vector<16x1xf32>
    %350 = vector.broadcast %348 : vector<16x1xf32> to vector<16x640xf32>
    %351 = arith.mulf %347, %350 : vector<16x640xf32>
    %352 = vector.broadcast %349 : vector<16x1xf32> to vector<16x640xf32>
    %353 = arith.addf %351, %352 : vector<16x640xf32>
    %cst_345 = arith.constant 0.000000e+00 : f32
    %354 = vector.broadcast %cst_345 : f32 to vector<16x640xf32>
    %355 = arith.maximumf %353, %354 : vector<16x640xf32>
    %356 = vector.broadcast %0 : vector<1x640xf32> to vector<16x640xf32>
    %357 = arith.mulf %355, %356 : vector<16x640xf32>
    %c0_346 = arith.constant 0 : index
    %c0_347 = arith.constant 0 : index
    %358 = vector.load %arg16[%c0_346, %c0_347] : memref<8x1xf32, #tpu.memory_space<vmem>>, vector<8x1xf32>
    %c0_348 = arith.constant 0 : index
    %c0_349 = arith.constant 0 : index
    %c0_350 = arith.constant 0 : index
    %359 = vector.load %arg15[%c0_348, %c0_349, %c0_350] : memref<9x8x16xf32, #tpu.memory_space<vmem>>, vector<1x8x16xf32>
    %360 = vector.shape_cast %359 : vector<1x8x16xf32> to vector<8x16xf32>
    %c25_i32_351 = arith.constant 25 : i32
    %361 = tpu.dynamic_rotate %357 by %c25_i32_351 dim 1 : vector<16x640xf32>, i32 -> vector<16x640xf32>
    %cst_352 = arith.constant dense<0.000000e+00> : vector<8x640xf32>
    %362 = tpu.matmul %360, %361, %cst_352 {dimension_numbers = #tpu.dot_dimension_numbers<[1], [0], [0], [1], [0, 0, 1, 1], [], []>} : vector<8x16xf32>, vector<16x640xf32>, vector<8x640xf32> -> vector<8x640xf32>
    %c1_353 = arith.constant 1 : index
    %c0_354 = arith.constant 0 : index
    %c0_355 = arith.constant 0 : index
    %363 = vector.load %arg15[%c1_353, %c0_354, %c0_355] : memref<9x8x16xf32, #tpu.memory_space<vmem>>, vector<1x8x16xf32>
    %364 = vector.shape_cast %363 : vector<1x8x16xf32> to vector<8x16xf32>
    %c24_i32_356 = arith.constant 24 : i32
    %365 = tpu.dynamic_rotate %357 by %c24_i32_356 dim 1 : vector<16x640xf32>, i32 -> vector<16x640xf32>
    %cst_357 = arith.constant dense<0.000000e+00> : vector<8x640xf32>
    %366 = tpu.matmul %364, %365, %cst_357 {dimension_numbers = #tpu.dot_dimension_numbers<[1], [0], [0], [1], [0, 0, 1, 1], [], []>} : vector<8x16xf32>, vector<16x640xf32>, vector<8x640xf32> -> vector<8x640xf32>
    %367 = arith.addf %362, %366 : vector<8x640xf32>
    %c2_358 = arith.constant 2 : index
    %c0_359 = arith.constant 0 : index
    %c0_360 = arith.constant 0 : index
    %368 = vector.load %arg15[%c2_358, %c0_359, %c0_360] : memref<9x8x16xf32, #tpu.memory_space<vmem>>, vector<1x8x16xf32>
    %369 = vector.shape_cast %368 : vector<1x8x16xf32> to vector<8x16xf32>
    %c23_i32_361 = arith.constant 23 : i32
    %370 = tpu.dynamic_rotate %357 by %c23_i32_361 dim 1 : vector<16x640xf32>, i32 -> vector<16x640xf32>
    %cst_362 = arith.constant dense<0.000000e+00> : vector<8x640xf32>
    %371 = tpu.matmul %369, %370, %cst_362 {dimension_numbers = #tpu.dot_dimension_numbers<[1], [0], [0], [1], [0, 0, 1, 1], [], []>} : vector<8x16xf32>, vector<16x640xf32>, vector<8x640xf32> -> vector<8x640xf32>
    %372 = arith.addf %367, %371 : vector<8x640xf32>
    %c3_363 = arith.constant 3 : index
    %c0_364 = arith.constant 0 : index
    %c0_365 = arith.constant 0 : index
    %373 = vector.load %arg15[%c3_363, %c0_364, %c0_365] : memref<9x8x16xf32, #tpu.memory_space<vmem>>, vector<1x8x16xf32>
    %374 = vector.shape_cast %373 : vector<1x8x16xf32> to vector<8x16xf32>
    %c1_i32_366 = arith.constant 1 : i32
    %375 = tpu.dynamic_rotate %357 by %c1_i32_366 dim 1 : vector<16x640xf32>, i32 -> vector<16x640xf32>
    %cst_367 = arith.constant dense<0.000000e+00> : vector<8x640xf32>
    %376 = tpu.matmul %374, %375, %cst_367 {dimension_numbers = #tpu.dot_dimension_numbers<[1], [0], [0], [1], [0, 0, 1, 1], [], []>} : vector<8x16xf32>, vector<16x640xf32>, vector<8x640xf32> -> vector<8x640xf32>
    %377 = arith.addf %372, %376 : vector<8x640xf32>
    %c4_368 = arith.constant 4 : index
    %c0_369 = arith.constant 0 : index
    %c0_370 = arith.constant 0 : index
    %378 = vector.load %arg15[%c4_368, %c0_369, %c0_370] : memref<9x8x16xf32, #tpu.memory_space<vmem>>, vector<1x8x16xf32>
    %379 = vector.shape_cast %378 : vector<1x8x16xf32> to vector<8x16xf32>
    %cst_371 = arith.constant dense<0.000000e+00> : vector<8x640xf32>
    %380 = tpu.matmul %379, %357, %cst_371 {dimension_numbers = #tpu.dot_dimension_numbers<[1], [0], [0], [1], [0, 0, 1, 1], [], []>} : vector<8x16xf32>, vector<16x640xf32>, vector<8x640xf32> -> vector<8x640xf32>
    %381 = arith.addf %377, %380 : vector<8x640xf32>
    %c5_372 = arith.constant 5 : index
    %c0_373 = arith.constant 0 : index
    %c0_374 = arith.constant 0 : index
    %382 = vector.load %arg15[%c5_372, %c0_373, %c0_374] : memref<9x8x16xf32, #tpu.memory_space<vmem>>, vector<1x8x16xf32>
    %383 = vector.shape_cast %382 : vector<1x8x16xf32> to vector<8x16xf32>
    %c639_i32_375 = arith.constant 639 : i32
    %384 = tpu.dynamic_rotate %357 by %c639_i32_375 dim 1 : vector<16x640xf32>, i32 -> vector<16x640xf32>
    %cst_376 = arith.constant dense<0.000000e+00> : vector<8x640xf32>
    %385 = tpu.matmul %383, %384, %cst_376 {dimension_numbers = #tpu.dot_dimension_numbers<[1], [0], [0], [1], [0, 0, 1, 1], [], []>} : vector<8x16xf32>, vector<16x640xf32>, vector<8x640xf32> -> vector<8x640xf32>
    %386 = arith.addf %381, %385 : vector<8x640xf32>
    %c6_377 = arith.constant 6 : index
    %c0_378 = arith.constant 0 : index
    %c0_379 = arith.constant 0 : index
    %387 = vector.load %arg15[%c6_377, %c0_378, %c0_379] : memref<9x8x16xf32, #tpu.memory_space<vmem>>, vector<1x8x16xf32>
    %388 = vector.shape_cast %387 : vector<1x8x16xf32> to vector<8x16xf32>
    %c617_i32_380 = arith.constant 617 : i32
    %389 = tpu.dynamic_rotate %357 by %c617_i32_380 dim 1 : vector<16x640xf32>, i32 -> vector<16x640xf32>
    %cst_381 = arith.constant dense<0.000000e+00> : vector<8x640xf32>
    %390 = tpu.matmul %388, %389, %cst_381 {dimension_numbers = #tpu.dot_dimension_numbers<[1], [0], [0], [1], [0, 0, 1, 1], [], []>} : vector<8x16xf32>, vector<16x640xf32>, vector<8x640xf32> -> vector<8x640xf32>
    %391 = arith.addf %386, %390 : vector<8x640xf32>
    %c7_382 = arith.constant 7 : index
    %c0_383 = arith.constant 0 : index
    %c0_384 = arith.constant 0 : index
    %392 = vector.load %arg15[%c7_382, %c0_383, %c0_384] : memref<9x8x16xf32, #tpu.memory_space<vmem>>, vector<1x8x16xf32>
    %393 = vector.shape_cast %392 : vector<1x8x16xf32> to vector<8x16xf32>
    %c616_i32_385 = arith.constant 616 : i32
    %394 = tpu.dynamic_rotate %357 by %c616_i32_385 dim 1 : vector<16x640xf32>, i32 -> vector<16x640xf32>
    %cst_386 = arith.constant dense<0.000000e+00> : vector<8x640xf32>
    %395 = tpu.matmul %393, %394, %cst_386 {dimension_numbers = #tpu.dot_dimension_numbers<[1], [0], [0], [1], [0, 0, 1, 1], [], []>} : vector<8x16xf32>, vector<16x640xf32>, vector<8x640xf32> -> vector<8x640xf32>
    %396 = arith.addf %391, %395 : vector<8x640xf32>
    %c8_387 = arith.constant 8 : index
    %c0_388 = arith.constant 0 : index
    %c0_389 = arith.constant 0 : index
    %397 = vector.load %arg15[%c8_387, %c0_388, %c0_389] : memref<9x8x16xf32, #tpu.memory_space<vmem>>, vector<1x8x16xf32>
    %398 = vector.shape_cast %397 : vector<1x8x16xf32> to vector<8x16xf32>
    %c615_i32_390 = arith.constant 615 : i32
    %399 = tpu.dynamic_rotate %357 by %c615_i32_390 dim 1 : vector<16x640xf32>, i32 -> vector<16x640xf32>
    %cst_391 = arith.constant dense<0.000000e+00> : vector<8x640xf32>
    %400 = tpu.matmul %398, %399, %cst_391 {dimension_numbers = #tpu.dot_dimension_numbers<[1], [0], [0], [1], [0, 0, 1, 1], [], []>} : vector<8x16xf32>, vector<16x640xf32>, vector<8x640xf32> -> vector<8x640xf32>
    %401 = arith.addf %396, %400 : vector<8x640xf32>
    %402 = vector.broadcast %358 : vector<8x1xf32> to vector<8x640xf32>
    %403 = arith.addf %401, %402 : vector<8x640xf32>
    %404 = vector.extract_strided_slice %403 {offsets = [0, 0], sizes = [1, 640], strides = [1, 1]} : vector<8x640xf32> to vector<1x640xf32>
    %c0_392 = arith.constant 0 : index
    %c0_393 = arith.constant 0 : index
    %c0_394 = arith.constant 0 : index
    %405 = vector.load %arg17[%c0_392, %c0_393, %c0_394] : memref<1x1x640xf32, #tpu.memory_space<vmem>>, vector<1x1x640xf32>
    %406 = vector.shape_cast %405 : vector<1x1x640xf32> to vector<1x640xf32>
    %407 = vector.shape_cast %404 : vector<1x640xf32> to vector<1x1x640xf32>
    tpu.vector_store %arg17[%c0_392, %c0_393, %c0_394], %407 {strides = array<i32>} : memref<1x1x640xf32, #tpu.memory_space<vmem>>, vector<1x1x640xf32>,
    return
  }
  func.func @transform_0(%arg0: i32) -> (i32, i32, i32) {
    %c0_i32 = arith.constant 0 : i32
    %c0_i32_0 = arith.constant 0 : i32
    %c0_i32_1 = arith.constant 0 : i32
    return %arg0, %c0_i32, %c0_i32_0 : i32, i32, i32
  }
  func.func @transform_1(%arg0: i32) -> (i32, i32) {
    %c0_i32 = arith.constant 0 : i32
    %c0_i32_0 = arith.constant 0 : i32
    %c0_i32_1 = arith.constant 0 : i32
    return %c0_i32, %c0_i32_0 : i32, i32
  }
  func.func @transform_2(%arg0: i32) -> (i32, i32) {
    %c0_i32 = arith.constant 0 : i32
    %c0_i32_0 = arith.constant 0 : i32
    %c0_i32_1 = arith.constant 0 : i32
    return %c0_i32, %c0_i32_0 : i32, i32
  }
  func.func @transform_3(%arg0: i32) -> (i32, i32) {
    %c0_i32 = arith.constant 0 : i32
    %c0_i32_0 = arith.constant 0 : i32
    %c0_i32_1 = arith.constant 0 : i32
    return %c0_i32, %c0_i32_0 : i32, i32
  }
  func.func @transform_4(%arg0: i32) -> (i32, i32) {
    %c0_i32 = arith.constant 0 : i32
    %c0_i32_0 = arith.constant 0 : i32
    %c0_i32_1 = arith.constant 0 : i32
    return %c0_i32, %c0_i32_0 : i32, i32
  }
  func.func @transform_5(%arg0: i32) -> (i32, i32) {
    %c0_i32 = arith.constant 0 : i32
    %c0_i32_0 = arith.constant 0 : i32
    %c0_i32_1 = arith.constant 0 : i32
    return %c0_i32, %c0_i32_0 : i32, i32
  }
  func.func @transform_6(%arg0: i32) -> (i32, i32, i32) {
    %c0_i32 = arith.constant 0 : i32
    %c0_i32_0 = arith.constant 0 : i32
    %c0_i32_1 = arith.constant 0 : i32
    %c0_i32_2 = arith.constant 0 : i32
    return %c0_i32, %c0_i32_0, %c0_i32_1 : i32, i32, i32
  }
  func.func @transform_7(%arg0: i32) -> (i32, i32, i32) {
    %c0_i32 = arith.constant 0 : i32
    %c0_i32_0 = arith.constant 0 : i32
    %c0_i32_1 = arith.constant 0 : i32
    %c0_i32_2 = arith.constant 0 : i32
    return %c0_i32, %c0_i32_0, %c0_i32_1 : i32, i32, i32
  }
  func.func @transform_8(%arg0: i32) -> (i32, i32, i32, i32) {
    %c0_i32 = arith.constant 0 : i32
    %c0_i32_0 = arith.constant 0 : i32
    %c0_i32_1 = arith.constant 0 : i32
    %c0_i32_2 = arith.constant 0 : i32
    %c0_i32_3 = arith.constant 0 : i32
    return %c0_i32, %c0_i32_0, %c0_i32_1, %c0_i32_2 : i32, i32, i32, i32
  }
  func.func @transform_9(%arg0: i32) -> (i32, i32, i32) {
    %c0_i32 = arith.constant 0 : i32
    %c0_i32_0 = arith.constant 0 : i32
    %c0_i32_1 = arith.constant 0 : i32
    %c0_i32_2 = arith.constant 0 : i32
    return %c0_i32, %c0_i32_0, %c0_i32_1 : i32, i32, i32
  }
  func.func @transform_10(%arg0: i32) -> (i32, i32, i32, i32) {
    %c0_i32 = arith.constant 0 : i32
    %c0_i32_0 = arith.constant 0 : i32
    %c0_i32_1 = arith.constant 0 : i32
    %c0_i32_2 = arith.constant 0 : i32
    %c0_i32_3 = arith.constant 0 : i32
    return %c0_i32, %c0_i32_0, %c0_i32_1, %c0_i32_2 : i32, i32, i32, i32
  }
  func.func @transform_11(%arg0: i32) -> (i32, i32, i32) {
    %c0_i32 = arith.constant 0 : i32
    %c0_i32_0 = arith.constant 0 : i32
    %c0_i32_1 = arith.constant 0 : i32
    %c0_i32_2 = arith.constant 0 : i32
    return %c0_i32, %c0_i32_0, %c0_i32_1 : i32, i32, i32
  }
  func.func @transform_12(%arg0: i32) -> (i32, i32) {
    %c0_i32 = arith.constant 0 : i32
    %c0_i32_0 = arith.constant 0 : i32
    %c0_i32_1 = arith.constant 0 : i32
    return %c0_i32, %c0_i32_0 : i32, i32
  }
  func.func @transform_13(%arg0: i32) -> (i32, i32) {
    %c0_i32 = arith.constant 0 : i32
    %c0_i32_0 = arith.constant 0 : i32
    %c0_i32_1 = arith.constant 0 : i32
    return %c0_i32, %c0_i32_0 : i32, i32
  }
  func.func @transform_14(%arg0: i32) -> (i32, i32, i32) {
    %c0_i32 = arith.constant 0 : i32
    %c0_i32_0 = arith.constant 0 : i32
    %c0_i32_1 = arith.constant 0 : i32
    %c0_i32_2 = arith.constant 0 : i32
    return %c0_i32, %c0_i32_0, %c0_i32_1 : i32, i32, i32
  }
  func.func @transform_15(%arg0: i32) -> (i32, i32) {
    %c0_i32 = arith.constant 0 : i32
    %c0_i32_0 = arith.constant 0 : i32
    %c0_i32_1 = arith.constant 0 : i32
    return %c0_i32, %c0_i32_0 : i32, i32
  }
  func.func @transform_16(%arg0: i32) -> (i32, i32, i32) {
    %c0_i32 = arith.constant 0 : i32
    %c0_i32_0 = arith.constant 0 : i32
    %c0_i32_1 = arith.constant 0 : i32
    return %arg0, %c0_i32, %c0_i32_0 : i32, i32, i32
  }
}

</mosaic_0001>

<bundles_post_ra>
// kernel: tpu_custom_call.1
= control target key start
LH: loop header
LB: loop body
LE: loop exit
PB: predicated region body
PF: predicated region fallthrough
CT: control target
= control target key end

     0   :  { %s25845_s0 = inlined_call_operand.vmem [shape: f32[2,8,640], index: 0, kind: input, shape index: {}]   ;;  %s25846_s1 = inlined_call_operand.vmem [shape: f32[1,640], index: 1, kind: input, shape index: {}]   ;;  %s25847_s2 = inlined_call_operand.vmem [shape: f32[8,1], index: 2, kind: input, shape index: {}]   ;;  %s25848_s3 = inlined_call_operand.vmem [shape: f32[8,1], index: 3, kind: input, shape index: {}]   ;;  %s25849_s4 = inlined_call_operand.vmem [shape: f32[16,8], index: 4, kind: input, shape index: {}]   ;;  %s25850_s5 = inlined_call_operand.vmem [shape: f32[16,1], index: 5, kind: input, shape index: {}]   ;;  %s25851_s6 = inlined_call_operand.vmem [shape: f32[3,16,1], index: 6, kind: input, shape index: {}]   ;;  %s25852_s7 = inlined_call_operand.vmem [shape: f32[3,16,1], index: 7, kind: input, shape index: {}]   ;;  %s25853_s8 = inlined_call_operand.hbm [shape: f32[3,9,16,16], index: 8, kind: input, shape index: {}]   ;;  %s25854_s9 = inlined_call_operand.vmem [shape: f32[3,16,1], index: 9, kind: input, shape index: {}]   ;;  %s25855_s10 = inlined_call_operand.hbm [shape: f32[3,9,16,16], index: 10, kind: input, shape index: {}]   ;;  %s25856_s11 = inlined_call_operand.vmem [shape: f32[3,16,1], index: 11, kind: input, shape index: {}]   ;;  %s25857_s12 = inlined_call_operand.vmem [shape: f32[16,1], index: 12, kind: input, shape index: {}]   ;;  %s25858_s13 = inlined_call_operand.vmem [shape: f32[16,1], index: 13, kind: input, shape index: {}]   ;;  %s25859_s14 = inlined_call_operand.vmem [shape: f32[9,8,16], index: 14, kind: input, shape index: {}]   ;;  %s25860_s15 = inlined_call_operand.vmem [shape: f32[8,1], index: 15, kind: input, shape index: {}]   ;;  %s25861_s16 = inlined_call_operand.hbm [shape: f32[2,1,640], index: 16, kind: output, shape index: {}]  }
   0x1   :  { %25921 = sst [smem:[#allocation36_spill]] %s25845_s0 }
   0x2   :  { %25922 = sst [smem:[#allocation37_spill]] %s25846_s1 }
   0x3   :  { %25923 = sst [smem:[#allocation38_spill]] %s25847_s2 }
   0x4   :  { %25924 = sst [smem:[#allocation39_spill]] %s25848_s3 }
   0x5   :  { %25925 = sst [smem:[#allocation40_spill]] %s25849_s4 }
   0x6   :  { %21 = vsyncpa [#allocation3], 0 }
   0x7   :  { %22 = vsyncpa [#allocation6], 0 }
   0x8   :  { %23 = vsyncpa [#allocation4], 0 }
   0x9   :  { %25 = vsyncpa [#allocation4 + $0x1], 0  ;;  %s19861_s21 = smov 0   ;;  %s19863_s22 = smov 0  }
   0xa   :  { %s19865_s23 = smov 0   ;;  %s19867_s24 = smov 0  }
   0xb LB: > { %25926 = sst [smem:[#allocation11_spill]] %s19729_s21  ;;  %s19882_s25 = sadd.s32 4294967295, %s19741_s24   ;;  %s19741_s24 = sphi %s19867_s24, %s26096_s24   ;;  %s19737_s23 = sphi %s19865_s23, %s26098_s23   ;;  %s19733_s22 = sphi %s19863_s22, %s26100_s22   ;;  %s19729_s21 = sphi %s19861_s21, %s26099_s21  }
   0xc   : > { %25927 = sst [smem:[#allocation12_spill]] %s19737_s23  ;;  %s18441_s26 = sadd.s32 4294967294, %s19741_s24  }
   0xd   : > { %s19886_s27 = sadd.s32 1, %s19741_s24   ;;  %s379_s28 = sadd.s32 1, %s19737_s23 }
   0xe   : > { %25928 = sst [smem:[#allocation13_spill]] %s19886_s27  ;;  %s376_s29 = ssub.s32 %s19741_s24, %s19886_s27 }
   0xf   : > { %p389_p0 = scmp.ne.s32.totalorder %s19737_s23, %s19733_s22  ;;  %p377_p1 = scmp.eq.s32.totalorder %s376_s29, 0 }
  0x10   : > { %p390_p2 = scmp.eq.s32.totalorder %s19882_s25, 1  ;;  %p395_p3 = scmp.ne.s32.totalorder %s19733_s22, %s19729_s21 }
  0x11   : > { %p396_p4 = scmp.eq.s32.totalorder %s18441_s26, 1  ;;  %p18442_p7 = scmp.ge.s32.totalorder %s19741_s24, 1 }
  0x12   : > { %s19897_s30 = scalar_select %p377_p1, %s19737_s23, %s379_s28  }
  0x13   : > { %p19899_p5 = por %p390_p2, %p389_p0  ;;  %p19903_p6 = por %p396_p4, %p395_p3 }
  0x14   : > { %25929 = sst [smem:[#allocation14_spill]] %s19897_s30  ;;  %p403_p8 = scmp.lt.s32.totalorder %s19741_s24, 3 }
  0x15   : > { %s25931_s17 = scalar_select %p19903_p6, 1, 0 }
  0x16   : > { %p25866_p9 = scmp.eq.s32.totalorder %s19882_s25, 0  ;;  %p19910_p10 = pnand %p18442_p7, %p403_p8 }
  0x17   : > { %25932 = sst [smem:[#allocation15_spill]] %s25931_s17  ;;  %s19743_s19 = smov [#allocation2]  }
  0x18   : > { %s436_s20 = sshll.u32 %s19743_s19, 4  ;;  %p19539_p11 = pneg %p19910_p10  ;;  %s437_s20 = int_to_ptr.vmem [resolvable:$true] %s436_s20 }
  0x19   : > { %s19744_s28 = smov [#allocation5]   ;;  %s19632_s30 = scalar_lea.vmem %s437_s20, 6912 }
  0x1a   : > { %p19918_p12 = pnand %p25866_p9, %p19539_p11  ;;  %s452_s29 = sshll.u32 %s19744_s28, 4  ;;  %s453_s29 = int_to_ptr.vmem [resolvable:$true] %s452_s29 }
  0x1b   : > { %p19633_p0 = scmp.ne.s32.totalorder %s437_s20, %s19632_s30  ;;  %p19640_p3 = scmp.lt.s32.totalorder %s437_s20, %s437_s20 }
  0x1c   : > { %p19623_p13 = pneg %p19918_p12  ;;  %p19641_p4 = scmp.lt.s32.totalorder %s19632_s30, %s19632_s30 }
  0x1e   : > { %p19635_p1 = pnand %p19633_p0, %p19623_p13  ;;  %p19642_p7 = por %p19641_p4, %p19640_p3 }
  0x20   : > { %p19636_p2 = pneg %p19635_p1 }
  0x22   : > { %p19643_p8 = pnand %p19642_p7, %p19636_p2 }
  0x24   : > { %19646 = shalt.err (!%p19643_p8)
}
  0x25   : > { %s19745_s19 = smov 128   ;;  %s19746_s23 = smov 8  }
  0x26   : > { %19542 = dma.hbm_to_vmem [thread:$0]  (!%p19918_p12), %s25853_s8, 6912, %s437_s20, [#allocation3], %s19745_s19, %s19745_s19, %s19746_s23  }
  0x27   : > { %s19658_s17 = scalar_lea.vmem %s453_s29, 6912  ;;  %p19666_p9 = scmp.lt.s32.totalorder %s453_s29, %s453_s29 }
  0x28   : > { %p19659_p11 = scmp.ne.s32.totalorder %s453_s29, %s19658_s17  ;;  %p19667_p6 = scmp.lt.s32.totalorder %s19658_s17, %s19658_s17 }
  0x2a   : > { %p19661_p0 = pnand %p19659_p11, %p19623_p13  ;;  %p19668_p3 = por %p19667_p6, %p19666_p9 }
  0x2c   : > { %p19662_p1 = pneg %p19661_p0 }
  0x2e   : > { %p19669_p2 = pnand %p19668_p3, %p19662_p1 }
  0x30   : > { %19672 = shalt.err (!%p19669_p2)
}
  0x31   : > { %19545 = dma.hbm_to_vmem [thread:$0]  (!%p19918_p12), %s25855_s10, 6912, %s453_s29, [#allocation6], %s19745_s19, %s19745_s19, %s19746_s23  }
  0x32   : > { %491 = sbr.rel (%p19910_p10) target bundleno = 3855 (0xf0f), region = 84 }
  0x37   : > { %p25935_p4 = scmp.eq.s32.totalorder %s19882_s25, 0 }
  0x39   : > { %19716 = dma.done.wait (%p25935_p4), [#allocation3], 6912   ;;  %p25936_p13 = pmov %p25935_p4 }
  0x3a   : > { %p25937_p7 = pmov %p25935_p4 }
  0x3b   : > { %19718 = vsyncadd (%p25936_p13), [#allocation3], 4294960384 }
  0x3c   : > { %19720 = dma.done.wait (%p25937_p7), [#allocation6], 6912   ;;  %p25938_p6 = pmov %p25935_p4 }
  0x3d   : > { %v19747_v0 = vmov 0   ;;  %s25939_s2 = sld [smem:[#allocation38_spill]]  ;;  %v865_v3 = vld [vmem:[%s25851_s6 + $0x8] sm:$0xff]  ;;  %v25871_v4 = vmov 0.0   ;;  %v616_v7 = vld [vmem:[%s25850_s5] sm:$0xff]  ;;  %p545_p9 = scmp.lt.s32.totalorder %s19882_s25, 1  ;;  %v25870_v10 = vlaneseq }
  0x3e   : > { %19722 = vsyncadd (%p25938_p6), [#allocation6], 4294960384  ;;  %19619 = vset.pattern.permute.xlu0 %v19747_v0  ;;  %19620 = vset.pattern.permute.xlu1 %v19747_v0  ;;  %s25940_s3 = sld [smem:[#allocation39_spill]]  ;;  %v867_v5 = vld [vmem:[%s25852_s7 + $0x8] sm:$0xff]  ;;  %v864_v8 = vld [vmem:[%s25851_s6] sm:$0xff]  ;;  %vm628_vm0 = vcmask 64512  }
  0x3f   : > { %699 = vmatprep.mubr.f32.mxu0 %v25871_v4  ;;  %776 = vmatprep.mubr.f32.mxu1 %v25871_v4  ;;  %v617_v6 = vld [vmem:[%s25850_s5 + $0x8] sm:$0xff]  ;;  %v866_v9 = vld [vmem:[%s25852_s7] sm:$0xff]  ;;  %s546_s20 = scalar_select %p545_p9, %s19882_s25, 1  ;;  %v19979_v11 = vshrl.u32 %v25870_v10, 7  ;;  %vm999_vm2 = vcmask 130048  }
  0x40   : > { %625 = vperm.xlu1 %19620, %v617_v6   ;;  %s25942_s28 = sld [smem:[#allocation36_spill]]  ;;  %s25894_s29 = smov 25  }
  0x41   : > { %s19527_s26 = smul.u32 40, %s546_s20  ;;  %25941 = vst [vmem:[#allocation16_spill] sm:$0xff] %v19979_v11  ;;  %v590_v12 = vsub.s32 1, %v19979_v11  ;;  %s25943_s1 = sld [smem:[#allocation37_spill]]  ;;  %v598_v17 = vsub.s32 3, %v19979_v11  ;;  %v586_v19 = vsub.s32 0, %v19979_v11 }
  0x42   : > { %v594_v21 = vsub.s32 2, %v19979_v11  ;;  %v602_v24 = vsub.s32 4, %v19979_v11  ;;  %s25945_s4 = sld [smem:[#allocation40_spill]]  ;;  %s25892_s19 = smov 23  }
  0x43   : > { %v556_v1 = vld [vmem:[%s25939_s2] sm:$0xff]  ;;  %s25878_s21 = smov 105   ;;  %s25868_s23 = smov 104  }
  0x44   : > { %560 = vperm.xlu0 %19619, %v556_v1   ;;  %v557_v2 = vld [vmem:[%s25940_s3] sm:$0xff]  ;;  %620 = vperm.xlu1 %19620, %v616_v7   ;;  %s25888_s27 = smov 103   ;;  %s25990_s17 = smov 105  }
  0x45   : > { %s19758_s18 = smov 48   ;;  %s19760_s20 = smov 46  }
  0x46   : > { %s549_s30 = scalar_lea.vmem %s25942_s28, %s19527_s26  ;;  %s25899_s26 = smov 24  }
  0x47   : > { %v550_v13 = vld [vmem:[%s25943_s1] sm:$0x1f]  ;;  %v552_v14 = vld [vmem:[%s549_s30 + $0x8] sm:$0xff]  ;;  %v554_v16 = vld [vmem:[%s549_s30 + $0x18] sm:$0xff]  ;;  %s25890_s28 = smov 1   ;;  %s26060_s1 = smov 124  }
  0x48   : > { %570 = vperm.xlu0 %19619, %v557_v2   ;;  %870 = vperm.xlu1 %19620, %v864_v8   ;;  %v551_v18 = vld [vmem:[%s549_s30] sm:$0xff]  ;;  %v553_v20 = vld [vmem:[%s549_s30 + $0x10] sm:$0xff]  ;;  %v19991_v23 = vrot.slane %v550_v13, %v590_v12  ;;  %v19994_v30 = vrot.slane %v550_v13, %v598_v17  ;;  %v19996_v31 = vrot.slane %v550_v13, %v586_v19  ;;  %v615_v51 = vld [vmem:[%s25945_s4 + $0x8] sm:$0xff]  ;;  %s19770_s2 = smov 36  }
  0x49   : > { %v555_v22 = vld [vmem:[%s549_s30 + $0x20] sm:$0xff]  ;;  %v19998_v32 = vrot.slane %v550_v13, %v594_v21  ;;  %v20000_v44 = vrot.slane %v550_v13, %v602_v24  ;;  %s25883_s30 = smov 127  }
  0x4a   : > { %v614_v49 = vld [vmem:[%s25945_s4] sm:$0xff]  ;;  %s26064_s4 = smov 24  }
  0x4b   : > { %25944 = vst [vmem:[#allocation17_spill] sm:$0xff] %v20000_v44 }
  0x4c   : > { %875 = vperm.xlu0 %19619, %v865_v3   ;;  %890 = vperm.xlu1 %19620, %v866_v9  }
  0x50   : > { %895 = vperm.xlu0 %19619, %v867_v5  }
  0xbb   : > { %v20023_v52 = vpop.permute.xlu1 %625 }
  0xbf   : > { %v561_v15 = vpop.permute.xlu0 %560  ;;  %v20025_v53 = vpop.permute.xlu1 %620 }
  0xc0   : > { %v564_v25 = vmul.f32 %v561_v15, %v552_v14  ;;  %v566_v26 = vmul.f32 %v561_v15, %v554_v16  ;;  %v563_v27 = vmul.f32 %v561_v15, %v551_v18  ;;  %v565_v28 = vmul.f32 %v561_v15, %v553_v20 }
  0xc1   : > { %v567_v33 = vmul.f32 %v561_v15, %v555_v22 }
  0xc3   : > { %v571_v29 = vpop.permute.xlu0 %570  ;;  %v20027_v54 = vpop.permute.xlu1 %870 }
  0xc4   : > { %v574_v34 = vadd.f32 %v571_v29, %v564_v25  ;;  %v576_v35 = vadd.f32 %v571_v29, %v566_v26  ;;  %v573_v36 = vadd.f32 %v571_v29, %v563_v27  ;;  %v575_v37 = vadd.f32 %v571_v29, %v565_v28 }
  0xc5   : > { %v577_v38 = vadd.f32 %v571_v29, %v567_v33 }
  0xc6   : > { %v579_v39 = vmax.f32 %v574_v34, 0.0  ;;  %v581_v40 = vmax.f32 %v576_v35, 0.0  ;;  %v578_v41 = vmax.f32 %v573_v36, 0.0  ;;  %v580_v42 = vmax.f32 %v575_v37, 0.0 }
  0xc7   : > { %v582_v43 = vmax.f32 %v577_v38, 0.0  ;;  %v20034_v63 = vpop.permute.xlu1 %890  ;;  %v876_v18 = vpop.permute.xlu0 %875 }
  0xc8   : > { %v610_v45 = vmul.f32 %v19991_v23, %v579_v39  ;;  %v612_v46 = vmul.f32 %v19994_v30, %v581_v40  ;;  %v609_v47 = vmul.f32 %v19996_v31, %v578_v41  ;;  %v611_v48 = vmul.f32 %v19998_v32, %v580_v42 }
  0xc9   : > { %v613_v50 = vmul.f32 %v20000_v44, %v582_v43 }
  0xca   : > { %665 = vmatprep.subr.mxu0 %v610_v45  ;;  %742 = vmatprep.subr.mxu1 %v612_v46 }
  0xcb   : > { %666 = vmatpush1.msra.mxu0 %v609_v47  ;;  %743 = vmatpush1.msra.mxu1 %v611_v48  ;;  %v896_v24 = vpop.permute.xlu0 %895 }
  0xcc   : > { %18450 = vmatmul.mubr.msk.f32.vlgmr.msra.gmra.mxu0 %vm628_vm0, %v614_v49  ;;  %18452 = vmatmul.mubr.msk.f32.vlgmr.msra.gmra.mxu1 %vm628_vm0, %v614_v49 }
  0xcd   : > { %19080 = vmatprep.subr.mxu0 %v613_v50  ;;  %705 = vmatprep.mubr.f32.mxu0 %v25871_v4 }
  0xce   : > { %19081 = vmatpush3.msra.mxu0 %v613_v50  ;;  %782 = vmatprep.mubr.f32.mxu1 %v25871_v4 }
  0xd0   : > { %18451 = vmatmul.mubr.msk.f32.gmra.mxu0 %vm628_vm0, %v615_v51  ;;  %18453 = vmatmul.mubr.msk.f32.gmra.mxu1 %vm628_vm0, %v615_v51 }
  0xd1   : > { %19082 = vmatprep.mubr.msk.f32.mxu0 %vm628_vm0, %v614_v49  ;;  %1070 = vmatprep.mubr.f32.mxu1 %v25871_v4 }
  0xd4   : > { %19083 = vmatmul.mubr.msk.f32.vlgmr.msra.gmra.mxu0 %vm628_vm0, %v615_v51 }
  0xd5   : > { %1147 = vmatprep.mubr.f32.mxu0 %v25871_v4 }
 0x18c   : > { %v701_v55 = vpop.f32.mrf.mxu0  ;;  %v778_v56 = vpop.f32.mrf.mxu1 }
 0x18d   : > { %v702_v57 = vadd.f32 %v701_v55, %v20025_v53  ;;  %v779_v58 = vadd.f32 %v778_v56, %v20025_v53 }
 0x18e   : > { %v780_v59 = vpop.f32.mrf.mxu1  ;;  %v703_v8 = vpop.f32.mrf.mxu0 }
 0x18f   : > { %v878_v60 = vmul.f32 %v20027_v54, %v702_v57  ;;  %v880_v61 = vmul.f32 %v20027_v54, %v779_v58  ;;  %v781_v62 = vadd.f32 %v780_v59, %v20025_v53  ;;  %v704_v12 = vadd.f32 %v703_v8, %v20025_v53 }
 0x190   : > { %v707_v14 = vpop.f32.mrf.mxu0  ;;  %v784_v21 = vpop.f32.mrf.mxu1 }
 0x191   : > { %v898_v0 = vadd.f32 %v20034_v63, %v878_v60  ;;  %v900_v1 = vadd.f32 %v20034_v63, %v880_v61  ;;  %v881_v2 = vmul.f32 %v20027_v54, %v781_v62  ;;  %v879_v15 = vmul.f32 %v20027_v54, %v704_v12 }
 0x192   : > { %v708_v17 = vadd.f32 %v707_v14, %v20023_v52  ;;  %v709_v22 = vpop.f32.mrf.mxu0  ;;  %v786_v28 = vpop.f32.mrf.mxu1  ;;  %v785_v36 = vadd.f32 %v784_v21, %v20023_v52 }
 0x193   : > { %v908_v3 = vmax.f32 %v898_v0, 0.0  ;;  %v910_v5 = vmax.f32 %v900_v1, 0.0  ;;  %v901_v9 = vadd.f32 %v20034_v63, %v881_v2  ;;  %v899_v19 = vadd.f32 %v20034_v63, %v879_v15 }
 0x194   : > { %v883_v20 = vmul.f32 %v876_v18, %v708_v17  ;;  %v710_v27 = vadd.f32 %v709_v22, %v20023_v52  ;;  %v787_v35 = vadd.f32 %v786_v28, %v20023_v52  ;;  %v885_v40 = vmul.f32 %v876_v18, %v785_v36  ;;  %v19084_v49 = vpop.f32.mrf.mxu0  ;;  %v929_v36 = vld [vmem:[%s25854_s9 + $0x8] sm:$0xff] }
 0x195   : > { %v20040_v6 = vmul.f32 %v908_v3, %v19996_v31  ;;  %v20043_v7 = vmul.f32 %v910_v5, %v19998_v32  ;;  %v911_v13 = vmax.f32 %v901_v9, 0.0  ;;  %v909_v25 = vmax.f32 %v899_v19, 0.0 }
 0x196   : > { %v903_v26 = vadd.f32 %v896_v24, %v883_v20  ;;  %v884_v34 = vmul.f32 %v876_v18, %v710_v27  ;;  %v886_v39 = vmul.f32 %v876_v18, %v787_v35  ;;  %v905_v43 = vadd.f32 %v896_v24, %v885_v40  ;;  %v855_v57 = vpop.f32.mrf.mxu0 }
 0x197   : > { %976 = vrot.lane.b32.xlu0 %v20043_v7, %s25899_s26  ;;  %968 = vrot.lane.b32.xlu1 %v20040_v6, %s25899_s26  ;;  %v20057_v16 = vmul.f32 %v911_v13, %v19994_v30  ;;  %v20075_v29 = vmul.f32 %v909_v25, %v19991_v23  ;;  %v861_v51 = vadd.f32 %v19084_v49, %v20023_v52  ;;  %v20258_v20 = vand.u32 127, %v25870_v10 }
 0x198   : > { %v913_v33 = vmax.f32 %v903_v26, 0.0  ;;  %v904_v38 = vadd.f32 %v896_v24, %v884_v34  ;;  %v906_v42 = vadd.f32 %v896_v24, %v886_v39  ;;  %v915_v47 = vmax.f32 %v905_v43, 0.0 }
 0x199   : > { %v887_v55 = vmul.f32 %v876_v18, %v861_v51  ;;  %v856_v58 = vadd.f32 %v855_v57, %v20025_v53  ;;  %25946 = vst [vmem:[#allocation18_spill] sm:$0xff] %v20258_v20  ;;  %vm988_vm1 = vcmp.lt.s32.totalorder %v20258_v20, 24  ;;  %vm954_vm3 = vcmp.lt.s32.totalorder %v20258_v20, 25 }
 0x19a   : > { %v20084_v37 = vmul.f32 %v913_v33, %v19996_v31  ;;  %v914_v41 = vmax.f32 %v904_v38, 0.0  ;;  %v916_v46 = vmax.f32 %v906_v42, 0.0  ;;  %v20109_v50 = vmul.f32 %v915_v47, %v19998_v32  ;;  %v966_v38 = vld [vmem:[#allocation2 + $0x10] sm:$0xff]  ;;  %v967_v47 = vld [vmem:[#allocation2 + $0x18] sm:$0xff] }
 0x19b   : > { %940 = vrot.lane.b32.xlu0 %v20043_v7, %s25894_s29  ;;  %1473 = vrot.lane.b32.xlu1 %v20040_v6, %s25892_s19  ;;  %v907_v56 = vadd.f32 %v896_v24, %v887_v55  ;;  %v882_v60 = vmul.f32 %v20027_v54, %v856_v58  ;;  %vm1493_vm4 = vcmp.lt.s32.totalorder %v20258_v20, 23  ;;  %vm1772_vm5 = vcmp.lt.s32.totalorder %v20258_v20, 1 }
 0x19c   : > { %v20095_v45 = vmul.f32 %v914_v41, %v19991_v23  ;;  %v20102_v48 = vmul.f32 %v916_v46, %v19994_v30  ;;  %v928_v41 = vld [vmem:[%s25854_s9] sm:$0xff]  ;;  %vm2299_vm6 = vcmp.lt.s32.totalorder %v20258_v20, 127  ;;  %vm2578_vm7 = vcmp.lt.s32.totalorder %v20258_v20, 105 }
 0x19d   : > { %v917_v52 = vmax.f32 %v907_v56, 0.0  ;;  %v902_v61 = vadd.f32 %v20034_v63, %v882_v60  ;;  %vm2857_vm8 = vcmp.lt.s32.totalorder %v20258_v20, 104  ;;  %vm3136_vm9 = vcmp.lt.s32.totalorder %v20258_v20, 103 }
 0x19f   : > { %932 = vrot.lane.b32.xlu0 %v20040_v6, %s25894_s29  ;;  %980 = vrot.lane.b32.xlu1 %v20057_v16, %s25899_s26  ;;  %v20130_v59 = vmul.f32 %v917_v52, %v20000_v44  ;;  %v912_v53 = vmax.f32 %v902_v61, 0.0 }
 0x1a1   : > { %v20147_v54 = vmul.f32 %v912_v53, %v20000_v44 }
 0x1a3   : > { %1481 = vrot.lane.b32.xlu0 %v20043_v7, %s25892_s19  ;;  %944 = vrot.lane.b32.xlu1 %v20057_v16, %s25894_s29 }
 0x1a7   : > { %1760 = vrot.lane.b32.xlu0 %v20043_v7, %s25890_s28  ;;  %1485 = vrot.lane.b32.xlu1 %v20057_v16, %s25892_s19 }
 0x1ab   : > { %972 = vrot.lane.b32.xlu0 %v20075_v29, %s25899_s26  ;;  %1764 = vrot.lane.b32.xlu1 %v20057_v16, %s25890_s28 }
 0x1af   : > { %936 = vrot.lane.b32.xlu0 %v20075_v29, %s25894_s29  ;;  %934 = vrot.lane.b32.xlu1 %v20084_v37, %s25894_s29 }
 0x1b3   : > { %1477 = vrot.lane.b32.xlu0 %v20075_v29, %s25892_s19  ;;  %1754 = vrot.lane.b32.xlu1 %v20084_v37, %s25890_s28 }
 0x1b7   : > { %1756 = vrot.lane.b32.xlu0 %v20075_v29, %s25890_s28  ;;  %974 = vrot.lane.b32.xlu1 %v20095_v45, %s25899_s26 }
 0x1bb   : > { %970 = vrot.lane.b32.xlu0 %v20084_v37, %s25899_s26  ;;  %982 = vrot.lane.b32.xlu1 %v20102_v48, %s25899_s26 }
 0x1bf   : > { %978 = vrot.lane.b32.xlu0 %v20109_v50, %s25899_s26  ;;  %946 = vrot.lane.b32.xlu1 %v20102_v48, %s25894_s29 }
 0x1c3   : > { %942 = vrot.lane.b32.xlu0 %v20109_v50, %s25894_s29  ;;  %1479 = vrot.lane.b32.xlu1 %v20095_v45, %s25892_s19 }
 0x1c7   : > { %1475 = vrot.lane.b32.xlu0 %v20084_v37, %s25892_s19  ;;  %1487 = vrot.lane.b32.xlu1 %v20102_v48, %s25892_s19 }
 0x1cb   : > { %1483 = vrot.lane.b32.xlu0 %v20109_v50, %s25892_s19  ;;  %1766 = vrot.lane.b32.xlu1 %v20102_v48, %s25890_s28 }
 0x1cf   : > { %1762 = vrot.lane.b32.xlu0 %v20109_v50, %s25890_s28  ;;  %950 = vrot.lane.b32.xlu1 %v20130_v59, %s25894_s29 }
 0x1d3   : > { %938 = vrot.lane.b32.xlu0 %v20095_v45, %s25894_s29  ;;  %1770 = vrot.lane.b32.xlu1 %v20130_v59, %s25890_s28 }
 0x1d7   : > { %1758 = vrot.lane.b32.xlu0 %v20095_v45, %s25890_s28  ;;  %2297 = vrot.lane.b32.xlu1 %v20130_v59, %s25883_s30 }
 0x1db   : > { %986 = vrot.lane.b32.xlu0 %v20130_v59, %s25899_s26  ;;  %984 = vrot.lane.b32.xlu1 %v20147_v54, %s25899_s26 }
 0x1df   : > { %1752 = vrot.lane.b32.xlu0 %v20040_v6, %s25890_s28  ;;  %2285 = vrot.lane.b32.xlu1 %v20095_v45, %s25883_s30 }
 0x1e3   : > { %2293 = vrot.lane.b32.xlu0 %v20102_v48, %s25883_s30  ;;  %2287 = vrot.lane.b32.xlu1 %v20043_v7, %s25883_s30 }
 0x1e7   : > { %2289 = vrot.lane.b32.xlu0 %v20109_v50, %s25883_s30  ;;  %2279 = vrot.lane.b32.xlu1 %v20040_v6, %s25883_s30 }
 0x1eb   : > { %1491 = vrot.lane.b32.xlu0 %v20130_v59, %s25892_s19  ;;  %948 = vrot.lane.b32.xlu1 %v20147_v54, %s25894_s29 }
 0x1ef   : > { %2291 = vrot.lane.b32.xlu0 %v20057_v16, %s25883_s30  ;;  %1489 = vrot.lane.b32.xlu1 %v20147_v54, %s25892_s19 }
 0x1f3   : > { %2281 = vrot.lane.b32.xlu0 %v20084_v37, %s25883_s30  ;;  %2568 = vrot.lane.b32.xlu1 %v20109_v50, %s25878_s21 }
 0x1f7   : > { %2283 = vrot.lane.b32.xlu0 %v20075_v29, %s25883_s30  ;;  %2562 = vrot.lane.b32.xlu1 %v20075_v29, %s25878_s21 }
 0x1fb   : > { %2564 = vrot.lane.b32.xlu0 %v20095_v45, %s25878_s21  ;;  %2558 = vrot.lane.b32.xlu1 %v20040_v6, %s25878_s21 }
 0x1ff   : > { %2560 = vrot.lane.b32.xlu0 %v20084_v37, %s25878_s21  ;;  %1768 = vrot.lane.b32.xlu1 %v20147_v54, %s25890_s28 }
 0x203   : > { %2566 = vrot.lane.b32.xlu0 %v20043_v7, %s25878_s21  ;;  %2576 = vrot.lane.b32.xlu1 %v20130_v59, %s25878_s21 }
 0x207   : > { %2572 = vrot.lane.b32.xlu0 %v20102_v48, %s25878_s21  ;;  %2855 = vrot.lane.b32.xlu1 %v20130_v59, %s25868_s23 }
 0x209   : > { %v977_v62 = vpop.permute.xlu0 %976  ;;  %v20197_v63 = vpop.permute.xlu1 %968 }
 0x20b   : > { %2570 = vrot.lane.b32.xlu0 %v20057_v16, %s25878_s21  ;;  %2843 = vrot.lane.b32.xlu1 %v20095_v45, %s25868_s23 }
 0x20d   : > { %v20203_v0 = vpop.permute.xlu0 %940  ;;  %v20205_v1 = vpop.permute.xlu1 %1473 }
 0x20f   : > { %2851 = vrot.lane.b32.xlu0 %v20102_v48, %s25868_s23  ;;  %2295 = vrot.lane.b32.xlu1 %v20147_v54, %s25883_s30 }
 0x211   : > { %v20211_v2 = vpop.permute.xlu0 %932  ;;  %v20213_v3 = vpop.permute.xlu1 %980 }
 0x212   : > { %v991_v35 = vsel %vm988_vm1, %v977_v62, %v20213_v3 }
 0x213   : > { %2847 = vrot.lane.b32.xlu0 %v20109_v50, %s25868_s23  ;;  %2845 = vrot.lane.b32.xlu1 %v20043_v7, %s25868_s23 }
 0x215   : > { %v20219_v5 = vpop.permute.xlu0 %1481  ;;  %v20221_v8 = vpop.permute.xlu1 %944 }
 0x217   : > { %2849 = vrot.lane.b32.xlu0 %v20057_v16, %s25868_s23  ;;  %2837 = vrot.lane.b32.xlu1 %v20040_v6, %s25868_s23 }
 0x219   : > { %v20227_v9 = vpop.permute.xlu0 %1760  ;;  %v20229_v12 = vpop.permute.xlu1 %1485 }
 0x21b   : > { %2839 = vrot.lane.b32.xlu0 %v20084_v37, %s25868_s23  ;;  %3126 = vrot.lane.b32.xlu1 %v20109_v50, %s25888_s27 }
 0x21d   : > { %v20235_v13 = vpop.permute.xlu0 %972  ;;  %v20237_v14 = vpop.permute.xlu1 %1764 }
 0x21e   : > { %v993_v40 = vsel %vm988_vm1, %v20235_v13, %v977_v62 }
 0x21f   : > { %2841 = vrot.lane.b32.xlu0 %v20075_v29, %s25868_s23  ;;  %2574 = vrot.lane.b32.xlu1 %v20147_v54, %s25878_s21 }
 0x221   : > { %v20243_v15 = vpop.permute.xlu0 %936  ;;  %v935_v17 = vpop.permute.xlu1 %934 }
 0x222   : > { %v961_v61 = vsel %vm954_vm3, %v20211_v2, %v20243_v15 }
 0x223   : > { %3122 = vrot.lane.b32.xlu0 %v20095_v45, %s25888_s27  ;;  %2853 = vrot.lane.b32.xlu1 %v20147_v54, %s25868_s23  ;;  %s25962_s23 = smov 104  }
 0x225   : > { %v20249_v18 = vpop.permute.xlu0 %1477  ;;  %v20251_v19 = vpop.permute.xlu1 %1754 }
 0x227   : > { %3118 = vrot.lane.b32.xlu0 %v20084_v37, %s25888_s27  ;;  %3120 = vrot.lane.b32.xlu1 %v20075_v29, %s25888_s27 }
 0x229   : > { %v20260_v21 = vpop.permute.xlu0 %1756  ;;  %v975_v22 = vpop.permute.xlu1 %974 }
 0x22b   : > { %3124 = vrot.lane.b32.xlu0 %v20043_v7, %s25888_s27  ;;  %3116 = vrot.lane.b32.xlu1 %v20040_v6, %s25888_s27 }
 0x22d   : > { %v971_v24 = vpop.permute.xlu0 %970  ;;  %v983_v25 = vpop.permute.xlu1 %982 }
 0x22e   : > { %v996_v26 = vsel %vm988_vm1, %v971_v24, %v975_v22 }
 0x22f   : > { %3130 = vrot.lane.b32.xlu0 %v20102_v48, %s25888_s27  ;;  %1034 = vmatprep.subr.mxu1 %v996_v26 }
 0x230   : > { %3134 = vrot.lane.b32.xlu1 %v20130_v59, %s25888_s27 }
 0x231   : > { %v979_v27 = vpop.permute.xlu0 %978  ;;  %v20273_v28 = vpop.permute.xlu1 %946 }
 0x232   : > { %v992_v33 = vsel %vm988_vm1, %v979_v27, %v983_v25  ;;  %v994_v34 = vsel %vm988_vm1, %v975_v22, %v979_v27 }
 0x233   : > { %3128 = vrot.lane.b32.xlu0 %v20057_v16, %s25888_s27  ;;  %1111 = vmatprep.subr.mxu0 %v992_v33 }
 0x234   : > { %3132 = vrot.lane.b32.xlu1 %v20147_v54, %s25888_s27  ;;  %1112 = vmatpush1.msra.mxu0 %v994_v34 }
 0x235   : > { %v943_v39 = vpop.permute.xlu0 %942  ;;  %1113 = vmatprep.subr.mxu0 %v991_v35  ;;  %v20295_v42 = vpop.permute.xlu1 %1479 }
 0x236   : > { %1114 = vmatpush1.msra.mxu0 %v993_v40 }
 0x237   : > { %3399 = vperm.xlu0 %19619, %v929_v36   ;;  %18458 = vmatmul.mubr.msk.f32.vlgmr.msra.gmra.mxu0 %vm999_vm2, %v966_v38 }
 0x238   : > { %3394 = vperm.xlu1 %19620, %v928_v41   ;;  %1153 = vmatprep.mubr.f32.mxu0 %v25871_v4 }
 0x239   : > { %v1476_v43 = vpop.permute.xlu0 %1475  ;;  %v20299_v46 = vpop.permute.xlu1 %1487 }
 0x23b   : > { %18459 = vmatmul.mubr.msk.f32.gmra.mxu0 %vm999_vm2, %v967_v47 }
 0x23c   : > { %1305 = vmatprep.mubr.f32.mxu0 %v25871_v4 }
 0x23d   : > { %v20303_v49 = vpop.permute.xlu0 %1483  ;;  %v20305_v51 = vpop.permute.xlu1 %1766 }
 0x241   : > { %v20307_v55 = vpop.permute.xlu0 %1762  ;;  %v951_v56 = vpop.permute.xlu1 %950 }
 0x242   : > { %v964_v60 = vsel %vm954_vm3, %v951_v56, %v935_v17 }
 0x245   : > { %v939_v57 = vpop.permute.xlu0 %938  ;;  %v20310_v52 = vpop.permute.xlu1 %1770 }
 0x246   : > { %v962_v58 = vsel %vm954_vm3, %v935_v17, %v939_v57  ;;  %v995_v17 = vsel %vm988_vm1, %v20197_v63, %v20235_v13  ;;  %v960_v41 = vsel %vm954_vm3, %v939_v57, %v943_v39 }
 0x247   : > { %1269 = vmatprep.subr.mxu0 %v962_v58  ;;  %v957_v58 = vsel %vm954_vm3, %v20203_v0, %v20221_v8 }
 0x248   : > { %1270 = vmatpush1.msra.mxu0 %v964_v60  ;;  %v930_v60 = vld [vmem:[#allocation2] sm:$0xff] }
 0x249   : > { %v20320_v53 = vpop.permute.xlu0 %1758  ;;  %1271 = vmatprep.subr.mxu0 %v961_v61  ;;  %v20322_v62 = vpop.permute.xlu1 %2297 }
 0x24d   : > { %v987_v22 = vpop.permute.xlu0 %986  ;;  %v985_v26 = vpop.permute.xlu1 %984 }
 0x24e   : > { %v998_v27 = vsel %vm988_vm1, %v987_v22, %v971_v24  ;;  %v997_v33 = vsel %vm988_vm1, %v985_v26, %v20197_v63  ;;  %v990_v35 = vsel %vm988_vm1, %v983_v25, %v987_v22  ;;  %v989_v13 = vsel %vm988_vm1, %v20213_v3, %v985_v26 }
 0x24f   : > { %1035 = vmatpush1.msra.mxu1 %v998_v27  ;;  %v958_v24 = vsel %vm954_vm3, %v943_v39, %v20273_v28  ;;  %v1501_v39 = vsel %vm1493_vm4, %v1476_v43, %v20295_v42  ;;  %v956_v26 = vsel %vm954_vm3, %v20273_v28, %v951_v56  ;;  %v1497_v56 = vsel %vm1493_vm4, %v20303_v49, %v20299_v46 }
 0x250   : > { %1036 = vmatprep.subr.mxu1 %v995_v17  ;;  %v1471_v17 = vld [vmem:[#allocation2 + $0x20] sm:$0xff] }
 0x251   : > { %v20333_v34 = vpop.permute.xlu0 %1752  ;;  %1037 = vmatpush1.msra.mxu1 %v997_v33  ;;  %v20337_v36 = vpop.permute.xlu1 %2285 }
 0x252   : > { %18456 = vmatmul.mubr.msk.f32.vlgmr.msra.gmra.mxu1 %vm999_vm2, %v966_v38  ;;  %19085 = vmatprep.subr.mxu1 %v990_v35 }
 0x253   : > { %19086 = vmatpush3.msra.mxu1 %v990_v35  ;;  %1076 = vmatprep.mubr.f32.mxu1 %v25871_v4 }
 0x254   : > { %19087 = vmatprep.subr.mxu1 %v989_v13 }
 0x255   : > { %v20344_v63 = vpop.permute.xlu0 %2293  ;;  %19088 = vmatpush3.msra.mxu1 %v989_v13  ;;  %v20349_v25 = vpop.permute.xlu1 %2287 }
 0x256   : > { %18457 = vmatmul.mubr.msk.f32.gmra.mxu1 %vm999_vm2, %v967_v47  ;;  %1346 = vmatprep.subr.mxu1 %v958_v24  ;;  %v1472_v24 = vld [vmem:[#allocation2 + $0x28] sm:$0xff] }
 0x257   : > { %19089 = vmatprep.mubr.msk.f32.mxu1 %vm999_vm2, %v966_v38  ;;  %v959_v38 = vsel %vm954_vm3, %v20243_v15, %v20203_v0  ;;  %v1500_v0 = vsel %vm1493_vm4, %v20205_v1, %v20249_v18  ;;  %v931_v15 = vld [vmem:[#allocation2 + $0x8] sm:$0xff] }
 0x259   : > { %v20353_v40 = vpop.permute.xlu0 %2289  ;;  %v20355_v3 = vpop.permute.xlu1 %2279 }
 0x25a   : > { %19090 = vmatmul.mubr.msk.f32.vlgmr.msra.gmra.mxu1 %vm999_vm2, %v967_v47 }
 0x25b   : > { %1347 = vmatpush1.msra.mxu1 %v960_v41  ;;  %1382 = vmatprep.mubr.f32.mxu1 %v25871_v4  ;;  %v1496_v41 = vsel %vm1493_vm4, %v20219_v5, %v20229_v12 }
 0x25c   : > { %1348 = vmatprep.subr.mxu1 %v957_v58  ;;  %v1776_v58 = vsel %vm1772_vm5, %v20307_v55, %v20305_v51 }
 0x25d   : > { %1349 = vmatpush1.msra.mxu1 %v959_v38  ;;  %v1492_v47 = vpop.permute.xlu0 %1491  ;;  %v949_v57 = vpop.permute.xlu1 %948  ;;  %v1779_v38 = vsel %vm1772_vm5, %v20333_v34, %v20260_v21 }
 0x25e   : > { %1538 = vmatprep.subr.mxu1 %v1501_v39  ;;  %18464 = vmatmul.mubr.msk.f32.vlgmr.msra.gmra.mxu1 %vm999_vm2, %v930_v60  ;;  %v1503_v61 = vsel %vm1493_vm4, %v1492_v47, %v1476_v43  ;;  %v963_v22 = vsel %vm954_vm3, %v949_v57, %v20211_v2  ;;  %v955_v27 = vsel %vm954_vm3, %v20221_v8, %v949_v57  ;;  %v1750_v57 = vld [vmem:[#allocation2 + $0x30] sm:$0xff] }
 0x25f   : > { %1539 = vmatpush1.msra.mxu1 %v1503_v61  ;;  %1388 = vmatprep.mubr.f32.mxu1 %v25871_v4  ;;  %v1495_v8 = vsel %vm1493_vm4, %v20299_v46, %v1492_v47  ;;  %v1499_v46 = vsel %vm1493_vm4, %v20295_v42, %v20303_v49  ;;  %v1498_v42 = vsel %vm1493_vm4, %v20249_v18, %v20219_v5 }
 0x260   : > { %1272 = vmatpush1.msra.mxu0 %v963_v22  ;;  %1540 = vmatprep.subr.mxu1 %v1500_v0  ;;  %v1782_v5 = vsel %vm1772_vm5, %v20310_v52, %v20251_v19  ;;  %v1775_v47 = vsel %vm1772_vm5, %v20227_v9, %v20237_v14  ;;  %v1777_v61 = vsel %vm1772_vm5, %v20260_v21, %v20227_v9 }
 0x261   : > { %18462 = vmatmul.mubr.msk.f32.vlgmr.msra.gmra.mxu0 %vm999_vm2, %v930_v60  ;;  %19092 = vmatprep.subr.mxu0 %v956_v26  ;;  %v20388_v43 = vpop.permute.xlu0 %2291  ;;  %v1490_v2 = vpop.permute.xlu1 %1489  ;;  %v1774_v9 = vsel %vm1772_vm5, %v20305_v51, %v20310_v52  ;;  %v2029_v51 = vld [vmem:[#allocation2 + $0x40] sm:$0xff]  ;;  %v2030_v52 = vld [vmem:[#allocation2 + $0x48] sm:$0xff] }
 0x262   : > { %19093 = vmatpush3.msra.mxu0 %v956_v26  ;;  %18465 = vmatmul.mubr.msk.f32.gmra.mxu1 %vm999_vm2, %v931_v15  ;;  %v1502_v28 = vsel %vm1493_vm4, %v1490_v2, %v20205_v1  ;;  %v1494_v35 = vsel %vm1493_vm4, %v20229_v12, %v1490_v2  ;;  %v1780_v12 = vsel %vm1772_vm5, %v20251_v19, %v20320_v53 }
 0x263   : > { %19094 = vmatprep.subr.mxu0 %v955_v27  ;;  %1311 = vmatprep.mubr.f32.mxu0 %v25871_v4  ;;  %v1778_v19 = vsel %vm1772_vm5, %v20320_v53, %v20307_v55  ;;  %v2303_v26 = vsel %vm2299_vm6, %v20353_v40, %v20344_v63 }
 0x264   : > { %19095 = vmatpush3.msra.mxu0 %v955_v27  ;;  %1541 = vmatpush1.msra.mxu1 %v1502_v28  ;;  %v2277_v28 = vld [vmem:[#allocation2 + $0x50] sm:$0xff] }
 0x265   : > { %18463 = vmatmul.mubr.msk.f32.gmra.mxu0 %vm999_vm2, %v931_v15  ;;  %1615 = vmatprep.subr.mxu0 %v1497_v56  ;;  %v20406_v33 = vpop.permute.xlu0 %2281  ;;  %v20409_v1 = vpop.permute.xlu1 %2568 }
 0x266   : > { %19099 = vmatprep.subr.mxu1 %v1495_v8  ;;  %1574 = vmatprep.mubr.f32.mxu1 %v25871_v4  ;;  %v2309_v27 = vsel %vm2299_vm6, %v20322_v62, %v20406_v33 }
 0x267   : > { %18468 = vmatmul.mubr.msk.f32.vlgmr.msra.gmra.mxu1 %vm999_vm2, %v1471_v17  ;;  %19096 = vmatprep.mubr.msk.f32.mxu0 %vm999_vm2, %v930_v60 }
 0x268   : > { %19100 = vmatpush3.msra.mxu1 %v1495_v8  ;;  %1580 = vmatprep.mubr.f32.mxu1 %v25871_v4  ;;  %v2278_v8 = vld [vmem:[#allocation2 + $0x58] sm:$0xff] }
 0x269   : > { %19101 = vmatprep.subr.mxu1 %v1494_v35  ;;  %19097 = vmatmul.mubr.msk.f32.vlgmr.msra.gmra.mxu0 %vm999_vm2, %v931_v15  ;;  %v20423_v13 = vpop.permute.xlu0 %2283  ;;  %v20433_v60 = vpop.permute.xlu1 %2562 }
 0x26a   : > { %1616 = vmatpush1.msra.mxu0 %v1499_v46  ;;  %19102 = vmatpush3.msra.mxu1 %v1494_v35 }
 0x26b   : > { %1617 = vmatprep.subr.mxu0 %v1496_v41  ;;  %1894 = vmatprep.subr.mxu1 %v1776_v58 }
 0x26c   : > { %18469 = vmatmul.mubr.msk.f32.gmra.mxu1 %vm999_vm2, %v1472_v24  ;;  %1618 = vmatpush1.msra.mxu0 %v1498_v42  ;;  %v2557_v42 = vld [vmem:[#allocation2 + $0x68] sm:$0xff] }
 0x26d   : > { %1651 = vmatprep.mubr.f32.mxu0 %v25871_v4  ;;  %1817 = vmatprep.subr.mxu0 %v1780_v12  ;;  %v20445_v49 = vpop.permute.xlu0 %2564  ;;  %v20453_v18 = vpop.permute.xlu1 %2558 }
 0x26e   : > { %18470 = vmatmul.mubr.msk.f32.vlgmr.msra.gmra.mxu0 %vm999_vm2, %v1471_v17  ;;  %19103 = vmatprep.mubr.msk.f32.mxu1 %vm999_vm2, %v1471_v17  ;;  %v2584_v56 = vsel %vm2578_vm7, %v20445_v49, %v20409_v1  ;;  %v2585_v17 = vsel %vm2578_vm7, %v20453_v18, %v20433_v60 }
 0x26f   : > { %1818 = vmatpush1.msra.mxu0 %v1782_v5  ;;  %1657 = vmatprep.mubr.f32.mxu0 %v25871_v4 }
 0x270   : > { %1819 = vmatprep.subr.mxu0 %v1779_v38  ;;  %19104 = vmatmul.mubr.msk.f32.vlgmr.msra.gmra.mxu1 %vm999_vm2, %v1472_v24 }
 0x271   : > { %1895 = vmatpush1.msra.mxu1 %v1778_v19  ;;  %v20469_v39 = vpop.permute.xlu0 %2560  ;;  %1930 = vmatprep.mubr.f32.mxu1 %v25871_v4  ;;  %v1769_v55 = vpop.permute.xlu1 %1768 }
 0x272   : > { %1896 = vmatprep.subr.mxu1 %v1775_v47  ;;  %18471 = vmatmul.mubr.msk.f32.gmra.mxu0 %vm999_vm2, %v1472_v24  ;;  %v1781_v53 = vsel %vm1772_vm5, %v1769_v55, %v20333_v34  ;;  %v1751_v34 = vld [vmem:[#allocation2 + $0x38] sm:$0xff]  ;;  %v2556_v24 = vld [vmem:[#allocation2 + $0x60] sm:$0xff] }
 0x273   : > { %1897 = vmatpush1.msra.mxu1 %v1777_v61  ;;  %1853 = vmatprep.mubr.f32.mxu0 %v25871_v4 }
 0x274   : > { %2065 = vmatprep.subr.mxu1 %v20095_v45  ;;  %18476 = vmatmul.mubr.msk.f32.vlgmr.msra.gmra.mxu1 %vm999_vm2, %v1750_v57 }
 0x275   : > { %2066 = vmatpush1.msra.mxu1 %v20084_v37  ;;  %1820 = vmatpush1.msra.mxu0 %v1781_v53  ;;  %v20484_v22 = vpop.permute.xlu0 %2566  ;;  %v20492_v21 = vpop.permute.xlu1 %2576 }
 0x276   : > { %2067 = vmatprep.subr.mxu1 %v20075_v29  ;;  %18474 = vmatmul.mubr.msk.f32.vlgmr.msra.gmra.mxu0 %vm999_vm2, %v1750_v57  ;;  %v1773_v29 = vsel %vm1772_vm5, %v20237_v14, %v1769_v55 }
 0x277   : > { %19106 = vmatprep.subr.mxu0 %v1774_v9  ;;  %2068 = vmatpush1.msra.mxu1 %v20040_v6 }
 0x278   : > { %1936 = vmatprep.mubr.f32.mxu1 %v25871_v4  ;;  %19107 = vmatpush3.msra.mxu0 %v1774_v9 }
 0x279   : > { %19113 = vmatprep.subr.mxu1 %v20130_v59  ;;  %18477 = vmatmul.mubr.msk.f32.gmra.mxu1 %vm999_vm2, %v1751_v34  ;;  %v20501_v37 = vpop.permute.xlu0 %2572  ;;  %v20504_v45 = vpop.permute.xlu1 %2855 }
 0x27a   : > { %19108 = vmatprep.subr.mxu0 %v1773_v29  ;;  %1859 = vmatprep.mubr.f32.mxu0 %v25871_v4  ;;  %v2582_v5 = vsel %vm2578_vm7, %v20409_v1, %v20501_v37 }
 0x27b   : > { %19109 = vmatpush3.msra.mxu0 %v1773_v29  ;;  %2101 = vmatprep.mubr.f32.mxu1 %v25871_v4  ;;  %v2835_v29 = vld [vmem:[#allocation2 + $0x70] sm:$0xff] }
 0x27c   : > { %18475 = vmatmul.mubr.msk.f32.gmra.mxu0 %vm999_vm2, %v1751_v34  ;;  %2142 = vmatprep.subr.mxu0 %v20102_v48  ;;  %v2301_v48 = vsel %vm2299_vm6, %v20344_v63, %v20322_v62  ;;  %v2302_v63 = vsel %vm2299_vm6, %v20349_v25, %v20388_v43 }
 0x27d   : > { %18480 = vmatmul.mubr.msk.f32.vlgmr.msra.gmra.mxu1 %vm999_vm2, %v2029_v51  ;;  %19110 = vmatprep.mubr.msk.f32.mxu0 %vm999_vm2, %v1750_v57  ;;  %v20512_v6 = vpop.permute.xlu0 %2570  ;;  %v20516_v14 = vpop.permute.xlu1 %2843 }
 0x27e   : > { %19114 = vmatpush3.msra.mxu1 %v20130_v59  ;;  %2107 = vmatprep.mubr.f32.mxu1 %v25871_v4  ;;  %v2581_v38 = vsel %vm2578_vm7, %v20484_v22, %v20512_v6 }
 0x27f   : > { %19115 = vmatprep.subr.mxu1 %v20147_v54 }
 0x280   : > { %19111 = vmatmul.mubr.msk.f32.vlgmr.msra.gmra.mxu0 %vm999_vm2, %v1751_v34  ;;  %19116 = vmatpush3.msra.mxu1 %v20147_v54  ;;  %v2305_v54 = vsel %vm2299_vm6, %v20337_v36, %v20353_v40 }
 0x281   : > { %2143 = vmatpush1.msra.mxu0 %v20109_v50  ;;  %2421 = vmatprep.subr.mxu1 %v2301_v48  ;;  %v20526_v59 = vpop.permute.xlu0 %2851  ;;  %v2296_v0 = vpop.permute.xlu1 %2295 }
 0x282   : > { %2144 = vmatprep.subr.mxu0 %v20057_v16  ;;  %18481 = vmatmul.mubr.msk.f32.gmra.mxu1 %vm999_vm2, %v2030_v52  ;;  %v2307_v16 = vsel %vm2299_vm6, %v20406_v33, %v20337_v36  ;;  %v2300_v50 = vsel %vm2299_vm6, %v20388_v43, %v2296_v0  ;;  %v2306_v36 = vsel %vm2299_vm6, %v20355_v3, %v20423_v13 }
 0x283   : > { %2145 = vmatpush1.msra.mxu0 %v20043_v7  ;;  %2178 = vmatprep.mubr.f32.mxu0 %v25871_v4  ;;  %v2304_v7 = vsel %vm2299_vm6, %v20423_v13, %v20349_v25  ;;  %v2586_v25 = vsel %vm2578_vm7, %v20469_v39, %v20445_v49  ;;  %v2583_v43 = vsel %vm2578_vm7, %v20433_v60, %v20484_v22 }
 0x284   : > { %2344 = vmatprep.subr.mxu0 %v2305_v54  ;;  %18482 = vmatmul.mubr.msk.f32.vlgmr.msra.gmra.mxu0 %vm999_vm2, %v2029_v51  ;;  %v2308_v35 = vsel %vm2299_vm6, %v2296_v0, %v20355_v3  ;;  %v2588_v13 = vsel %vm2578_vm7, %v20492_v21, %v20469_v39  ;;  %v2580_v3 = vsel %vm2578_vm7, %v20501_v37, %v20492_v21 }
 0x285   : > { %2345 = vmatpush1.msra.mxu0 %v2307_v16  ;;  %19117 = vmatprep.mubr.msk.f32.mxu1 %vm999_vm2, %v2029_v51  ;;  %v20549_v15 = vpop.permute.xlu0 %2847  ;;  %v20560_v2 = vpop.permute.xlu1 %2845  ;;  %v2859_v47 = vsel %vm2857_vm8, %v20526_v59, %v20504_v45 }
 0x286   : > { %2346 = vmatprep.subr.mxu0 %v2304_v7  ;;  %19118 = vmatmul.mubr.msk.f32.vlgmr.msra.gmra.mxu1 %vm999_vm2, %v2030_v52  ;;  %v2863_v1 = vsel %vm2857_vm8, %v20516_v14, %v20549_v15  ;;  %v2861_v55 = vsel %vm2857_vm8, %v20549_v15, %v20526_v59 }
 0x287   : > { %2347 = vmatpush1.msra.mxu0 %v2306_v36  ;;  %2422 = vmatpush1.msra.mxu1 %v2303_v26  ;;  %v3115_v26 = vld [vmem:[#allocation2 + $0x88] sm:$0xff] }
 0x288   : > { %2184 = vmatprep.mubr.f32.mxu0 %v25871_v4  ;;  %2423 = vmatprep.subr.mxu1 %v2300_v50  ;;  %v3114_v50 = vld [vmem:[#allocation2 + $0x80] sm:$0xff] }
 0x289   : > { %19120 = vmatprep.subr.mxu0 %v2309_v27  ;;  %18483 = vmatmul.mubr.msk.f32.gmra.mxu0 %vm999_vm2, %v2030_v52  ;;  %v20573_v40 = vpop.permute.xlu0 %2849  ;;  %v20580_v62 = vpop.permute.xlu1 %2837 }
 0x28a   : > { %2424 = vmatpush1.msra.mxu1 %v2302_v63  ;;  %2457 = vmatprep.mubr.f32.mxu1 %v25871_v4  ;;  %v2860_v21 = vsel %vm2857_vm8, %v20560_v2, %v20573_v40 }
 0x28b   : > { %2623 = vmatprep.subr.mxu1 %v2584_v56  ;;  %18488 = vmatmul.mubr.msk.f32.vlgmr.msra.gmra.mxu1 %vm999_vm2, %v2277_v28 }
 0x28c   : > { %2624 = vmatpush1.msra.mxu1 %v2586_v25  ;;  %2380 = vmatprep.mubr.f32.mxu0 %v25871_v4 }
 0x28d   : > { %2625 = vmatprep.subr.mxu1 %v2583_v43  ;;  %18486 = vmatmul.mubr.msk.f32.vlgmr.msra.gmra.mxu0 %vm999_vm2, %v2277_v28  ;;  %v20597_v33 = vpop.permute.xlu0 %2839  ;;  %v20602_v46 = vpop.permute.xlu1 %3126 }
 0x28e   : > { %19121 = vmatpush3.msra.mxu0 %v2309_v27  ;;  %2626 = vmatpush1.msra.mxu1 %v2585_v17  ;;  %v2865_v57 = vsel %vm2857_vm8, %v20597_v33, %v20516_v14  ;;  %v2867_v37 = vsel %vm2857_vm8, %v20504_v45, %v20597_v33  ;;  %v2836_v45 = vld [vmem:[#allocation2 + $0x78] sm:$0xff] }
 0x28f   : > { %2463 = vmatprep.mubr.f32.mxu1 %v25871_v4  ;;  %19122 = vmatprep.subr.mxu0 %v2308_v35 }
 0x290   : > { %19127 = vmatprep.subr.mxu1 %v2588_v13  ;;  %18489 = vmatmul.mubr.msk.f32.gmra.mxu1 %vm999_vm2, %v2278_v8 }
 0x291   : > { %19123 = vmatpush3.msra.mxu0 %v2308_v35  ;;  %2386 = vmatprep.mubr.f32.mxu0 %v25871_v4  ;;  %v2842_v41 = vpop.permute.xlu0 %2841  ;;  %v2575_v58 = vpop.permute.xlu1 %2574 }
 0x292   : > { %2700 = vmatprep.subr.mxu0 %v2580_v3  ;;  %18487 = vmatmul.mubr.msk.f32.gmra.mxu0 %vm999_vm2, %v2278_v8  ;;  %v2587_v60 = vsel %vm2578_vm7, %v2575_v58, %v20453_v18  ;;  %v2579_v12 = vsel %vm2578_vm7, %v20512_v6, %v2575_v58  ;;  %v2862_v53 = vsel %vm2857_vm8, %v2842_v41, %v20560_v2 }
 0x293   : > { %2659 = vmatprep.mubr.f32.mxu1 %v25871_v4  ;;  %19124 = vmatprep.mubr.msk.f32.mxu0 %vm999_vm2, %v2277_v28  ;;  %v2864_v9 = vsel %vm2857_vm8, %v20580_v62, %v2842_v41 }
 0x294   : > { %18492 = vmatmul.mubr.msk.f32.vlgmr.msra.gmra.mxu1 %vm999_vm2, %v2556_v24 }
 0x295   : > { %19128 = vmatpush3.msra.mxu1 %v2588_v13  ;;  %2665 = vmatprep.mubr.f32.mxu1 %v25871_v4  ;;  %v3123_v49 = vpop.permute.xlu0 %3122  ;;  %v2854_v18 = vpop.permute.xlu1 %2853 }
 0x296   : > { %19125 = vmatmul.mubr.msk.f32.vlgmr.msra.gmra.mxu0 %vm999_vm2, %v2278_v8  ;;  %19129 = vmatprep.subr.mxu1 %v2587_v60  ;;  %v2858_v61 = vsel %vm2857_vm8, %v20573_v40, %v2854_v18  ;;  %v3142_v51 = vsel %vm3136_vm9, %v3123_v49, %v20602_v46  ;;  %v2866_v0 = vsel %vm2857_vm8, %v2854_v18, %v20580_v62 }
 0x297   : > { %2701 = vmatpush1.msra.mxu0 %v2582_v5  ;;  %2736 = vmatprep.mubr.f32.mxu0 %v25871_v4 }
 0x298   : > { %18493 = vmatmul.mubr.msk.f32.gmra.mxu1 %vm999_vm2, %v2557_v42  ;;  %2702 = vmatprep.subr.mxu0 %v2579_v12 }
 0x299   : > { %2703 = vmatpush1.msra.mxu0 %v2581_v38  ;;  %19130 = vmatpush3.msra.mxu1 %v2587_v60  ;;  %v3119_v19 = vpop.permute.xlu0 %3118  ;;  %v3121_v39 = vpop.permute.xlu1 %3120 }
 0x29a   : > { %18494 = vmatmul.mubr.msk.f32.vlgmr.msra.gmra.mxu0 %vm999_vm2, %v2556_v24  ;;  %19131 = vmatprep.mubr.msk.f32.mxu1 %vm999_vm2, %v2556_v24  ;;  %v3144_v6 = vsel %vm3136_vm9, %v3119_v19, %v3123_v49 }
 0x29b   : > { %2902 = vmatprep.subr.mxu0 %v2863_v1  ;;  %2979 = vmatprep.subr.mxu1 %v2859_v47 }
 0x29c   : > { %19132 = vmatmul.mubr.msk.f32.vlgmr.msra.gmra.mxu1 %vm999_vm2, %v2557_v42  ;;  %2903 = vmatpush1.msra.mxu0 %v2865_v57 }
 0x29d   : > { %2980 = vmatpush1.msra.mxu1 %v2861_v55  ;;  %2904 = vmatprep.subr.mxu0 %v2862_v53  ;;  %v3125_v22 = vpop.permute.xlu0 %3124  ;;  %v3117_v34 = vpop.permute.xlu1 %3116 }
 0x29e   : > { %2981 = vmatprep.subr.mxu1 %v2858_v61  ;;  %2742 = vmatprep.mubr.f32.mxu0 %v25871_v4  ;;  %v3141_v14 = vsel %vm3136_vm9, %v3121_v39, %v3125_v22  ;;  %v3143_v59 = vsel %vm3136_vm9, %v3117_v34, %v3121_v39 }
 0x29f   : > { %2905 = vmatpush1.msra.mxu0 %v2864_v9  ;;  %2982 = vmatpush1.msra.mxu1 %v2860_v21 }
 0x2a0   : > { %18495 = vmatmul.mubr.msk.f32.gmra.mxu0 %vm999_vm2, %v2557_v42  ;;  %3015 = vmatprep.mubr.f32.mxu1 %v25871_v4 }
 0x2a1   : > { %19134 = vmatprep.subr.mxu0 %v2867_v37  ;;  %3181 = vmatprep.subr.mxu1 %v3142_v51  ;;  %v3131_v52 = vpop.permute.xlu0 %3130 }
 0x2a2   : > { %18500 = vmatmul.mubr.msk.f32.vlgmr.msra.gmra.mxu1 %vm999_vm2, %v2835_v29  ;;  %2938 = vmatprep.mubr.f32.mxu0 %v25871_v4  ;;  %v3135_v48 = vpop.permute.xlu1 %3134  ;;  %v3140_v27 = vsel %vm3136_vm9, %v20602_v46, %v3131_v52 }
 0x2a3   : > { %3182 = vmatpush1.msra.mxu1 %v3144_v6  ;;  %3021 = vmatprep.mubr.f32.mxu1 %v25871_v4  ;;  %v3138_v54 = vsel %vm3136_vm9, %v3131_v52, %v3135_v48  ;;  %v3146_v16 = vsel %vm3136_vm9, %v3135_v48, %v3119_v19 }
 0x2a4   : > { %18498 = vmatmul.mubr.msk.f32.vlgmr.msra.gmra.mxu0 %vm999_vm2, %v2835_v29  ;;  %3183 = vmatprep.subr.mxu1 %v3141_v14 }
 0x2a5   : > { %19135 = vmatpush3.msra.mxu0 %v2867_v37  ;;  %2944 = vmatprep.mubr.f32.mxu0 %v25871_v4  ;;  %v3129_v15 = vpop.permute.xlu0 %3128 }
 0x2a6   : > { %18501 = vmatmul.mubr.msk.f32.gmra.mxu1 %vm999_vm2, %v2836_v45  ;;  %19136 = vmatprep.subr.mxu0 %v2866_v0  ;;  %v3133_v7 = vpop.permute.xlu1 %3132  ;;  %v3139_v28 = vsel %vm3136_vm9, %v3125_v22, %v3129_v15 }
 0x2a7   : > { %19137 = vmatpush3.msra.mxu0 %v2866_v0  ;;  %3184 = vmatpush1.msra.mxu1 %v3143_v59  ;;  %v3145_v36 = vsel %vm3136_vm9, %v3133_v7, %v3117_v34  ;;  %v3137_v2 = vsel %vm3136_vm9, %v3129_v15, %v3133_v7 }
 0x2a8   : > { %18499 = vmatmul.mubr.msk.f32.gmra.mxu0 %vm999_vm2, %v2836_v45  ;;  %3217 = vmatprep.mubr.f32.mxu1 %v25871_v4 }
 0x2a9   : > { %3258 = vmatprep.subr.mxu0 %v3138_v54  ;;  %19141 = vmatprep.subr.mxu1 %v3146_v16 }
 0x2aa   : > { %18504 = vmatmul.mubr.msk.f32.vlgmr.msra.gmra.mxu1 %vm999_vm2, %v3114_v50  ;;  %19138 = vmatprep.mubr.msk.f32.mxu0 %vm999_vm2, %v2835_v29 }
 0x2ab   : > { %19142 = vmatpush3.msra.mxu1 %v3146_v16  ;;  %3223 = vmatprep.mubr.f32.mxu1 %v25871_v4 }
 0x2ac   : > { %19139 = vmatmul.mubr.msk.f32.vlgmr.msra.gmra.mxu0 %vm999_vm2, %v2836_v45  ;;  %19143 = vmatprep.subr.mxu1 %v3145_v36 }
 0x2ad   : > { %3259 = vmatpush1.msra.mxu0 %v3140_v27  ;;  %3294 = vmatprep.mubr.f32.mxu0 %v25871_v4 }
 0x2ae   : > { %18505 = vmatmul.mubr.msk.f32.gmra.mxu1 %vm999_vm2, %v3115_v26  ;;  %3260 = vmatprep.subr.mxu0 %v3137_v2 }
 0x2af   : > { %3261 = vmatpush1.msra.mxu0 %v3139_v28  ;;  %19144 = vmatpush3.msra.mxu1 %v3145_v36 }
 0x2b0   : > { %18506 = vmatmul.mubr.msk.f32.vlgmr.msra.gmra.mxu0 %vm999_vm2, %v3114_v50  ;;  %19145 = vmatprep.mubr.msk.f32.mxu1 %vm999_vm2, %v3114_v50 }
 0x2b1   : > { %3300 = vmatprep.mubr.f32.mxu0 %v25871_v4 }
 0x2b2   : > { %19146 = vmatmul.mubr.msk.f32.vlgmr.msra.gmra.mxu1 %vm999_vm2, %v3115_v26 }
 0x2b3   : > { %3646 = vmatprep.mubr.f32.mxu1 %v25871_v4 }
 0x2b4   : > { %18507 = vmatmul.mubr.msk.f32.gmra.mxu0 %vm999_vm2, %v3115_v26 }
 0x2b5   : > { %3569 = vmatprep.mubr.f32.mxu0 %v25871_v4 }
 0x2f7   : > { %v20724_v63 = vpop.f32.mrf.mxu0 }
 0x2f9   : > { %v20730_v62 = vpop.f32.mrf.mxu0 }
 0x2fb   : > { %v1155_v17 = vpop.f32.mrf.mxu0 }
 0x2fd   : > { %v20736_v35 = vpop.f32.mrf.mxu0 }
 0x312   : > { %v20726_v40 = vpop.f32.mrf.mxu1 }
 0x314   : > { %v20728_v56 = vpop.f32.mrf.mxu1 }
 0x316   : > { %v1078_v25 = vpop.f32.mrf.mxu1 }
 0x318   : > { %v20732_v43 = vpop.f32.mrf.mxu1 }
 0x31a   : > { %v19091_v8 = vpop.f32.mrf.mxu1 }
 0x31c   : > { %v20734_v33 = vpop.f32.mrf.mxu1 }
 0x31d   : > { %25947 = vst [vmem:[#allocation19_spill] sm:$0xff] %v20734_v33 }
 0x31e   : > { %v20738_v46 = vpop.f32.mrf.mxu1 }
 0x320   : > { %v20740_v13 = vpop.f32.mrf.mxu1 }
 0x321   : > { %v20742_v3 = vpop.f32.mrf.mxu0 }
 0x322   : > { %v1390_v24 = vpop.f32.mrf.mxu1 }
 0x323   : > { %v20744_v41 = vpop.f32.mrf.mxu0  ;;  %v1391_v58 = vadd.f32 %v1390_v24, %v1155_v17 }
 0x324   : > { %v20746_v60 = vpop.f32.mrf.mxu1 }
 0x325   : > { %v1313_v42 = vpop.f32.mrf.mxu0 }
 0x326   : > { %v1314_v12 = vadd.f32 %v1313_v42, %v1078_v25 }
 0x327   : > { %v20748_v49 = vpop.f32.mrf.mxu0  ;;  %v20750_v5 = vpop.f32.mrf.mxu1 }
 0x329   : > { %v19098_v18 = vpop.f32.mrf.mxu0  ;;  %v20752_v38 = vpop.f32.mrf.mxu1 }
 0x32a   : > { %v1467_v19 = vadd.f32 %v19098_v18, %v19091_v8 }
 0x32b   : > { %v20754_v1 = vpop.f32.mrf.mxu0 }
 0x32c   : > { %25948 = vst [vmem:[#allocation20_spill] sm:$0xff] %v20754_v1  ;;  %v1582_v47 = vpop.f32.mrf.mxu1 }
 0x32d   : > { %v1744_v39 = vadd.f32 %v1582_v47, %v1314_v12 }
 0x32e   : > { %v20756_v57 = vpop.f32.mrf.mxu1  ;;  %v20758_v61 = vpop.f32.mrf.mxu0 }
 0x330   : > { %v20760_v55 = vpop.f32.mrf.mxu0  ;;  %v19105_v53 = vpop.f32.mrf.mxu1 }
 0x331   : > { %v1748_v22 = vadd.f32 %v19105_v53, %v1467_v19 }
 0x332   : > { %v1659_v9 = vpop.f32.mrf.mxu0  ;;  %v20762_v21 = vpop.f32.mrf.mxu1 }
 0x333   : > { %25949 = vst [vmem:[#allocation21_spill] sm:$0xff] %v20762_v21  ;;  %v1746_v34 = vadd.f32 %v1659_v9, %v1391_v58 }
 0x334   : > { %v20764_v29 = vpop.f32.mrf.mxu0  ;;  %v20766_v37 = vpop.f32.mrf.mxu1 }
 0x336   : > { %v1855_v51 = vpop.f32.mrf.mxu0  ;;  %v20768_v6 = vpop.f32.mrf.mxu1 }
 0x338   : > { %v20770_v14 = vpop.f32.mrf.mxu0 }
 0x339   : > { %v1938_v52 = vpop.f32.mrf.mxu1 }
 0x33a   : > { %v20772_v48 = vadd.f32 %v1938_v52, %v1746_v34 }
 0x33b   : > { %v20774_v45 = vpop.f32.mrf.mxu1 }
 0x33c   : > { %v1861_v59 = vpop.f32.mrf.mxu0 }
 0x33d   : > { %v2023_v0 = vadd.f32 %v1861_v59, %v1744_v39  ;;  %v2103_v54 = vpop.f32.mrf.mxu1 }
 0x33e   : > { %v20776_v16 = vpop.f32.mrf.mxu0 }
 0x33f   : > { %v20778_v7 = vpop.f32.mrf.mxu1 }
 0x340   : > { %v19112_v50 = vpop.f32.mrf.mxu0 }
 0x341   : > { %v2027_v15 = vadd.f32 %v19112_v50, %v1748_v22 }
 0x342   : > { %v20780_v36 = vpop.f32.mrf.mxu0  ;;  %v2109_v26 = vpop.f32.mrf.mxu1 }
 0x343   : > { %25950 = vst [vmem:[#allocation22_spill] sm:$0xff] %v20780_v36  ;;  %v2271_v2 = vadd.f32 %v2109_v26, %v2023_v0  ;;  %v1385_v36 = vadd.f32 %v20738_v46, %v20724_v63 }
 0x344   : > { %v20782_v27 = vpop.f32.mrf.mxu1  ;;  %v2180_v28 = vpop.f32.mrf.mxu0 }
 0x346   : > { %v2182_v25 = vpop.f32.mrf.mxu0  ;;  %v19119_v17 = vpop.f32.mrf.mxu1 }
 0x347   : > { %v2275_v8 = vadd.f32 %v19119_v17, %v2027_v15 }
 0x348   : > { %v20784_v24 = vpop.f32.mrf.mxu1 }
 0x349   : > { %25951 = vst [vmem:[#allocation23_spill] sm:$0xff] %v20784_v24  ;;  %v20786_v58 = vpop.f32.mrf.mxu0 }
 0x34b   : > { %v20788_v42 = vpop.f32.mrf.mxu0  ;;  %v2459_v12 = vpop.f32.mrf.mxu1 }
 0x34d   : > { %v2382_v18 = vpop.f32.mrf.mxu0  ;;  %v2461_v19 = vpop.f32.mrf.mxu1 }
 0x34f   : > { %v20790_v47 = vpop.f32.mrf.mxu0 }
 0x350   : > { %v20792_v39 = vpop.f32.mrf.mxu1 }
 0x352   : > { %v2388_v53 = vpop.f32.mrf.mxu0  ;;  %v20794_v22 = vpop.f32.mrf.mxu1 }
 0x353   : > { %v2550_v9 = vadd.f32 %v2388_v53, %v2271_v2  ;;  %v1308_v2 = vadd.f32 %v20742_v3, %v20726_v40 }
 0x354   : > { %v20796_v34 = vpop.f32.mrf.mxu0  ;;  %v2661_v52 = vpop.f32.mrf.mxu1 }
 0x355   : > { %v1739_v24 = vadd.f32 %v20750_v5, %v1308_v2  ;;  %v1387_v5 = vadd.f32 %v20740_v13, %v20730_v62 }
 0x356   : > { %v19126_v59 = vpop.f32.mrf.mxu0  ;;  %v20798_v0 = vpop.f32.mrf.mxu1 }
 0x357   : > { %v2554_v50 = vadd.f32 %v19126_v59, %v2275_v8  ;;  %v2018_v59 = vadd.f32 %v1855_v51, %v1739_v24 }
 0x358   : > { %v20800_v15 = vpop.f32.mrf.mxu0  ;;  %v2667_v26 = vpop.f32.mrf.mxu1 }
 0x359   : > { %25952 = vst [vmem:[#allocation24_spill] sm:$0xff] %v20800_v15  ;;  %v20802_v17 = vadd.f32 %v2667_v26, %v2550_v9  ;;  %v2266_v26 = vadd.f32 %v2103_v54, %v2018_v59  ;;  %v1742_v54 = vadd.f32 %v20760_v55, %v1387_v5 }
 0x35a   : > { %v20804_v10 = vpop.f32.mrf.mxu1  ;;  %v2738_v4 = vpop.f32.mrf.mxu0 }
 0x35b   : > { %v2545_v33 = vadd.f32 %v2382_v18, %v2266_v26  ;;  %v20831_v26 = vpop.permute.xlu1 %3394 }
 0x35c   : > { %v19133_v11 = vpop.f32.mrf.mxu1  ;;  %v2740_v20 = vpop.f32.mrf.mxu0 }
 0x35d   : > { %v20808_v53 = vadd.f32 %v19133_v11, %v2554_v50  ;;  %v1741_v11 = vadd.f32 %v20758_v61, %v1385_v36  ;;  %v2824_v50 = vadd.f32 %v2661_v52, %v2545_v33  ;;  %v2021_v61 = vadd.f32 %v20768_v6, %v1742_v54 }
 0x35e   : > { %v20810_v44 = vpop.f32.mrf.mxu1 }
 0x35f   : > { %25953 = vst [vmem:[#allocation25_spill] sm:$0xff] %v20810_v44  ;;  %v2020_v51 = vadd.f32 %v20766_v37, %v1741_v11  ;;  %v2269_v33 = vadd.f32 %v2182_v25, %v2021_v61  ;;  %v1310_v37 = vadd.f32 %v20744_v41, %v20728_v56 }
 0x360   : > { %v20813_v8 = vpop.f32.mrf.mxu0 }
 0x361   : > { %v2268_v46 = vadd.f32 %v2180_v28, %v2020_v51  ;;  %v2548_v28 = vadd.f32 %v2461_v19, %v2269_v33  ;;  %v1740_v11 = vadd.f32 %v20752_v38, %v1310_v37 }
 0x362   : > { %v3017_v15 = vpop.f32.mrf.mxu1  ;;  %v20815_v9 = vpop.f32.mrf.mxu0 }
 0x363   : > { %v2547_v44 = vadd.f32 %v2459_v12, %v2268_v46  ;;  %v2019_v25 = vadd.f32 %v20770_v14, %v1740_v11 }
 0x364   : > { %v3019_v21 = vpop.f32.mrf.mxu1  ;;  %v2940_v1 = vpop.f32.mrf.mxu0 }
 0x365   : > { %v3103_v63 = vadd.f32 %v2940_v1, %v2824_v50  ;;  %v2826_v55 = vadd.f32 %v2738_v4, %v2547_v44  ;;  %v2827_v50 = vadd.f32 %v2740_v20, %v2548_v28  ;;  %v2267_v4 = vadd.f32 %v20778_v7, %v2019_v25 }
 0x366   : > { %v20820_v40 = vpop.f32.mrf.mxu1  ;;  %v2942_v3 = vpop.f32.mrf.mxu0  ;;  %v1393_v20 = vadd.f32 %v20746_v60, %v20736_v35 }
 0x367   : > { %v3105_v6 = vadd.f32 %v3017_v15, %v2826_v55  ;;  %v2546_v41 = vadd.f32 %v20790_v47, %v2267_v4  ;;  %v25955_v4 = vld [vmem:[#allocation20_spill] sm:$0xff] }
 0x368   : > { %v3025_v24 = vpop.f32.mrf.mxu1  ;;  %v20825_v2 = vpop.f32.mrf.mxu0  ;;  %v1747_v19 = vadd.f32 %v20764_v29, %v1393_v20 }
 0x369   : > { %v2825_v14 = vadd.f32 %v20798_v0, %v2546_v41  ;;  %v25956_v41 = vld [vmem:[#allocation21_spill] sm:$0xff] }
 0x36a   : > { %v3219_v59 = vpop.f32.mrf.mxu1  ;;  %v20828_v18 = vpop.f32.mrf.mxu0  ;;  %v2026_v47 = vadd.f32 %v20774_v45, %v1747_v19  ;;  %v25958_v19 = vld [vmem:[#allocation23_spill] sm:$0xff] }
 0x36b   : > { %v3382_v36 = vadd.f32 %v3219_v59, %v3103_v63  ;;  %v3106_v63 = vadd.f32 %v3019_v21, %v2827_v50  ;;  %v3104_v46 = vadd.f32 %v2942_v3, %v2825_v14 }
 0x36c   : > { %v20833_v62 = vpop.f32.mrf.mxu0  ;;  %v3221_v7 = vpop.f32.mrf.mxu1  ;;  %v2274_v60 = vadd.f32 %v20788_v42, %v2026_v47 }
 0x36d   : > { %v3402_v13 = vadd.f32 %v20831_v26, %v3382_v36  ;;  %v3383_v35 = vadd.f32 %v3221_v7, %v3104_v46  ;;  %v25959_v46 = vld [vmem:[#allocation24_spill] sm:$0xff] }
 0x36e   : > { %v20838_v1 = vpop.f32.mrf.mxu0  ;;  %v2553_v29 = vadd.f32 %v20794_v22, %v2274_v60  ;;  %v2273_v22 = vadd.f32 %v20786_v58, %v20772_v48  ;;  %v3225_v11 = vpop.f32.mrf.mxu1 }
 0x36f   : > { %v3412_v52 = vmax.f32 %v3402_v13, 0.0  ;;  %v3403_v3 = vadd.f32 %v20831_v26, %v3383_v35  ;;  %v3112_v35 = vadd.f32 %v20833_v62, %v20808_v53 }
 0x370   : > { %v3296_v5 = vpop.f32.mrf.mxu0  ;;  %v2832_v45 = vadd.f32 %v20815_v9, %v2553_v29  ;;  %v2552_v37 = vadd.f32 %v20792_v39, %v2273_v22  ;;  %v1316_v9 = vadd.f32 %v20748_v49, %v20732_v43 }
 0x371   : > { %v20842_v12 = vmul.f32 %v3412_v52, %v19996_v31  ;;  %v3384_v51 = vadd.f32 %v3296_v5, %v3105_v6  ;;  %v3413_v33 = vmax.f32 %v3403_v3, 0.0  ;;  %v3227_v5 = vpop.f32.mrf.mxu1 }
 0x372   : > { %v3298_v54 = vpop.f32.mrf.mxu0  ;;  %v3111_v42 = vadd.f32 %v3025_v24, %v2832_v45  ;;  %v3400_v24 = vpop.permute.xlu0 %3399  ;;  %v2831_v55 = vadd.f32 %v20813_v8, %v2552_v37  ;;  %v1745_v48 = vadd.f32 %v20756_v57, %v1316_v9 }
 0x373   : > { %3469 = vrot.lane.b32.xlu1 %v20842_v12, %s25899_s26  ;;  %v3404_v44 = vadd.f32 %v20831_v26, %v3384_v51  ;;  %v3385_v56 = vadd.f32 %v3298_v54, %v3106_v63  ;;  %v20891_v28 = vmul.f32 %v3413_v33, %v19991_v23  ;;  %v3108_v51 = vadd.f32 %v20825_v2, %v20802_v17  ;;  %v25954_v63 = vld [vmem:[#allocation19_spill] sm:$0xff] }
 0x374   : > { %v3302_v59 = vpop.f32.mrf.mxu0  ;;  %v3110_v39 = vadd.f32 %v20820_v40, %v2831_v55  ;;  %v2024_v52 = vadd.f32 %v20776_v16, %v1745_v48 }
 0x375   : > { %v3414_v38 = vmax.f32 %v3404_v44, 0.0  ;;  %v3405_v15 = vadd.f32 %v20831_v26, %v3385_v56  ;;  %v1462_v44 = vadd.f32 %v25955_v4, %v25954_v63 }
 0x376   : > { %v3304_v36 = vpop.f32.mrf.mxu0  ;;  %v3389_v43 = vadd.f32 %v3302_v59, %v3110_v39  ;;  %v2272_v49 = vadd.f32 %v20782_v27, %v2024_v52 }
 0x377   : > { %3436 = vrot.lane.b32.xlu1 %v20842_v12, %s25894_s29  ;;  %v20856_v21 = vmul.f32 %v3414_v38, %v19998_v32  ;;  %v3415_v0 = vmax.f32 %v3405_v15, 0.0  ;;  %v3390_v13 = vadd.f32 %v3304_v36, %v3111_v42  ;;  %v1743_v17 = vadd.f32 %v25956_v41, %v1462_v44  ;;  %v25957_v38 = vld [vmem:[#allocation22_spill] sm:$0xff]  ;;  %v19147_v15 = vpop.f32.mrf.mxu1  ;;  %v18564_v44 = vld [vmem:[%s25851_s6 + $0x10] sm:$0xff] }
 0x378   : > { %v2551_v57 = vadd.f32 %v20796_v34, %v2272_v49  ;;  %v3409_v40 = vadd.f32 %v3400_v24, %v3389_v43  ;;  %v3391_v29 = vadd.f32 %v19147_v15, %v3112_v35  ;;  %v3467_v15 = vld [vmem:[#allocation5 + $0x10] sm:$0xff] }
 0x379   : > { %3477 = vrot.lane.b32.xlu0 %v20856_v21, %s25899_s26  ;;  %v20874_v61 = vmul.f32 %v3415_v0, %v19994_v30  ;;  %v3410_v58 = vadd.f32 %v3400_v24, %v3390_v13  ;;  %v2022_v20 = vadd.f32 %v25957_v38, %v1743_v17  ;;  %v25960_v0 = vld [vmem:[#allocation25_spill] sm:$0xff]  ;;  %v3373_v3 = vpop.f32.mrf.mxu1  ;;  %v3433_v38 = vld [vmem:[%s25856_s11 + $0x8] sm:$0xff] }
 0x37a   : > { %v2830_v6 = vadd.f32 %v20804_v10, %v2551_v57  ;;  %v3419_v50 = vmax.f32 %v3409_v40, 0.0  ;;  %v3411_v36 = vadd.f32 %v3400_v24, %v3391_v29  ;;  %v3468_v29 = vld [vmem:[#allocation5 + $0x18] sm:$0xff] }
 0x37b   : > { %3972 = vrot.lane.b32.xlu1 %v20842_v12, %s25892_s19  ;;  %v3420_v8 = vmax.f32 %v3410_v58, 0.0  ;;  %v2270_v7 = vadd.f32 %v25958_v19, %v2022_v20  ;;  %v18566_v19 = vld [vmem:[%s25852_s7 + $0x10] sm:$0xff] }
 0x37c   : > { %v3109_v27 = vadd.f32 %v20828_v18, %v2830_v6  ;;  %v20920_v10 = vmul.f32 %v3419_v50, %v19998_v32  ;;  %v3387_v18 = vadd.f32 %v3225_v11, %v3108_v51  ;;  %v3421_v62 = vmax.f32 %v3411_v36, 0.0 }
 0x37d   : > { %3444 = vrot.lane.b32.xlu0 %v20856_v21, %s25894_s29  ;;  %v20908_v16 = vmul.f32 %v3420_v8, %v19994_v30  ;;  %v2549_v47 = vadd.f32 %v25959_v46, %v2270_v7  ;;  %v18565_v46 = vld [vmem:[%s25851_s6 + $0x18] sm:$0xff] }
 0x37e   : > { %v3388_v34 = vadd.f32 %v3227_v5, %v3109_v27  ;;  %v3407_v56 = vadd.f32 %v3400_v24, %v3387_v18 }
 0x37f   : > { %4250 = vrot.lane.b32.xlu1 %v20842_v12, %s25890_s28  ;;  %v2828_v59 = vadd.f32 %v25960_v0, %v2549_v47  ;;  %v25964_v47 = vmov 0.0  }
 0x380   : > { %v3408_v25 = vadd.f32 %v3400_v24, %v3388_v34  ;;  %v3417_v14 = vmax.f32 %v3407_v56, 0.0 }
 0x381   : > { %3980 = vrot.lane.b32.xlu0 %v20856_v21, %s25892_s19  ;;  %v3107_v45 = vadd.f32 %v20838_v1, %v2828_v59  ;;  %v25961_v1 = vld [vmem:[#allocation17_spill] sm:$0xff] }
 0x382   : > { %v3418_v54 = vmax.f32 %v3408_v25, 0.0  ;;  %v20952_v60 = vmul.f32 %v3417_v14, %v19996_v31  ;;  %v20970_v22 = vmul.f32 %v3421_v62, %v25961_v1 }
 0x383   : > { %3481 = vrot.lane.b32.xlu1 %v20874_v61, %s25899_s26  ;;  %v3386_v53 = vadd.f32 %v3373_v3, %v3107_v45  ;;  %v18567_v3 = vld [vmem:[%s25852_s7 + $0x18] sm:$0xff] }
 0x384   : > { %v20936_v2 = vmul.f32 %v3418_v54, %v19991_v23  ;;  %v3432_v54 = vld [vmem:[%s25856_s11] sm:$0xff] }
 0x385   : > { %4258 = vrot.lane.b32.xlu0 %v20856_v21, %s25890_s28  ;;  %v3406_v42 = vadd.f32 %v20831_v26, %v3386_v53 }
 0x387   : > { %3448 = vrot.lane.b32.xlu1 %v20874_v61, %s25894_s29  ;;  %v3416_v33 = vmax.f32 %v3406_v42, 0.0 }
 0x389   : > { %3473 = vrot.lane.b32.xlu0 %v20891_v28, %s25899_s26  ;;  %v20977_v13 = vmul.f32 %v3416_v33, %v25961_v1 }
 0x38b   : > { %3984 = vrot.lane.b32.xlu1 %v20874_v61, %s25892_s19 }
 0x38d   : > { %3440 = vrot.lane.b32.xlu0 %v20891_v28, %s25894_s29 }
 0x38f   : > { %4262 = vrot.lane.b32.xlu1 %v20874_v61, %s25890_s28 }
 0x391   : > { %3976 = vrot.lane.b32.xlu0 %v20891_v28, %s25892_s19 }
 0x393   : > { %3483 = vrot.lane.b32.xlu1 %v20908_v16, %s25899_s26 }
 0x395   : > { %4254 = vrot.lane.b32.xlu0 %v20891_v28, %s25890_s28 }
 0x397   : > { %3450 = vrot.lane.b32.xlu1 %v20908_v16, %s25894_s29 }
 0x399   : > { %3479 = vrot.lane.b32.xlu0 %v20920_v10, %s25899_s26 }
 0x39b   : > { %3986 = vrot.lane.b32.xlu1 %v20908_v16, %s25892_s19 }
 0x39d   : > { %3446 = vrot.lane.b32.xlu0 %v20920_v10, %s25894_s29 }
 0x39f   : > { %4264 = vrot.lane.b32.xlu1 %v20908_v16, %s25890_s28 }
 0x3a1   : > { %3982 = vrot.lane.b32.xlu0 %v20920_v10, %s25892_s19 }
 0x3a3   : > { %3475 = vrot.lane.b32.xlu1 %v20936_v2, %s25899_s26 }
 0x3a5   : > { %4260 = vrot.lane.b32.xlu0 %v20920_v10, %s25890_s28 }
 0x3a7   : > { %3442 = vrot.lane.b32.xlu1 %v20936_v2, %s25894_s29 }
 0x3a9   : > { %3471 = vrot.lane.b32.xlu0 %v20952_v60, %s25899_s26 }
 0x3ab   : > { %3978 = vrot.lane.b32.xlu1 %v20936_v2, %s25892_s19 }
 0x3ad   : > { %3438 = vrot.lane.b32.xlu0 %v20952_v60, %s25894_s29 }
 0x3af   : > { %4256 = vrot.lane.b32.xlu1 %v20936_v2, %s25890_s28 }
 0x3b1   : > { %3974 = vrot.lane.b32.xlu0 %v20952_v60, %s25892_s19 }
 0x3b3   : > { %4786 = vrot.lane.b32.xlu1 %v20920_v10, %s25883_s30 }
 0x3b5   : > { %4252 = vrot.lane.b32.xlu0 %v20952_v60, %s25890_s28 }
 0x3b7   : > { %4794 = vrot.lane.b32.xlu1 %v20970_v22, %s25883_s30 }
 0x3b9   : > { %4790 = vrot.lane.b32.xlu0 %v20908_v16, %s25883_s30 }
 0x3bb   : > { %3485 = vrot.lane.b32.xlu1 %v20977_v13, %s25899_s26 }
 0x3bd   : > { %3487 = vrot.lane.b32.xlu0 %v20970_v22, %s25899_s26 }
 0x3bf   : > { %4788 = vrot.lane.b32.xlu1 %v20874_v61, %s25883_s30 }
 0x3c1   : > { %4782 = vrot.lane.b32.xlu0 %v20936_v2, %s25883_s30 }
 0x3c3   : > { %4780 = vrot.lane.b32.xlu1 %v20891_v28, %s25883_s30 }
 0x3c5   : > { %4778 = vrot.lane.b32.xlu0 %v20952_v60, %s25883_s30 }
 0x3c7   : > { %3452 = vrot.lane.b32.xlu1 %v20977_v13, %s25894_s29 }
 0x3c9   : > { %3454 = vrot.lane.b32.xlu0 %v20970_v22, %s25894_s29 }
 0x3cb   : > { %4776 = vrot.lane.b32.xlu1 %v20842_v12, %s25883_s30 }
 0x3cd   : > { %3990 = vrot.lane.b32.xlu0 %v20970_v22, %s25892_s19 }
 0x3cf   : > { %3988 = vrot.lane.b32.xlu1 %v20977_v13, %s25892_s19 }
 0x3d1   : > { %4268 = vrot.lane.b32.xlu0 %v20970_v22, %s25890_s28 }
 0x3d3   : > { %5064 = vrot.lane.b32.xlu1 %v20920_v10, %s25878_s21 }
 0x3d5   : > { %4784 = vrot.lane.b32.xlu0 %v20856_v21, %s25883_s30 }
 0x3d7   : > { %5058 = vrot.lane.b32.xlu1 %v20891_v28, %s25878_s21 }
 0x3d9   : > { %5060 = vrot.lane.b32.xlu0 %v20936_v2, %s25878_s21 }
 0x3db   : > { %4266 = vrot.lane.b32.xlu1 %v20977_v13, %s25890_s28 }
 0x3dd   : > { %5056 = vrot.lane.b32.xlu0 %v20952_v60, %s25878_s21 }
 0x3df   : > { %5054 = vrot.lane.b32.xlu1 %v20842_v12, %s25878_s21 }
 0x3e1   : > { %5062 = vrot.lane.b32.xlu0 %v20856_v21, %s25878_s21 }
 0x3e3   : > { %5072 = vrot.lane.b32.xlu1 %v20970_v22, %s25878_s21 }
 0x3e5   : > { %v21023_v26 = vpop.permute.xlu1 %3469  ;;  %5068 = vrot.lane.b32.xlu0 %v20908_v16, %s25878_s21 }
 0x3e7   : > { %5350 = vrot.lane.b32.xlu1 %v20970_v22, %s25962_s23 }
 0x3e9   : > { %v21029_v37 = vpop.permute.xlu1 %3436  ;;  %5066 = vrot.lane.b32.xlu0 %v20874_v61, %s25878_s21 }
 0x3eb   : > { %5342 = vrot.lane.b32.xlu1 %v20920_v10, %s25962_s23  ;;  %v3478_v9 = vpop.permute.xlu0 %3477 }
 0x3ed   : > { %v21035_v24 = vpop.permute.xlu1 %3972  ;;  %5346 = vrot.lane.b32.xlu0 %v20908_v16, %s25962_s23 }
 0x3ef   : > { %5344 = vrot.lane.b32.xlu1 %v20874_v61, %s25962_s23  ;;  %v21041_v55 = vpop.permute.xlu0 %3444 }
 0x3f1   : > { %v21043_v48 = vpop.permute.xlu1 %4250  ;;  %4792 = vrot.lane.b32.xlu0 %v20977_v13, %s25883_s30 }
 0x3f3   : > { %5336 = vrot.lane.b32.xlu1 %v20891_v28, %s25962_s23  ;;  %v21049_v58 = vpop.permute.xlu0 %3980 }
 0x3f5   : > { %v21051_v39 = vpop.permute.xlu1 %3481  ;;  %5338 = vrot.lane.b32.xlu0 %v20936_v2, %s25962_s23 }
 0x3f6   : > { %v3491_v17 = vsel %vm988_vm1, %v3478_v9, %v21051_v39 }
 0x3f7   : > { %5332 = vrot.lane.b32.xlu1 %v20842_v12, %s25962_s23  ;;  %v21057_v52 = vpop.permute.xlu0 %4258 }
 0x3f9   : > { %v21059_v43 = vpop.permute.xlu1 %3448  ;;  %5334 = vrot.lane.b32.xlu0 %v20952_v60, %s25962_s23 }
 0x3fb   : > { %5070 = vrot.lane.b32.xlu1 %v20977_v13, %s25878_s21  ;;  %v21065_v49 = vpop.permute.xlu0 %3473  ;;  %s19759_s21 = smov 2  }
 0x3fc   : > { %v3493_v14 = vsel %vm988_vm1, %v21065_v49, %v3478_v9 }
 0x3fd   : > { %v21067_v8 = vpop.permute.xlu1 %3984  ;;  %5340 = vrot.lane.b32.xlu0 %v20856_v21, %s25962_s23 }
 0x3ff   : > { %5620 = vrot.lane.b32.xlu1 %v20920_v10, %s25888_s27  ;;  %v21073_v11 = vpop.permute.xlu0 %3440 }
 0x401   : > { %v21075_v57 = vpop.permute.xlu1 %4262  ;;  %5616 = vrot.lane.b32.xlu0 %v20936_v2, %s25888_s27 }
 0x403   : > { %5614 = vrot.lane.b32.xlu1 %v20891_v28, %s25888_s27  ;;  %v21081_v40 = vpop.permute.xlu0 %3976 }
 0x405   : > { %v21083_v6 = vpop.permute.xlu1 %3483  ;;  %5348 = vrot.lane.b32.xlu0 %v20977_v13, %s25962_s23 }
 0x407   : > { %5610 = vrot.lane.b32.xlu1 %v20842_v12, %s25888_s27  ;;  %v21089_v5 = vpop.permute.xlu0 %4254 }
 0x409   : > { %v21091_v27 = vpop.permute.xlu1 %3450  ;;  %5612 = vrot.lane.b32.xlu0 %v20952_v60, %s25888_s27 }
 0x40b   : > { %5628 = vrot.lane.b32.xlu1 %v20970_v22, %s25888_s27  ;;  %v3480_v50 = vpop.permute.xlu0 %3479 }
 0x40c   : > { %v3492_v51 = vsel %vm988_vm1, %v3480_v50, %v21083_v6 }
 0x40d   : > { %v21097_v34 = vpop.permute.xlu1 %3986  ;;  %5618 = vrot.lane.b32.xlu0 %v20856_v21, %s25888_s27  ;;  %3610 = vmatprep.subr.mxu1 %v3492_v51 }
 0x40f   : > { %5626 = vrot.lane.b32.xlu1 %v20977_v13, %s25888_s27  ;;  %v21106_v18 = vpop.permute.xlu0 %3446 }
 0x411   : > { %v21111_v63 = vpop.permute.xlu1 %4264  ;;  %5624 = vrot.lane.b32.xlu0 %v20908_v16, %s25888_s27 }
 0x413   : > { %5887 = vperm.xlu1 %19620, %v3432_v54   ;;  %v21115_v4 = vpop.permute.xlu0 %3982 }
 0x415   : > { %v3476_v56 = vpop.permute.xlu1 %3475  ;;  %5622 = vrot.lane.b32.xlu0 %v20874_v61, %s25888_s27 }
 0x416   : > { %v3494_v41 = vsel %vm988_vm1, %v3476_v56, %v3480_v50 }
 0x417   : > { %5913 = vperm.xlu1 %19620, %v18564_v44   ;;  %3611 = vmatpush1.msra.mxu1 %v3494_v41  ;;  %v21130_v20 = vpop.permute.xlu0 %4260  ;;  %v3495_v41 = vsel %vm988_vm1, %v21023_v26, %v21065_v49 }
 0x418   : > { %3612 = vmatprep.subr.mxu1 %v3491_v17 }
 0x419   : > { %3613 = vmatpush1.msra.mxu1 %v3493_v14  ;;  %v3443_v7 = vpop.permute.xlu1 %3442  ;;  %5892 = vperm.xlu0 %19619, %v3433_v38  }
 0x41a   : > { %18512 = vmatmul.mubr.msk.f32.vlgmr.msra.gmra.mxu1 %vm999_vm2, %v3467_v15 }
 0x41b   : > { %5933 = vperm.xlu1 %19620, %v18566_v19   ;;  %3652 = vmatprep.mubr.f32.mxu1 %v25964_v47  ;;  %v3472_v35 = vpop.permute.xlu0 %3471 }
 0x41c   : > { %v3496_v59 = vsel %vm988_vm1, %v3472_v35, %v3476_v56 }
 0x41d   : > { %v21143_v0 = vpop.permute.xlu1 %3978  ;;  %5918 = vperm.xlu0 %19619, %v18565_v46   ;;  %3533 = vmatprep.subr.mxu0 %v3496_v59 }
 0x41e   : > { %18513 = vmatmul.mubr.msk.f32.gmra.mxu1 %vm999_vm2, %v3468_v29 }
 0x41f   : > { %v3439_v45 = vpop.permute.xlu0 %3438  ;;  %3804 = vmatprep.mubr.f32.mxu1 %v25964_v47 }
 0x420   : > { %v3463_v53 = vsel %vm954_vm3, %v3439_v45, %v3443_v7 }
 0x421   : > { %v21152_v36 = vpop.permute.xlu1 %4256  ;;  %5938 = vperm.xlu0 %19619, %v18567_v3   ;;  %3768 = vmatprep.subr.mxu1 %v3463_v53  ;;  %v3458_v53 = vsel %vm954_vm3, %v21041_v55, %v21059_v43 }
 0x423   : > { %v3975_v62 = vpop.permute.xlu0 %3974 }
 0x425   : > { %v21156_v42 = vpop.permute.xlu1 %4786 }
 0x427   : > { %v21158_v33 = vpop.permute.xlu0 %4252 }
 0x429   : > { %v21160_v9 = vpop.permute.xlu1 %4794 }
 0x42b   : > { %v21162_v50 = vpop.permute.xlu0 %4790 }
 0x42d   : > { %v3486_v51 = vpop.permute.xlu1 %3485 }
 0x42e   : > { %v3497_v17 = vsel %vm988_vm1, %v3486_v51, %v21023_v26  ;;  %v3489_v49 = vsel %vm988_vm1, %v21051_v39, %v3486_v51  ;;  %v3461_v39 = vsel %vm954_vm3, %v3443_v7, %v21106_v18  ;;  %v3999_v51 = vsel %vm1493_vm4, %v3975_v62, %v21143_v0 }
 0x42f   : > { %v3488_v54 = vpop.permute.xlu0 %3487 }
 0x430   : > { %v3498_v56 = vsel %vm988_vm1, %v3488_v54, %v3472_v35  ;;  %v3490_v14 = vsel %vm988_vm1, %v21083_v6, %v3488_v54  ;;  %v3459_v6 = vsel %vm954_vm3, %v21106_v18, %v21091_v27  ;;  %v3460_v18 = vsel %vm954_vm3, %v21073_v11, %v21041_v55 }
 0x431   : > { %v21164_v44 = vpop.permute.xlu1 %4788  ;;  %3534 = vmatpush1.msra.mxu0 %v3498_v56  ;;  %v3998_v55 = vsel %vm1493_vm4, %v21035_v24, %v21081_v40 }
 0x432   : > { %3535 = vmatprep.subr.mxu0 %v3495_v41 }
 0x433   : > { %v21175_v38 = vpop.permute.xlu0 %4782  ;;  %3536 = vmatpush1.msra.mxu0 %v3497_v17  ;;  %v3435_v17 = vld [vmem:[#allocation5 + $0x8] sm:$0xff] }
 0x434   : > { %18510 = vmatmul.mubr.msk.f32.vlgmr.msra.gmra.mxu0 %vm999_vm2, %v3467_v15  ;;  %19148 = vmatprep.subr.mxu0 %v3490_v14 }
 0x435   : > { %v21181_v19 = vpop.permute.xlu1 %4780  ;;  %19149 = vmatpush3.msra.mxu0 %v3490_v14  ;;  %3575 = vmatprep.mubr.f32.mxu0 %v25964_v47 }
 0x436   : > { %19150 = vmatprep.subr.mxu0 %v3489_v49 }
 0x437   : > { %v21187_v26 = vpop.permute.xlu0 %4778  ;;  %19151 = vmatpush3.msra.mxu0 %v3489_v49  ;;  %v3970_v49 = vld [vmem:[#allocation5 + $0x20] sm:$0xff] }
 0x438   : > { %18511 = vmatmul.mubr.msk.f32.gmra.mxu0 %vm999_vm2, %v3468_v29  ;;  %3845 = vmatprep.subr.mxu0 %v3459_v6 }
 0x439   : > { %v3453_v46 = vpop.permute.xlu1 %3452  ;;  %19152 = vmatprep.mubr.msk.f32.mxu0 %vm999_vm2, %v3467_v15  ;;  %v3462_v15 = vsel %vm954_vm3, %v21029_v37, %v21073_v11 }
 0x43a   : > { %v3464_v7 = vsel %vm954_vm3, %v3453_v46, %v21029_v37  ;;  %v3456_v11 = vsel %vm954_vm3, %v21059_v43, %v3453_v46  ;;  %v3995_v43 = vsel %vm1493_vm4, %v21115_v4, %v21097_v34  ;;  %v3997_v46 = vsel %vm1493_vm4, %v21143_v0, %v21115_v4 }
 0x43b   : > { %v3455_v35 = vpop.permute.xlu0 %3454  ;;  %v3996_v4 = vsel %vm1493_vm4, %v21081_v40, %v21049_v58 }
 0x43c   : > { %19153 = vmatmul.mubr.msk.f32.vlgmr.msra.gmra.mxu0 %vm999_vm2, %v3468_v29  ;;  %v3465_v3 = vsel %vm954_vm3, %v3455_v35, %v3439_v45  ;;  %v3434_v29 = vld [vmem:[#allocation5] sm:$0xff]  ;;  %v3457_v37 = vsel %vm954_vm3, %v21091_v27, %v3455_v35 }
 0x43d   : > { %v21199_v59 = vpop.permute.xlu1 %4776  ;;  %3846 = vmatpush1.msra.mxu0 %v3461_v39  ;;  %3769 = vmatpush1.msra.mxu1 %v3465_v3  ;;  %v3971_v3 = vld [vmem:[#allocation5 + $0x28] sm:$0xff] }
 0x43e   : > { %3847 = vmatprep.subr.mxu0 %v3458_v53  ;;  %3770 = vmatprep.subr.mxu1 %v3462_v15  ;;  %v4277_v53 = vsel %vm1772_vm5, %v21158_v33, %v21152_v36 }
 0x43f   : > { %3848 = vmatpush1.msra.mxu0 %v3460_v18  ;;  %v3991_v45 = vpop.permute.xlu0 %3990  ;;  %3771 = vmatpush1.msra.mxu1 %v3464_v7  ;;  %v4276_v7 = vsel %vm1772_vm5, %v21043_v48, %v21089_v5 }
 0x440   : > { %3881 = vmatprep.mubr.f32.mxu0 %v25964_v47  ;;  %4036 = vmatprep.subr.mxu0 %v3999_v51  ;;  %v4001_v56 = vsel %vm1493_vm4, %v3991_v45, %v3975_v62  ;;  %v4272_v51 = vsel %vm1772_vm5, %v21057_v52, %v21075_v57 }
 0x441   : > { %v3989_v54 = vpop.permute.xlu1 %3988  ;;  %18516 = vmatmul.mubr.msk.f32.vlgmr.msra.gmra.mxu1 %vm999_vm2, %v3434_v29  ;;  %18518 = vmatmul.mubr.msk.f32.vlgmr.msra.gmra.mxu0 %vm999_vm2, %v3434_v29 }
 0x442   : > { %19155 = vmatprep.subr.mxu1 %v3457_v37  ;;  %4037 = vmatpush1.msra.mxu0 %v4001_v56  ;;  %v4000_v41 = vsel %vm1493_vm4, %v3989_v54, %v21035_v24  ;;  %v3993_v24 = vsel %vm1493_vm4, %v21097_v34, %v3991_v45  ;;  %v3994_v34 = vsel %vm1493_vm4, %v21049_v58, %v21067_v8 }
 0x443   : > { %19156 = vmatpush3.msra.mxu1 %v3457_v37  ;;  %4038 = vmatprep.subr.mxu0 %v3998_v55  ;;  %v4269_v62 = vpop.permute.xlu0 %4268  ;;  %v3992_v39 = vsel %vm1493_vm4, %v21067_v8, %v3989_v54  ;;  %v4273_v58 = vsel %vm1772_vm5, %v21130_v20, %v21111_v63  ;;  %v4274_v54 = vsel %vm1772_vm5, %v21089_v5, %v21057_v52  ;;  %v4249_v5 = vld [vmem:[#allocation5 + $0x38] sm:$0xff] }
 0x444   : > { %19157 = vmatprep.subr.mxu1 %v3456_v11  ;;  %3810 = vmatprep.mubr.f32.mxu1 %v25964_v47  ;;  %v4279_v15 = vsel %vm1772_vm5, %v4269_v62, %v21158_v33  ;;  %v4271_v33 = vsel %vm1772_vm5, %v21111_v63, %v4269_v62  ;;  %v4248_v63 = vld [vmem:[#allocation5 + $0x30] sm:$0xff] }
 0x445   : > { %v21240_v27 = vpop.permute.xlu1 %5064  ;;  %3887 = vmatprep.mubr.f32.mxu0 %v25964_v47  ;;  %19158 = vmatpush3.msra.mxu1 %v3456_v11  ;;  %v4802_v11 = vsel %vm2299_vm6, %v21199_v59, %v21181_v19 }
 0x446   : > { %4039 = vmatpush1.msra.mxu0 %v4000_v41  ;;  %18517 = vmatmul.mubr.msk.f32.gmra.mxu1 %vm999_vm2, %v3435_v17 }
 0x447   : > { %18519 = vmatmul.mubr.msk.f32.gmra.mxu0 %vm999_vm2, %v3435_v17  ;;  %4113 = vmatprep.subr.mxu1 %v3995_v43  ;;  %v21252_v14 = vpop.permute.xlu0 %4784 }
 0x448   : > { %19162 = vmatprep.subr.mxu0 %v3993_v24  ;;  %19159 = vmatprep.mubr.msk.f32.mxu1 %vm999_vm2, %v3434_v29 }
 0x449   : > { %v21255_v6 = vpop.permute.xlu1 %5058  ;;  %4072 = vmatprep.mubr.f32.mxu0 %v25964_v47 }
 0x44a   : > { %19160 = vmatmul.mubr.msk.f32.vlgmr.msra.gmra.mxu1 %vm999_vm2, %v3435_v17  ;;  %v4798_v17 = vsel %vm2299_vm6, %v21252_v14, %v21164_v44 }
 0x44b   : > { %18522 = vmatmul.mubr.msk.f32.vlgmr.msra.gmra.mxu0 %vm999_vm2, %v3970_v49  ;;  %4114 = vmatpush1.msra.mxu1 %v3997_v46  ;;  %v21268_v35 = vpop.permute.xlu0 %5060  ;;  %v4775_v46 = vld [vmem:[#allocation5 + $0x58] sm:$0xff] }
 0x44c   : > { %19163 = vmatpush3.msra.mxu0 %v3993_v24  ;;  %4115 = vmatprep.subr.mxu1 %v3994_v34 }
 0x44d   : > { %v4267_v0 = vpop.permute.xlu1 %4266  ;;  %19164 = vmatprep.subr.mxu0 %v3992_v39  ;;  %4116 = vmatpush1.msra.mxu1 %v3996_v4 }
 0x44e   : > { %19165 = vmatpush3.msra.mxu0 %v3992_v39  ;;  %4078 = vmatprep.mubr.f32.mxu0 %v25964_v47  ;;  %v4278_v18 = vsel %vm1772_vm5, %v4267_v0, %v21043_v48  ;;  %v4275_v48 = vsel %vm1772_vm5, %v21152_v36, %v21130_v20  ;;  %v4270_v36 = vsel %vm1772_vm5, %v21075_v57, %v4267_v0 }
 0x44f   : > { %4149 = vmatprep.mubr.f32.mxu1 %v25964_v47  ;;  %4314 = vmatprep.subr.mxu1 %v4277_v53  ;;  %v21287_v8 = vpop.permute.xlu0 %5056  ;;  %v4801_v57 = vsel %vm2299_vm6, %v21175_v38, %v21156_v42 }
 0x450   : > { %4391 = vmatprep.subr.mxu0 %v4273_v58  ;;  %18523 = vmatmul.mubr.msk.f32.gmra.mxu0 %vm999_vm2, %v3971_v3 }
 0x451   : > { %v21290_v40 = vpop.permute.xlu1 %5054  ;;  %18524 = vmatmul.mubr.msk.f32.vlgmr.msra.gmra.mxu1 %vm999_vm2, %v3970_v49  ;;  %19166 = vmatprep.mubr.msk.f32.mxu0 %vm999_vm2, %v3970_v49 }
 0x452   : > { %4315 = vmatpush1.msra.mxu1 %v4279_v15  ;;  %4155 = vmatprep.mubr.f32.mxu1 %v25964_v47  ;;  %v5080_v49 = vsel %vm2578_vm7, %v21290_v40, %v21255_v6 }
 0x453   : > { %4316 = vmatprep.subr.mxu1 %v4276_v7  ;;  %v21305_v29 = vpop.permute.xlu0 %5062 }
 0x454   : > { %4317 = vmatpush1.msra.mxu1 %v4278_v18  ;;  %19167 = vmatmul.mubr.msk.f32.vlgmr.msra.gmra.mxu0 %vm999_vm2, %v3971_v3  ;;  %v5078_v24 = vsel %vm2578_vm7, %v21255_v6, %v21305_v29 }
 0x455   : > { %v21311_v45 = vpop.permute.xlu1 %5072  ;;  %19169 = vmatprep.subr.mxu1 %v4271_v33  ;;  %18525 = vmatmul.mubr.msk.f32.gmra.mxu1 %vm999_vm2, %v3971_v3 }
 0x456   : > { %4392 = vmatpush1.msra.mxu0 %v4275_v48  ;;  %4350 = vmatprep.mubr.f32.mxu1 %v25964_v47  ;;  %v5083_v34 = vsel %vm2578_vm7, %v21311_v45, %v21287_v8 }
 0x457   : > { %4393 = vmatprep.subr.mxu0 %v4272_v51  ;;  %4427 = vmatprep.mubr.f32.mxu0 %v25964_v47  ;;  %v21328_v56 = vpop.permute.xlu0 %5068 }
 0x458   : > { %4394 = vmatpush1.msra.mxu0 %v4274_v54  ;;  %v5077_v4 = vsel %vm2578_vm7, %v21240_v27, %v21328_v56  ;;  %v5330_v54 = vld [vmem:[#allocation5 + $0x70] sm:$0xff] }
 0x459   : > { %v21330_v20 = vpop.permute.xlu1 %5350  ;;  %4562 = vmatprep.subr.mxu0 %v20936_v2  ;;  %18528 = vmatmul.mubr.msk.f32.vlgmr.msra.gmra.mxu1 %vm999_vm2, %v4248_v63 }
 0x45a   : > { %18530 = vmatmul.mubr.msk.f32.vlgmr.msra.gmra.mxu0 %vm999_vm2, %v4248_v63  ;;  %19170 = vmatpush3.msra.mxu1 %v4271_v33 }
 0x45b   : > { %4563 = vmatpush1.msra.mxu0 %v20952_v60  ;;  %19171 = vmatprep.subr.mxu1 %v4270_v36  ;;  %v21339_v52 = vpop.permute.xlu0 %5066 }
 0x45c   : > { %4564 = vmatprep.subr.mxu0 %v20891_v28  ;;  %19172 = vmatpush3.msra.mxu1 %v4270_v36  ;;  %v4526_v28 = vld [vmem:[#allocation5 + $0x40] sm:$0xff]  ;;  %v5076_v53 = vsel %vm2578_vm7, %v21305_v29, %v21339_v52 }
 0x45d   : > { %v21342_v37 = vpop.permute.xlu1 %5342  ;;  %4565 = vmatpush1.msra.mxu0 %v20842_v12  ;;  %4356 = vmatprep.mubr.f32.mxu1 %v25964_v47 }
 0x45e   : > { %4433 = vmatprep.mubr.f32.mxu0 %v25964_v47  ;;  %4639 = vmatprep.subr.mxu1 %v20908_v16  ;;  %v4527_v16 = vld [vmem:[#allocation5 + $0x48] sm:$0xff] }
 0x45f   : > { %19176 = vmatprep.subr.mxu0 %v20970_v22  ;;  %18529 = vmatmul.mubr.msk.f32.gmra.mxu1 %vm999_vm2, %v4249_v5  ;;  %v21350_v2 = vpop.permute.xlu0 %5346 }
 0x460   : > { %18531 = vmatmul.mubr.msk.f32.gmra.mxu0 %vm999_vm2, %v4249_v5  ;;  %19173 = vmatprep.mubr.msk.f32.mxu1 %vm999_vm2, %v4248_v63  ;;  %v5355_v63 = vsel %vm2857_vm8, %v21342_v37, %v21350_v2 }
 0x461   : > { %4598 = vmatprep.mubr.f32.mxu0 %v25964_v47  ;;  %v21355_v12 = vpop.permute.xlu1 %5344 }
 0x463   : > { %19174 = vmatmul.mubr.msk.f32.vlgmr.msra.gmra.mxu1 %vm999_vm2, %v4249_v5  ;;  %v4793_v60 = vpop.permute.xlu0 %4792 }
 0x464   : > { %18534 = vmatmul.mubr.msk.f32.vlgmr.msra.gmra.mxu0 %vm999_vm2, %v4526_v28  ;;  %4640 = vmatpush1.msra.mxu1 %v20920_v10  ;;  %v4803_v10 = vsel %vm2299_vm6, %v21187_v26, %v21175_v38  ;;  %v4805_v38 = vsel %vm2299_vm6, %v21160_v9, %v21187_v26  ;;  %v4796_v62 = vsel %vm2299_vm6, %v21164_v44, %v4793_v60 }
 0x465   : > { %19177 = vmatpush3.msra.mxu0 %v20970_v22  ;;  %4641 = vmatprep.subr.mxu1 %v20874_v61  ;;  %v21377_v61 = vpop.permute.xlu1 %5336  ;;  %v4800_v22 = vsel %vm2299_vm6, %v21181_v19, %v21252_v14  ;;  %v4799_v19 = vsel %vm2299_vm6, %v21156_v42, %v21162_v50  ;;  %v5079_v42 = vsel %vm2578_vm7, %v21268_v35, %v21240_v27  ;;  %v5053_v27 = vld [vmem:[#allocation5 + $0x68] sm:$0xff] }
 0x466   : > { %19178 = vmatprep.subr.mxu0 %v20977_v13  ;;  %4642 = vmatpush1.msra.mxu1 %v20856_v21  ;;  %v4797_v21 = vsel %vm2299_vm6, %v21162_v50, %v21160_v9  ;;  %v4774_v9 = vld [vmem:[#allocation5 + $0x50] sm:$0xff]  ;;  %v5081_v50 = vsel %vm2578_vm7, %v21287_v8, %v21268_v35  ;;  %v4804_v44 = vsel %vm2299_vm6, %v4793_v60, %v21199_v59  ;;  %v5052_v35 = vld [vmem:[#allocation5 + $0x60] sm:$0xff] }
 0x467   : > { %19179 = vmatpush3.msra.mxu0 %v20977_v13  ;;  %4604 = vmatprep.mubr.f32.mxu0 %v25964_v47  ;;  %v21370_v55 = vpop.permute.xlu0 %5338  ;;  %v5075_v59 = vsel %vm2578_vm7, %v21328_v56, %v21311_v45 }
 0x468   : > { %4675 = vmatprep.mubr.f32.mxu1 %v25964_v47  ;;  %4840 = vmatprep.subr.mxu1 %v4801_v57  ;;  %v5357_v8 = vsel %vm2857_vm8, %v21370_v55, %v21342_v37 }
 0x469   : > { %4917 = vmatprep.subr.mxu0 %v4797_v21  ;;  %18535 = vmatmul.mubr.msk.f32.gmra.mxu0 %vm999_vm2, %v4527_v16  ;;  %v21410_v41 = vpop.permute.xlu1 %5332 }
 0x46a   : > { %18536 = vmatmul.mubr.msk.f32.vlgmr.msra.gmra.mxu1 %vm999_vm2, %v4526_v28  ;;  %19180 = vmatprep.mubr.msk.f32.mxu0 %vm999_vm2, %v4526_v28  ;;  %v5358_v33 = vsel %vm2857_vm8, %v21410_v41, %v21377_v61 }
 0x46b   : > { %4841 = vmatpush1.msra.mxu1 %v4803_v10  ;;  %4681 = vmatprep.mubr.f32.mxu1 %v25964_v47  ;;  %v21391_v13 = vpop.permute.xlu0 %5334 }
 0x46c   : > { %4842 = vmatprep.subr.mxu1 %v4800_v22  ;;  %v5359_v18 = vsel %vm2857_vm8, %v21391_v13, %v21370_v55  ;;  %v5361_v45 = vsel %vm2857_vm8, %v21330_v20, %v21391_v13  ;;  %v5608_v55 = vld [vmem:[#allocation5 + $0x80] sm:$0xff] }
 0x46d   : > { %4843 = vmatpush1.msra.mxu1 %v4802_v11  ;;  %19181 = vmatmul.mubr.msk.f32.vlgmr.msra.gmra.mxu0 %vm999_vm2, %v4527_v16  ;;  %v5071_v14 = vpop.permute.xlu1 %5070  ;;  %v5609_v11 = vld [vmem:[#allocation5 + $0x88] sm:$0xff] }
 0x46e   : > { %19183 = vmatprep.subr.mxu1 %v4805_v38  ;;  %18537 = vmatmul.mubr.msk.f32.gmra.mxu1 %vm999_vm2, %v4527_v16  ;;  %v5074_v0 = vsel %vm2578_vm7, %v21339_v52, %v5071_v14  ;;  %v5082_v3 = vsel %vm2578_vm7, %v5071_v14, %v21290_v40  ;;  %v5353_v40 = vsel %vm2857_vm8, %v21350_v2, %v21330_v20  ;;  %v5331_v2 = vld [vmem:[#allocation5 + $0x78] sm:$0xff] }
 0x46f   : > { %4918 = vmatpush1.msra.mxu0 %v4799_v19  ;;  %4876 = vmatprep.mubr.f32.mxu1 %v25964_v47  ;;  %v21413_v26 = vpop.permute.xlu0 %5340 }
 0x470   : > { %4919 = vmatprep.subr.mxu0 %v4796_v62  ;;  %4953 = vmatprep.mubr.f32.mxu0 %v25964_v47  ;;  %v5356_v7 = vsel %vm2857_vm8, %v21377_v61, %v21413_v26  ;;  %v5354_v56 = vsel %vm2857_vm8, %v21413_v26, %v21355_v12 }
 0x471   : > { %4920 = vmatpush1.msra.mxu0 %v4798_v17  ;;  %v21457_v39 = vpop.permute.xlu1 %5620 }
 0x472   : > { %5118 = vmatprep.subr.mxu0 %v5079_v42  ;;  %18540 = vmatmul.mubr.msk.f32.vlgmr.msra.gmra.mxu1 %vm999_vm2, %v4774_v9 }
 0x473   : > { %18542 = vmatmul.mubr.msk.f32.vlgmr.msra.gmra.mxu0 %vm999_vm2, %v4774_v9  ;;  %19184 = vmatpush3.msra.mxu1 %v4805_v38  ;;  %v21433_v43 = vpop.permute.xlu0 %5616 }
 0x474   : > { %5119 = vmatpush1.msra.mxu0 %v5081_v50  ;;  %19185 = vmatprep.subr.mxu1 %v4804_v44  ;;  %v5635_v20 = vsel %vm3136_vm9, %v21433_v43, %v21457_v39 }
 0x475   : > { %5120 = vmatprep.subr.mxu0 %v5078_v24  ;;  %19186 = vmatpush3.msra.mxu1 %v4804_v44  ;;  %v5615_v15 = vpop.permute.xlu1 %5614 }
 0x476   : > { %5121 = vmatpush1.msra.mxu0 %v5080_v49  ;;  %4882 = vmatprep.mubr.f32.mxu1 %v25964_v47 }
 0x477   : > { %4959 = vmatprep.mubr.f32.mxu0 %v25964_v47  ;;  %5195 = vmatprep.subr.mxu1 %v5075_v59  ;;  %v5349_v6 = vpop.permute.xlu0 %5348 }
 0x478   : > { %19190 = vmatprep.subr.mxu0 %v5083_v34  ;;  %18541 = vmatmul.mubr.msk.f32.gmra.mxu1 %vm999_vm2, %v4775_v46  ;;  %v5352_v51 = vsel %vm2857_vm8, %v21355_v12, %v5349_v6  ;;  %v5360_v37 = vsel %vm2857_vm8, %v5349_v6, %v21410_v41 }
 0x479   : > { %18543 = vmatmul.mubr.msk.f32.gmra.mxu0 %vm999_vm2, %v4775_v46  ;;  %19187 = vmatprep.mubr.msk.f32.mxu1 %vm999_vm2, %v4774_v9  ;;  %v5611_v48 = vpop.permute.xlu1 %5610 }
 0x47a   : > { %5154 = vmatprep.mubr.f32.mxu0 %v25964_v47  ;;  %v5636_v12 = vsel %vm3136_vm9, %v5611_v48, %v5615_v15 }
 0x47b   : > { %v5613_v58 = vpop.permute.xlu0 %5612 }
 0x47c   : > { %19188 = vmatmul.mubr.msk.f32.vlgmr.msra.gmra.mxu1 %vm999_vm2, %v4775_v46  ;;  %v5637_v36 = vsel %vm3136_vm9, %v5613_v58, %v21433_v43 }
 0x47d   : > { %18546 = vmatmul.mubr.msk.f32.vlgmr.msra.gmra.mxu0 %vm999_vm2, %v5052_v35  ;;  %5196 = vmatpush1.msra.mxu1 %v5077_v4  ;;  %v5629_v5 = vpop.permute.xlu1 %5628 }
 0x47e   : > { %19191 = vmatpush3.msra.mxu0 %v5083_v34  ;;  %5197 = vmatprep.subr.mxu1 %v5074_v0  ;;  %v5639_v57 = vsel %vm3136_vm9, %v5629_v5, %v5613_v58 }
 0x47f   : > { %19192 = vmatprep.subr.mxu0 %v5082_v3  ;;  %5198 = vmatpush1.msra.mxu1 %v5076_v53  ;;  %v5619_v29 = vpop.permute.xlu0 %5618 }
 0x480   : > { %19193 = vmatpush3.msra.mxu0 %v5082_v3  ;;  %5160 = vmatprep.mubr.f32.mxu0 %v25964_v47  ;;  %v5634_v28 = vsel %vm3136_vm9, %v5615_v15, %v5619_v29 }
 0x481   : > { %5231 = vmatprep.mubr.f32.mxu1 %v25964_v47  ;;  %5396 = vmatprep.subr.mxu1 %v5357_v8  ;;  %v5627_v61 = vpop.permute.xlu1 %5626 }
 0x482   : > { %5473 = vmatprep.subr.mxu0 %v5353_v40  ;;  %18547 = vmatmul.mubr.msk.f32.gmra.mxu0 %vm999_vm2, %v5053_v27  ;;  %v5638_v13 = vsel %vm3136_vm9, %v5627_v61, %v5611_v48 }
 0x483   : > { %18548 = vmatmul.mubr.msk.f32.vlgmr.msra.gmra.mxu1 %vm999_vm2, %v5052_v35  ;;  %19194 = vmatprep.mubr.msk.f32.mxu0 %vm999_vm2, %v5052_v35  ;;  %v5625_v52 = vpop.permute.xlu0 %5624 }
 0x484   : > { %5397 = vmatpush1.msra.mxu1 %v5359_v18  ;;  %5237 = vmatprep.mubr.f32.mxu1 %v25964_v47  ;;  %v5631_v60 = vsel %vm3136_vm9, %v5625_v52, %v5629_v5  ;;  %v5633_v21 = vsel %vm3136_vm9, %v21457_v39, %v5625_v52 }
 0x485   : > { %5398 = vmatprep.subr.mxu1 %v5356_v7 }
 0x486   : > { %5399 = vmatpush1.msra.mxu1 %v5358_v33  ;;  %19195 = vmatmul.mubr.msk.f32.vlgmr.msra.gmra.mxu0 %vm999_vm2, %v5053_v27 }
 0x487   : > { %19197 = vmatprep.subr.mxu1 %v5361_v45  ;;  %18549 = vmatmul.mubr.msk.f32.gmra.mxu1 %vm999_vm2, %v5053_v27  ;;  %v5623_v16 = vpop.permute.xlu0 %5622 }
 0x488   : > { %5474 = vmatpush1.msra.mxu0 %v5355_v63  ;;  %5432 = vmatprep.mubr.f32.mxu1 %v25964_v47  ;;  %v5630_v10 = vsel %vm3136_vm9, %v5623_v16, %v5627_v61  ;;  %v5632_v22 = vsel %vm3136_vm9, %v5619_v29, %v5623_v16 }
 0x489   : > { %5475 = vmatprep.subr.mxu0 %v5352_v51  ;;  %5509 = vmatprep.mubr.f32.mxu0 %v25964_v47 }
 0x48a   : > { %5476 = vmatpush1.msra.mxu0 %v5354_v56 }
 0x48b   : > { %5674 = vmatprep.subr.mxu0 %v5635_v20  ;;  %18552 = vmatmul.mubr.msk.f32.vlgmr.msra.gmra.mxu1 %vm999_vm2, %v5330_v54 }
 0x48c   : > { %18554 = vmatmul.mubr.msk.f32.vlgmr.msra.gmra.mxu0 %vm999_vm2, %v5330_v54  ;;  %19198 = vmatpush3.msra.mxu1 %v5361_v45 }
 0x48d   : > { %19199 = vmatprep.subr.mxu1 %v5360_v37  ;;  %5675 = vmatpush1.msra.mxu0 %v5637_v36 }
 0x48e   : > { %19200 = vmatpush3.msra.mxu1 %v5360_v37  ;;  %5438 = vmatprep.mubr.f32.mxu1 %v25964_v47 }
 0x48f   : > { %5515 = vmatprep.mubr.f32.mxu0 %v25964_v47  ;;  %18553 = vmatmul.mubr.msk.f32.gmra.mxu1 %vm999_vm2, %v5331_v2 }
 0x490   : > { %18555 = vmatmul.mubr.msk.f32.gmra.mxu0 %vm999_vm2, %v5331_v2  ;;  %5676 = vmatprep.subr.mxu0 %v5634_v28 }
 0x491   : > { %5677 = vmatpush1.msra.mxu0 %v5636_v12  ;;  %19201 = vmatprep.mubr.msk.f32.mxu1 %vm999_vm2, %v5330_v54 }
 0x492   : > { %5710 = vmatprep.mubr.f32.mxu0 %v25964_v47  ;;  %19204 = vmatprep.subr.mxu0 %v5639_v57 }
 0x493   : > { %19202 = vmatmul.mubr.msk.f32.vlgmr.msra.gmra.mxu1 %vm999_vm2, %v5331_v2  ;;  %5751 = vmatprep.subr.mxu1 %v5631_v60 }
 0x494   : > { %18558 = vmatmul.mubr.msk.f32.vlgmr.msra.gmra.mxu0 %vm999_vm2, %v5608_v55  ;;  %5752 = vmatpush1.msra.mxu1 %v5633_v21 }
 0x495   : > { %19205 = vmatpush3.msra.mxu0 %v5639_v57  ;;  %5716 = vmatprep.mubr.f32.mxu0 %v25964_v47 }
 0x496   : > { %19206 = vmatprep.subr.mxu0 %v5638_v13  ;;  %5753 = vmatprep.subr.mxu1 %v5630_v10 }
 0x497   : > { %19207 = vmatpush3.msra.mxu0 %v5638_v13  ;;  %5754 = vmatpush1.msra.mxu1 %v5632_v22 }
 0x498   : > { %18559 = vmatmul.mubr.msk.f32.gmra.mxu0 %vm999_vm2, %v5609_v11  ;;  %5787 = vmatprep.mubr.f32.mxu1 %v25964_v47 }
 0x499   : > { %18560 = vmatmul.mubr.msk.f32.vlgmr.msra.gmra.mxu1 %vm999_vm2, %v5608_v55  ;;  %19208 = vmatprep.mubr.msk.f32.mxu0 %vm999_vm2, %v5608_v55 }
 0x49a   : > { %5793 = vmatprep.mubr.f32.mxu1 %v25964_v47 }
 0x49c   : > { %19209 = vmatmul.mubr.msk.f32.vlgmr.msra.gmra.mxu0 %vm999_vm2, %v5609_v11 }
 0x49d   : > { %18561 = vmatmul.mubr.msk.f32.gmra.mxu1 %vm999_vm2, %v5609_v11  ;;  %6187 = vmatprep.mubr.f32.mxu0 %v25964_v47 }
 0x49e   : > { %6110 = vmatprep.mubr.f32.mxu1 %v25964_v47 }
 0x4da   : > { %v21567_v38 = vpop.f32.mrf.mxu1 }
 0x4dc   : > { %v21569_v19 = vpop.f32.mrf.mxu1 }
 0x4de   : > { %v3654_v26 = vpop.f32.mrf.mxu1 }
 0x4e0   : > { %v21575_v50 = vpop.f32.mrf.mxu1 }
 0x4f4   : > { %v3571_v62 = vpop.f32.mrf.mxu0 }
 0x4f6   : > { %v21571_v41 = vpop.f32.mrf.mxu0 }
 0x4f8   : > { %v3577_v9 = vpop.f32.mrf.mxu0 }
 0x4fa   : > { %v21573_v17 = vpop.f32.mrf.mxu0 }
 0x4fc   : > { %v19154_v42 = vpop.f32.mrf.mxu0 }
 0x4fe   : > { %v21577_v44 = vpop.f32.mrf.mxu0 }
 0x4ff   : > { %25965 = vst [vmem:[#allocation19_spill] sm:$0xff] %v21577_v44 }
 0x501   : > { %v3806_v43 = vpop.f32.mrf.mxu1  ;;  %v21579_v24 = vpop.f32.mrf.mxu0 }
 0x502   : > { %v21581_v14 = vadd.f32 %v3806_v43, %v3571_v62 }
 0x503   : > { %v21583_v49 = vpop.f32.mrf.mxu1  ;;  %v21585_v46 = vpop.f32.mrf.mxu0 }
 0x506   : > { %v3812_v59 = vpop.f32.mrf.mxu1 }
 0x507   : > { %v3813_v34 = vadd.f32 %v3812_v59, %v3577_v9  ;;  %v3889_v6 = vpop.f32.mrf.mxu0 }
 0x508   : > { %v3890_v35 = vadd.f32 %v3889_v6, %v3654_v26  ;;  %v21587_v39 = vpop.f32.mrf.mxu1 }
 0x509   : > { %v21589_v4 = vpop.f32.mrf.mxu0 }
 0x50a   : > { %v19161_v0 = vpop.f32.mrf.mxu1 }
 0x50b   : > { %v3966_v3 = vadd.f32 %v19161_v0, %v19154_v42  ;;  %v21591_v53 = vpop.f32.mrf.mxu0 }
 0x50c   : > { %v21593_v58 = vpop.f32.mrf.mxu1 }
 0x50d   : > { %25966 = vst [vmem:[#allocation20_spill] sm:$0xff] %v21593_v58  ;;  %v21595_v27 = vpop.f32.mrf.mxu0 }
 0x510   : > { %v4080_v8 = vpop.f32.mrf.mxu0 }
 0x511   : > { %v4242_v15 = vadd.f32 %v4080_v8, %v3813_v34  ;;  %v4151_v40 = vpop.f32.mrf.mxu1 }
 0x512   : > { %v21597_v18 = vpop.f32.mrf.mxu0 }
 0x513   : > { %v21599_v7 = vpop.f32.mrf.mxu1 }
 0x514   : > { %v19168_v29 = vpop.f32.mrf.mxu0 }
 0x515   : > { %v4157_v33 = vpop.f32.mrf.mxu1  ;;  %v4246_v45 = vadd.f32 %v19168_v29, %v3966_v3 }
 0x516   : > { %v21601_v48 = vadd.f32 %v4157_v33, %v3890_v35  ;;  %v21603_v51 = vpop.f32.mrf.mxu0 }
 0x517   : > { %25967 = vst [vmem:[#allocation21_spill] sm:$0xff] %v21603_v51  ;;  %v21605_v63 = vpop.f32.mrf.mxu1  ;;  %v3886_v51 = vadd.f32 %v21585_v46, %v21569_v19  ;;  %v21660_v19 = vpop.permute.xlu1 %5887 }
 0x519   : > { %v4352_v54 = vpop.f32.mrf.mxu1 }
 0x51a   : > { %v4429_v56 = vpop.f32.mrf.mxu0 }
 0x51b   : > { %v21607_v20 = vpop.f32.mrf.mxu1 }
 0x51c   : > { %v4431_v36 = vpop.f32.mrf.mxu0 }
 0x51f   : > { %v4358_v52 = vpop.f32.mrf.mxu1 }
 0x520   : > { %v4520_v5 = vadd.f32 %v4358_v52, %v4242_v15  ;;  %v21609_v37 = vpop.f32.mrf.mxu0 }
 0x521   : > { %v21611_v2 = vpop.f32.mrf.mxu1 }
 0x522   : > { %v21613_v28 = vpop.f32.mrf.mxu0 }
 0x523   : > { %v19175_v12 = vpop.f32.mrf.mxu1 }
 0x524   : > { %v4524_v60 = vadd.f32 %v19175_v12, %v4246_v45  ;;  %v4600_v16 = vpop.f32.mrf.mxu0 }
 0x525   : > { %v21615_v57 = vpop.f32.mrf.mxu1 }
 0x526   : > { %25968 = vst [vmem:[#allocation22_spill] sm:$0xff] %v21615_v57  ;;  %v21617_v55 = vpop.f32.mrf.mxu0 }
 0x529   : > { %v4606_v21 = vpop.f32.mrf.mxu0 }
 0x52a   : > { %v4768_v61 = vadd.f32 %v4606_v21, %v4520_v5  ;;  %v4677_v10 = vpop.f32.mrf.mxu1 }
 0x52b   : > { %v21619_v22 = vpop.f32.mrf.mxu0 }
 0x52c   : > { %25969 = vst [vmem:[#allocation23_spill] sm:$0xff] %v21619_v22  ;;  %v4679_v13 = vpop.f32.mrf.mxu1 }
 0x52d   : > { %v19182_v11 = vpop.f32.mrf.mxu0 }
 0x52e   : > { %v21621_v62 = vpop.f32.mrf.mxu1  ;;  %v4772_v9 = vadd.f32 %v19182_v11, %v4524_v60 }
 0x52f   : > { %v21623_v26 = vpop.f32.mrf.mxu0 }
 0x530   : > { %25970 = vst [vmem:[#allocation24_spill] sm:$0xff] %v21623_v26  ;;  %v21625_v42 = vpop.f32.mrf.mxu1 }
 0x532   : > { %v4878_v43 = vpop.f32.mrf.mxu1 }
 0x533   : > { %v4955_v59 = vpop.f32.mrf.mxu0 }
 0x534   : > { %v4880_v34 = vpop.f32.mrf.mxu1 }
 0x535   : > { %v4957_v6 = vpop.f32.mrf.mxu0 }
 0x538   : > { %v4884_v35 = vpop.f32.mrf.mxu1 }
 0x539   : > { %v21627_v0 = vadd.f32 %v4884_v35, %v4768_v61  ;;  %v21629_v3 = vpop.f32.mrf.mxu0 }
 0x53a   : > { %v21631_v8 = vpop.f32.mrf.mxu1 }
 0x53b   : > { %25971 = vst [vmem:[#allocation25_spill] sm:$0xff] %v21627_v0  ;;  %25972 = vst [vmem:[#allocation26_spill] sm:$0xff] %v21631_v8  ;;  %v21633_v15 = vpop.f32.mrf.mxu0 }
 0x53c   : > { %v19189_v29 = vpop.f32.mrf.mxu1 }
 0x53d   : > { %v5050_v33 = vadd.f32 %v19189_v29, %v4772_v9  ;;  %v5156_v45 = vpop.f32.mrf.mxu0  ;;  %v3884_v9 = vadd.f32 %v21579_v24, %v21567_v38  ;;  %v4237_v29 = vadd.f32 %v21591_v53, %v21581_v14  ;;  %v3809_v38 = vadd.f32 %v21583_v49, %v21571_v41 }
 0x53e   : > { %v21635_v52 = vpop.f32.mrf.mxu1 }
 0x53f   : > { %25973 = vst [vmem:[#allocation27_spill] sm:$0xff] %v21635_v52  ;;  %v5158_v5 = vpop.f32.mrf.mxu0  ;;  %v4239_v58 = vadd.f32 %v4151_v40, %v3884_v9  ;;  %v4515_v44 = vadd.f32 %v4352_v54, %v4237_v29  ;;  %v4238_v46 = vadd.f32 %v21595_v27, %v3809_v38  ;;  %v21669_v27 = vpop.permute.xlu1 %5913 }
 0x541   : > { %v4763_v8 = vadd.f32 %v4600_v16, %v4515_v44 }
 0x542   : > { %v21637_v12 = vpop.f32.mrf.mxu0 }
 0x543   : > { %25974 = vst [vmem:[#allocation28_spill] sm:$0xff] %v21637_v12  ;;  %v5233_v60 = vpop.f32.mrf.mxu1  ;;  %v5041_v0 = vadd.f32 %v4878_v43, %v4763_v8 }
 0x544   : > { %v21639_v21 = vpop.f32.mrf.mxu0 }
 0x545   : > { %25975 = vst [vmem:[#allocation29_spill] sm:$0xff] %v21639_v21  ;;  %v5235_v11 = vpop.f32.mrf.mxu1 }
 0x546   : > { %v19196_v61 = vpop.f32.mrf.mxu0 }
 0x547   : > { %v5239_v35 = vpop.f32.mrf.mxu1  ;;  %v5328_v47 = vadd.f32 %v19196_v61, %v5050_v33  ;;  %v4240_v61 = vadd.f32 %v21599_v7, %v3886_v51  ;;  %v4516_v51 = vadd.f32 %v21607_v20, %v4238_v46 }
 0x548   : > { %v21641_v25 = vpop.f32.mrf.mxu0 }
 0x549   : > { %25976 = vst [vmem:[#allocation30_spill] sm:$0xff] %v21641_v25  ;;  %v21643_v1 = vpop.f32.mrf.mxu1  ;;  %v4517_v25 = vadd.f32 %v4429_v56, %v4239_v58  ;;  %v4518_v14 = vadd.f32 %v4431_v36, %v4240_v61  ;;  %v5319_v58 = vadd.f32 %v5156_v45, %v5041_v0 }
 0x54b   : > { %v5434_v26 = vpop.f32.mrf.mxu1  ;;  %v4765_v53 = vadd.f32 %v4677_v10, %v4517_v25  ;;  %v4766_v54 = vadd.f32 %v4679_v13, %v4518_v14  ;;  %v4764_v25 = vadd.f32 %v21617_v55, %v4516_v51 }
 0x54c   : > { %v5511_v52 = vpop.f32.mrf.mxu0  ;;  %v5597_v36 = vadd.f32 %v5434_v26, %v5319_v58  ;;  %v3892_v58 = vadd.f32 %v21589_v4, %v21575_v50 }
 0x54d   : > { %v5436_v57 = vpop.f32.mrf.mxu1  ;;  %v5043_v7 = vadd.f32 %v4955_v59, %v4765_v53  ;;  %v5044_v49 = vadd.f32 %v4957_v6, %v4766_v54  ;;  %v5042_v13 = vadd.f32 %v4880_v34, %v4764_v25 }
 0x54e   : > { %v5513_v21 = vpop.f32.mrf.mxu0 }
 0x54f   : > { %v21651_v33 = vpop.f32.mrf.mxu1  ;;  %v5321_v56 = vadd.f32 %v5233_v60, %v5043_v7  ;;  %v5322_v10 = vadd.f32 %v5235_v11, %v5044_v49  ;;  %v5320_v45 = vadd.f32 %v5158_v5, %v5042_v13 }
 0x550   : > { %v5517_v12 = vpop.f32.mrf.mxu0 }
 0x551   : > { %v21656_v24 = vpop.f32.mrf.mxu1  ;;  %v5599_v43 = vadd.f32 %v5511_v52, %v5321_v56  ;;  %v5600_v0 = vadd.f32 %v5513_v21, %v5322_v10  ;;  %v5598_v9 = vadd.f32 %v5436_v57, %v5320_v45  ;;  %v21684_v57 = vpop.permute.xlu0 %5892 }
 0x552   : > { %v21658_v22 = vpop.f32.mrf.mxu0 }
 0x553   : > { %v19203_v40 = vpop.f32.mrf.mxu1 }
 0x554   : > { %v21663_v44 = vadd.f32 %v19203_v40, %v5328_v47  ;;  %v5712_v41 = vpop.f32.mrf.mxu0  ;;  %v4522_v47 = vadd.f32 %v21609_v37, %v21601_v48  ;;  %v21679_v48 = vpop.permute.xlu1 %5933 }
 0x555   : > { %v21667_v16 = vpop.f32.mrf.mxu1  ;;  %v5875_v8 = vadd.f32 %v5712_v41, %v5597_v36  ;;  %v21701_v36 = vpop.permute.xlu0 %5918 }
 0x556   : > { %v4770_v26 = vadd.f32 %v21621_v62, %v4522_v47  ;;  %v5714_v60 = vpop.f32.mrf.mxu0 }
 0x557   : > { %v5895_v55 = vadd.f32 %v21660_v19, %v5875_v8  ;;  %v5876_v37 = vadd.f32 %v5714_v60, %v5598_v9  ;;  %v25978_v60 = vld [vmem:[#allocation25_spill] sm:$0xff] }
 0x558   : > { %v5048_v29 = vadd.f32 %v21629_v3, %v4770_v26  ;;  %v5718_v9 = vpop.f32.mrf.mxu0 }
 0x559   : > { %v5789_v59 = vpop.f32.mrf.mxu1  ;;  %v5921_v21 = vmul.f32 %v21669_v27, %v5895_v55  ;;  %v5896_v3 = vadd.f32 %v21660_v19, %v5876_v37  ;;  %v21722_v8 = vpop.permute.xlu0 %5938 }
 0x55a   : > { %v5877_v20 = vadd.f32 %v5789_v59, %v5599_v43  ;;  %v5326_v5 = vadd.f32 %v5239_v35, %v5048_v29  ;;  %v25980_v29 = vld [vmem:[#allocation26_spill] sm:$0xff] }
 0x55b   : > { %v5791_v6 = vpop.f32.mrf.mxu1  ;;  %v5941_v40 = vadd.f32 %v21679_v48, %v5921_v21  ;;  %v5922_v41 = vmul.f32 %v21669_v27, %v5896_v3 }
 0x55c   : > { %v5897_v11 = vadd.f32 %v21660_v19, %v5877_v20  ;;  %v5878_v52 = vadd.f32 %v5791_v6, %v5600_v0  ;;  %v5604_v53 = vadd.f32 %v5517_v12, %v5326_v5  ;;  %v4245_v12 = vadd.f32 %v21605_v63, %v3892_v58  ;;  %v25984_v58 = vld [vmem:[#allocation21_spill] sm:$0xff] }
 0x55d   : > { %v5795_v14 = vpop.f32.mrf.mxu1  ;;  %v5951_v51 = vmax.f32 %v5941_v40, 0.0  ;;  %v5942_v63 = vadd.f32 %v21679_v48, %v5922_v41  ;;  %v25982_v40 = vld [vmem:[#allocation19_spill] sm:$0xff] }
 0x55e   : > { %v5923_v34 = vmul.f32 %v21669_v27, %v5897_v11  ;;  %v5898_v61 = vadd.f32 %v21660_v19, %v5878_v52  ;;  %v5882_v7 = vadd.f32 %v5795_v14, %v5604_v53  ;;  %v4523_v25 = vadd.f32 %v21613_v28, %v4245_v12  ;;  %v25979_v11 = vld [vmem:[#allocation28_spill] sm:$0xff] }
 0x55f   : > { %v21710_v4 = vmul.f32 %v5951_v51, %v19996_v31  ;;  %v5952_v13 = vmax.f32 %v5942_v63, 0.0  ;;  %v5797_v47 = vpop.f32.mrf.mxu1  ;;  %v5324_v52 = vadd.f32 %v25979_v11, %v25978_v60 }
 0x560   : > { %v5943_v62 = vadd.f32 %v21679_v48, %v5923_v34  ;;  %v5924_v38 = vmul.f32 %v21669_v27, %v5898_v61  ;;  %v5902_v56 = vadd.f32 %v21684_v57, %v5882_v7  ;;  %v4771_v50 = vadd.f32 %v21625_v42, %v4523_v25  ;;  %v25986_v25 = vld [vmem:[#allocation24_spill] sm:$0xff] }
 0x561   : > { %v5602_v61 = vadd.f32 %v21651_v33, %v5324_v52 }
 0x562   : > { %v5953_v46 = vmax.f32 %v5943_v62, 0.0  ;;  %v5944_v35 = vadd.f32 %v21679_v48, %v5924_v38  ;;  %v5928_v43 = vmul.f32 %v21701_v36, %v5902_v56  ;;  %v5049_v28 = vadd.f32 %v21633_v15, %v4771_v50  ;;  %v5720_v62 = vpop.f32.mrf.mxu0 }
 0x563   : > { %v21732_v15 = vmul.f32 %v5952_v13, %v19991_v23  ;;  %v5880_v5 = vadd.f32 %v5718_v9, %v5602_v61 }
 0x564   : > { %v21689_v54 = vmul.f32 %v5953_v46, %v19998_v32  ;;  %v5954_v49 = vmax.f32 %v5944_v35, 0.0  ;;  %v5327_v42 = vadd.f32 %v21643_v1, %v5049_v28  ;;  %v5948_v59 = vadd.f32 %v21722_v8, %v5928_v43  ;;  %v25983_v35 = vld [vmem:[#allocation20_spill] sm:$0xff]  ;;  %v19210_v28 = vpop.f32.mrf.mxu0 }
 0x565   : > { %v3815_v1 = vadd.f32 %v21587_v39, %v21573_v17  ;;  %v25977_v17 = vld [vmem:[#allocation23_spill] sm:$0xff]  ;;  %v5900_v33 = vadd.f32 %v21684_v57, %v5880_v5  ;;  %v3961_v7 = vadd.f32 %v25983_v35, %v25982_v40 }
 0x566   : > { %5985 = vrot.lane.b32.xlu1 %v21689_v54, %s25894_s29  ;;  %6018 = vrot.lane.b32.xlu0 %v21689_v54, %s25899_s26  ;;  %v21714_v10 = vmul.f32 %v5954_v49, %v19994_v30  ;;  %v5605_v0 = vadd.f32 %v21658_v22, %v5327_v42  ;;  %v5958_v20 = vmax.f32 %v5948_v59, 0.0  ;;  %v25985_v49 = vld [vmem:[#allocation22_spill] sm:$0xff]  ;;  %v25987_v42 = vld [vmem:[#allocation27_spill] sm:$0xff] }
 0x567   : > { %v4243_v22 = vadd.f32 %v21597_v18, %v3815_v1  ;;  %v5926_v46 = vmul.f32 %v21701_v36, %v5900_v33  ;;  %v4241_v12 = vadd.f32 %v25984_v58, %v3961_v7  ;;  %v25988_v59 = vld [vmem:[#allocation30_spill] sm:$0xff]  ;;  %v5866_v1 = vpop.f32.mrf.mxu0 }
 0x568   : > { %v5883_v45 = vadd.f32 %v5797_v47, %v5605_v0  ;;  %v21742_v6 = vmul.f32 %v5958_v20, %v19998_v32 }
 0x569   : > { %v4521_v55 = vadd.f32 %v21611_v2, %v4243_v22  ;;  %v25981_v2 = vld [vmem:[#allocation29_spill] sm:$0xff]  ;;  %v5946_v51 = vadd.f32 %v21722_v8, %v5926_v46  ;;  %v4519_v56 = vadd.f32 %v25985_v49, %v4241_v12 }
 0x56a   : > { %6799 = vrot.lane.b32.xlu1 %v21689_v54, %s25890_s28  ;;  %6521 = vrot.lane.b32.xlu0 %v21689_v54, %s25892_s19  ;;  %v5903_v26 = vadd.f32 %v21684_v57, %v5883_v45  ;;  %v5884_v45 = vadd.f32 %v19210_v28, %v21663_v44  ;;  %v18568_v49 = vld [vmem:[%s25854_s9 + $0x10] sm:$0xff] }
 0x56b   : > { %v4769_v39 = vadd.f32 %v25977_v17, %v4521_v55  ;;  %v4767_v50 = vadd.f32 %v25986_v25, %v4519_v56  ;;  %v5956_v63 = vmax.f32 %v5946_v51, 0.0 }
 0x56c   : > { %v5929_v18 = vmul.f32 %v21701_v36, %v5903_v26  ;;  %v5904_v55 = vadd.f32 %v21684_v57, %v5884_v45 }
 0x56d   : > { %v5047_v34 = vadd.f32 %v25980_v29, %v4769_v39  ;;  %v5045_v13 = vadd.f32 %v25987_v42, %v4767_v50  ;;  %v21800_v0 = vmul.f32 %v5956_v63, %v19996_v31 }
 0x56e   : > { %5989 = vrot.lane.b32.xlu0 %v21714_v10, %s25894_s29  ;;  %6010 = vrot.lane.b32.xlu1 %v21710_v4, %s25899_s26  ;;  %v5949_v21 = vadd.f32 %v21722_v8, %v5929_v18  ;;  %v5930_v44 = vmul.f32 %v21701_v36, %v5904_v55  ;;  %v25992_v55 = vmov 0.0  }
 0x56f   : > { %v5325_v37 = vadd.f32 %v25981_v2, %v5047_v34  ;;  %v5323_v47 = vadd.f32 %v25988_v59, %v5045_v13 }
 0x570   : > { %v5959_v53 = vmax.f32 %v5949_v21, 0.0  ;;  %v5950_v39 = vadd.f32 %v21722_v8, %v5930_v44 }
 0x571   : > { %v5603_v38 = vadd.f32 %v21656_v24, %v5325_v37  ;;  %v5601_v22 = vadd.f32 %v21667_v16, %v5323_v47 }
 0x572   : > { %6803 = vrot.lane.b32.xlu0 %v21714_v10, %s25890_s28  ;;  %6022 = vrot.lane.b32.xlu1 %v21714_v10, %s25899_s26  ;;  %v21775_v3 = vmul.f32 %v5959_v53, %v19994_v30  ;;  %v5960_v60 = vmax.f32 %v5950_v39, 0.0 }
 0x573   : > { %v5881_v14 = vadd.f32 %v5720_v62, %v5603_v38  ;;  %v5879_v17 = vadd.f32 %v5866_v1, %v5601_v22  ;;  %v6008_v1 = vld [vmem:[#allocation2 + $0xa0] sm:$0xff] }
 0x575   : > { %v5901_v24 = vadd.f32 %v21684_v57, %v5881_v14  ;;  %v5899_v16 = vadd.f32 %v21660_v19, %v5879_v17  ;;  %v25989_v19 = vld [vmem:[#allocation17_spill] sm:$0xff] }
 0x576   : > { %6014 = vrot.lane.b32.xlu0 %v21732_v15, %s25899_s26  ;;  %5977 = vrot.lane.b32.xlu1 %v21710_v4, %s25894_s29  ;;  %v21834_v11 = vmul.f32 %v5960_v60, %v25989_v19 }
 0x577   : > { %v5927_v41 = vmul.f32 %v21701_v36, %v5901_v24  ;;  %v5925_v57 = vmul.f32 %v21669_v27, %v5899_v16  ;;  %v6009_v16 = vld [vmem:[#allocation2 + $0xa8] sm:$0xff] }
 0x579   : > { %v5947_v43 = vadd.f32 %v21722_v8, %v5927_v41  ;;  %v5945_v36 = vadd.f32 %v21679_v48, %v5925_v57  ;;  %v18569_v41 = vld [vmem:[%s25854_s9 + $0x18] sm:$0xff] }
 0x57a   : > { %6020 = vrot.lane.b32.xlu0 %v21742_v6, %s25899_s26  ;;  %6513 = vrot.lane.b32.xlu1 %v21710_v4, %s25892_s19 }
 0x57b   : > { %v5957_v20 = vmax.f32 %v5947_v43, 0.0  ;;  %v5955_v8 = vmax.f32 %v5945_v36, 0.0 }
 0x57d   : > { %v21809_v26 = vmul.f32 %v5957_v20, %v19991_v23  ;;  %v21841_v27 = vmul.f32 %v5955_v8, %v25989_v19 }
 0x57e   : > { %5987 = vrot.lane.b32.xlu0 %v21742_v6, %s25894_s29  ;;  %6525 = vrot.lane.b32.xlu1 %v21714_v10, %s25892_s19 }
 0x582   : > { %5981 = vrot.lane.b32.xlu0 %v21732_v15, %s25894_s29  ;;  %6791 = vrot.lane.b32.xlu1 %v21710_v4, %s25890_s28 }
 0x586   : > { %6517 = vrot.lane.b32.xlu0 %v21732_v15, %s25892_s19  ;;  %7327 = vrot.lane.b32.xlu1 %v21742_v6, %s25883_s30 }
 0x58a   : > { %6523 = vrot.lane.b32.xlu0 %v21742_v6, %s25892_s19  ;;  %6024 = vrot.lane.b32.xlu1 %v21775_v3, %s25899_s26 }
 0x58e   : > { %6801 = vrot.lane.b32.xlu0 %v21742_v6, %s25890_s28  ;;  %5991 = vrot.lane.b32.xlu1 %v21775_v3, %s25894_s29 }
 0x592   : > { %6795 = vrot.lane.b32.xlu0 %v21732_v15, %s25890_s28  ;;  %6527 = vrot.lane.b32.xlu1 %v21775_v3, %s25892_s19 }
 0x596   : > { %6012 = vrot.lane.b32.xlu0 %v21800_v0, %s25899_s26  ;;  %6805 = vrot.lane.b32.xlu1 %v21775_v3, %s25890_s28 }
 0x59a   : > { %5979 = vrot.lane.b32.xlu0 %v21800_v0, %s25894_s29  ;;  %6016 = vrot.lane.b32.xlu1 %v21809_v26, %s25899_s26 }
 0x59e   : > { %6515 = vrot.lane.b32.xlu0 %v21800_v0, %s25892_s19  ;;  %5983 = vrot.lane.b32.xlu1 %v21809_v26, %s25894_s29 }
 0x5a2   : > { %6793 = vrot.lane.b32.xlu0 %v21800_v0, %s25890_s28  ;;  %6519 = vrot.lane.b32.xlu1 %v21809_v26, %s25892_s19 }
 0x5a6   : > { %7323 = vrot.lane.b32.xlu0 %v21809_v26, %s25883_s30  ;;  %6797 = vrot.lane.b32.xlu1 %v21809_v26, %s25890_s28 }
 0x5aa   : > { %6028 = vrot.lane.b32.xlu0 %v21834_v11, %s25899_s26  ;;  %7335 = vrot.lane.b32.xlu1 %v21834_v11, %s25883_s30 }
 0x5ae   : > { %7331 = vrot.lane.b32.xlu0 %v21775_v3, %s25883_s30  ;;  %6026 = vrot.lane.b32.xlu1 %v21841_v27, %s25899_s26 }
 0x5b2   : > { %7319 = vrot.lane.b32.xlu0 %v21800_v0, %s25883_s30  ;;  %7321 = vrot.lane.b32.xlu1 %v21732_v15, %s25883_s30 }
 0x5b6   : > { %5995 = vrot.lane.b32.xlu0 %v21834_v11, %s25894_s29  ;;  %7329 = vrot.lane.b32.xlu1 %v21714_v10, %s25883_s30 }
 0x5ba   : > { %6531 = vrot.lane.b32.xlu0 %v21834_v11, %s25892_s19  ;;  %5993 = vrot.lane.b32.xlu1 %v21841_v27, %s25894_s29  ;;  %s26040_s29 = smov 25  }
 0x5be   : > { %6809 = vrot.lane.b32.xlu0 %v21834_v11, %s25890_s28  ;;  %7317 = vrot.lane.b32.xlu1 %v21710_v4, %s25883_s30 }
 0x5c2   : > { %7325 = vrot.lane.b32.xlu0 %v21689_v54, %s25883_s30  ;;  %6529 = vrot.lane.b32.xlu1 %v21841_v27, %s25892_s19  ;;  %s26041_s19 = smov 23  }
 0x5c6   : > { %7601 = vrot.lane.b32.xlu0 %v21809_v26, %s25990_s17  ;;  %7605 = vrot.lane.b32.xlu1 %v21742_v6, %s25990_s17 }
 0x5ca   : > { %7597 = vrot.lane.b32.xlu0 %v21800_v0, %s25990_s17  ;;  %7599 = vrot.lane.b32.xlu1 %v21732_v15, %s25990_s17 }
 0x5ce   : > { %7603 = vrot.lane.b32.xlu0 %v21689_v54, %s25990_s17  ;;  %6807 = vrot.lane.b32.xlu1 %v21841_v27, %s25890_s28  ;;  %s26042_s28 = smov 1  }
 0x5d2   : > { %7609 = vrot.lane.b32.xlu0 %v21775_v3, %s25990_s17  ;;  %7595 = vrot.lane.b32.xlu1 %v21710_v4, %s25990_s17 }
 0x5d6   : > { %7607 = vrot.lane.b32.xlu0 %v21714_v10, %s25990_s17  ;;  %7613 = vrot.lane.b32.xlu1 %v21834_v11, %s25990_s17 }
 0x5d8   : > { %v21887_v48 = vpop.permute.xlu1 %5985  ;;  %v6019_v52 = vpop.permute.xlu0 %6018 }
 0x5da   : > { %7879 = vrot.lane.b32.xlu0 %v21809_v26, %s25962_s23  ;;  %7883 = vrot.lane.b32.xlu1 %v21742_v6, %s25962_s23 }
 0x5dc   : > { %v21893_v18 = vpop.permute.xlu1 %6799  ;;  %v21895_v9 = vpop.permute.xlu0 %6521 }
 0x5de   : > { %7887 = vrot.lane.b32.xlu0 %v21775_v3, %s25962_s23  ;;  %7891 = vrot.lane.b32.xlu1 %v21834_v11, %s25962_s23 }
 0x5e0   : > { %v21901_v29 = vpop.permute.xlu0 %5989  ;;  %v21903_v34 = vpop.permute.xlu1 %6010 }
 0x5e2   : > { %7333 = vrot.lane.b32.xlu0 %v21841_v27, %s25883_s30  ;;  %7877 = vrot.lane.b32.xlu1 %v21732_v15, %s25962_s23  ;;  %s19757_s30 = smov 50  }
 0x5e4   : > { %v21909_v61 = vpop.permute.xlu0 %6803  ;;  %v21911_v2 = vpop.permute.xlu1 %6022 }
 0x5e5   : > { %v6032_v59 = vsel %vm988_vm1, %v6019_v52, %v21911_v2 }
 0x5e6   : > { %7875 = vrot.lane.b32.xlu0 %v21800_v0, %s25962_s23  ;;  %7885 = vrot.lane.b32.xlu1 %v21714_v10, %s25962_s23 }
 0x5e8   : > { %v21917_v37 = vpop.permute.xlu0 %6014  ;;  %v21919_v5 = vpop.permute.xlu1 %5977 }
 0x5e9   : > { %v6034_v47 = vsel %vm988_vm1, %v21917_v37, %v6019_v52  ;;  %v6036_v52 = vsel %vm988_vm1, %v21903_v34, %v21917_v37 }
 0x5ea   : > { %7881 = vrot.lane.b32.xlu0 %v21689_v54, %s25962_s23  ;;  %7873 = vrot.lane.b32.xlu1 %v21710_v4, %s25962_s23 }
 0x5ec   : > { %v6021_v21 = vpop.permute.xlu0 %6020  ;;  %v21925_v62 = vpop.permute.xlu1 %6513 }
 0x5ee   : > { %8157 = vrot.lane.b32.xlu0 %v21809_v26, %s25888_s27  ;;  %7611 = vrot.lane.b32.xlu1 %v21841_v27, %s25990_s17 }
 0x5f0   : > { %v21931_v38 = vpop.permute.xlu0 %5987  ;;  %v21933_v33 = vpop.permute.xlu1 %6525 }
 0x5f2   : > { %8153 = vrot.lane.b32.xlu0 %v21800_v0, %s25888_s27  ;;  %8161 = vrot.lane.b32.xlu1 %v21742_v6, %s25888_s27 }
 0x5f4   : > { %v21939_v14 = vpop.permute.xlu0 %5981  ;;  %v21941_v53 = vpop.permute.xlu1 %6791 }
 0x5f6   : > { %7889 = vrot.lane.b32.xlu0 %v21841_v27, %s25962_s23  ;;  %8155 = vrot.lane.b32.xlu1 %v21732_v15, %s25888_s27 }
 0x5f8   : > { %v21947_v46 = vpop.permute.xlu0 %6517  ;;  %v21949_v24 = vpop.permute.xlu1 %7327 }
 0x5fa   : > { %8159 = vrot.lane.b32.xlu0 %v21689_v54, %s25888_s27  ;;  %8151 = vrot.lane.b32.xlu1 %v21710_v4, %s25888_s27 }
 0x5fc   : > { %v21955_v40 = vpop.permute.xlu0 %6523  ;;  %v6025_v35 = vpop.permute.xlu1 %6024 }
 0x5fd   : > { %v6033_v58 = vsel %vm988_vm1, %v6021_v21, %v6025_v35 }
 0x5fe   : > { %8165 = vrot.lane.b32.xlu0 %v21775_v3, %s25888_s27  ;;  %8169 = vrot.lane.b32.xlu1 %v21834_v11, %s25888_s27 }
 0x5ff   : > { %6151 = vmatprep.subr.mxu0 %v6033_v58 }
 0x600   : > { %v21963_v12 = vpop.permute.xlu0 %6801  ;;  %v21965_v51 = vpop.permute.xlu1 %5991 }
 0x602   : > { %8163 = vrot.lane.b32.xlu0 %v21714_v10, %s25888_s27  ;;  %8167 = vrot.lane.b32.xlu1 %v21841_v27, %s25888_s27  ;;  %s19761_s27 = smov 126  }
 0x604   : > { %v21977_v56 = vpop.permute.xlu0 %6795  ;;  %v21979_v25 = vpop.permute.xlu1 %6527 }
 0x606   : > { %8433 = vperm.xlu0 %19619, %v18569_v41   ;;  %8428 = vperm.xlu1 %19620, %v18568_v49  }
 0x608   : > { %v6013_v50 = vpop.permute.xlu0 %6012  ;;  %v21981_v63 = vpop.permute.xlu1 %6805 }
 0x60c   : > { %v5980_v43 = vpop.permute.xlu0 %5979  ;;  %v6017_v28 = vpop.permute.xlu1 %6016 }
 0x60d   : > { %v6037_v42 = vsel %vm988_vm1, %v6013_v50, %v6017_v28  ;;  %v6035_v13 = vsel %vm988_vm1, %v6017_v28, %v6021_v21 }
 0x60e   : > { %6074 = vmatprep.subr.mxu1 %v6037_v42  ;;  %6152 = vmatpush1.msra.mxu0 %v6035_v13  ;;  %v6003_v13 = vsel %vm954_vm3, %v21919_v5, %v21939_v14 }
 0x60f   : > { %6153 = vmatprep.subr.mxu0 %v6032_v59 }
 0x610   : > { %v6516_v20 = vpop.permute.xlu0 %6515  ;;  %6154 = vmatpush1.msra.mxu0 %v6034_v47  ;;  %v5984_v45 = vpop.permute.xlu1 %5983 }
 0x611   : > { %v6004_v22 = vsel %vm954_vm3, %v5980_v43, %v5984_v45  ;;  %18572 = vmatmul.mubr.msk.f32.vlgmr.msra.gmra.mxu0 %vm999_vm2, %v6008_v1  ;;  %v6002_v59 = vsel %vm954_vm3, %v5984_v45, %v21931_v38 }
 0x612   : > { %6309 = vmatprep.subr.mxu0 %v6004_v22  ;;  %6193 = vmatprep.mubr.f32.mxu0 %v25992_v55  ;;  %v5975_v22 = vld [vmem:[#allocation2 + $0x90] sm:$0xff] }
 0x614   : > { %v21997_v17 = vpop.permute.xlu0 %6793  ;;  %v21999_v44 = vpop.permute.xlu1 %6519 }
 0x615   : > { %18573 = vmatmul.mubr.msk.f32.gmra.mxu0 %vm999_vm2, %v6009_v16  ;;  %v6540_v45 = vsel %vm1493_vm4, %v6516_v20, %v21999_v44 }
 0x616   : > { %6345 = vmatprep.mubr.f32.mxu0 %v25992_v55 }
 0x618   : > { %v22003_v39 = vpop.permute.xlu0 %7323  ;;  %v22005_v57 = vpop.permute.xlu1 %6797 }
 0x61c   : > { %v6029_v60 = vpop.permute.xlu0 %6028  ;;  %v22007_v36 = vpop.permute.xlu1 %7335 }
 0x61d   : > { %v6039_v8 = vsel %vm988_vm1, %v6029_v60, %v6013_v50  ;;  %v6031_v49 = vsel %vm988_vm1, %v6025_v35, %v6029_v60 }
 0x61e   : > { %6075 = vmatpush1.msra.mxu1 %v6039_v8 }
 0x61f   : > { %6076 = vmatprep.subr.mxu1 %v6036_v52  ;;  %v5976_v52 = vld [vmem:[#allocation2 + $0x98] sm:$0xff] }
 0x620   : > { %v22015_v21 = vpop.permute.xlu0 %7331  ;;  %v6027_v58 = vpop.permute.xlu1 %6026 }
 0x621   : > { %v6038_v41 = vsel %vm988_vm1, %v6027_v58, %v21903_v34  ;;  %v6030_v37 = vsel %vm988_vm1, %v21911_v2, %v6027_v58  ;;  %v6000_v34 = vsel %vm954_vm3, %v21931_v38, %v21965_v51 }
 0x622   : > { %6077 = vmatpush1.msra.mxu1 %v6038_v41 }
 0x623   : > { %18570 = vmatmul.mubr.msk.f32.vlgmr.msra.gmra.mxu1 %vm999_vm2, %v6008_v1  ;;  %19211 = vmatprep.subr.mxu1 %v6031_v49 }
 0x624   : > { %v22023_v50 = vpop.permute.xlu0 %7319  ;;  %19212 = vmatpush3.msra.mxu1 %v6031_v49  ;;  %v22025_v28 = vpop.permute.xlu1 %7321  ;;  %6116 = vmatprep.mubr.f32.mxu1 %v25992_v55  ;;  %v6511_v49 = vld [vmem:[#allocation2 + $0xb0] sm:$0xff] }
 0x625   : > { %19213 = vmatprep.subr.mxu1 %v6030_v37 }
 0x626   : > { %19214 = vmatpush3.msra.mxu1 %v6030_v37 }
 0x627   : > { %18571 = vmatmul.mubr.msk.f32.gmra.mxu1 %vm999_vm2, %v6009_v16  ;;  %6386 = vmatprep.subr.mxu1 %v6000_v34 }
 0x628   : > { %v5996_v35 = vpop.permute.xlu0 %5995  ;;  %v22036_v42 = vpop.permute.xlu1 %7329  ;;  %19215 = vmatprep.mubr.msk.f32.mxu1 %vm999_vm2, %v6008_v1 }
 0x629   : > { %v6006_v2 = vsel %vm954_vm3, %v5996_v35, %v5980_v43  ;;  %v5999_v43 = vsel %vm954_vm3, %v21887_v48, %v21901_v29 }
 0x62a   : > { %6310 = vmatpush1.msra.mxu0 %v6006_v2  ;;  %v6535_v2 = vsel %vm1493_vm4, %v21895_v9, %v21933_v33 }
 0x62b   : > { %19216 = vmatmul.mubr.msk.f32.vlgmr.msra.gmra.mxu1 %vm999_vm2, %v6009_v16  ;;  %6311 = vmatprep.subr.mxu0 %v6003_v13  ;;  %v6001_v16 = vsel %vm954_vm3, %v21939_v14, %v21887_v48  ;;  %v5998_v48 = vsel %vm954_vm3, %v21965_v51, %v5996_v35  ;;  %v6536_v51 = vsel %vm1493_vm4, %v21955_v40, %v21979_v25 }
 0x62c   : > { %6387 = vmatpush1.msra.mxu1 %v6002_v59  ;;  %v6532_v47 = vpop.permute.xlu0 %6531  ;;  %v5994_v1 = vpop.permute.xlu1 %5993  ;;  %6422 = vmatprep.mubr.f32.mxu1 %v25992_v55  ;;  %v6537_v13 = vsel %vm1493_vm4, %v21947_v46, %v21895_v9 }
 0x62d   : > { %6388 = vmatprep.subr.mxu1 %v5999_v43  ;;  %v6005_v38 = vsel %vm954_vm3, %v5994_v1, %v21919_v5  ;;  %v6542_v60 = vsel %vm1493_vm4, %v6532_v47, %v6516_v20  ;;  %v6539_v20 = vsel %vm1493_vm4, %v21925_v62, %v21947_v46  ;;  %v5997_v8 = vsel %vm954_vm3, %v21901_v29, %v5994_v1 }
 0x62e   : > { %6389 = vmatpush1.msra.mxu1 %v6001_v16  ;;  %6312 = vmatpush1.msra.mxu0 %v6005_v38  ;;  %v6534_v37 = vsel %vm1493_vm4, %v21979_v25, %v6532_v47  ;;  %v6814_v46 = vsel %vm1772_vm5, %v21963_v12, %v21981_v63  ;;  %v6817_v47 = vsel %vm1772_vm5, %v21941_v53, %v21977_v56  ;;  %v6789_v38 = vld [vmem:[#allocation2 + $0xc0] sm:$0xff] }
 0x62f   : > { %6577 = vmatprep.subr.mxu1 %v6540_v45  ;;  %18576 = vmatmul.mubr.msk.f32.vlgmr.msra.gmra.mxu0 %vm999_vm2, %v5975_v22  ;;  %v6813_v16 = vsel %vm1772_vm5, %v21893_v18, %v21909_v61 }
 0x630   : > { %18578 = vmatmul.mubr.msk.f32.vlgmr.msra.gmra.mxu1 %vm999_vm2, %v5975_v22  ;;  %19218 = vmatprep.subr.mxu0 %v5998_v48  ;;  %v22071_v5 = vpop.permute.xlu0 %6809  ;;  %v22073_v14 = vpop.permute.xlu1 %7317 }
 0x631   : > { %6578 = vmatpush1.msra.mxu1 %v6542_v60  ;;  %19219 = vmatpush3.msra.mxu0 %v5998_v48  ;;  %v6820_v9 = vsel %vm1772_vm5, %v22071_v5, %v21997_v17  ;;  %v7342_v48 = vsel %vm2299_vm6, %v22003_v39, %v21949_v24 }
 0x632   : > { %6579 = vmatprep.subr.mxu1 %v6539_v20  ;;  %19220 = vmatprep.subr.mxu0 %v5997_v8 }
 0x633   : > { %6351 = vmatprep.mubr.f32.mxu0 %v25992_v55  ;;  %6428 = vmatprep.mubr.f32.mxu1 %v25992_v55 }
 0x634   : > { %19221 = vmatpush3.msra.mxu0 %v5997_v8  ;;  %18579 = vmatmul.mubr.msk.f32.gmra.mxu1 %vm999_vm2, %v5976_v52  ;;  %v22089_v58 = vpop.permute.xlu0 %7325  ;;  %v6530_v41 = vpop.permute.xlu1 %6529  ;;  %v7346_v8 = vsel %vm2299_vm6, %v22007_v36, %v22023_v50 }
 0x635   : > { %18577 = vmatmul.mubr.msk.f32.gmra.mxu0 %vm999_vm2, %v5976_v52  ;;  %6654 = vmatprep.subr.mxu0 %v6536_v51  ;;  %v6541_v29 = vsel %vm1493_vm4, %v6530_v41, %v21925_v62  ;;  %v6538_v62 = vsel %vm1493_vm4, %v21999_v44, %v21955_v40  ;;  %v6533_v25 = vsel %vm1493_vm4, %v21933_v33, %v6530_v41  ;;  %v6512_v40 = vld [vmem:[#allocation2 + $0xb8] sm:$0xff]  ;;  %v7315_v51 = vld [vmem:[#allocation2 + $0xe0] sm:$0xff] }
 0x636   : > { %19222 = vmatprep.mubr.msk.f32.mxu0 %vm999_vm2, %v5975_v22  ;;  %6580 = vmatpush1.msra.mxu1 %v6541_v29  ;;  %v6818_v44 = vsel %vm1772_vm5, %v21997_v17, %v22005_v57  ;;  %v6816_v22 = vsel %vm1772_vm5, %v22005_v57, %v21963_v12  ;;  %v6812_v12 = vsel %vm1772_vm5, %v21981_v63, %v22071_v5  ;;  %v6790_v57 = vld [vmem:[#allocation2 + $0xc8] sm:$0xff] }
 0x637   : > { %6613 = vmatprep.mubr.f32.mxu1 %v25992_v55  ;;  %19225 = vmatprep.subr.mxu1 %v6534_v37 }
 0x638   : > { %18582 = vmatmul.mubr.msk.f32.vlgmr.msra.gmra.mxu1 %vm999_vm2, %v6511_v49  ;;  %v22101_v34 = vpop.permute.xlu0 %7601  ;;  %v22103_v35 = vpop.permute.xlu1 %7605 }
 0x639   : > { %19223 = vmatmul.mubr.msk.f32.vlgmr.msra.gmra.mxu0 %vm999_vm2, %v5976_v52  ;;  %19226 = vmatpush3.msra.mxu1 %v6534_v37 }
 0x63a   : > { %6655 = vmatpush1.msra.mxu0 %v6538_v62  ;;  %19227 = vmatprep.subr.mxu1 %v6533_v25 }
 0x63b   : > { %6656 = vmatprep.subr.mxu0 %v6535_v2  ;;  %6619 = vmatprep.mubr.f32.mxu1 %v25992_v55 }
 0x63c   : > { %6657 = vmatpush1.msra.mxu0 %v6537_v13  ;;  %6690 = vmatprep.mubr.f32.mxu0 %v25992_v55  ;;  %v22127_v59 = vpop.permute.xlu0 %7597  ;;  %v22129_v33 = vpop.permute.xlu1 %7599  ;;  %v7593_v13 = vld [vmem:[#allocation2 + $0xf0] sm:$0xff] }
 0x63d   : > { %19228 = vmatpush3.msra.mxu1 %v6533_v25  ;;  %6855 = vmatprep.subr.mxu0 %v6818_v44 }
 0x63e   : > { %18583 = vmatmul.mubr.msk.f32.gmra.mxu1 %vm999_vm2, %v6512_v40  ;;  %18584 = vmatmul.mubr.msk.f32.vlgmr.msra.gmra.mxu0 %vm999_vm2, %v6511_v49 }
 0x63f   : > { %6856 = vmatpush1.msra.mxu0 %v6820_v9  ;;  %6932 = vmatprep.subr.mxu1 %v6814_v46  ;;  %v7594_v46 = vld [vmem:[#allocation2 + $0xf8] sm:$0xff] }
 0x640   : > { %6857 = vmatprep.subr.mxu0 %v6817_v47  ;;  %6696 = vmatprep.mubr.f32.mxu0 %v25992_v55  ;;  %v22146_v43 = vpop.permute.xlu0 %7603  ;;  %v6808_v1 = vpop.permute.xlu1 %6807 }
 0x641   : > { %19229 = vmatprep.mubr.msk.f32.mxu1 %vm999_vm2, %v6511_v49  ;;  %v6819_v17 = vsel %vm1772_vm5, %v6808_v1, %v21941_v53  ;;  %v6815_v53 = vsel %vm1772_vm5, %v21977_v56, %v21893_v18  ;;  %v6811_v18 = vsel %vm1772_vm5, %v21909_v61, %v6808_v1  ;;  %v7316_v49 = vld [vmem:[#allocation2 + $0xe8] sm:$0xff] }
 0x642   : > { %18585 = vmatmul.mubr.msk.f32.gmra.mxu0 %vm999_vm2, %v6512_v40  ;;  %19230 = vmatmul.mubr.msk.f32.vlgmr.msra.gmra.mxu1 %vm999_vm2, %v6512_v40 }
 0x643   : > { %6933 = vmatpush1.msra.mxu1 %v6816_v22  ;;  %6858 = vmatpush1.msra.mxu0 %v6819_v17 }
 0x644   : > { %6934 = vmatprep.subr.mxu1 %v6813_v16  ;;  %6891 = vmatprep.mubr.f32.mxu0 %v25992_v55  ;;  %v22167_v45 = vpop.permute.xlu0 %7609  ;;  %v22169_v60 = vpop.permute.xlu1 %7595 }
 0x645   : > { %6935 = vmatpush1.msra.mxu1 %v6815_v53  ;;  %6968 = vmatprep.mubr.f32.mxu1 %v25992_v55  ;;  %v7618_v44 = vsel %vm2578_vm7, %v22103_v35, %v22167_v45 }
 0x646   : > { %7103 = vmatprep.subr.mxu1 %v21809_v26  ;;  %18588 = vmatmul.mubr.msk.f32.vlgmr.msra.gmra.mxu0 %vm999_vm2, %v6789_v38 }
 0x647   : > { %18590 = vmatmul.mubr.msk.f32.vlgmr.msra.gmra.mxu1 %vm999_vm2, %v6789_v38  ;;  %19232 = vmatprep.subr.mxu0 %v6812_v12 }
 0x648   : > { %7104 = vmatpush1.msra.mxu1 %v21800_v0  ;;  %19233 = vmatpush3.msra.mxu0 %v6812_v12  ;;  %v22183_v56 = vpop.permute.xlu0 %7607  ;;  %v22185_v26 = vpop.permute.xlu1 %7613  ;;  %v7871_v12 = vld [vmem:[#allocation2 + $0x100] sm:$0xff] }
 0x649   : > { %7105 = vmatprep.subr.mxu1 %v21732_v15  ;;  %19234 = vmatprep.subr.mxu0 %v6811_v18  ;;  %v7616_v37 = vsel %vm2578_vm7, %v22167_v45, %v22185_v26  ;;  %v7624_v2 = vsel %vm2578_vm7, %v22185_v26, %v22127_v59 }
 0x64a   : > { %7106 = vmatpush1.msra.mxu1 %v21710_v4  ;;  %6897 = vmatprep.mubr.f32.mxu0 %v25992_v55  ;;  %v7067_v4 = vld [vmem:[#allocation2 + $0xd0] sm:$0xff] }
 0x64b   : > { %6974 = vmatprep.mubr.f32.mxu1 %v25992_v55  ;;  %19235 = vmatpush3.msra.mxu0 %v6811_v18 }
 0x64c   : > { %19239 = vmatprep.subr.mxu1 %v21834_v11  ;;  %18589 = vmatmul.mubr.msk.f32.gmra.mxu0 %vm999_vm2, %v6790_v57  ;;  %v22193_v0 = vpop.permute.xlu0 %7879  ;;  %v22195_v61 = vpop.permute.xlu1 %7883 }
 0x64d   : > { %18591 = vmatmul.mubr.msk.f32.gmra.mxu1 %vm999_vm2, %v6790_v57  ;;  %7180 = vmatprep.subr.mxu0 %v21775_v3  ;;  %v7068_v3 = vld [vmem:[#allocation2 + $0xd8] sm:$0xff]  ;;  %v7898_v47 = vsel %vm2857_vm8, %v22193_v0, %v22195_v61 }
 0x64e   : > { %19236 = vmatprep.mubr.msk.f32.mxu0 %vm999_vm2, %v6789_v38  ;;  %7139 = vmatprep.mubr.f32.mxu1 %v25992_v55 }
 0x650   : > { %19237 = vmatmul.mubr.msk.f32.vlgmr.msra.gmra.mxu0 %vm999_vm2, %v6790_v57  ;;  %v22202_v15 = vpop.permute.xlu0 %7887  ;;  %v22204_v63 = vpop.permute.xlu1 %7891 }
 0x651   : > { %18594 = vmatmul.mubr.msk.f32.vlgmr.msra.gmra.mxu1 %vm999_vm2, %v7067_v4  ;;  %7181 = vmatpush1.msra.mxu0 %v21742_v6  ;;  %v7894_v1 = vsel %vm2857_vm8, %v22202_v15, %v22204_v63  ;;  %v7896_v45 = vsel %vm2857_vm8, %v22195_v61, %v22202_v15 }
 0x652   : > { %19240 = vmatpush3.msra.mxu1 %v21834_v11  ;;  %7182 = vmatprep.subr.mxu0 %v21714_v10  ;;  %v7344_v10 = vsel %vm2299_vm6, %v22023_v50, %v22003_v39  ;;  %v7341_v11 = vsel %vm2299_vm6, %v22025_v28, %v22089_v58  ;;  %v7343_v39 = vsel %vm2299_vm6, %v22073_v14, %v22025_v28 }
 0x653   : > { %19241 = vmatprep.subr.mxu1 %v21841_v27  ;;  %7183 = vmatpush1.msra.mxu0 %v21689_v54  ;;  %v7338_v54 = vsel %vm2299_vm6, %v22015_v21, %v22007_v36  ;;  %v7340_v28 = vsel %vm2299_vm6, %v21949_v24, %v22015_v21  ;;  %v7339_v50 = vsel %vm2299_vm6, %v22089_v58, %v22036_v42 }
 0x654   : > { %19242 = vmatpush3.msra.mxu1 %v21841_v27  ;;  %7145 = vmatprep.mubr.f32.mxu1 %v25992_v55  ;;  %v7334_v5 = vpop.permute.xlu0 %7333  ;;  %v22218_v6 = vpop.permute.xlu1 %7877  ;;  %v7620_v24 = vsel %vm2578_vm7, %v22101_v34, %v22103_v35  ;;  %v7617_v35 = vsel %vm2578_vm7, %v22146_v43, %v22183_v56 }
 0x655   : > { %7216 = vmatprep.mubr.f32.mxu0 %v25992_v55  ;;  %7381 = vmatprep.subr.mxu0 %v7342_v48  ;;  %v7337_v52 = vsel %vm2299_vm6, %v22036_v42, %v7334_v5  ;;  %v7345_v21 = vsel %vm2299_vm6, %v7334_v5, %v22073_v14  ;;  %v7622_v42 = vsel %vm2578_vm7, %v22127_v59, %v22101_v34 }
 0x656   : > { %7458 = vmatprep.subr.mxu1 %v7338_v54  ;;  %18595 = vmatmul.mubr.msk.f32.gmra.mxu1 %vm999_vm2, %v7068_v3  ;;  %v7619_v14 = vsel %vm2578_vm7, %v22129_v33, %v22146_v43  ;;  %v7621_v34 = vsel %vm2578_vm7, %v22169_v60, %v22129_v33  ;;  %v8149_v54 = vld [vmem:[#allocation2 + $0x110] sm:$0xff] }
 0x657   : > { %18596 = vmatmul.mubr.msk.f32.vlgmr.msra.gmra.mxu0 %vm999_vm2, %v7067_v4  ;;  %19243 = vmatprep.mubr.msk.f32.mxu1 %vm999_vm2, %v7067_v4 }
 0x658   : > { %7382 = vmatpush1.msra.mxu0 %v7344_v10  ;;  %7222 = vmatprep.mubr.f32.mxu0 %v25992_v55  ;;  %v22237_v27 = vpop.permute.xlu0 %7875  ;;  %v22239_v20 = vpop.permute.xlu1 %7885 }
 0x659   : > { %7383 = vmatprep.subr.mxu0 %v7341_v11  ;;  %v7900_v43 = vsel %vm2857_vm8, %v22237_v27, %v22193_v0 }
 0x65a   : > { %7384 = vmatpush1.msra.mxu0 %v7343_v39  ;;  %19244 = vmatmul.mubr.msk.f32.vlgmr.msra.gmra.mxu1 %vm999_vm2, %v7068_v3  ;;  %v8150_v39 = vld [vmem:[#allocation2 + $0x118] sm:$0xff] }
 0x65b   : > { %19246 = vmatprep.subr.mxu0 %v7346_v8  ;;  %18597 = vmatmul.mubr.msk.f32.gmra.mxu0 %vm999_vm2, %v7068_v3 }
 0x65c   : > { %7459 = vmatpush1.msra.mxu1 %v7340_v28  ;;  %7417 = vmatprep.mubr.f32.mxu0 %v25992_v55  ;;  %v22259_v41 = vpop.permute.xlu0 %7881  ;;  %v22261_v36 = vpop.permute.xlu1 %7873 }
 0x65d   : > { %7460 = vmatprep.subr.mxu1 %v7337_v52  ;;  %7494 = vmatprep.mubr.f32.mxu1 %v25992_v55  ;;  %v7897_v17 = vsel %vm2857_vm8, %v22218_v6, %v22259_v41  ;;  %v7899_v38 = vsel %vm2857_vm8, %v22261_v36, %v22218_v6  ;;  %v7895_v18 = vsel %vm2857_vm8, %v22259_v41, %v22239_v20 }
 0x65e   : > { %7461 = vmatpush1.msra.mxu1 %v7339_v50 }
 0x65f   : > { %18600 = vmatmul.mubr.msk.f32.vlgmr.msra.gmra.mxu0 %vm999_vm2, %v7315_v51  ;;  %18602 = vmatmul.mubr.msk.f32.vlgmr.msra.gmra.mxu1 %vm999_vm2, %v7315_v51 }
 0x660   : > { %19247 = vmatpush3.msra.mxu0 %v7346_v8  ;;  %7659 = vmatprep.subr.mxu1 %v7620_v24  ;;  %v22281_v58 = vpop.permute.xlu0 %8157  ;;  %v7612_v29 = vpop.permute.xlu1 %7611 }
 0x661   : > { %19248 = vmatprep.subr.mxu0 %v7345_v21  ;;  %7660 = vmatpush1.msra.mxu1 %v7622_v42  ;;  %v7615_v40 = vsel %vm2578_vm7, %v22183_v56, %v7612_v29  ;;  %v7623_v59 = vsel %vm2578_vm7, %v7612_v29, %v22169_v60  ;;  %v7902_v60 = vsel %vm2857_vm8, %v22204_v63, %v22237_v27  ;;  %v7872_v63 = vld [vmem:[#allocation2 + $0x108] sm:$0xff] }
 0x662   : > { %19249 = vmatpush3.msra.mxu0 %v7345_v21  ;;  %7423 = vmatprep.mubr.f32.mxu0 %v25992_v55 }
 0x663   : > { %7661 = vmatprep.subr.mxu1 %v7619_v14  ;;  %7736 = vmatprep.subr.mxu0 %v7616_v37 }
 0x664   : > { %18601 = vmatmul.mubr.msk.f32.gmra.mxu0 %vm999_vm2, %v7316_v49  ;;  %7500 = vmatprep.mubr.f32.mxu1 %v25992_v55  ;;  %v22298_v62 = vpop.permute.xlu0 %8153  ;;  %v22300_v25 = vpop.permute.xlu1 %8161 }
 0x665   : > { %7662 = vmatpush1.msra.mxu1 %v7621_v34  ;;  %19250 = vmatprep.mubr.msk.f32.mxu0 %vm999_vm2, %v7315_v51  ;;  %v8176_v57 = vsel %vm3136_vm9, %v22281_v58, %v22300_v25  ;;  %v8178_v4 = vsel %vm3136_vm9, %v22298_v62, %v22281_v58 }
 0x666   : > { %18603 = vmatmul.mubr.msk.f32.gmra.mxu1 %vm999_vm2, %v7316_v49  ;;  %19253 = vmatprep.subr.mxu1 %v7624_v2 }
 0x667   : > { %7695 = vmatprep.mubr.f32.mxu1 %v25992_v55 }
 0x668   : > { %19251 = vmatmul.mubr.msk.f32.vlgmr.msra.gmra.mxu0 %vm999_vm2, %v7316_v49  ;;  %v7890_v33 = vpop.permute.xlu0 %7889  ;;  %v8156_v9 = vpop.permute.xlu1 %8155 }
 0x669   : > { %7737 = vmatpush1.msra.mxu0 %v7618_v44  ;;  %7772 = vmatprep.mubr.f32.mxu0 %v25992_v55  ;;  %v7893_v53 = vsel %vm2857_vm8, %v22239_v20, %v7890_v33  ;;  %v7901_v61 = vsel %vm2857_vm8, %v7890_v33, %v22261_v36 }
 0x66a   : > { %18606 = vmatmul.mubr.msk.f32.vlgmr.msra.gmra.mxu1 %vm999_vm2, %v7593_v13  ;;  %7738 = vmatprep.subr.mxu0 %v7615_v40 }
 0x66b   : > { %19254 = vmatpush3.msra.mxu1 %v7624_v2  ;;  %7701 = vmatprep.mubr.f32.mxu1 %v25992_v55 }
 0x66c   : > { %19255 = vmatprep.subr.mxu1 %v7623_v59  ;;  %7739 = vmatpush1.msra.mxu0 %v7617_v35  ;;  %v8160_v22 = vpop.permute.xlu0 %8159  ;;  %v8152_v16 = vpop.permute.xlu1 %8151 }
 0x66d   : > { %19256 = vmatpush3.msra.mxu1 %v7623_v59  ;;  %18608 = vmatmul.mubr.msk.f32.vlgmr.msra.gmra.mxu0 %vm999_vm2, %v7593_v13  ;;  %v8175_v0 = vsel %vm3136_vm9, %v8156_v9, %v8160_v22  ;;  %v8177_v15 = vsel %vm3136_vm9, %v8152_v16, %v8156_v9 }
 0x66e   : > { %18607 = vmatmul.mubr.msk.f32.gmra.mxu1 %vm999_vm2, %v7594_v46  ;;  %7937 = vmatprep.subr.mxu0 %v7898_v47 }
 0x66f   : > { %8014 = vmatprep.subr.mxu1 %v7894_v1  ;;  %7938 = vmatpush1.msra.mxu0 %v7900_v43 }
 0x670   : > { %7939 = vmatprep.subr.mxu0 %v7897_v17  ;;  %7778 = vmatprep.mubr.f32.mxu0 %v25992_v55  ;;  %v8166_v56 = vpop.permute.xlu0 %8165  ;;  %v8170_v26 = vpop.permute.xlu1 %8169 }
 0x671   : > { %19257 = vmatprep.mubr.msk.f32.mxu1 %vm999_vm2, %v7593_v13  ;;  %7940 = vmatpush1.msra.mxu0 %v7899_v38  ;;  %v8172_v3 = vsel %vm3136_vm9, %v8166_v56, %v8170_v26  ;;  %v8180_v48 = vsel %vm3136_vm9, %v8170_v26, %v22298_v62  ;;  %v8174_v11 = vsel %vm3136_vm9, %v22300_v25, %v8166_v56 }
 0x672   : > { %18609 = vmatmul.mubr.msk.f32.gmra.mxu0 %vm999_vm2, %v7594_v46  ;;  %19258 = vmatmul.mubr.msk.f32.vlgmr.msra.gmra.mxu1 %vm999_vm2, %v7594_v46 }
 0x673   : > { %8015 = vmatpush1.msra.mxu1 %v7896_v45  ;;  %19260 = vmatprep.subr.mxu0 %v7902_v60 }
 0x674   : > { %8016 = vmatprep.subr.mxu1 %v7893_v53  ;;  %7973 = vmatprep.mubr.f32.mxu0 %v25992_v55  ;;  %v8164_v5 = vpop.permute.xlu0 %8163  ;;  %v8168_v6 = vpop.permute.xlu1 %8167 }
 0x675   : > { %8017 = vmatpush1.msra.mxu1 %v7895_v18  ;;  %8050 = vmatprep.mubr.f32.mxu1 %v25992_v55  ;;  %v8171_v10 = vsel %vm3136_vm9, %v8164_v5, %v8168_v6  ;;  %v8179_v27 = vsel %vm3136_vm9, %v8168_v6, %v8152_v16  ;;  %v8173_v20 = vsel %vm3136_vm9, %v8160_v22, %v8164_v5 }
 0x676   : > { %18612 = vmatmul.mubr.msk.f32.vlgmr.msra.gmra.mxu0 %vm999_vm2, %v7871_v12  ;;  %18614 = vmatmul.mubr.msk.f32.vlgmr.msra.gmra.mxu1 %vm999_vm2, %v7871_v12 }
 0x677   : > { %19261 = vmatpush3.msra.mxu0 %v7902_v60  ;;  %8215 = vmatprep.subr.mxu1 %v8176_v57 }
 0x678   : > { %19262 = vmatprep.subr.mxu0 %v7901_v61  ;;  %8216 = vmatpush1.msra.mxu1 %v8178_v4 }
 0x679   : > { %19263 = vmatpush3.msra.mxu0 %v7901_v61  ;;  %8217 = vmatprep.subr.mxu1 %v8175_v0 }
 0x67a   : > { %7979 = vmatprep.mubr.f32.mxu0 %v25992_v55  ;;  %8056 = vmatprep.mubr.f32.mxu1 %v25992_v55 }
 0x67b   : > { %8218 = vmatpush1.msra.mxu1 %v8177_v15  ;;  %18613 = vmatmul.mubr.msk.f32.gmra.mxu0 %vm999_vm2, %v7872_v63 }
 0x67c   : > { %18615 = vmatmul.mubr.msk.f32.gmra.mxu1 %vm999_vm2, %v7872_v63  ;;  %8292 = vmatprep.subr.mxu0 %v8172_v3 }
 0x67d   : > { %19267 = vmatprep.subr.mxu1 %v8180_v48  ;;  %19264 = vmatprep.mubr.msk.f32.mxu0 %vm999_vm2, %v7871_v12 }
 0x67e   : > { %8251 = vmatprep.mubr.f32.mxu1 %v25992_v55 }
 0x67f   : > { %19265 = vmatmul.mubr.msk.f32.vlgmr.msra.gmra.mxu0 %vm999_vm2, %v7872_v63 }
 0x680   : > { %18618 = vmatmul.mubr.msk.f32.vlgmr.msra.gmra.mxu1 %vm999_vm2, %v8149_v54  ;;  %8293 = vmatpush1.msra.mxu0 %v8174_v11 }
 0x681   : > { %19268 = vmatpush3.msra.mxu1 %v8180_v48  ;;  %8294 = vmatprep.subr.mxu0 %v8171_v10 }
 0x682   : > { %19269 = vmatprep.subr.mxu1 %v8179_v27  ;;  %8257 = vmatprep.mubr.f32.mxu1 %v25992_v55 }
 0x683   : > { %8295 = vmatpush1.msra.mxu0 %v8173_v20  ;;  %8328 = vmatprep.mubr.f32.mxu0 %v25992_v55 }
 0x684   : > { %19270 = vmatpush3.msra.mxu1 %v8179_v27  ;;  %18620 = vmatmul.mubr.msk.f32.vlgmr.msra.gmra.mxu0 %vm999_vm2, %v8149_v54 }
 0x685   : > { %18619 = vmatmul.mubr.msk.f32.gmra.mxu1 %vm999_vm2, %v8150_v39  ;;  %8334 = vmatprep.mubr.f32.mxu0 %v25992_v55 }
 0x686   : > { %19271 = vmatprep.mubr.msk.f32.mxu1 %vm999_vm2, %v8149_v54 }
 0x688   : > { %18621 = vmatmul.mubr.msk.f32.gmra.mxu0 %vm999_vm2, %v8150_v39 }
 0x689   : > { %19272 = vmatmul.mubr.msk.f32.vlgmr.msra.gmra.mxu1 %vm999_vm2, %v8150_v39  ;;  %8607 = vmatprep.mubr.f32.mxu0 %v25992_v55 }
 0x68a   : > { %8684 = vmatprep.mubr.f32.mxu1 %v25992_v55 }
 0x6d1   : > { %v22419_v8 = vpop.f32.mrf.mxu0 }
 0x6d3   : > { %v22421_v28 = vpop.f32.mrf.mxu0 }
 0x6d5   : > { %v6195_v36 = vpop.f32.mrf.mxu0 }
 0x6d7   : > { %v22427_v21 = vpop.f32.mrf.mxu0 }
 0x6e3   : > { %v6112_v52 = vpop.f32.mrf.mxu1 }
 0x6e5   : > { %v22423_v51 = vpop.f32.mrf.mxu1 }
 0x6e7   : > { %v6118_v41 = vpop.f32.mrf.mxu1 }
 0x6e9   : > { %v22425_v50 = vpop.f32.mrf.mxu1 }
 0x6ea   : > { %25993 = vst [vmem:[#allocation23_spill] sm:$0xff] %v22425_v50 }
 0x6eb   : > { %v19217_v24 = vpop.f32.mrf.mxu1 }
 0x6ed   : > { %v22429_v42 = vpop.f32.mrf.mxu1 }
 0x6ee   : > { %25994 = vst [vmem:[#allocation25_spill] sm:$0xff] %v22429_v42 }
 0x6ef   : > { %v6347_v58 = vpop.f32.mrf.mxu0 }
 0x6f0   : > { %v22431_v29 = vadd.f32 %v6347_v58, %v6112_v52  ;;  %v22433_v49 = vpop.f32.mrf.mxu1 }
 0x6f1   : > { %v22435_v14 = vpop.f32.mrf.mxu0 }
 0x6f2   : > { %v22437_v37 = vpop.f32.mrf.mxu1 }
 0x6f3   : > { %v6427_v42 = vadd.f32 %v22437_v37, %v22421_v28 }
 0x6f4   : > { %v6430_v34 = vpop.f32.mrf.mxu1 }
 0x6f5   : > { %v6353_v62 = vpop.f32.mrf.mxu0  ;;  %v6431_v25 = vadd.f32 %v6430_v34, %v6195_v36 }
 0x6f6   : > { %v6354_v2 = vadd.f32 %v6353_v62, %v6118_v41  ;;  %v22439_v13 = vpop.f32.mrf.mxu1 }
 0x6f7   : > { %v22441_v40 = vpop.f32.mrf.mxu0 }
 0x6f8   : > { %25995 = vst [vmem:[#allocation28_spill] sm:$0xff] %v22441_v40  ;;  %v22443_v44 = vpop.f32.mrf.mxu1 }
 0x6f9   : > { %v19224_v59 = vpop.f32.mrf.mxu0 }
 0x6fa   : > { %v6507_v33 = vadd.f32 %v19224_v59, %v19217_v24  ;;  %v22445_v9 = vpop.f32.mrf.mxu1 }
 0x6fb   : > { %v22447_v35 = vpop.f32.mrf.mxu0 }
 0x6fc   : > { %25996 = vst [vmem:[#allocation26_spill] sm:$0xff] %v22447_v35 }
 0x6fe   : > { %v6621_v46 = vpop.f32.mrf.mxu1  ;;  %v6692_v47 = vpop.f32.mrf.mxu0 }
 0x6ff   : > { %v6783_v1 = vadd.f32 %v6621_v46, %v6354_v2 }
 0x700   : > { %v22449_v43 = vpop.f32.mrf.mxu1  ;;  %v6694_v17 = vpop.f32.mrf.mxu0 }
 0x701   : > { %25997 = vst [vmem:[#allocation29_spill] sm:$0xff] %v22449_v43 }
 0x702   : > { %v6698_v22 = vpop.f32.mrf.mxu0  ;;  %v19231_v16 = vpop.f32.mrf.mxu1 }
 0x703   : > { %v22451_v38 = vadd.f32 %v6698_v22, %v6431_v25  ;;  %v6787_v53 = vadd.f32 %v19231_v16, %v6507_v33 }
 0x704   : > { %v22453_v45 = vpop.f32.mrf.mxu0  ;;  %v22455_v60 = vpop.f32.mrf.mxu1 }
 0x705   : > { %25998 = vst [vmem:[#allocation19_spill] sm:$0xff] %v22455_v60 }
 0x706   : > { %v6893_v12 = vpop.f32.mrf.mxu0 }
 0x707   : > { %v6970_v18 = vpop.f32.mrf.mxu1 }
 0x708   : > { %v22457_v56 = vpop.f32.mrf.mxu0 }
 0x709   : > { %v6972_v26 = vpop.f32.mrf.mxu1 }
 0x70c   : > { %v6899_v57 = vpop.f32.mrf.mxu0 }
 0x70d   : > { %v22459_v0 = vadd.f32 %v6899_v57, %v6783_v1  ;;  %v22461_v61 = vpop.f32.mrf.mxu1 }
 0x70e   : > { %v22463_v4 = vpop.f32.mrf.mxu0 }
 0x70f   : > { %25999 = vst [vmem:[#allocation20_spill] sm:$0xff] %v22463_v4  ;;  %v22465_v15 = vpop.f32.mrf.mxu1 }
 0x710   : > { %v19238_v63 = vpop.f32.mrf.mxu0 }
 0x711   : > { %v7065_v3 = vadd.f32 %v19238_v63, %v6787_v53  ;;  %v7141_v48 = vpop.f32.mrf.mxu1 }
 0x712   : > { %v22467_v5 = vpop.f32.mrf.mxu0 }
 0x713   : > { %26000 = vst [vmem:[#allocation21_spill] sm:$0xff] %v22467_v5  ;;  %v22469_v6 = vpop.f32.mrf.mxu1 }
 0x716   : > { %v22471_v54 = vpop.f32.mrf.mxu1 }
 0x717   : > { %v7218_v10 = vpop.f32.mrf.mxu0 }
 0x718   : > { %v22473_v11 = vpop.f32.mrf.mxu1 }
 0x719   : > { %26001 = vst [vmem:[#allocation22_spill] sm:$0xff] %v22473_v11  ;;  %v7220_v27 = vpop.f32.mrf.mxu0  ;;  %v6781_v11 = vadd.f32 %v6694_v17, %v6427_v42  ;;  %v6350_v42 = vadd.f32 %v22435_v14, %v22423_v51 }
 0x71a   : > { %v19245_v20 = vpop.f32.mrf.mxu1 }
 0x71b   : > { %v22475_v39 = vpop.f32.mrf.mxu0  ;;  %v7313_v52 = vadd.f32 %v19245_v20, %v7065_v3  ;;  %v7059_v43 = vadd.f32 %v6972_v26, %v6781_v11  ;;  %v6779_v17 = vadd.f32 %v22445_v9, %v6350_v42  ;;  %v22523_v11 = vpop.permute.xlu1 %8428  ;;  %v7063_v9 = vadd.f32 %v22461_v61, %v22451_v38 }
 0x71c   : > { %v22477_v41 = vpop.f32.mrf.mxu1 }
 0x71d   : > { %26002 = vst [vmem:[#allocation24_spill] sm:$0xff] %v22477_v41  ;;  %v22479_v36 = vpop.f32.mrf.mxu0 }
 0x71f   : > { %v7419_v24 = vpop.f32.mrf.mxu0  ;;  %v7496_v58 = vpop.f32.mrf.mxu1 }
 0x721   : > { %v22481_v34 = vpop.f32.mrf.mxu0  ;;  %v7498_v62 = vpop.f32.mrf.mxu1 }
 0x724   : > { %v22483_v25 = vpop.f32.mrf.mxu0 }
 0x726   : > { %v22485_v2 = vpop.f32.mrf.mxu1  ;;  %v22487_v59 = vpop.f32.mrf.mxu0 }
 0x727   : > { %26003 = vst [vmem:[#allocation27_spill] sm:$0xff] %v22487_v59 }
 0x728   : > { %v22489_v33 = vpop.f32.mrf.mxu1  ;;  %v19252_v46 = vpop.f32.mrf.mxu0 }
 0x729   : > { %26004 = vst [vmem:[#allocation30_spill] sm:$0xff] %v22489_v33  ;;  %v7591_v1 = vadd.f32 %v19252_v46, %v7313_v52  ;;  %v6425_v46 = vadd.f32 %v22433_v49, %v22419_v8  ;;  %v7307_v49 = vadd.f32 %v7220_v27, %v7059_v43 }
 0x72a   : > { %v7697_v22 = vpop.f32.mrf.mxu1  ;;  %v22491_v16 = vpop.f32.mrf.mxu0 }
 0x72b   : > { %26005 = vst [vmem:[#allocation31_spill] sm:$0xff] %v22491_v16  ;;  %v6780_v59 = vadd.f32 %v6692_v47, %v6425_v46  ;;  %v7585_v37 = vadd.f32 %v7498_v62, %v7307_v49  ;;  %v6433_v49 = vadd.f32 %v22439_v13, %v22427_v21 }
 0x72c   : > { %v7699_v53 = vpop.f32.mrf.mxu1 }
 0x72d   : > { %v7774_v57 = vpop.f32.mrf.mxu0  ;;  %v6786_v42 = vadd.f32 %v22453_v45, %v6433_v49 }
 0x72e   : > { %v22493_v63 = vpop.f32.mrf.mxu1 }
 0x72f   : > { %26006 = vst [vmem:[#allocation32_spill] sm:$0xff] %v22493_v63  ;;  %v7776_v3 = vpop.f32.mrf.mxu0 }
 0x730   : > { %v22495_v20 = vpop.f32.mrf.mxu1 }
 0x731   : > { %26007 = vst [vmem:[#allocation33_spill] sm:$0xff] %v22495_v20  ;;  %v6778_v20 = vadd.f32 %v22443_v44, %v22431_v29 }
 0x732   : > { %v22497_v55 = vpop.f32.mrf.mxu0  ;;  %v19259_v7 = vpop.f32.mrf.mxu1 }
 0x733   : > { %v7869_v19 = vadd.f32 %v19259_v7, %v7591_v1  ;;  %v7058_v7 = vadd.f32 %v6970_v18, %v6780_v59  ;;  %v7863_v18 = vadd.f32 %v7776_v3, %v7585_v37 }
 0x734   : > { %v22499_v41 = vpop.f32.mrf.mxu0  ;;  %v22501_v5 = vpop.f32.mrf.mxu1 }
 0x735   : > { %26008 = vst [vmem:[#allocation34_spill] sm:$0xff] %v22499_v41  ;;  %26009 = vst [vmem:[#allocation35_spill] sm:$0xff] %v22501_v5  ;;  %v7056_v5 = vadd.f32 %v6893_v12, %v6778_v20  ;;  %v7306_v40 = vadd.f32 %v7218_v10, %v7058_v7 }
 0x736   : > { %v7975_v60 = vpop.f32.mrf.mxu0  ;;  %v8052_v52 = vpop.f32.mrf.mxu1  ;;  %v26010_v13 = vld [vmem:[#allocation32_spill] sm:$0xff] }
 0x737   : > { %v7304_v8 = vadd.f32 %v7141_v48, %v7056_v5  ;;  %v7584_v41 = vadd.f32 %v7496_v58, %v7306_v40  ;;  %v7057_v48 = vadd.f32 %v22457_v56, %v6779_v17  ;;  %v7311_v56 = vadd.f32 %v22475_v39, %v7063_v9 }
 0x738   : > { %v7977_v16 = vpop.f32.mrf.mxu0  ;;  %v8054_v35 = vpop.f32.mrf.mxu1 }
 0x739   : > { %v7582_v29 = vadd.f32 %v7419_v24, %v7304_v8  ;;  %v7862_v44 = vadd.f32 %v7774_v57, %v7584_v41  ;;  %v7305_v14 = vadd.f32 %v22469_v6, %v7057_v48  ;;  %v26014_v48 = vld [vmem:[#allocation28_spill] sm:$0xff] }
 0x73b   : > { %v22509_v1 = vpop.f32.mrf.mxu0  ;;  %v7860_v12 = vadd.f32 %v7697_v22, %v7582_v29  ;;  %v8140_v26 = vadd.f32 %v8052_v52, %v7862_v44  ;;  %v7583_v58 = vadd.f32 %v22481_v34, %v7305_v14  ;;  %v7589_v22 = vadd.f32 %v22485_v2, %v7311_v56  ;;  %v26016_v14 = vld [vmem:[#allocation20_spill] sm:$0xff]  ;;  %v26019_v56 = vld [vmem:[#allocation33_spill] sm:$0xff] }
 0x73c   : > { %v8058_v4 = vpop.f32.mrf.mxu1  ;;  %v7309_v29 = vadd.f32 %v22471_v54, %v22459_v0  ;;  %v7064_v44 = vadd.f32 %v22465_v15, %v6786_v42  ;;  %v26012_v15 = vld [vmem:[#allocation34_spill] sm:$0xff]  ;;  %v26025_v42 = vld [vmem:[#allocation31_spill] sm:$0xff] }
 0x73d   : > { %v22511_v50 = vpop.f32.mrf.mxu0  ;;  %v8138_v5 = vadd.f32 %v7975_v60, %v7860_v12  ;;  %v7861_v60 = vadd.f32 %v7699_v53, %v7583_v58  ;;  %v7867_v38 = vadd.f32 %v22497_v55, %v7589_v22  ;;  %v26018_v58 = vld [vmem:[#allocation27_spill] sm:$0xff] }
 0x73e   : > { %v22513_v63 = vpop.f32.mrf.mxu1  ;;  %v7587_v17 = vadd.f32 %v22483_v25, %v7309_v29  ;;  %v7312_v21 = vadd.f32 %v22479_v36, %v7064_v44  ;;  %v26026_v44 = vld [vmem:[#allocation35_spill] sm:$0xff] }
 0x73f   : > { %v19266_v33 = vpop.f32.mrf.mxu0  ;;  %v8139_v57 = vadd.f32 %v7977_v16, %v7861_v60  ;;  %v8145_v3 = vadd.f32 %v8058_v4, %v7867_v38  ;;  %v22557_v4 = vpop.permute.xlu0 %8433 }
 0x740   : > { %v22515_v28 = vadd.f32 %v19266_v33, %v7869_v19  ;;  %v8253_v43 = vpop.f32.mrf.mxu1  ;;  %v8141_v19 = vadd.f32 %v8054_v35, %v7863_v18  ;;  %v7865_v45 = vadd.f32 %v26010_v13, %v7587_v17  ;;  %v26011_v18 = vld [vmem:[#allocation30_spill] sm:$0xff] }
 0x741   : > { %v22519_v47 = vpop.f32.mrf.mxu0  ;;  %v8416_v27 = vadd.f32 %v8253_v43, %v8138_v5  ;;  %v7590_v0 = vadd.f32 %v26011_v18, %v7312_v21 }
 0x742   : > { %v8255_v33 = vpop.f32.mrf.mxu1  ;;  %v8143_v54 = vadd.f32 %v22509_v1, %v7865_v45  ;;  %v26015_v1 = vld [vmem:[#allocation29_spill] sm:$0xff] }
 0x743   : > { %v8436_v35 = vadd.f32 %v22523_v11, %v8416_v27  ;;  %v8417_v39 = vadd.f32 %v8255_v33, %v8139_v57  ;;  %v7868_v25 = vadd.f32 %v26012_v15, %v7590_v0 }
 0x744   : > { %v8330_v40 = vpop.f32.mrf.mxu0 }
 0x745   : > { %v8418_v10 = vadd.f32 %v8330_v40, %v8140_v26  ;;  %v8446_v61 = vmax.f32 %v8436_v35, 0.0  ;;  %v8437_v16 = vadd.f32 %v22523_v11, %v8417_v39  ;;  %v8259_v12 = vpop.f32.mrf.mxu1  ;;  %v26013_v40 = vld [vmem:[#allocation23_spill] sm:$0xff]  ;;  %v8146_v5 = vadd.f32 %v22513_v63, %v7868_v25  ;;  %v26017_v63 = vld [vmem:[#allocation22_spill] sm:$0xff] }
 0x746   : > { %v8332_v51 = vpop.f32.mrf.mxu0  ;;  %v8421_v26 = vadd.f32 %v8259_v12, %v8143_v54  ;;  %v6356_v36 = vadd.f32 %v26014_v48, %v26013_v40  ;;  %v26021_v39 = vld [vmem:[#allocation26_spill] sm:$0xff] }
 0x747   : > { %v8438_v41 = vadd.f32 %v22523_v11, %v8418_v10  ;;  %v8419_v24 = vadd.f32 %v8332_v51, %v8141_v19  ;;  %v22547_v2 = vmul.f32 %v8446_v61, %v19996_v31  ;;  %v8447_v52 = vmax.f32 %v8437_v16, 0.0  ;;  %v8261_v33 = vpop.f32.mrf.mxu1  ;;  %v26020_v61 = vld [vmem:[#allocation25_spill] sm:$0xff] }
 0x748   : > { %v8336_v53 = vpop.f32.mrf.mxu0  ;;  %v6784_v19 = vadd.f32 %v26015_v1, %v6356_v36  ;;  %v8441_v10 = vadd.f32 %v22557_v4, %v8421_v26  ;;  %v26023_v16 = vld [vmem:[#allocation21_spill] sm:$0xff] }
 0x749   : > { %v8448_v62 = vmax.f32 %v8438_v41, 0.0  ;;  %v8439_v6 = vadd.f32 %v22523_v11, %v8419_v24  ;;  %v8423_v20 = vadd.f32 %v8336_v53, %v8145_v3  ;;  %v22565_v7 = vmul.f32 %v8447_v52, %v19991_v23  ;;  %v26024_v52 = vld [vmem:[#allocation24_spill] sm:$0xff]  ;;  %v19273_v49 = vpop.f32.mrf.mxu1 }
 0x74a   : > { %v8338_v43 = vpop.f32.mrf.mxu0  ;;  %v7062_v27 = vadd.f32 %v26016_v14, %v6784_v19  ;;  %v8451_v24 = vmax.f32 %v8441_v10, 0.0  ;;  %v8425_v12 = vadd.f32 %v19273_v49, %v22515_v28  ;;  %v26027_v28 = vld [vmem:[#allocation17_spill] sm:$0xff] }
 0x74b   : > { %v22533_v59 = vmul.f32 %v8448_v62, %v19998_v32  ;;  %v8449_v34 = vmax.f32 %v8439_v6, 0.0  ;;  %v8443_v46 = vadd.f32 %v22557_v4, %v8423_v20  ;;  %v8424_v51 = vadd.f32 %v8338_v43, %v8146_v5  ;;  %v8407_v13 = vpop.f32.mrf.mxu1 }
 0x74c   : > { %v7310_v41 = vadd.f32 %v26017_v63, %v7062_v27  ;;  %v22617_v35 = vmul.f32 %v8451_v24, %v19996_v31  ;;  %v8445_v0 = vadd.f32 %v22557_v4, %v8425_v12 }
 0x74d   : > { %8480 = vrot.lane.b32.xlu1 %v22533_v59, %s19757_s30  ;;  %8514 = vrot.lane.b32.xlu0 %v22533_v59, %s19758_s18  ;;  %v22551_v55 = vmul.f32 %v8449_v34, %v19994_v30  ;;  %v8453_v8 = vmax.f32 %v8443_v46, 0.0  ;;  %v8444_v9 = vadd.f32 %v22557_v4, %v8424_v51  ;;  %v6502_v34 = vadd.f32 %v26021_v39, %v26020_v61  ;;  %v26028_v39 = vld [vmem:[#allocation18_spill] sm:$0xff] }
 0x74e   : > { %v7588_v62 = vadd.f32 %v26018_v58, %v7310_v41  ;;  %vm8526_vm10 = vcmp.lt.s32.totalorder %v26028_v39, 48  ;;  %vm8492_vm11 = vcmp.lt.s32.totalorder %v26028_v39, 50  ;;  %vm9030_vm12 = vcmp.lt.s32.totalorder %v26028_v39, 46 }
 0x74f   : > { %v22577_v37 = vmul.f32 %v8453_v8, %v19998_v32  ;;  %v8454_v6 = vmax.f32 %v8444_v9, 0.0  ;;  %vm9309_vm13 = vcmp.lt.s32.totalorder %v26028_v39, 2  ;;  %vm9836_vm14 = vcmp.lt.s32.totalorder %v26028_v39, 126 }
 0x750   : > { %v7866_v60 = vadd.f32 %v26019_v56, %v7588_v62  ;;  %vm10115_vm15 = vcmp.lt.s32.totalorder %v26028_v39, 82  ;;  %vm10394_vm0 = vcmp.lt.s32.totalorder %v26028_v39, 80 }
 0x751   : > { %9297 = vrot.lane.b32.xlu1 %v22533_v59, %s19759_s21  ;;  %9018 = vrot.lane.b32.xlu0 %v22533_v59, %s19760_s20  ;;  %v22625_v38 = vmul.f32 %v8454_v6, %v19994_v30 }
 0x752   : > { %v8144_v22 = vadd.f32 %v22511_v50, %v7866_v60  ;;  %v26022_v50 = vld [vmem:[#allocation19_spill] sm:$0xff] }
 0x753   : > { %v6782_v53 = vadd.f32 %v26022_v50, %v6502_v34  ;;  %v18681_v50 = vld [vmem:[%s25851_s6 + $0x28] sm:$0xff] }
 0x754   : > { %v8422_v57 = vadd.f32 %v8261_v33, %v8144_v22  ;;  %v18625_v33 = vld [vmem:[%s25856_s11 + $0x18] sm:$0xff]  ;;  %v18624_v22 = vld [vmem:[%s25856_s11 + $0x10] sm:$0xff] }
 0x755   : > { %8484 = vrot.lane.b32.xlu0 %v22551_v55, %s19757_s30  ;;  %8506 = vrot.lane.b32.xlu1 %v22547_v2, %s19758_s18  ;;  %v7060_v20 = vadd.f32 %v26023_v16, %v6782_v53  ;;  %v18680_v53 = vld [vmem:[%s25851_s6 + $0x20] sm:$0xff] }
 0x756   : > { %v8442_v3 = vadd.f32 %v22557_v4, %v8422_v57 }
 0x757   : > { %v7308_v46 = vadd.f32 %v26024_v52, %v7060_v20  ;;  %v18683_v20 = vld [vmem:[%s25852_s7 + $0x28] sm:$0xff]  ;;  %v18682_v52 = vld [vmem:[%s25852_s7 + $0x20] sm:$0xff] }
 0x758   : > { %v8452_v8 = vmax.f32 %v8442_v3, 0.0 }
 0x759   : > { %9301 = vrot.lane.b32.xlu0 %v22551_v55, %s19759_s21  ;;  %8518 = vrot.lane.b32.xlu1 %v22551_v55, %s19758_s18  ;;  %v7586_v29 = vadd.f32 %v26025_v42, %v7308_v46 }
 0x75a   : > { %v22648_v21 = vmul.f32 %v8452_v8, %v19991_v23 }
 0x75b   : > { %v7864_v17 = vadd.f32 %v26026_v44, %v7586_v29 }
 0x75d   : > { %8510 = vrot.lane.b32.xlu0 %v22565_v7, %s19758_s18  ;;  %8472 = vrot.lane.b32.xlu1 %v22547_v2, %s19757_s30  ;;  %v8142_v45 = vadd.f32 %v22519_v47, %v7864_v17  ;;  %v8455_v47 = vmax.f32 %v8445_v0, 0.0 }
 0x75f   : > { %v8420_v18 = vadd.f32 %v8407_v13, %v8142_v45  ;;  %v22671_v25 = vmul.f32 %v8455_v47, %v26027_v28  ;;  %v8504_v13 = vld [vmem:[#allocation5 + $0xa0] sm:$0xff]  ;;  %v26029_v47 = vmov 0.0  }
 0x761   : > { %8482 = vrot.lane.b32.xlu0 %v22577_v37, %s19757_s30  ;;  %9010 = vrot.lane.b32.xlu1 %v22547_v2, %s19760_s20  ;;  %v8440_v54 = vadd.f32 %v22523_v11, %v8420_v18 }
 0x763   : > { %v8450_v15 = vmax.f32 %v8440_v54, 0.0  ;;  %v8505_v54 = vld [vmem:[#allocation5 + $0xa8] sm:$0xff] }
 0x765   : > { %8476 = vrot.lane.b32.xlu0 %v22565_v7, %s19757_s30  ;;  %9022 = vrot.lane.b32.xlu1 %v22551_v55, %s19760_s20  ;;  %v22674_v4 = vmul.f32 %v8450_v15, %v26027_v28 }
 0x769   : > { %9014 = vrot.lane.b32.xlu0 %v22565_v7, %s19760_s20  ;;  %9289 = vrot.lane.b32.xlu1 %v22547_v2, %s19759_s21 }
 0x76d   : > { %9299 = vrot.lane.b32.xlu0 %v22577_v37, %s19759_s21  ;;  %8516 = vrot.lane.b32.xlu1 %v22577_v37, %s19758_s18 }
 0x771   : > { %9293 = vrot.lane.b32.xlu0 %v22565_v7, %s19759_s21  ;;  %9020 = vrot.lane.b32.xlu1 %v22577_v37, %s19760_s20 }
 0x775   : > { %8508 = vrot.lane.b32.xlu0 %v22617_v35, %s19758_s18  ;;  %9826 = vrot.lane.b32.xlu1 %v22577_v37, %s19761_s27 }
 0x779   : > { %8520 = vrot.lane.b32.xlu0 %v22625_v38, %s19758_s18  ;;  %8486 = vrot.lane.b32.xlu1 %v22625_v38, %s19757_s30 }
 0x77d   : > { %8474 = vrot.lane.b32.xlu0 %v22617_v35, %s19757_s30  ;;  %9303 = vrot.lane.b32.xlu1 %v22625_v38, %s19759_s21 }
 0x781   : > { %9012 = vrot.lane.b32.xlu0 %v22617_v35, %s19760_s20  ;;  %9830 = vrot.lane.b32.xlu1 %v22625_v38, %s19761_s27 }
 0x785   : > { %9024 = vrot.lane.b32.xlu0 %v22625_v38, %s19760_s20  ;;  %8512 = vrot.lane.b32.xlu1 %v22648_v21, %s19758_s18 }
 0x789   : > { %9291 = vrot.lane.b32.xlu0 %v22617_v35, %s19759_s21  ;;  %8478 = vrot.lane.b32.xlu1 %v22648_v21, %s19757_s30 }
 0x78d   : > { %9818 = vrot.lane.b32.xlu0 %v22617_v35, %s19761_s27  ;;  %9016 = vrot.lane.b32.xlu1 %v22648_v21, %s19760_s20 }
 0x791   : > { %9822 = vrot.lane.b32.xlu0 %v22648_v21, %s19761_s27  ;;  %9295 = vrot.lane.b32.xlu1 %v22648_v21, %s19759_s21 }
 0x795   : > { %8524 = vrot.lane.b32.xlu0 %v22671_v25, %s19758_s18  ;;  %8522 = vrot.lane.b32.xlu1 %v22674_v4, %s19758_s18  ;;  %s19762_s18 = smov 82  }
 0x799   : > { %8490 = vrot.lane.b32.xlu0 %v22671_v25, %s19757_s30  ;;  %9820 = vrot.lane.b32.xlu1 %v22565_v7, %s19761_s27 }
 0x79d   : > { %9028 = vrot.lane.b32.xlu0 %v22671_v25, %s19760_s20  ;;  %9816 = vrot.lane.b32.xlu1 %v22547_v2, %s19761_s27 }
 0x7a1   : > { %9307 = vrot.lane.b32.xlu0 %v22671_v25, %s19759_s21  ;;  %8488 = vrot.lane.b32.xlu1 %v22674_v4, %s19757_s30  ;;  %s19763_s30 = smov 80  }
 0x7a5   : > { %9834 = vrot.lane.b32.xlu0 %v22671_v25, %s19761_s27  ;;  %10105 = vrot.lane.b32.xlu1 %v22577_v37, %s19762_s18 }
 0x7a9   : > { %9824 = vrot.lane.b32.xlu0 %v22533_v59, %s19761_s27  ;;  %9026 = vrot.lane.b32.xlu1 %v22674_v4, %s19760_s20  ;;  %s19766_s20 = smov 96  }
 0x7ad   : > { %9828 = vrot.lane.b32.xlu0 %v22551_v55, %s19761_s27  ;;  %10099 = vrot.lane.b32.xlu1 %v22565_v7, %s19762_s18 }
 0x7b1   : > { %10101 = vrot.lane.b32.xlu0 %v22648_v21, %s19762_s18  ;;  %10095 = vrot.lane.b32.xlu1 %v22547_v2, %s19762_s18 }
 0x7b5   : > { %10097 = vrot.lane.b32.xlu0 %v22617_v35, %s19762_s18  ;;  %9305 = vrot.lane.b32.xlu1 %v22674_v4, %s19759_s21  ;;  %s19764_s21 = smov 78  }
 0x7b9   : > { %10103 = vrot.lane.b32.xlu0 %v22533_v59, %s19762_s18  ;;  %10113 = vrot.lane.b32.xlu1 %v22671_v25, %s19762_s18 }
 0x7bd   : > { %10109 = vrot.lane.b32.xlu0 %v22625_v38, %s19762_s18  ;;  %10384 = vrot.lane.b32.xlu1 %v22577_v37, %s19763_s30 }
 0x7bf   : > { %v22720_v11 = vpop.permute.xlu1 %8480  ;;  %v22722_v26 = vpop.permute.xlu0 %8514 }
 0x7c1   : > { %10107 = vrot.lane.b32.xlu0 %v22551_v55, %s19762_s18  ;;  %10388 = vrot.lane.b32.xlu1 %v22625_v38, %s19763_s30 }
 0x7c3   : > { %v22728_v43 = vpop.permute.xlu1 %9297  ;;  %v22730_v40 = vpop.permute.xlu0 %9018 }
 0x7c5   : > { %10380 = vrot.lane.b32.xlu0 %v22648_v21, %s19763_s30  ;;  %10378 = vrot.lane.b32.xlu1 %v22565_v7, %s19763_s30 }
 0x7c7   : > { %v22736_v48 = vpop.permute.xlu0 %8484  ;;  %v22738_v36 = vpop.permute.xlu1 %8506 }
 0x7c9   : > { %10376 = vrot.lane.b32.xlu0 %v22617_v35, %s19763_s30  ;;  %9832 = vrot.lane.b32.xlu1 %v22674_v4, %s19761_s27  ;;  %s26055_s27 = smov 103  }
 0x7cb   : > { %v22744_v5 = vpop.permute.xlu0 %9301  ;;  %v22746_v1 = vpop.permute.xlu1 %8518 }
 0x7cc   : > { %v8529_v17 = vsel %vm8526_vm10, %v22722_v26, %v22746_v1 }
 0x7cd   : > { %10392 = vrot.lane.b32.xlu0 %v22671_v25, %s19763_s30  ;;  %10374 = vrot.lane.b32.xlu1 %v22547_v2, %s19763_s30 }
 0x7cf   : > { %v22752_v19 = vpop.permute.xlu0 %8510  ;;  %v22754_v10 = vpop.permute.xlu1 %8472 }
 0x7d0   : > { %v8531_v45 = vsel %vm8526_vm10, %v22752_v19, %v22722_v26 }
 0x7d1   : > { %10382 = vrot.lane.b32.xlu0 %v22533_v59, %s19763_s30  ;;  %10663 = vrot.lane.b32.xlu1 %v22577_v37, %s19764_s21 }
 0x7d3   : > { %v22759_v51 = vpop.permute.xlu0 %8482  ;;  %v22761_v14 = vpop.permute.xlu1 %9010 }
 0x7d5   : > { %10386 = vrot.lane.b32.xlu0 %v22551_v55, %s19763_s30  ;;  %10111 = vrot.lane.b32.xlu1 %v22674_v4, %s19762_s18  ;;  %s25906_s18 = smov 4  }
 0x7d7   : > { %v22767_v27 = vpop.permute.xlu0 %8476  ;;  %v22769_v63 = vpop.permute.xlu1 %9022 }
 0x7d9   : > { %10659 = vrot.lane.b32.xlu0 %v22648_v21, %s19764_s21  ;;  %10657 = vrot.lane.b32.xlu1 %v22565_v7, %s19764_s21 }
 0x7db   : > { %v22773_v41 = vpop.permute.xlu0 %9014  ;;  %v22775_v24 = vpop.permute.xlu1 %9289 }
 0x7dd   : > { %10655 = vrot.lane.b32.xlu0 %v22617_v35, %s19764_s21  ;;  %10390 = vrot.lane.b32.xlu1 %v22674_v4, %s19763_s30  ;;  %s25904_s30 = smov 92  }
 0x7df   : > { %v22780_v9 = vpop.permute.xlu0 %9299  ;;  %v8517_v58 = vpop.permute.xlu1 %8516 }
 0x7e1   : > { %10661 = vrot.lane.b32.xlu0 %v22533_v59, %s19764_s21  ;;  %10653 = vrot.lane.b32.xlu1 %v22547_v2, %s19764_s21 }
 0x7e3   : > { %v22784_v62 = vpop.permute.xlu0 %9293  ;;  %v22786_v56 = vpop.permute.xlu1 %9020 }
 0x7e5   : > { %10667 = vrot.lane.b32.xlu0 %v22625_v38, %s19764_s21  ;;  %10671 = vrot.lane.b32.xlu1 %v22671_v25, %s19764_s21 }
 0x7e7   : > { %v8509_v60 = vpop.permute.xlu0 %8508  ;;  %v22790_v6 = vpop.permute.xlu1 %9826 }
 0x7e9   : > { %10665 = vrot.lane.b32.xlu0 %v22551_v55, %s19764_s21  ;;  %10669 = vrot.lane.b32.xlu1 %v22674_v4, %s19764_s21  ;;  %s26053_s21 = smov 127  }
 0x7eb   : > { %v8521_v57 = vpop.permute.xlu0 %8520  ;;  %v22800_v61 = vpop.permute.xlu1 %8486 }
 0x7ec   : > { %v8530_v34 = vsel %vm8526_vm10, %v8517_v58, %v8521_v57 }
 0x7ed   : > { %10936 = vperm.xlu0 %19619, %v18625_v33   ;;  %10931 = vperm.xlu1 %19620, %v18624_v22  }
 0x7ee   : > { %8648 = vmatprep.subr.mxu1 %v8530_v34 }
 0x7ef   : > { %v8475_v3 = vpop.permute.xlu0 %8474  ;;  %v22811_v16 = vpop.permute.xlu1 %9303 }
 0x7f1   : > { %10962 = vperm.xlu0 %19619, %v18681_v50   ;;  %10957 = vperm.xlu1 %19620, %v18680_v53   ;;  %v8533_v53 = vsel %vm8526_vm10, %v22738_v36, %v22752_v19 }
 0x7f3   : > { %v22819_v46 = vpop.permute.xlu0 %9012  ;;  %v22821_v8 = vpop.permute.xlu1 %9830 }
 0x7f5   : > { %10982 = vperm.xlu0 %19619, %v18683_v20   ;;  %10977 = vperm.xlu1 %19620, %v18682_v52  }
 0x7f7   : > { %v22823_v49 = vpop.permute.xlu0 %9024  ;;  %v8513_v42 = vpop.permute.xlu1 %8512 }
 0x7f8   : > { %v8534_v29 = vsel %vm8526_vm10, %v8509_v60, %v8513_v42  ;;  %v8532_v44 = vsel %vm8526_vm10, %v8513_v42, %v8517_v58 }
 0x7f9   : > { %8571 = vmatprep.subr.mxu0 %v8534_v29  ;;  %8649 = vmatpush1.msra.mxu1 %v8532_v44 }
 0x7fa   : > { %8650 = vmatprep.subr.mxu1 %v8529_v17 }
 0x7fb   : > { %v22837_v12 = vpop.permute.xlu0 %9291  ;;  %8651 = vmatpush1.msra.mxu1 %v8531_v45  ;;  %v8479_v18 = vpop.permute.xlu1 %8478  ;;  %v8470_v45 = vld [vmem:[#allocation5 + $0x90] sm:$0xff] }
 0x7fc   : > { %v8500_v0 = vsel %vm8492_vm11, %v8475_v3, %v8479_v18  ;;  %18628 = vmatmul.mubr.msk.f32.vlgmr.msra.gmra.mxu1 %vm999_vm2, %v8504_v13 }
 0x7fd   : > { %8806 = vmatprep.subr.mxu1 %v8500_v0  ;;  %8690 = vmatprep.mubr.f32.mxu1 %v26029_v47  ;;  %v8498_v0 = vsel %vm8492_vm11, %v8479_v18, %v22759_v51 }
 0x7ff   : > { %v22844_v15 = vpop.permute.xlu0 %9818  ;;  %v22846_v58 = vpop.permute.xlu1 %9016 }
 0x800   : > { %18629 = vmatmul.mubr.msk.f32.gmra.mxu1 %vm999_vm2, %v8505_v54 }
 0x801   : > { %8842 = vmatprep.mubr.f32.mxu1 %v26029_v47 }
 0x803   : > { %v22850_v26 = vpop.permute.xlu0 %9822  ;;  %v22852_v33 = vpop.permute.xlu1 %9295 }
 0x807   : > { %v8525_v22 = vpop.permute.xlu0 %8524  ;;  %v8523_v34 = vpop.permute.xlu1 %8522 }
 0x808   : > { %v8536_v50 = vsel %vm8526_vm10, %v8525_v22, %v8509_v60  ;;  %v8535_v20 = vsel %vm8526_vm10, %v8523_v34, %v22738_v36  ;;  %v8528_v29 = vsel %vm8526_vm10, %v8521_v57, %v8525_v22  ;;  %v8527_v19 = vsel %vm8526_vm10, %v22746_v1, %v8523_v34  ;;  %v8471_v34 = vld [vmem:[#allocation5 + $0x98] sm:$0xff] }
 0x809   : > { %8572 = vmatpush1.msra.mxu0 %v8536_v50  ;;  %v8499_v36 = vsel %vm8492_vm11, %v22754_v10, %v22767_v27  ;;  %v9037_v50 = vsel %vm9030_vm12, %v22761_v14, %v22773_v41  ;;  %vm10673_vm10 = vcmp.lt.s32.totalorder %v26028_v39, 78 }
 0x80a   : > { %8573 = vmatprep.subr.mxu0 %v8533_v53 }
 0x80b   : > { %v8491_v52 = vpop.permute.xlu0 %8490  ;;  %8574 = vmatpush1.msra.mxu0 %v8535_v20  ;;  %v22863_v42 = vpop.permute.xlu1 %9820 }
 0x80c   : > { %18626 = vmatmul.mubr.msk.f32.vlgmr.msra.gmra.mxu0 %vm999_vm2, %v8504_v13  ;;  %19274 = vmatprep.subr.mxu0 %v8528_v29  ;;  %v8502_v60 = vsel %vm8492_vm11, %v8491_v52, %v8475_v3  ;;  %v8496_v3 = vsel %vm8492_vm11, %v22759_v51, %v22800_v61  ;;  %v8494_v51 = vsel %vm8492_vm11, %v22800_v61, %v8491_v52 }
 0x80d   : > { %19275 = vmatpush3.msra.mxu0 %v8528_v29  ;;  %8807 = vmatpush1.msra.mxu1 %v8502_v60 }
 0x80e   : > { %19276 = vmatprep.subr.mxu0 %v8527_v19  ;;  %8808 = vmatprep.subr.mxu1 %v8499_v36  ;;  %v9035_v36 = vsel %vm9030_vm12, %v22773_v41, %v22730_v40  ;;  %v9316_v41 = vsel %vm9309_vm13, %v22775_v24, %v22784_v62 }
 0x80f   : > { %v9029_v57 = vpop.permute.xlu0 %9028  ;;  %8613 = vmatprep.mubr.f32.mxu0 %v26029_v47  ;;  %19277 = vmatpush3.msra.mxu0 %v8527_v19  ;;  %v22878_v44 = vpop.permute.xlu1 %9816  ;;  %v9008_v19 = vld [vmem:[#allocation5 + $0xb0] sm:$0xff] }
 0x810   : > { %18627 = vmatmul.mubr.msk.f32.gmra.mxu0 %vm999_vm2, %v8505_v54  ;;  %8883 = vmatprep.subr.mxu0 %v8496_v3  ;;  %v9040_v61 = vsel %vm9030_vm12, %v9029_v57, %v22819_v46  ;;  %v9032_v52 = vsel %vm9030_vm12, %v22823_v49, %v9029_v57 }
 0x811   : > { %19278 = vmatprep.mubr.msk.f32.mxu0 %vm999_vm2, %v8504_v13  ;;  %v8495_v13 = vsel %vm8492_vm11, %v22720_v11, %v22736_v48 }
 0x813   : > { %v22886_v1 = vpop.permute.xlu0 %9307  ;;  %v8489_v17 = vpop.permute.xlu1 %8488 }
 0x814   : > { %19279 = vmatmul.mubr.msk.f32.vlgmr.msra.gmra.mxu0 %vm999_vm2, %v8505_v54  ;;  %v8501_v22 = vsel %vm8492_vm11, %v8489_v17, %v22754_v10  ;;  %v8497_v54 = vsel %vm8492_vm11, %v22767_v27, %v22720_v11  ;;  %v9038_v11 = vsel %vm9030_vm12, %v22819_v46, %v22846_v58  ;;  %v8493_v27 = vsel %vm8492_vm11, %v22736_v48, %v8489_v17 }
 0x815   : > { %8884 = vmatpush1.msra.mxu0 %v8498_v0  ;;  %8809 = vmatpush1.msra.mxu1 %v8501_v22  ;;  %v9034_v48 = vsel %vm9030_vm12, %v22786_v56, %v22823_v49  ;;  %v9033_v49 = vsel %vm9030_vm12, %v22730_v40, %v22769_v63  ;;  %v9319_v40 = vsel %vm9309_vm13, %v22886_v1, %v22837_v12  ;;  %v9287_v22 = vld [vmem:[#allocation5 + $0xc0] sm:$0xff] }
 0x816   : > { %8885 = vmatprep.subr.mxu0 %v8495_v13  ;;  %18632 = vmatmul.mubr.msk.f32.vlgmr.msra.gmra.mxu1 %vm999_vm2, %v8470_v45  ;;  %v9313_v17 = vsel %vm9309_vm13, %v22780_v9, %v22811_v16  ;;  %v9311_v13 = vsel %vm9309_vm13, %v22811_v16, %v22886_v1  ;;  %v9314_v16 = vsel %vm9309_vm13, %v22784_v62, %v22728_v43 }
 0x817   : > { %8886 = vmatpush1.msra.mxu0 %v8497_v54  ;;  %19281 = vmatprep.subr.mxu1 %v8494_v51  ;;  %v22907_v10 = vpop.permute.xlu0 %9834  ;;  %v22910_v18 = vpop.permute.xlu1 %10105 }
 0x818   : > { %8919 = vmatprep.mubr.f32.mxu0 %v26029_v47  ;;  %19282 = vmatpush3.msra.mxu1 %v8494_v51  ;;  %v9838_v62 = vsel %vm9836_vm14, %v22821_v8, %v22907_v10 }
 0x819   : > { %9075 = vmatprep.subr.mxu0 %v9038_v11  ;;  %18634 = vmatmul.mubr.msk.f32.vlgmr.msra.gmra.mxu0 %vm999_vm2, %v8470_v45  ;;  %v9312_v11 = vsel %vm9309_vm13, %v22728_v43, %v22744_v5 }
 0x81a   : > { %19283 = vmatprep.subr.mxu1 %v8493_v27  ;;  %9076 = vmatpush1.msra.mxu0 %v9040_v61 }
 0x81b   : > { %8848 = vmatprep.mubr.f32.mxu1 %v26029_v47  ;;  %19284 = vmatpush3.msra.mxu1 %v8493_v27  ;;  %v22929_v53 = vpop.permute.xlu0 %9824  ;;  %v9027_v20 = vpop.permute.xlu1 %9026  ;;  %v9288_v27 = vld [vmem:[#allocation5 + $0xc8] sm:$0xff] }
 0x81c   : > { %9077 = vmatprep.subr.mxu0 %v9037_v50  ;;  %18633 = vmatmul.mubr.msk.f32.gmra.mxu1 %vm999_vm2, %v8471_v34  ;;  %v9039_v46 = vsel %vm9030_vm12, %v9027_v20, %v22761_v14  ;;  %v9036_v14 = vsel %vm9030_vm12, %v22846_v58, %v22786_v56  ;;  %v9031_v56 = vsel %vm9030_vm12, %v22769_v63, %v9027_v20  ;;  %v9009_v63 = vld [vmem:[#allocation5 + $0xb8] sm:$0xff]  ;;  %v9814_v50 = vld [vmem:[#allocation5 + $0xe0] sm:$0xff] }
 0x81d   : > { %9152 = vmatprep.subr.mxu1 %v9034_v48  ;;  %8925 = vmatprep.mubr.f32.mxu0 %v26029_v47  ;;  %v9317_v58 = vsel %vm9309_vm13, %v22837_v12, %v22852_v33  ;;  %v9840_v20 = vsel %vm9836_vm14, %v22790_v6, %v22821_v8 }
 0x81e   : > { %18635 = vmatmul.mubr.msk.f32.gmra.mxu0 %vm999_vm2, %v8471_v34  ;;  %19285 = vmatprep.mubr.msk.f32.mxu1 %vm999_vm2, %v8470_v45 }
 0x81f   : > { %9078 = vmatpush1.msra.mxu0 %v9039_v46  ;;  %v22945_v29 = vpop.permute.xlu0 %9828  ;;  %9111 = vmatprep.mubr.f32.mxu0 %v26029_v47  ;;  %v22948_v60 = vpop.permute.xlu1 %10099 }
 0x820   : > { %19286 = vmatmul.mubr.msk.f32.vlgmr.msra.gmra.mxu1 %vm999_vm2, %v8471_v34  ;;  %19288 = vmatprep.subr.mxu0 %v9032_v52  ;;  %v9846_v34 = vsel %vm9836_vm14, %v22907_v10, %v22844_v15  ;;  %v9839_v48 = vsel %vm9836_vm14, %v22929_v53, %v22945_v29 }
 0x821   : > { %9153 = vmatpush1.msra.mxu1 %v9036_v14  ;;  %9188 = vmatprep.mubr.f32.mxu1 %v26029_v47 }
 0x822   : > { %9154 = vmatprep.subr.mxu1 %v9033_v49  ;;  %18638 = vmatmul.mubr.msk.f32.vlgmr.msra.gmra.mxu0 %vm999_vm2, %v9008_v19 }
 0x823   : > { %9155 = vmatpush1.msra.mxu1 %v9035_v36  ;;  %19289 = vmatpush3.msra.mxu0 %v9032_v52  ;;  %v22973_v57 = vpop.permute.xlu0 %10101  ;;  %v22975_v3 = vpop.permute.xlu1 %10095 }
 0x824   : > { %19290 = vmatprep.subr.mxu0 %v9031_v56  ;;  %9354 = vmatprep.subr.mxu1 %v9317_v58  ;;  %v10121_v8 = vsel %vm10115_vm15, %v22973_v57, %v22910_v18  ;;  %v10122_v14 = vsel %vm10115_vm15, %v22975_v3, %v22948_v60 }
 0x825   : > { %18640 = vmatmul.mubr.msk.f32.vlgmr.msra.gmra.mxu1 %vm999_vm2, %v9008_v19  ;;  %19291 = vmatpush3.msra.mxu0 %v9031_v56 }
 0x826   : > { %9355 = vmatpush1.msra.mxu1 %v9319_v40  ;;  %9117 = vmatprep.mubr.f32.mxu0 %v26029_v47 }
 0x827   : > { %9356 = vmatprep.subr.mxu1 %v9316_v41  ;;  %9431 = vmatprep.subr.mxu0 %v9313_v17  ;;  %v22991_v45 = vpop.permute.xlu0 %10097  ;;  %v9306_v0 = vpop.permute.xlu1 %9305 }
 0x828   : > { %18639 = vmatmul.mubr.msk.f32.gmra.mxu0 %vm999_vm2, %v9009_v63  ;;  %9194 = vmatprep.mubr.f32.mxu1 %v26029_v47  ;;  %v9318_v12 = vsel %vm9309_vm13, %v9306_v0, %v22775_v24  ;;  %v9315_v24 = vsel %vm9309_vm13, %v22852_v33, %v22780_v9  ;;  %v9310_v33 = vsel %vm9309_vm13, %v22744_v5, %v9306_v0 }
 0x829   : > { %18641 = vmatmul.mubr.msk.f32.gmra.mxu1 %vm999_vm2, %v9009_v63  ;;  %19292 = vmatprep.mubr.msk.f32.mxu0 %vm999_vm2, %v9008_v19 }
 0x82a   : > { %9357 = vmatpush1.msra.mxu1 %v9318_v12  ;;  %9390 = vmatprep.mubr.f32.mxu1 %v26029_v47 }
 0x82b   : > { %19295 = vmatprep.subr.mxu1 %v9311_v13  ;;  %v23005_v54 = vpop.permute.xlu0 %10103  ;;  %v23007_v51 = vpop.permute.xlu1 %10113 }
 0x82c   : > { %19293 = vmatmul.mubr.msk.f32.vlgmr.msra.gmra.mxu0 %vm999_vm2, %v9009_v63  ;;  %v10125_v49 = vsel %vm10115_vm15, %v23007_v51, %v22991_v45 }
 0x82d   : > { %9432 = vmatpush1.msra.mxu0 %v9315_v24  ;;  %18644 = vmatmul.mubr.msk.f32.vlgmr.msra.gmra.mxu1 %vm999_vm2, %v9287_v22 }
 0x82e   : > { %9433 = vmatprep.subr.mxu0 %v9312_v11  ;;  %9467 = vmatprep.mubr.f32.mxu0 %v26029_v47 }
 0x82f   : > { %9434 = vmatpush1.msra.mxu0 %v9314_v16  ;;  %19296 = vmatpush3.msra.mxu1 %v9311_v13  ;;  %v23024_v1 = vpop.permute.xlu0 %10109  ;;  %v23026_v9 = vpop.permute.xlu1 %10384  ;;  %v10372_v16 = vld [vmem:[#allocation5 + $0x100] sm:$0xff] }
 0x830   : > { %9602 = vmatprep.subr.mxu0 %v22648_v21  ;;  %18646 = vmatmul.mubr.msk.f32.vlgmr.msra.gmra.mxu0 %vm999_vm2, %v9287_v22  ;;  %v10117_v19 = vsel %vm10115_vm15, %v23024_v1, %v23007_v51 }
 0x831   : > { %19297 = vmatprep.subr.mxu1 %v9310_v33  ;;  %9603 = vmatpush1.msra.mxu0 %v22617_v35 }
 0x832   : > { %9396 = vmatprep.mubr.f32.mxu1 %v26029_v47  ;;  %19298 = vmatpush3.msra.mxu1 %v9310_v33 }
 0x833   : > { %9604 = vmatprep.subr.mxu0 %v22565_v7  ;;  %18645 = vmatmul.mubr.msk.f32.gmra.mxu1 %vm999_vm2, %v9288_v27  ;;  %v23037_v43 = vpop.permute.xlu0 %10107  ;;  %v23039_v21 = vpop.permute.xlu1 %10388  ;;  %v9566_v7 = vld [vmem:[#allocation5 + $0xd0] sm:$0xff] }
 0x834   : > { %9605 = vmatpush1.msra.mxu0 %v22547_v2  ;;  %9679 = vmatprep.subr.mxu1 %v22625_v38  ;;  %v9842_v2 = vsel %vm9836_vm14, %v22850_v26, %v22790_v6  ;;  %v10118_v17 = vsel %vm10115_vm15, %v23005_v54, %v23037_v43  ;;  %v10398_v11 = vsel %vm10394_vm0, %v23026_v9, %v23039_v21 }
 0x835   : > { %9473 = vmatprep.mubr.f32.mxu0 %v26029_v47  ;;  %19302 = vmatprep.subr.mxu0 %v22671_v25 }
 0x836   : > { %18647 = vmatmul.mubr.msk.f32.gmra.mxu0 %vm999_vm2, %v9288_v27  ;;  %19299 = vmatprep.mubr.msk.f32.mxu1 %vm999_vm2, %v9287_v22 }
 0x837   : > { %19300 = vmatmul.mubr.msk.f32.vlgmr.msra.gmra.mxu1 %vm999_vm2, %v9288_v27  ;;  %9638 = vmatprep.mubr.f32.mxu0 %v26029_v47  ;;  %v23049_v35 = vpop.permute.xlu0 %10380  ;;  %v23051_v5 = vpop.permute.xlu1 %10378 }
 0x838   : > { %9680 = vmatpush1.msra.mxu1 %v22577_v37  ;;  %9715 = vmatprep.mubr.f32.mxu1 %v26029_v47 }
 0x839   : > { %9681 = vmatprep.subr.mxu1 %v22551_v55  ;;  %v9567_v55 = vld [vmem:[#allocation5 + $0xd8] sm:$0xff] }
 0x83a   : > { %18650 = vmatmul.mubr.msk.f32.vlgmr.msra.gmra.mxu0 %vm999_vm2, %v9566_v7  ;;  %9682 = vmatpush1.msra.mxu1 %v22533_v59  ;;  %v9844_v59 = vsel %vm9836_vm14, %v22844_v15, %v22850_v26 }
 0x83b   : > { %19303 = vmatpush3.msra.mxu0 %v22671_v25  ;;  %9881 = vmatprep.subr.mxu1 %v9842_v2  ;;  %v23064_v38 = vpop.permute.xlu0 %10376  ;;  %v9833_v37 = vpop.permute.xlu1 %9832  ;;  %v9841_v25 = vsel %vm9836_vm14, %v22863_v42, %v22929_v53  ;;  %v10123_v53 = vsel %vm10115_vm15, %v22991_v45, %v22973_v57  ;;  %v10119_v57 = vsel %vm10115_vm15, %v22910_v18, %v23024_v1  ;;  %v10094_v18 = vld [vmem:[#allocation5 + $0xf8] sm:$0xff] }
 0x83c   : > { %19304 = vmatprep.subr.mxu0 %v22674_v4  ;;  %18652 = vmatmul.mubr.msk.f32.vlgmr.msra.gmra.mxu1 %vm999_vm2, %v9566_v7  ;;  %v9845_v6 = vsel %vm9836_vm14, %v9833_v37, %v22878_v44  ;;  %v10402_v0 = vsel %vm10394_vm0, %v23064_v38, %v23049_v35 }
 0x83d   : > { %19305 = vmatpush3.msra.mxu0 %v22674_v4  ;;  %9882 = vmatpush1.msra.mxu1 %v9844_v59  ;;  %v9843_v4 = vsel %vm9836_vm14, %v22878_v44, %v22863_v42  ;;  %v9837_v42 = vsel %vm9836_vm14, %v22945_v29, %v9833_v37  ;;  %v9815_v29 = vld [vmem:[#allocation5 + $0xe8] sm:$0xff]  ;;  %v10120_v44 = vsel %vm10115_vm15, %v22948_v60, %v23005_v54  ;;  %v10093_v60 = vld [vmem:[#allocation5 + $0xf0] sm:$0xff] }
 0x83e   : > { %9644 = vmatprep.mubr.f32.mxu0 %v26029_v47  ;;  %9883 = vmatprep.subr.mxu1 %v9841_v25 }
 0x83f   : > { %9958 = vmatprep.subr.mxu0 %v9838_v62  ;;  %18651 = vmatmul.mubr.msk.f32.gmra.mxu0 %vm999_vm2, %v9567_v55  ;;  %v23087_v26 = vpop.permute.xlu0 %10392  ;;  %v23089_v61 = vpop.permute.xlu1 %10374 }
 0x840   : > { %9884 = vmatpush1.msra.mxu1 %v9843_v4  ;;  %9721 = vmatprep.mubr.f32.mxu1 %v26029_v47  ;;  %v10396_v45 = vsel %vm10394_vm0, %v23039_v21, %v23087_v26  ;;  %v10401_v54 = vsel %vm10394_vm0, %v23089_v61, %v23051_v5  ;;  %v10404_v51 = vsel %vm10394_vm0, %v23087_v26, %v23064_v38 }
 0x841   : > { %19309 = vmatprep.subr.mxu1 %v9846_v34  ;;  %18653 = vmatmul.mubr.msk.f32.gmra.mxu1 %vm999_vm2, %v9567_v55 }
 0x842   : > { %19306 = vmatprep.mubr.msk.f32.mxu0 %vm999_vm2, %v9566_v7  ;;  %9917 = vmatprep.mubr.f32.mxu1 %v26029_v47 }
 0x843   : > { %19307 = vmatmul.mubr.msk.f32.vlgmr.msra.gmra.mxu0 %vm999_vm2, %v9567_v55  ;;  %v23108_v15 = vpop.permute.xlu0 %10382  ;;  %v23110_v10 = vpop.permute.xlu1 %10663  ;;  %v10651_v55 = vld [vmem:[#allocation5 + $0x110] sm:$0xff] }
 0x844   : > { %9959 = vmatpush1.msra.mxu0 %v9840_v20  ;;  %9994 = vmatprep.mubr.f32.mxu0 %v26029_v47  ;;  %v10399_v12 = vsel %vm10394_vm0, %v23051_v5, %v23108_v15  ;;  %v10373_v5 = vld [vmem:[#allocation5 + $0x108] sm:$0xff] }
 0x845   : > { %9960 = vmatprep.subr.mxu0 %v9837_v42  ;;  %18656 = vmatmul.mubr.msk.f32.vlgmr.msra.gmra.mxu1 %vm999_vm2, %v9814_v50 }
 0x846   : > { %9961 = vmatpush1.msra.mxu0 %v9839_v48  ;;  %19310 = vmatpush3.msra.mxu1 %v9846_v34 }
 0x847   : > { %19311 = vmatprep.subr.mxu1 %v9845_v6  ;;  %10160 = vmatprep.subr.mxu0 %v10121_v8  ;;  %v23125_v46 = vpop.permute.xlu0 %10386  ;;  %v10112_v52 = vpop.permute.xlu1 %10111 }
 0x848   : > { %18658 = vmatmul.mubr.msk.f32.vlgmr.msra.gmra.mxu0 %vm999_vm2, %v9814_v50  ;;  %19312 = vmatpush3.msra.mxu1 %v9845_v6  ;;  %v10116_v58 = vsel %vm10115_vm15, %v23037_v43, %v10112_v52  ;;  %v10124_v40 = vsel %vm10115_vm15, %v10112_v52, %v22975_v3  ;;  %v10400_v3 = vsel %vm10394_vm0, %v23049_v35, %v23026_v9 }
 0x849   : > { %10161 = vmatpush1.msra.mxu0 %v10123_v53  ;;  %9923 = vmatprep.mubr.f32.mxu1 %v26029_v47  ;;  %v10397_v1 = vsel %vm10394_vm0, %v23108_v15, %v23125_v46 }
 0x84a   : > { %10162 = vmatprep.subr.mxu0 %v10120_v44  ;;  %10237 = vmatprep.subr.mxu1 %v10117_v19 }
 0x84b   : > { %18657 = vmatmul.mubr.msk.f32.gmra.mxu1 %vm999_vm2, %v9815_v29  ;;  %10163 = vmatpush1.msra.mxu0 %v10122_v14  ;;  %v23150_v36 = vpop.permute.xlu0 %10659  ;;  %v23152_v56 = vpop.permute.xlu1 %10657 }
 0x84c   : > { %10000 = vmatprep.mubr.f32.mxu0 %v26029_v47  ;;  %19316 = vmatprep.subr.mxu0 %v10125_v49  ;;  %v10679_v9 = vsel %vm10673_vm10, %v23150_v36, %v23110_v10 }
 0x84d   : > { %18659 = vmatmul.mubr.msk.f32.gmra.mxu0 %vm999_vm2, %v9815_v29  ;;  %19313 = vmatprep.mubr.msk.f32.mxu1 %vm999_vm2, %v9814_v50 }
 0x84e   : > { %10196 = vmatprep.mubr.f32.mxu0 %v26029_v47 }
 0x84f   : > { %19314 = vmatmul.mubr.msk.f32.vlgmr.msra.gmra.mxu1 %vm999_vm2, %v9815_v29  ;;  %v10656_v63 = vpop.permute.xlu0 %10655  ;;  %v10391_v41 = vpop.permute.xlu1 %10390 }
 0x850   : > { %10238 = vmatpush1.msra.mxu1 %v10119_v57  ;;  %10273 = vmatprep.mubr.f32.mxu1 %v26029_v47  ;;  %v10395_v24 = vsel %vm10394_vm0, %v23125_v46, %v10391_v41  ;;  %v10403_v43 = vsel %vm10394_vm0, %v10391_v41, %v23089_v61  ;;  %v10681_v7 = vsel %vm10673_vm10, %v10656_v63, %v23150_v36  ;;  %v10652_v61 = vld [vmem:[#allocation5 + $0x118] sm:$0xff] }
 0x851   : > { %18662 = vmatmul.mubr.msk.f32.vlgmr.msra.gmra.mxu0 %vm999_vm2, %v10093_v60  ;;  %10239 = vmatprep.subr.mxu1 %v10116_v58 }
 0x852   : > { %19317 = vmatpush3.msra.mxu0 %v10125_v49  ;;  %10240 = vmatpush1.msra.mxu1 %v10118_v17 }
 0x853   : > { %19318 = vmatprep.subr.mxu0 %v10124_v40  ;;  %10202 = vmatprep.mubr.f32.mxu0 %v26029_v47  ;;  %v10662_v22 = vpop.permute.xlu0 %10661  ;;  %v10654_v13 = vpop.permute.xlu1 %10653 }
 0x854   : > { %19319 = vmatpush3.msra.mxu0 %v10124_v40  ;;  %18664 = vmatmul.mubr.msk.f32.vlgmr.msra.gmra.mxu1 %vm999_vm2, %v10093_v60  ;;  %v10678_v21 = vsel %vm10673_vm10, %v23152_v56, %v10662_v22  ;;  %v10680_v35 = vsel %vm10673_vm10, %v10654_v13, %v23152_v56 }
 0x855   : > { %10439 = vmatprep.subr.mxu1 %v10400_v3  ;;  %10516 = vmatprep.subr.mxu0 %v10396_v45 }
 0x856   : > { %18663 = vmatmul.mubr.msk.f32.gmra.mxu0 %vm999_vm2, %v10094_v18  ;;  %10440 = vmatpush1.msra.mxu1 %v10402_v0 }
 0x857   : > { %10441 = vmatprep.subr.mxu1 %v10399_v12  ;;  %10279 = vmatprep.mubr.f32.mxu1 %v26029_v47  ;;  %v10668_v33 = vpop.permute.xlu0 %10667  ;;  %v10672_v27 = vpop.permute.xlu1 %10671 }
 0x858   : > { %10442 = vmatpush1.msra.mxu1 %v10401_v54  ;;  %19320 = vmatprep.mubr.msk.f32.mxu0 %vm999_vm2, %v10093_v60  ;;  %v10675_v2 = vsel %vm10673_vm10, %v10668_v33, %v10672_v27  ;;  %v10683_v38 = vsel %vm10673_vm10, %v10672_v27, %v10656_v63  ;;  %v10677_v62 = vsel %vm10673_vm10, %v23110_v10, %v10668_v33 }
 0x859   : > { %18665 = vmatmul.mubr.msk.f32.gmra.mxu1 %vm999_vm2, %v10094_v18  ;;  %19323 = vmatprep.subr.mxu1 %v10404_v51 }
 0x85a   : > { %19321 = vmatmul.mubr.msk.f32.vlgmr.msra.gmra.mxu0 %vm999_vm2, %v10094_v18  ;;  %10475 = vmatprep.mubr.f32.mxu1 %v26029_v47 }
 0x85b   : > { %10517 = vmatpush1.msra.mxu0 %v10398_v11  ;;  %10552 = vmatprep.mubr.f32.mxu0 %v26029_v47  ;;  %v10666_v37 = vpop.permute.xlu0 %10665  ;;  %v10670_v59 = vpop.permute.xlu1 %10669 }
 0x85c   : > { %10518 = vmatprep.subr.mxu0 %v10395_v24  ;;  %v10674_v25 = vsel %vm10673_vm10, %v10666_v37, %v10670_v59  ;;  %v10676_v4 = vsel %vm10673_vm10, %v10662_v22, %v10666_v37  ;;  %v10682_v26 = vsel %vm10673_vm10, %v10670_v59, %v10654_v13 }
 0x85d   : > { %10519 = vmatpush1.msra.mxu0 %v10397_v1  ;;  %18668 = vmatmul.mubr.msk.f32.vlgmr.msra.gmra.mxu1 %vm999_vm2, %v10372_v16 }
 0x85e   : > { %19324 = vmatpush3.msra.mxu1 %v10404_v51  ;;  %10718 = vmatprep.subr.mxu0 %v10679_v9 }
 0x85f   : > { %18670 = vmatmul.mubr.msk.f32.vlgmr.msra.gmra.mxu0 %vm999_vm2, %v10372_v16  ;;  %19325 = vmatprep.subr.mxu1 %v10403_v43 }
 0x860   : > { %10719 = vmatpush1.msra.mxu0 %v10681_v7  ;;  %19326 = vmatpush3.msra.mxu1 %v10403_v43 }
 0x861   : > { %10720 = vmatprep.subr.mxu0 %v10678_v21  ;;  %10481 = vmatprep.mubr.f32.mxu1 %v26029_v47 }
 0x862   : > { %10721 = vmatpush1.msra.mxu0 %v10680_v35  ;;  %18669 = vmatmul.mubr.msk.f32.gmra.mxu1 %vm999_vm2, %v10373_v5 }
 0x863   : > { %10558 = vmatprep.mubr.f32.mxu0 %v26029_v47  ;;  %10795 = vmatprep.subr.mxu1 %v10675_v2 }
 0x864   : > { %18671 = vmatmul.mubr.msk.f32.gmra.mxu0 %vm999_vm2, %v10373_v5  ;;  %19330 = vmatprep.subr.mxu0 %v10683_v38 }
 0x865   : > { %19327 = vmatprep.mubr.msk.f32.mxu1 %vm999_vm2, %v10372_v16  ;;  %10754 = vmatprep.mubr.f32.mxu0 %v26029_v47 }
 0x866   : > { %19328 = vmatmul.mubr.msk.f32.vlgmr.msra.gmra.mxu1 %vm999_vm2, %v10373_v5 }
 0x867   : > { %10796 = vmatpush1.msra.mxu1 %v10677_v62  ;;  %10831 = vmatprep.mubr.f32.mxu1 %v26029_v47 }
 0x868   : > { %18674 = vmatmul.mubr.msk.f32.vlgmr.msra.gmra.mxu0 %vm999_vm2, %v10651_v55  ;;  %10797 = vmatprep.subr.mxu1 %v10674_v25 }
 0x869   : > { %19331 = vmatpush3.msra.mxu0 %v10683_v38  ;;  %10798 = vmatpush1.msra.mxu1 %v10676_v4 }
 0x86a   : > { %19332 = vmatprep.subr.mxu0 %v10682_v26  ;;  %10760 = vmatprep.mubr.f32.mxu0 %v26029_v47 }
 0x86b   : > { %19333 = vmatpush3.msra.mxu0 %v10682_v26  ;;  %18676 = vmatmul.mubr.msk.f32.vlgmr.msra.gmra.mxu1 %vm999_vm2, %v10651_v55 }
 0x86c   : > { %18675 = vmatmul.mubr.msk.f32.gmra.mxu0 %vm999_vm2, %v10652_v61  ;;  %10837 = vmatprep.mubr.f32.mxu1 %v26029_v47 }
 0x86d   : > { %19334 = vmatprep.mubr.msk.f32.mxu0 %vm999_vm2, %v10651_v55 }
 0x86f   : > { %18677 = vmatmul.mubr.msk.f32.gmra.mxu1 %vm999_vm2, %v10652_v61 }
 0x870   : > { %19335 = vmatmul.mubr.msk.f32.vlgmr.msra.gmra.mxu0 %vm999_vm2, %v10652_v61  ;;  %11154 = vmatprep.mubr.f32.mxu1 %v26029_v47 }
 0x871   : > { %11231 = vmatprep.mubr.f32.mxu0 %v26029_v47 }
 0x8bc   : > { %v23270_v34 = vpop.f32.mrf.mxu1 }
 0x8be   : > { %v23272_v42 = vpop.f32.mrf.mxu1 }
 0x8c0   : > { %v8692_v15 = vpop.f32.mrf.mxu1 }
 0x8c2   : > { %v23280_v6 = vpop.f32.mrf.mxu1 }
 0x8cc   : > { %v23274_v50 = vpop.f32.mrf.mxu0 }
 0x8ce   : > { %v23276_v20 = vpop.f32.mrf.mxu0 }
 0x8d0   : > { %v8615_v10 = vpop.f32.mrf.mxu0 }
 0x8d2   : > { %v23278_v48 = vpop.f32.mrf.mxu0 }
 0x8d4   : > { %v19280_v8 = vpop.f32.mrf.mxu0 }
 0x8d6   : > { %v23282_v46 = vpop.f32.mrf.mxu0  ;;  %v23284_v52 = vpop.f32.mrf.mxu1 }
 0x8d7   : > { %26030 = vst [vmem:[#allocation32_spill] sm:$0xff] %v23282_v46  ;;  %v8845_v28 = vadd.f32 %v23284_v52, %v23274_v50 }
 0x8d8   : > { %v23286_v53 = vpop.f32.mrf.mxu1 }
 0x8d9   : > { %v23288_v29 = vpop.f32.mrf.mxu0 }
 0x8db   : > { %v23290_v44 = vpop.f32.mrf.mxu0 }
 0x8dc   : > { %v8850_v19 = vpop.f32.mrf.mxu1 }
 0x8dd   : > { %v8851_v14 = vadd.f32 %v8850_v19, %v8615_v10 }
 0x8de   : > { %v23292_v49 = vpop.f32.mrf.mxu1  ;;  %v8927_v36 = vpop.f32.mrf.mxu0 }
 0x8df   : > { %v8928_v56 = vadd.f32 %v8927_v36, %v8692_v15 }
 0x8e0   : > { %v23294_v60 = vpop.f32.mrf.mxu0  ;;  %v19287_v58 = vpop.f32.mrf.mxu1 }
 0x8e1   : > { %v9004_v57 = vadd.f32 %v19287_v58, %v19280_v8 }
 0x8e2   : > { %v23296_v40 = vpop.f32.mrf.mxu1  ;;  %v9113_v63 = vpop.f32.mrf.mxu0 }
 0x8e3   : > { %26031 = vst [vmem:[#allocation30_spill] sm:$0xff] %v23296_v40 }
 0x8e4   : > { %v23298_v41 = vpop.f32.mrf.mxu0 }
 0x8e5   : > { %v23300_v17 = vpop.f32.mrf.mxu1 }
 0x8e7   : > { %v23302_v18 = vpop.f32.mrf.mxu1 }
 0x8e8   : > { %v9119_v3 = vpop.f32.mrf.mxu0 }
 0x8e9   : > { %v9281_v45 = vadd.f32 %v9119_v3, %v8851_v14  ;;  %v9196_v0 = vpop.f32.mrf.mxu1 }
 0x8ea   : > { %v23304_v12 = vpop.f32.mrf.mxu0  ;;  %v9283_v22 = vadd.f32 %v9196_v0, %v8928_v56 }
 0x8eb   : > { %v23306_v13 = vpop.f32.mrf.mxu1 }
 0x8ec   : > { %v19294_v54 = vpop.f32.mrf.mxu0 }
 0x8ed   : > { %v9285_v51 = vadd.f32 %v19294_v54, %v9004_v57  ;;  %v9392_v24 = vpop.f32.mrf.mxu1 }
 0x8ee   : > { %v23308_v11 = vpop.f32.mrf.mxu0 }
 0x8ef   : > { %26032 = vst [vmem:[#allocation34_spill] sm:$0xff] %v23308_v11  ;;  %v23310_v16 = vpop.f32.mrf.mxu1  ;;  %v8922_v11 = vadd.f32 %v23288_v29, %v23270_v34  ;;  %v8847_v34 = vadd.f32 %v23286_v53, %v23276_v20 }
 0x8f0   : > { %v9469_v1 = vpop.f32.mrf.mxu0 }
 0x8f2   : > { %v9471_v33 = vpop.f32.mrf.mxu0 }
 0x8f3   : > { %v9398_v27 = vpop.f32.mrf.mxu1 }
 0x8f4   : > { %v23312_v9 = vadd.f32 %v9398_v27, %v9281_v45 }
 0x8f5   : > { %v23314_v43 = vpop.f32.mrf.mxu1 }
 0x8f6   : > { %26033 = vst [vmem:[#allocation23_spill] sm:$0xff] %v23314_v43  ;;  %v9475_v21 = vpop.f32.mrf.mxu0  ;;  %v23361_v43 = vpop.permute.xlu1 %10931 }
 0x8f7   : > { %v23316_v7 = vadd.f32 %v9475_v21, %v9283_v22  ;;  %v19301_v35 = vpop.f32.mrf.mxu1 }
 0x8f8   : > { %v23318_v5 = vpop.f32.mrf.mxu0  ;;  %v9564_v2 = vadd.f32 %v19301_v35, %v9285_v51 }
 0x8f9   : > { %v23320_v38 = vpop.f32.mrf.mxu1 }
 0x8fa   : > { %26034 = vst [vmem:[#allocation28_spill] sm:$0xff] %v23320_v38  ;;  %v9640_v37 = vpop.f32.mrf.mxu0 }
 0x8fc   : > { %v23322_v59 = vpop.f32.mrf.mxu0  ;;  %v9717_v55 = vpop.f32.mrf.mxu1 }
 0x8fe   : > { %v9719_v25 = vpop.f32.mrf.mxu1 }
 0x8ff   : > { %v23324_v62 = vpop.f32.mrf.mxu0 }
 0x901   : > { %v23326_v4 = vpop.f32.mrf.mxu0  ;;  %v23328_v26 = vpop.f32.mrf.mxu1 }
 0x902   : > { %26035 = vst [vmem:[#allocation29_spill] sm:$0xff] %v23326_v4  ;;  %v9278_v4 = vadd.f32 %v23300_v17, %v8922_v11  ;;  %v9277_v17 = vadd.f32 %v23298_v41, %v8847_v34 }
 0x903   : > { %v23330_v61 = vpop.f32.mrf.mxu1  ;;  %v19308_v15 = vpop.f32.mrf.mxu0 }
 0x904   : > { %v9812_v10 = vadd.f32 %v19308_v15, %v9564_v2  ;;  %v9556_v20 = vadd.f32 %v23310_v16, %v9277_v17 }
 0x905   : > { %v23332_v8 = vpop.f32.mrf.mxu0  ;;  %v9919_v19 = vpop.f32.mrf.mxu1 }
 0x906   : > { %26036 = vst [vmem:[#allocation20_spill] sm:$0xff] %v23332_v8  ;;  %v9804_v41 = vadd.f32 %v23322_v59, %v9556_v20 }
 0x907   : > { %v9921_v14 = vpop.f32.mrf.mxu1 }
 0x908   : > { %v9996_v36 = vpop.f32.mrf.mxu0 }
 0x90a   : > { %v9998_v56 = vpop.f32.mrf.mxu0 }
 0x90b   : > { %v23334_v58 = vpop.f32.mrf.mxu1 }
 0x90d   : > { %v23336_v57 = vpop.f32.mrf.mxu1  ;;  %v23338_v3 = vpop.f32.mrf.mxu0 }
 0x90e   : > { %26037 = vst [vmem:[#allocation22_spill] sm:$0xff] %v23336_v57 }
 0x90f   : > { %v23340_v45 = vpop.f32.mrf.mxu0  ;;  %v19315_v0 = vpop.f32.mrf.mxu1 }
 0x910   : > { %v10091_v22 = vadd.f32 %v19315_v0, %v9812_v10  ;;  %v9276_v0 = vadd.f32 %v9113_v63, %v8845_v28 }
 0x911   : > { %v23342_v54 = vpop.f32.mrf.mxu1  ;;  %v10198_v51 = vpop.f32.mrf.mxu0 }
 0x912   : > { %26038 = vst [vmem:[#allocation27_spill] sm:$0xff] %v23342_v54  ;;  %v9555_v40 = vadd.f32 %v9392_v24, %v9276_v0 }
 0x913   : > { %v10200_v27 = vpop.f32.mrf.mxu0 }
 0x914   : > { %v10275_v21 = vpop.f32.mrf.mxu1 }
 0x916   : > { %v23344_v35 = vpop.f32.mrf.mxu0  ;;  %v10277_v2 = vpop.f32.mrf.mxu1 }
 0x918   : > { %v23346_v15 = vpop.f32.mrf.mxu0 }
 0x919   : > { %26039 = vst [vmem:[#allocation33_spill] sm:$0xff] %v23346_v15  ;;  %v23348_v47 = vpop.f32.mrf.mxu1  ;;  %v8924_v15 = vadd.f32 %v23290_v44, %v23272_v42 }
 0x91a   : > { %v19322_v39 = vpop.f32.mrf.mxu0 }
 0x91b   : > { %v10370_v8 = vadd.f32 %v19322_v39, %v10091_v22  ;;  %v23352_v38 = vpop.f32.mrf.mxu1  ;;  %v9803_v39 = vadd.f32 %v9640_v37, %v9555_v40  ;;  %v9279_v52 = vadd.f32 %v23302_v18, %v8924_v15  ;;  %v9557_v22 = vadd.f32 %v9469_v1, %v9278_v4  ;;  %v23375_v1 = vpop.permute.xlu1 %10957 }
 0x91c   : > { %v23354_v10 = vpop.f32.mrf.mxu0 }
 0x91d   : > { %v10477_v54 = vpop.f32.mrf.mxu1  ;;  %v10082_v63 = vadd.f32 %v9919_v19, %v9803_v39  ;;  %v9558_v29 = vadd.f32 %v9471_v33, %v9279_v52  ;;  %v9805_v24 = vadd.f32 %v9717_v55, %v9557_v22  ;;  %v10083_v22 = vadd.f32 %v9921_v14, %v9804_v41 }
 0x91e   : > { %v9808_v41 = vadd.f32 %v23324_v62, %v23312_v9 }
 0x91f   : > { %v10554_v46 = vpop.f32.mrf.mxu0  ;;  %v10479_v57 = vpop.f32.mrf.mxu1  ;;  %v10361_v44 = vadd.f32 %v10198_v51, %v10082_v63  ;;  %v9806_v40 = vadd.f32 %v9719_v25, %v9558_v29  ;;  %v10084_v11 = vadd.f32 %v9996_v36, %v9805_v24 }
 0x920   : > { %v23385_v16 = vpop.permute.xlu1 %10977 }
 0x921   : > { %v10556_v50 = vpop.f32.mrf.mxu0  ;;  %v10640_v4 = vadd.f32 %v10477_v54, %v10361_v44  ;;  %v10085_v53 = vadd.f32 %v9998_v56, %v9806_v40  ;;  %v10363_v33 = vadd.f32 %v10275_v21, %v10084_v11  ;;  %v10362_v56 = vadd.f32 %v10200_v27, %v10083_v22 }
 0x922   : > { %v23364_v28 = vpop.f32.mrf.mxu1 }
 0x923   : > { %v10364_v25 = vadd.f32 %v10277_v2, %v10085_v53  ;;  %v10642_v36 = vadd.f32 %v10554_v46, %v10363_v33  ;;  %v10641_v2 = vadd.f32 %v10479_v57, %v10362_v56  ;;  %v8930_v53 = vadd.f32 %v23294_v60, %v23280_v6 }
 0x924   : > { %v23368_v0 = vpop.f32.mrf.mxu0  ;;  %v23370_v42 = vpop.f32.mrf.mxu1  ;;  %v9810_v33 = vadd.f32 %v23328_v26, %v23316_v7  ;;  %v10087_v60 = vadd.f32 %v23334_v58, %v9808_v41 }
 0x925   : > { %v10643_v63 = vadd.f32 %v10556_v50, %v10364_v25 }
 0x926   : > { %v23373_v37 = vpop.f32.mrf.mxu0  ;;  %v19329_v18 = vpop.f32.mrf.mxu1  ;;  %v10089_v25 = vadd.f32 %v23338_v3, %v9810_v33  ;;  %v10366_v9 = vadd.f32 %v23344_v35, %v10087_v60 }
 0x927   : > { %v23377_v19 = vadd.f32 %v19329_v18, %v10370_v8 }
 0x928   : > { %v10756_v55 = vpop.f32.mrf.mxu0  ;;  %v23380_v15 = vpop.f32.mrf.mxu1  ;;  %v10368_v7 = vadd.f32 %v23348_v47, %v10089_v25 }
 0x929   : > { %v10919_v51 = vadd.f32 %v10756_v55, %v10640_v4 }
 0x92a   : > { %v10758_v59 = vpop.f32.mrf.mxu0  ;;  %v10647_v62 = vadd.f32 %v23368_v0, %v10368_v7 }
 0x92b   : > { %v10939_v39 = vadd.f32 %v23361_v43, %v10919_v51  ;;  %v10833_v52 = vpop.f32.mrf.mxu1  ;;  %v10920_v50 = vadd.f32 %v10758_v59, %v10641_v2  ;;  %v9284_v51 = vadd.f32 %v23306_v13, %v8930_v53  ;;  %v26043_v2 = vld [vmem:[#allocation23_spill] sm:$0xff] }
 0x92c   : > { %v10921_v54 = vadd.f32 %v10833_v52, %v10642_v36  ;;  %v10762_v58 = vpop.f32.mrf.mxu0 }
 0x92d   : > { %v10965_v8 = vmul.f32 %v23375_v1, %v10939_v39  ;;  %v10835_v34 = vpop.f32.mrf.mxu1  ;;  %v10940_v57 = vadd.f32 %v23361_v43, %v10920_v50  ;;  %v9563_v6 = vadd.f32 %v23318_v5, %v9284_v51  ;;  %v23430_v5 = vpop.permute.xlu0 %10936  ;;  %v10645_v39 = vadd.f32 %v23364_v28, %v10366_v9  ;;  %v26050_v9 = vld [vmem:[#allocation28_spill] sm:$0xff] }
 0x92e   : > { %v10941_v21 = vadd.f32 %v23361_v43, %v10921_v54  ;;  %v10922_v29 = vadd.f32 %v10835_v34, %v10643_v63  ;;  %v10764_v53 = vpop.f32.mrf.mxu0 }
 0x92f   : > { %v10985_v24 = vadd.f32 %v23385_v16, %v10965_v8  ;;  %v10966_v36 = vmul.f32 %v23375_v1, %v10940_v57  ;;  %v10839_v13 = vpop.f32.mrf.mxu1  ;;  %v9811_v26 = vadd.f32 %v23330_v61, %v9563_v6  ;;  %v10924_v0 = vadd.f32 %v10762_v58, %v10645_v39  ;;  %v26048_v6 = vld [vmem:[#allocation30_spill] sm:$0xff] }
 0x930   : > { %v10967_v46 = vmul.f32 %v23375_v1, %v10941_v21  ;;  %v10942_v44 = vadd.f32 %v23361_v43, %v10922_v29  ;;  %v10926_v52 = vadd.f32 %v10839_v13, %v10647_v62  ;;  %v19336_v39 = vpop.f32.mrf.mxu0 }
 0x931   : > { %v10995_v14 = vmax.f32 %v10985_v24, 0.0  ;;  %v10986_v3 = vadd.f32 %v23385_v16, %v10966_v36  ;;  %v10090_v47 = vadd.f32 %v23340_v45, %v9811_v26  ;;  %v10841_v22 = vpop.f32.mrf.mxu1  ;;  %v23443_v45 = vpop.permute.xlu0 %10962  ;;  %v26047_v36 = vld [vmem:[#allocation32_spill] sm:$0xff] }
 0x932   : > { %v10987_v17 = vadd.f32 %v23385_v16, %v10967_v46  ;;  %v10968_v40 = vmul.f32 %v23375_v1, %v10942_v44  ;;  %v10946_v54 = vadd.f32 %v23430_v5, %v10926_v52  ;;  %v8999_v60 = vadd.f32 %v26048_v6, %v26047_v36  ;;  %v26052_v52 = vld [vmem:[#allocation27_spill] sm:$0xff] }
 0x933   : > { %v23394_v11 = vmul.f32 %v10995_v14, %v19996_v31  ;;  %v10369_v61 = vadd.f32 %v23352_v38, %v10090_v47  ;;  %v10996_v35 = vmax.f32 %v10986_v3, 0.0  ;;  %v10944_v38 = vadd.f32 %v23430_v5, %v10924_v0  ;;  %v26051_v3 = vld [vmem:[#allocation20_spill] sm:$0xff] }
 0x934   : > { %v10997_v27 = vmax.f32 %v10987_v17, 0.0  ;;  %v10988_v18 = vadd.f32 %v23385_v16, %v10968_v40  ;;  %v10972_v34 = vmul.f32 %v23443_v45, %v10946_v54  ;;  %v26045_v17 = vld [vmem:[#allocation22_spill] sm:$0xff] }
 0x935   : > { %11054 = vrot.lane.b32.xlu1 %v23394_v11, %s25899_s26  ;;  %v10648_v63 = vadd.f32 %v23373_v37, %v10369_v61  ;;  %v23446_v28 = vmul.f32 %v10996_v35, %v19991_v23  ;;  %v8853_v37 = vadd.f32 %v23292_v49, %v23278_v48  ;;  %v10970_v56 = vmul.f32 %v23443_v45, %v10944_v38  ;;  %v10983_v29 = vpop.permute.xlu0 %10982  ;;  %v26044_v48 = vld [vmem:[#allocation29_spill] sm:$0xff] }
 0x936   : > { %v23401_v4 = vmul.f32 %v10997_v27, %v19998_v32  ;;  %v10998_v20 = vmax.f32 %v10988_v18, 0.0  ;;  %v10992_v59 = vadd.f32 %v10983_v29, %v10972_v34  ;;  %v26046_v18 = vld [vmem:[#allocation33_spill] sm:$0xff] }
 0x937   : > { %v10927_v8 = vadd.f32 %v10841_v22, %v10648_v63  ;;  %v9282_v24 = vadd.f32 %v23304_v12, %v8853_v37  ;;  %v10990_v44 = vadd.f32 %v10983_v29, %v10970_v56  ;;  %v10910_v22 = vpop.f32.mrf.mxu0 }
 0x938   : > { %v23408_v55 = vmul.f32 %v10998_v20, %v19994_v30  ;;  %11062 = vrot.lane.b32.xlu0 %v23401_v4, %s25899_s26  ;;  %v11002_v50 = vmax.f32 %v10992_v59, 0.0 }
 0x939   : > { %v10947_v21 = vadd.f32 %v23430_v5, %v10927_v8  ;;  %v9561_v46 = vadd.f32 %v26043_v2, %v9282_v24  ;;  %v11000_v40 = vmax.f32 %v10990_v44, 0.0  ;;  %v10928_v8 = vadd.f32 %v19336_v39, %v23377_v19 }
 0x93a   : > { %11066 = vrot.lane.b32.xlu1 %v23408_v55, %s25899_s26  ;;  %v23475_v20 = vmul.f32 %v11002_v50, %v19998_v32 }
 0x93b   : > { %v10973_v14 = vmul.f32 %v23443_v45, %v10947_v21  ;;  %v9809_v49 = vadd.f32 %v26044_v48, %v9561_v46  ;;  %v23481_v51 = vmul.f32 %v11000_v40, %v19996_v31 }
 0x93c   : > { %11029 = vrot.lane.b32.xlu0 %v23401_v4, %s26040_s29 }
 0x93d   : > { %v10088_v12 = vadd.f32 %v26045_v17, %v9809_v49  ;;  %v10993_v27 = vadd.f32 %v10983_v29, %v10973_v14 }
 0x93e   : > { %11021 = vrot.lane.b32.xlu1 %v23394_v11, %s26040_s29 }
 0x93f   : > { %v10367_v57 = vadd.f32 %v26046_v18, %v10088_v12  ;;  %v11003_v41 = vmax.f32 %v10993_v27, 0.0 }
 0x940   : > { %11565 = vrot.lane.b32.xlu0 %v23401_v4, %s26041_s19 }
 0x941   : > { %v10646_v33 = vadd.f32 %v23370_v42, %v10367_v57  ;;  %v23490_v7 = vmul.f32 %v11003_v41, %v19994_v30  ;;  %v26049_v42 = vld [vmem:[#allocation34_spill] sm:$0xff] }
 0x942   : > { %11033 = vrot.lane.b32.xlu1 %v23408_v55, %s26040_s29  ;;  %v9280_v13 = vadd.f32 %v26049_v42, %v8999_v60 }
 0x943   : > { %v10925_v25 = vadd.f32 %v10764_v53, %v10646_v33 }
 0x944   : > { %11843 = vrot.lane.b32.xlu0 %v23401_v4, %s26042_s28  ;;  %v9559_v62 = vadd.f32 %v26050_v9, %v9280_v13  ;;  %v18684_v13 = vld [vmem:[%s25854_s9 + $0x20] sm:$0xff]  ;;  %v18685_v9 = vld [vmem:[%s25854_s9 + $0x28] sm:$0xff] }
 0x945   : > { %v10945_v26 = vadd.f32 %v23430_v5, %v10925_v25 }
 0x946   : > { %11557 = vrot.lane.b32.xlu1 %v23394_v11, %s26041_s19  ;;  %v9807_v58 = vadd.f32 %v26051_v3, %v9559_v62 }
 0x947   : > { %v10971_v47 = vmul.f32 %v23443_v45, %v10945_v26 }
 0x948   : > { %11058 = vrot.lane.b32.xlu0 %v23446_v28, %s25899_s26  ;;  %v10086_v61 = vadd.f32 %v26052_v52, %v9807_v58 }
 0x949   : > { %v10991_v0 = vadd.f32 %v10983_v29, %v10971_v47 }
 0x94a   : > { %11569 = vrot.lane.b32.xlu1 %v23408_v55, %s26041_s19  ;;  %v10365_v35 = vadd.f32 %v23354_v10, %v10086_v61 }
 0x94b   : > { %v11001_v54 = vmax.f32 %v10991_v0, 0.0 }
 0x94c   : > { %11025 = vrot.lane.b32.xlu0 %v23446_v28, %s26040_s29  ;;  %v10644_v63 = vadd.f32 %v23380_v15, %v10365_v35  ;;  %v10948_v15 = vadd.f32 %v23430_v5, %v10928_v8 }
 0x94d   : > { %v23520_v10 = vmul.f32 %v11001_v54, %v19991_v23 }
 0x94e   : > { %11835 = vrot.lane.b32.xlu1 %v23394_v11, %s26042_s28  ;;  %v10923_v38 = vadd.f32 %v10910_v22, %v10644_v63  ;;  %v10974_v19 = vmul.f32 %v23443_v45, %v10948_v15  ;;  %v26054_v45 = vld [vmem:[#allocation17_spill] sm:$0xff]  ;;  %v26057_v15 = vmov 0.0  }
 0x94f   : > { %v11052_v63 = vld [vmem:[#allocation2 + $0x130] sm:$0xff] }
 0x950   : > { %11561 = vrot.lane.b32.xlu0 %v23446_v28, %s26041_s19  ;;  %v10943_v34 = vadd.f32 %v23361_v43, %v10923_v38  ;;  %v10994_v56 = vadd.f32 %v10983_v29, %v10974_v19 }
 0x952   : > { %11847 = vrot.lane.b32.xlu1 %v23408_v55, %s26042_s28  ;;  %v10969_v37 = vmul.f32 %v23375_v1, %v10943_v34  ;;  %v11004_v1 = vmax.f32 %v10994_v56, 0.0 }
 0x954   : > { %11839 = vrot.lane.b32.xlu0 %v23446_v28, %s26042_s28  ;;  %v10989_v43 = vadd.f32 %v23385_v16, %v10969_v37  ;;  %v23549_v16 = vmul.f32 %v11004_v1, %v26054_v45  ;;  %v11053_v37 = vld [vmem:[#allocation2 + $0x138] sm:$0xff] }
 0x956   : > { %11064 = vrot.lane.b32.xlu1 %v23475_v20, %s25899_s26  ;;  %v10999_v5 = vmax.f32 %v10989_v43, 0.0 }
 0x958   : > { %11056 = vrot.lane.b32.xlu0 %v23481_v51, %s25899_s26  ;;  %v23544_v21 = vmul.f32 %v10999_v5, %v26054_v45 }
 0x95a   : > { %11031 = vrot.lane.b32.xlu1 %v23475_v20, %s26040_s29 }
 0x95c   : > { %11068 = vrot.lane.b32.xlu0 %v23490_v7, %s25899_s26 }
 0x95e   : > { %11567 = vrot.lane.b32.xlu1 %v23475_v20, %s26041_s19 }
 0x960   : > { %11023 = vrot.lane.b32.xlu0 %v23481_v51, %s26040_s29 }
 0x962   : > { %11845 = vrot.lane.b32.xlu1 %v23475_v20, %s26042_s28 }
 0x964   : > { %11035 = vrot.lane.b32.xlu0 %v23490_v7, %s26040_s29 }
 0x966   : > { %12371 = vrot.lane.b32.xlu1 %v23475_v20, %s26053_s21 }
 0x968   : > { %11559 = vrot.lane.b32.xlu0 %v23481_v51, %s26041_s19 }
 0x96a   : > { %12365 = vrot.lane.b32.xlu1 %v23446_v28, %s26053_s21 }
 0x96c   : > { %11571 = vrot.lane.b32.xlu0 %v23490_v7, %s26041_s19 }
 0x96e   : > { %11060 = vrot.lane.b32.xlu1 %v23520_v10, %s25899_s26 }
 0x970   : > { %11837 = vrot.lane.b32.xlu0 %v23481_v51, %s26042_s28 }
 0x972   : > { %11027 = vrot.lane.b32.xlu1 %v23520_v10, %s26040_s29 }
 0x974   : > { %11849 = vrot.lane.b32.xlu0 %v23490_v7, %s26042_s28 }
 0x976   : > { %11563 = vrot.lane.b32.xlu1 %v23520_v10, %s26041_s19 }
 0x978   : > { %12363 = vrot.lane.b32.xlu0 %v23481_v51, %s26053_s21 }
 0x97a   : > { %11841 = vrot.lane.b32.xlu1 %v23520_v10, %s26042_s28 }
 0x97c   : > { %12367 = vrot.lane.b32.xlu0 %v23520_v10, %s26053_s21 }
 0x97e   : > { %11070 = vrot.lane.b32.xlu1 %v23544_v21, %s25899_s26 }
 0x980   : > { %11072 = vrot.lane.b32.xlu0 %v23549_v16, %s25899_s26  ;;  %s19765_s26 = smov 100  }
 0x982   : > { %12375 = vrot.lane.b32.xlu1 %v23490_v7, %s26053_s21 }
 0x984   : > { %12369 = vrot.lane.b32.xlu0 %v23401_v4, %s26053_s21 }
 0x986   : > { %12361 = vrot.lane.b32.xlu1 %v23394_v11, %s26053_s21 }
 0x988   : > { %11039 = vrot.lane.b32.xlu0 %v23549_v16, %s26040_s29 }
 0x98a   : > { %11037 = vrot.lane.b32.xlu1 %v23544_v21, %s26040_s29 }
 0x98c   : > { %11575 = vrot.lane.b32.xlu0 %v23549_v16, %s26041_s19 }
 0x98e   : > { %12649 = vrot.lane.b32.xlu1 %v23475_v20, %s25990_s17 }
 0x990   : > { %11853 = vrot.lane.b32.xlu0 %v23549_v16, %s26042_s28 }
 0x992   : > { %11573 = vrot.lane.b32.xlu1 %v23544_v21, %s26041_s19 }
 0x994   : > { %12379 = vrot.lane.b32.xlu0 %v23549_v16, %s26053_s21 }
 0x996   : > { %12643 = vrot.lane.b32.xlu1 %v23446_v28, %s25990_s17 }
 0x998   : > { %12373 = vrot.lane.b32.xlu0 %v23408_v55, %s26053_s21 }
 0x99a   : > { %12653 = vrot.lane.b32.xlu1 %v23490_v7, %s25990_s17 }
 0x99c   : > { %12645 = vrot.lane.b32.xlu0 %v23520_v10, %s25990_s17 }
 0x99e   : > { %11851 = vrot.lane.b32.xlu1 %v23544_v21, %s26042_s28 }
 0x9a0   : > { %12641 = vrot.lane.b32.xlu0 %v23481_v51, %s25990_s17 }
 0x9a2   : > { %12639 = vrot.lane.b32.xlu1 %v23394_v11, %s25990_s17 }
 0x9a4   : > { %12647 = vrot.lane.b32.xlu0 %v23401_v4, %s25990_s17 }
 0x9a6   : > { %12927 = vrot.lane.b32.xlu1 %v23475_v20, %s25962_s23 }
 0x9a7   : > { %v23593_v29 = vpop.permute.xlu1 %11054 }
 0x9a8   : > { %12657 = vrot.lane.b32.xlu0 %v23549_v16, %s25990_s17 }
 0x9aa   : > { %v23597_v24 = vpop.permute.xlu0 %11062  ;;  %12921 = vrot.lane.b32.xlu1 %v23446_v28, %s25962_s23 }
 0x9ac   : > { %12651 = vrot.lane.b32.xlu0 %v23408_v55, %s25990_s17  ;;  %v23603_v59 = vpop.permute.xlu1 %11066 }
 0x9ad   : > { %v11076_v22 = vsel %vm988_vm1, %v23597_v24, %v23603_v59 }
 0x9ae   : > { %v23605_v2 = vpop.permute.xlu0 %11029  ;;  %12931 = vrot.lane.b32.xlu1 %v23490_v7, %s25962_s23 }
 0x9b0   : > { %12923 = vrot.lane.b32.xlu0 %v23520_v10, %s25962_s23  ;;  %v23611_v46 = vpop.permute.xlu1 %11021 }
 0x9b2   : > { %v23613_v44 = vpop.permute.xlu0 %11565  ;;  %12377 = vrot.lane.b32.xlu1 %v23544_v21, %s26053_s21 }
 0x9b4   : > { %12919 = vrot.lane.b32.xlu0 %v23481_v51, %s25962_s23  ;;  %v23619_v14 = vpop.permute.xlu1 %11033 }
 0x9b6   : > { %v23621_v48 = vpop.permute.xlu0 %11843  ;;  %12917 = vrot.lane.b32.xlu1 %v23394_v11, %s25962_s23 }
 0x9b8   : > { %12925 = vrot.lane.b32.xlu0 %v23401_v4, %s25962_s23  ;;  %v23627_v49 = vpop.permute.xlu1 %11557 }
 0x9ba   : > { %v23629_v50 = vpop.permute.xlu0 %11058  ;;  %13205 = vrot.lane.b32.xlu1 %v23475_v20, %s26055_s27 }
 0x9bb   : > { %v11078_v54 = vsel %vm988_vm1, %v23629_v50, %v23597_v24 }
 0x9bc   : > { %12935 = vrot.lane.b32.xlu0 %v23549_v16, %s25962_s23  ;;  %v23635_v17 = vpop.permute.xlu1 %11569 }
 0x9be   : > { %v23637_v12 = vpop.permute.xlu0 %11025  ;;  %12655 = vrot.lane.b32.xlu1 %v23544_v21, %s25990_s17 }
 0x9c0   : > { %12929 = vrot.lane.b32.xlu0 %v23408_v55, %s25962_s23  ;;  %v23643_v40 = vpop.permute.xlu1 %11835 }
 0x9c2   : > { %v23645_v27 = vpop.permute.xlu0 %11561  ;;  %13199 = vrot.lane.b32.xlu1 %v23446_v28, %s26055_s27 }
 0x9c4   : > { %13201 = vrot.lane.b32.xlu0 %v23520_v10, %s26055_s27  ;;  %v23651_v18 = vpop.permute.xlu1 %11847 }
 0x9c6   : > { %v23653_v57 = vpop.permute.xlu0 %11839  ;;  %12933 = vrot.lane.b32.xlu1 %v23544_v21, %s25962_s23 }
 0x9c8   : > { %13197 = vrot.lane.b32.xlu0 %v23481_v51, %s26055_s27  ;;  %v11065_v53 = vpop.permute.xlu1 %11064 }
 0x9ca   : > { %v11057_v33 = vpop.permute.xlu0 %11056  ;;  %13209 = vrot.lane.b32.xlu1 %v23490_v7, %s26055_s27 }
 0x9cc   : > { %13203 = vrot.lane.b32.xlu0 %v23401_v4, %s26055_s27  ;;  %v23663_v41 = vpop.permute.xlu1 %11031 }
 0x9ce   : > { %v11069_v25 = vpop.permute.xlu0 %11068  ;;  %13195 = vrot.lane.b32.xlu1 %v23394_v11, %s26055_s27 }
 0x9cf   : > { %v11077_v6 = vsel %vm988_vm1, %v11065_v53, %v11069_v25 }
 0x9d0   : > { %13213 = vrot.lane.b32.xlu0 %v23549_v16, %s26055_s27  ;;  %11195 = vmatprep.subr.mxu0 %v11077_v6  ;;  %v23671_v60 = vpop.permute.xlu1 %11567 }
 0x9d2   : > { %v11024_v42 = vpop.permute.xlu0 %11023  ;;  %13211 = vrot.lane.b32.xlu1 %v23544_v21, %s26055_s27 }
 0x9d4   : > { %13207 = vrot.lane.b32.xlu0 %v23408_v55, %s26055_s27  ;;  %v23680_v26 = vpop.permute.xlu1 %11845 }
 0x9d6   : > { %v23685_v62 = vpop.permute.xlu0 %11035  ;;  %13472 = vperm.xlu1 %19620, %v18684_v13   ;;  %v11080_v13 = vsel %vm988_vm1, %v23593_v29, %v23629_v50 }
 0x9d8   : > { %13477 = vperm.xlu0 %19619, %v18685_v9   ;;  %v23687_v3 = vpop.permute.xlu1 %12371 }
 0x9da   : > { %v23689_v58 = vpop.permute.xlu0 %11559 }
 0x9dc   : > { %v23691_v47 = vpop.permute.xlu1 %12365 }
 0x9de   : > { %v23693_v39 = vpop.permute.xlu0 %11571 }
 0x9e0   : > { %v11061_v52 = vpop.permute.xlu1 %11060 }
 0x9e1   : > { %v11081_v61 = vsel %vm988_vm1, %v11057_v33, %v11061_v52  ;;  %v11079_v35 = vsel %vm988_vm1, %v11061_v52, %v11065_v53 }
 0x9e2   : > { %v23699_v0 = vpop.permute.xlu0 %11837  ;;  %11118 = vmatprep.subr.mxu1 %v11081_v61  ;;  %11196 = vmatpush1.msra.mxu0 %v11079_v35 }
 0x9e3   : > { %11197 = vmatprep.subr.mxu0 %v11076_v22 }
 0x9e4   : > { %11198 = vmatpush1.msra.mxu0 %v11078_v54  ;;  %v11028_v38 = vpop.permute.xlu1 %11027  ;;  %v11019_v54 = vld [vmem:[#allocation2 + $0x120] sm:$0xff] }
 0x9e5   : > { %v11048_v8 = vsel %vm954_vm3, %v11024_v42, %v11028_v38  ;;  %18688 = vmatmul.mubr.msk.f32.vlgmr.msra.gmra.mxu0 %vm999_vm2, %v11052_v63 }
 0x9e6   : > { %v23712_v34 = vpop.permute.xlu0 %11849  ;;  %11353 = vmatprep.subr.mxu0 %v11048_v8  ;;  %11237 = vmatprep.mubr.f32.mxu0 %v26057_v15 }
 0x9e8   : > { %v23715_v19 = vpop.permute.xlu1 %11563 }
 0x9e9   : > { %18689 = vmatmul.mubr.msk.f32.gmra.mxu0 %vm999_vm2, %v11053_v37 }
 0x9ea   : > { %v23718_v43 = vpop.permute.xlu0 %12363  ;;  %11389 = vmatprep.mubr.f32.mxu0 %v26057_v15 }
 0x9ec   : > { %v23721_v56 = vpop.permute.xlu1 %11841 }
 0x9ee   : > { %v23723_v5 = vpop.permute.xlu0 %12367 }
 0x9f0   : > { %v11071_v1 = vpop.permute.xlu1 %11070 }
 0x9f1   : > { %v11082_v9 = vsel %vm988_vm1, %v11071_v1, %v23593_v29  ;;  %v11074_v50 = vsel %vm988_vm1, %v23603_v59, %v11071_v1  ;;  %v11047_v59 = vsel %vm954_vm3, %v23611_v46, %v23637_v12 }
 0x9f2   : > { %v11073_v24 = vpop.permute.xlu0 %11072 }
 0x9f3   : > { %v11083_v53 = vsel %vm988_vm1, %v11073_v24, %v11057_v33  ;;  %v11075_v61 = vsel %vm988_vm1, %v11069_v25, %v11073_v24  ;;  %v11044_v25 = vsel %vm954_vm3, %v23663_v41, %v23685_v62 }
 0x9f4   : > { %11119 = vmatpush1.msra.mxu1 %v11083_v53  ;;  %v23727_v6 = vpop.permute.xlu1 %12375  ;;  %v11584_v53 = vsel %vm1493_vm4, %v23689_v58, %v23715_v19 }
 0x9f5   : > { %11120 = vmatprep.subr.mxu1 %v11080_v13 }
 0x9f6   : > { %v23736_v52 = vpop.permute.xlu0 %12369  ;;  %11121 = vmatpush1.msra.mxu1 %v11082_v9  ;;  %v11583_v9 = vsel %vm1493_vm4, %v23627_v49, %v23645_v27 }
 0x9f7   : > { %18686 = vmatmul.mubr.msk.f32.vlgmr.msra.gmra.mxu1 %vm999_vm2, %v11052_v63  ;;  %19337 = vmatprep.subr.mxu1 %v11075_v61 }
 0x9f8   : > { %19338 = vmatpush3.msra.mxu1 %v11075_v61  ;;  %v23741_v33 = vpop.permute.xlu1 %12361  ;;  %11160 = vmatprep.mubr.f32.mxu1 %v26057_v15 }
 0x9f9   : > { %19339 = vmatprep.subr.mxu1 %v11074_v50 }
 0x9fa   : > { %v11040_v29 = vpop.permute.xlu0 %11039  ;;  %19340 = vmatpush3.msra.mxu1 %v11074_v50  ;;  %v11582_v50 = vsel %vm1493_vm4, %v23715_v19, %v23671_v60 }
 0x9fb   : > { %18687 = vmatmul.mubr.msk.f32.gmra.mxu1 %vm999_vm2, %v11053_v37  ;;  %11430 = vmatprep.subr.mxu1 %v11044_v25  ;;  %v11050_v35 = vsel %vm954_vm3, %v11040_v29, %v11024_v42  ;;  %v11046_v42 = vsel %vm954_vm3, %v11028_v38, %v23663_v41  ;;  %v11045_v41 = vsel %vm954_vm3, %v23637_v12, %v23605_v2 }
 0x9fc   : > { %11354 = vmatpush1.msra.mxu0 %v11050_v35  ;;  %v11038_v22 = vpop.permute.xlu1 %11037  ;;  %19341 = vmatprep.mubr.msk.f32.mxu1 %vm999_vm2, %v11052_v63  ;;  %v11042_v63 = vsel %vm954_vm3, %v23685_v62, %v11040_v29  ;;  %v11580_v12 = vsel %vm1493_vm4, %v23671_v60, %v23693_v39  ;;  %v11579_v29 = vsel %vm1493_vm4, %v23613_v44, %v23635_v17  ;;  %v11555_v35 = vld [vmem:[#allocation2 + $0x140] sm:$0xff] }
 0x9fd   : > { %11355 = vmatprep.subr.mxu0 %v11047_v59  ;;  %v11049_v8 = vsel %vm954_vm3, %v11038_v22, %v23611_v46  ;;  %v11043_v46 = vsel %vm954_vm3, %v23605_v2, %v23619_v14  ;;  %v11041_v62 = vsel %vm954_vm3, %v23619_v14, %v11038_v22  ;;  %v11581_v60 = vsel %vm1493_vm4, %v23645_v27, %v23613_v44 }
 0x9fe   : > { %v11576_v1 = vpop.permute.xlu0 %11575  ;;  %11356 = vmatpush1.msra.mxu0 %v11049_v8  ;;  %v11861_v59 = vsel %vm1772_vm5, %v23643_v40, %v23653_v57 }
 0x9ff   : > { %19342 = vmatmul.mubr.msk.f32.vlgmr.msra.gmra.mxu1 %vm999_vm2, %v11053_v37  ;;  %18692 = vmatmul.mubr.msk.f32.vlgmr.msra.gmra.mxu0 %vm999_vm2, %v11019_v54  ;;  %v11020_v37 = vld [vmem:[#allocation2 + $0x128] sm:$0xff]  ;;  %v11586_v14 = vsel %vm1493_vm4, %v11576_v1, %v23689_v58 }
 0xa00   : > { %11431 = vmatpush1.msra.mxu1 %v11046_v42  ;;  %19344 = vmatprep.subr.mxu0 %v11042_v63  ;;  %v23774_v24 = vpop.permute.xlu1 %12649  ;;  %v11833_v42 = vld [vmem:[#allocation2 + $0x150] sm:$0xff] }
 0xa01   : > { %11432 = vmatprep.subr.mxu1 %v11043_v46  ;;  %19345 = vmatpush3.msra.mxu0 %v11042_v63 }
 0xa02   : > { %11433 = vmatpush1.msra.mxu1 %v11045_v41  ;;  %19346 = vmatprep.subr.mxu0 %v11041_v62  ;;  %v23783_v38 = vpop.permute.xlu0 %11853 }
 0xa03   : > { %11395 = vmatprep.mubr.f32.mxu0 %v26057_v15  ;;  %11466 = vmatprep.mubr.f32.mxu1 %v26057_v15  ;;  %v11864_v44 = vsel %vm1772_vm5, %v23783_v38, %v23699_v0  ;;  %v11856_v63 = vsel %vm1772_vm5, %v23712_v34, %v23783_v38  ;;  %v11834_v38 = vld [vmem:[#allocation2 + $0x158] sm:$0xff] }
 0xa04   : > { %19347 = vmatpush3.msra.mxu0 %v11041_v62  ;;  %11621 = vmatprep.subr.mxu1 %v11584_v53  ;;  %v11574_v2 = vpop.permute.xlu1 %11573  ;;  %v11859_v62 = vsel %vm1772_vm5, %v23653_v57, %v23621_v48  ;;  %v12387_v57 = vsel %vm2299_vm6, %v23741_v33, %v23691_v47 }
 0xa05   : > { %18693 = vmatmul.mubr.msk.f32.gmra.mxu0 %vm999_vm2, %v11020_v37  ;;  %18694 = vmatmul.mubr.msk.f32.vlgmr.msra.gmra.mxu1 %vm999_vm2, %v11019_v54  ;;  %v11585_v13 = vsel %vm1493_vm4, %v11574_v2, %v23627_v49  ;;  %v11578_v49 = vsel %vm1493_vm4, %v23693_v39, %v11576_v1  ;;  %v11862_v39 = vsel %vm1772_vm5, %v23699_v0, %v23721_v56 }
 0xa06   : > { %11622 = vmatpush1.msra.mxu1 %v11586_v14  ;;  %11698 = vmatprep.subr.mxu0 %v11580_v12  ;;  %v23807_v61 = vpop.permute.xlu0 %12379  ;;  %v11577_v27 = vsel %vm1493_vm4, %v23635_v17, %v11574_v2  ;;  %v11858_v17 = vsel %vm1772_vm5, %v23680_v26, %v23712_v34  ;;  %v11857_v34 = vsel %vm1772_vm5, %v23621_v48, %v23651_v18  ;;  %v12359_v2 = vld [vmem:[#allocation2 + $0x170] sm:$0xff] }
 0xa07   : > { %11623 = vmatprep.subr.mxu1 %v11583_v9  ;;  %11472 = vmatprep.mubr.f32.mxu1 %v26057_v15  ;;  %v12382_v53 = vsel %vm2299_vm6, %v23727_v6, %v23807_v61 }
 0xa08   : > { %19348 = vmatprep.mubr.msk.f32.mxu0 %vm999_vm2, %v11019_v54  ;;  %11624 = vmatpush1.msra.mxu1 %v11585_v13  ;;  %v23811_v58 = vpop.permute.xlu1 %12643  ;;  %v11556_v54 = vld [vmem:[#allocation2 + $0x148] sm:$0xff] }
 0xa09   : > { %18695 = vmatmul.mubr.msk.f32.gmra.mxu1 %vm999_vm2, %v11020_v37  ;;  %19349 = vmatmul.mubr.msk.f32.vlgmr.msra.gmra.mxu0 %vm999_vm2, %v11020_v37 }
 0xa0a   : > { %11699 = vmatpush1.msra.mxu0 %v11582_v50  ;;  %19351 = vmatprep.subr.mxu1 %v11578_v49  ;;  %v23826_v25 = vpop.permute.xlu0 %12373 }
 0xa0b   : > { %11700 = vmatprep.subr.mxu0 %v11579_v29  ;;  %11657 = vmatprep.mubr.f32.mxu1 %v26057_v15  ;;  %v12383_v50 = vsel %vm2299_vm6, %v23736_v52, %v23826_v25 }
 0xa0c   : > { %11701 = vmatpush1.msra.mxu0 %v11581_v60  ;;  %11734 = vmatprep.mubr.f32.mxu0 %v26057_v15  ;;  %v23838_v19 = vpop.permute.xlu1 %12653 }
 0xa0d   : > { %11899 = vmatprep.subr.mxu0 %v11862_v39  ;;  %18698 = vmatmul.mubr.msk.f32.vlgmr.msra.gmra.mxu1 %vm999_vm2, %v11555_v35 }
 0xa0e   : > { %18700 = vmatmul.mubr.msk.f32.vlgmr.msra.gmra.mxu0 %vm999_vm2, %v11555_v35  ;;  %19352 = vmatpush3.msra.mxu1 %v11578_v49  ;;  %v23849_v22 = vpop.permute.xlu0 %12645 }
 0xa0f   : > { %11900 = vmatpush1.msra.mxu0 %v11864_v44  ;;  %19353 = vmatprep.subr.mxu1 %v11577_v27 }
 0xa10   : > { %11901 = vmatprep.subr.mxu0 %v11861_v59  ;;  %19354 = vmatpush3.msra.mxu1 %v11577_v27  ;;  %v11852_v8 = vpop.permute.xlu1 %11851  ;;  %v12637_v27 = vld [vmem:[#allocation2 + $0x180] sm:$0xff] }
 0xa11   : > { %11663 = vmatprep.mubr.f32.mxu1 %v26057_v15  ;;  %11740 = vmatprep.mubr.f32.mxu0 %v26057_v15  ;;  %v11863_v0 = vsel %vm1772_vm5, %v11852_v8, %v23643_v40  ;;  %v11860_v40 = vsel %vm1772_vm5, %v23721_v56, %v23680_v26  ;;  %v11855_v26 = vsel %vm1772_vm5, %v23651_v18, %v11852_v8 }
 0xa12   : > { %11976 = vmatprep.subr.mxu1 %v11858_v17  ;;  %18699 = vmatmul.mubr.msk.f32.gmra.mxu1 %vm999_vm2, %v11556_v54  ;;  %v23865_v1 = vpop.permute.xlu0 %12641  ;;  %v12638_v17 = vld [vmem:[#allocation2 + $0x188] sm:$0xff] }
 0xa13   : > { %18701 = vmatmul.mubr.msk.f32.gmra.mxu0 %vm999_vm2, %v11556_v54  ;;  %19355 = vmatprep.mubr.msk.f32.mxu1 %vm999_vm2, %v11555_v35 }
 0xa14   : > { %11902 = vmatpush1.msra.mxu0 %v11863_v0  ;;  %11935 = vmatprep.mubr.f32.mxu0 %v26057_v15  ;;  %v23874_v46 = vpop.permute.xlu1 %12639 }
 0xa15   : > { %19358 = vmatprep.subr.mxu0 %v11856_v63  ;;  %v12665_v60 = vsel %vm2578_vm7, %v23874_v46, %v23811_v58 }
 0xa16   : > { %19356 = vmatmul.mubr.msk.f32.vlgmr.msra.gmra.mxu1 %vm999_vm2, %v11556_v54  ;;  %v23881_v41 = vpop.permute.xlu0 %12647 }
 0xa17   : > { %18704 = vmatmul.mubr.msk.f32.vlgmr.msra.gmra.mxu0 %vm999_vm2, %v11833_v42  ;;  %11977 = vmatpush1.msra.mxu1 %v11860_v40  ;;  %v12663_v29 = vsel %vm2578_vm7, %v23811_v58, %v23881_v41  ;;  %v12662_v58 = vsel %vm2578_vm7, %v23774_v24, %v23838_v19 }
 0xa18   : > { %11978 = vmatprep.subr.mxu1 %v11857_v34  ;;  %19359 = vmatpush3.msra.mxu0 %v11856_v63  ;;  %v23895_v56 = vpop.permute.xlu1 %12927 }
 0xa19   : > { %11979 = vmatpush1.msra.mxu1 %v11859_v62  ;;  %19360 = vmatprep.subr.mxu0 %v11855_v26 }
 0xa1a   : > { %11941 = vmatprep.mubr.f32.mxu0 %v26057_v15  ;;  %12012 = vmatprep.mubr.f32.mxu1 %v26057_v15  ;;  %v23899_v37 = vpop.permute.xlu0 %12657 }
 0xa1b   : > { %19361 = vmatpush3.msra.mxu0 %v11855_v26  ;;  %12147 = vmatprep.subr.mxu1 %v23520_v10  ;;  %v12660_v49 = vsel %vm2578_vm7, %v23838_v19, %v23899_v37  ;;  %v12668_v39 = vsel %vm2578_vm7, %v23899_v37, %v23865_v1 }
 0xa1c   : > { %18705 = vmatmul.mubr.msk.f32.gmra.mxu0 %vm999_vm2, %v11834_v38  ;;  %18706 = vmatmul.mubr.msk.f32.vlgmr.msra.gmra.mxu1 %vm999_vm2, %v11833_v42  ;;  %v23904_v48 = vpop.permute.xlu1 %12921 }
 0xa1d   : > { %12148 = vmatpush1.msra.mxu1 %v23481_v51  ;;  %12224 = vmatprep.subr.mxu0 %v23490_v7  ;;  %v12111_v51 = vld [vmem:[#allocation2 + $0x160] sm:$0xff] }
 0xa1e   : > { %12149 = vmatprep.subr.mxu1 %v23446_v28  ;;  %12018 = vmatprep.mubr.f32.mxu1 %v26057_v15  ;;  %v23910_v18 = vpop.permute.xlu0 %12651 }
 0xa1f   : > { %12150 = vmatpush1.msra.mxu1 %v23394_v11  ;;  %19362 = vmatprep.mubr.msk.f32.mxu0 %vm999_vm2, %v11833_v42  ;;  %v12386_v11 = vsel %vm2299_vm6, %v23723_v5, %v23687_v3  ;;  %v12661_v59 = vsel %vm2578_vm7, %v23881_v41, %v23910_v18  ;;  %v12915_v41 = vld [vmem:[#allocation2 + $0x190] sm:$0xff] }
 0xa20   : > { %19365 = vmatprep.subr.mxu1 %v23549_v16  ;;  %18707 = vmatmul.mubr.msk.f32.gmra.mxu1 %vm999_vm2, %v11834_v38  ;;  %v23916_v10 = vpop.permute.xlu1 %12931 }
 0xa21   : > { %19363 = vmatmul.mubr.msk.f32.vlgmr.msra.gmra.mxu0 %vm999_vm2, %v11834_v38  ;;  %12183 = vmatprep.mubr.f32.mxu1 %v26057_v15  ;;  %v12940_v34 = vsel %vm2857_vm8, %v23895_v56, %v23916_v10 }
 0xa22   : > { %12225 = vmatpush1.msra.mxu0 %v23475_v20  ;;  %12260 = vmatprep.mubr.f32.mxu0 %v26057_v15  ;;  %v23922_v28 = vpop.permute.xlu0 %12923  ;;  %v12388_v20 = vsel %vm2299_vm6, %v23718_v43, %v23723_v5 }
 0xa23   : > { %12226 = vmatprep.subr.mxu0 %v23408_v55  ;;  %v12942_v19 = vsel %vm2857_vm8, %v23922_v28, %v23895_v56 }
 0xa24   : > { %12227 = vmatpush1.msra.mxu0 %v23401_v4  ;;  %18710 = vmatmul.mubr.msk.f32.vlgmr.msra.gmra.mxu1 %vm999_vm2, %v12111_v51  ;;  %v12378_v7 = vpop.permute.xlu1 %12377  ;;  %v12385_v4 = vsel %vm2299_vm6, %v23691_v47, %v23736_v52  ;;  %v12390_v47 = vsel %vm2299_vm6, %v23807_v61, %v23718_v43  ;;  %v12384_v43 = vsel %vm2299_vm6, %v23687_v3, %v23727_v6  ;;  %v12360_v3 = vld [vmem:[#allocation2 + $0x178] sm:$0xff] }
 0xa25   : > { %12425 = vmatprep.subr.mxu0 %v12386_v11  ;;  %18712 = vmatmul.mubr.msk.f32.vlgmr.msra.gmra.mxu0 %vm999_vm2, %v12111_v51  ;;  %v12381_v13 = vsel %vm2299_vm6, %v23826_v25, %v12378_v7  ;;  %v12389_v9 = vsel %vm2299_vm6, %v12378_v7, %v23741_v33  ;;  %v12664_v33 = vsel %vm2578_vm7, %v23849_v22, %v23774_v24 }
 0xa26   : > { %19366 = vmatpush3.msra.mxu1 %v23549_v16  ;;  %12426 = vmatpush1.msra.mxu0 %v12388_v20  ;;  %v23941_v55 = vpop.permute.xlu0 %12919  ;;  %v12112_v16 = vld [vmem:[#allocation2 + $0x168] sm:$0xff]  ;;  %v12666_v52 = vsel %vm2578_vm7, %v23865_v1, %v23849_v22 }
 0xa27   : > { %19367 = vmatprep.subr.mxu1 %v23544_v21  ;;  %12427 = vmatprep.subr.mxu0 %v12385_v4  ;;  %v12944_v8 = vsel %vm2857_vm8, %v23941_v55, %v23922_v28 }
 0xa28   : > { %19368 = vmatpush3.msra.mxu1 %v23544_v21  ;;  %12428 = vmatpush1.msra.mxu0 %v12387_v57  ;;  %v23949_v5 = vpop.permute.xlu1 %12917 }
 0xa29   : > { %12189 = vmatprep.mubr.f32.mxu1 %v26057_v15  ;;  %12266 = vmatprep.mubr.f32.mxu0 %v26057_v15  ;;  %v12943_v63 = vsel %vm2857_vm8, %v23949_v5, %v23904_v48 }
 0xa2a   : > { %12502 = vmatprep.subr.mxu1 %v12382_v53  ;;  %19372 = vmatprep.subr.mxu0 %v12390_v47  ;;  %v23961_v21 = vpop.permute.xlu0 %12925 }
 0xa2b   : > { %18711 = vmatmul.mubr.msk.f32.gmra.mxu1 %vm999_vm2, %v12112_v16  ;;  %18713 = vmatmul.mubr.msk.f32.gmra.mxu0 %vm999_vm2, %v12112_v16  ;;  %v12941_v0 = vsel %vm2857_vm8, %v23904_v48, %v23961_v21 }
 0xa2c   : > { %19369 = vmatprep.mubr.msk.f32.mxu1 %vm999_vm2, %v12111_v51  ;;  %12461 = vmatprep.mubr.f32.mxu0 %v26057_v15  ;;  %v23967_v14 = vpop.permute.xlu1 %13205 }
 0xa2e   : > { %v23969_v12 = vpop.permute.xlu0 %12935 }
 0xa2f   : > { %19370 = vmatmul.mubr.msk.f32.vlgmr.msra.gmra.mxu1 %vm999_vm2, %v12112_v16  ;;  %18716 = vmatmul.mubr.msk.f32.vlgmr.msra.gmra.mxu0 %vm999_vm2, %v12359_v2  ;;  %v12938_v42 = vsel %vm2857_vm8, %v23916_v10, %v23969_v12  ;;  %v12946_v40 = vsel %vm2857_vm8, %v23969_v12, %v23941_v55 }
 0xa30   : > { %12503 = vmatpush1.msra.mxu1 %v12384_v43  ;;  %19373 = vmatpush3.msra.mxu0 %v12390_v47  ;;  %v12656_v61 = vpop.permute.xlu1 %12655  ;;  %v13194_v47 = vld [vmem:[#allocation2 + $0x1a8] sm:$0xff] }
 0xa31   : > { %12504 = vmatprep.subr.mxu1 %v12381_v13  ;;  %19374 = vmatprep.subr.mxu0 %v12389_v9  ;;  %v12659_v44 = vsel %vm2578_vm7, %v23910_v18, %v12656_v61  ;;  %v12667_v24 = vsel %vm2578_vm7, %v12656_v61, %v23874_v46  ;;  %v12916_v18 = vld [vmem:[#allocation2 + $0x198] sm:$0xff] }
 0xa32   : > { %12505 = vmatpush1.msra.mxu1 %v12383_v50  ;;  %19375 = vmatpush3.msra.mxu0 %v12389_v9  ;;  %v23987_v6 = vpop.permute.xlu0 %12929 }
 0xa33   : > { %12467 = vmatprep.mubr.f32.mxu0 %v26057_v15  ;;  %12538 = vmatprep.mubr.f32.mxu1 %v26057_v15  ;;  %v12939_v38 = vsel %vm2857_vm8, %v23961_v21, %v23987_v6 }
 0xa34   : > { %12703 = vmatprep.subr.mxu1 %v12664_v33  ;;  %12780 = vmatprep.subr.mxu0 %v12660_v49  ;;  %v24010_v25 = vpop.permute.xlu1 %13199 }
 0xa35   : > { %18717 = vmatmul.mubr.msk.f32.gmra.mxu0 %vm999_vm2, %v12360_v3  ;;  %18718 = vmatmul.mubr.msk.f32.vlgmr.msra.gmra.mxu1 %vm999_vm2, %v12359_v2 }
 0xa36   : > { %12704 = vmatpush1.msra.mxu1 %v12666_v52  ;;  %12544 = vmatprep.mubr.f32.mxu1 %v26057_v15  ;;  %v24012_v35 = vpop.permute.xlu0 %13201 }
 0xa37   : > { %12705 = vmatprep.subr.mxu1 %v12663_v29  ;;  %19376 = vmatprep.mubr.msk.f32.mxu0 %vm999_vm2, %v12359_v2  ;;  %v13220_v48 = vsel %vm3136_vm9, %v24012_v35, %v23967_v14 }
 0xa38   : > { %12706 = vmatpush1.msra.mxu1 %v12665_v60  ;;  %v12934_v54 = vpop.permute.xlu1 %12933 }
 0xa39   : > { %19379 = vmatprep.subr.mxu1 %v12668_v39  ;;  %18719 = vmatmul.mubr.msk.f32.gmra.mxu1 %vm999_vm2, %v12360_v3  ;;  %v12937_v26 = vsel %vm2857_vm8, %v23987_v6, %v12934_v54  ;;  %v12945_v56 = vsel %vm2857_vm8, %v12934_v54, %v23949_v5  ;;  %v13193_v5 = vld [vmem:[#allocation2 + $0x1a0] sm:$0xff] }
 0xa3a   : > { %19377 = vmatmul.mubr.msk.f32.vlgmr.msra.gmra.mxu0 %vm999_vm2, %v12360_v3  ;;  %12739 = vmatprep.mubr.f32.mxu1 %v26057_v15  ;;  %v24033_v22 = vpop.permute.xlu0 %13197 }
 0xa3b   : > { %12781 = vmatpush1.msra.mxu0 %v12662_v58  ;;  %12816 = vmatprep.mubr.f32.mxu0 %v26057_v15  ;;  %v13222_v51 = vsel %vm3136_vm9, %v24033_v22, %v24012_v35 }
 0xa3c   : > { %12782 = vmatprep.subr.mxu0 %v12659_v44  ;;  %v13210_v46 = vpop.permute.xlu1 %13209 }
 0xa3d   : > { %18722 = vmatmul.mubr.msk.f32.vlgmr.msra.gmra.mxu1 %vm999_vm2, %v12637_v27  ;;  %12783 = vmatpush1.msra.mxu0 %v12661_v59  ;;  %v13218_v57 = vsel %vm3136_vm9, %v23967_v14, %v13210_v46 }
 0xa3e   : > { %19380 = vmatpush3.msra.mxu1 %v12668_v39  ;;  %18724 = vmatmul.mubr.msk.f32.vlgmr.msra.gmra.mxu0 %vm999_vm2, %v12637_v27  ;;  %v13204_v1 = vpop.permute.xlu0 %13203 }
 0xa3f   : > { %19381 = vmatprep.subr.mxu1 %v12667_v24  ;;  %12981 = vmatprep.subr.mxu0 %v12942_v19  ;;  %v13219_v10 = vsel %vm3136_vm9, %v24010_v25, %v13204_v1 }
 0xa40   : > { %19382 = vmatpush3.msra.mxu1 %v12667_v24  ;;  %12982 = vmatpush1.msra.mxu0 %v12944_v8  ;;  %v13196_v37 = vpop.permute.xlu1 %13195 }
 0xa41   : > { %12745 = vmatprep.mubr.f32.mxu1 %v26057_v15  ;;  %12983 = vmatprep.subr.mxu0 %v12941_v0  ;;  %v13221_v28 = vsel %vm3136_vm9, %v13196_v37, %v24010_v25 }
 0xa42   : > { %13058 = vmatprep.subr.mxu1 %v12938_v42  ;;  %18723 = vmatmul.mubr.msk.f32.gmra.mxu1 %vm999_vm2, %v12638_v17  ;;  %v13214_v62 = vpop.permute.xlu0 %13213 }
 0xa43   : > { %12822 = vmatprep.mubr.f32.mxu0 %v26057_v15  ;;  %12984 = vmatpush1.msra.mxu0 %v12943_v63  ;;  %v13216_v11 = vsel %vm3136_vm9, %v13210_v46, %v13214_v62  ;;  %v13224_v20 = vsel %vm3136_vm9, %v13214_v62, %v24033_v22 }
 0xa44   : > { %18725 = vmatmul.mubr.msk.f32.gmra.mxu0 %vm999_vm2, %v12638_v17  ;;  %19386 = vmatprep.subr.mxu0 %v12946_v40  ;;  %v13212_v4 = vpop.permute.xlu1 %13211 }
 0xa45   : > { %19383 = vmatprep.mubr.msk.f32.mxu1 %vm999_vm2, %v12637_v27  ;;  %13017 = vmatprep.mubr.f32.mxu0 %v26057_v15  ;;  %v13223_v53 = vsel %vm3136_vm9, %v13212_v4, %v13196_v37 }
 0xa46   : > { %19384 = vmatmul.mubr.msk.f32.vlgmr.msra.gmra.mxu1 %vm999_vm2, %v12638_v17  ;;  %v13208_v7 = vpop.permute.xlu0 %13207 }
 0xa47   : > { %13059 = vmatpush1.msra.mxu1 %v12940_v34  ;;  %13094 = vmatprep.mubr.f32.mxu1 %v26057_v15  ;;  %v13215_v55 = vsel %vm3136_vm9, %v13208_v7, %v13212_v4  ;;  %v13217_v16 = vsel %vm3136_vm9, %v13204_v1, %v13208_v7 }
 0xa48   : > { %18728 = vmatmul.mubr.msk.f32.vlgmr.msra.gmra.mxu0 %vm999_vm2, %v12915_v41  ;;  %13060 = vmatprep.subr.mxu1 %v12937_v26 }
 0xa49   : > { %19387 = vmatpush3.msra.mxu0 %v12946_v40  ;;  %13061 = vmatpush1.msra.mxu1 %v12939_v38 }
 0xa4a   : > { %19388 = vmatprep.subr.mxu0 %v12945_v56  ;;  %13259 = vmatprep.subr.mxu1 %v13220_v48 }
 0xa4b   : > { %19389 = vmatpush3.msra.mxu0 %v12945_v56  ;;  %13023 = vmatprep.mubr.f32.mxu0 %v26057_v15 }
 0xa4c   : > { %18730 = vmatmul.mubr.msk.f32.vlgmr.msra.gmra.mxu1 %vm999_vm2, %v12915_v41  ;;  %18729 = vmatmul.mubr.msk.f32.gmra.mxu0 %vm999_vm2, %v12916_v18 }
 0xa4d   : > { %13260 = vmatpush1.msra.mxu1 %v13222_v51  ;;  %13100 = vmatprep.mubr.f32.mxu1 %v26057_v15 }
 0xa4e   : > { %13261 = vmatprep.subr.mxu1 %v13219_v10  ;;  %19390 = vmatprep.mubr.msk.f32.mxu0 %vm999_vm2, %v12915_v41 }
 0xa4f   : > { %13262 = vmatpush1.msra.mxu1 %v13221_v28  ;;  %13336 = vmatprep.subr.mxu0 %v13216_v11 }
 0xa50   : > { %18731 = vmatmul.mubr.msk.f32.gmra.mxu1 %vm999_vm2, %v12916_v18  ;;  %19391 = vmatmul.mubr.msk.f32.vlgmr.msra.gmra.mxu0 %vm999_vm2, %v12916_v18 }
 0xa51   : > { %19393 = vmatprep.subr.mxu1 %v13224_v20  ;;  %13337 = vmatpush1.msra.mxu0 %v13218_v57 }
 0xa52   : > { %13295 = vmatprep.mubr.f32.mxu1 %v26057_v15  ;;  %13338 = vmatprep.subr.mxu0 %v13215_v55 }
 0xa53   : > { %13339 = vmatpush1.msra.mxu0 %v13217_v16  ;;  %13372 = vmatprep.mubr.f32.mxu0 %v26057_v15 }
 0xa54   : > { %18734 = vmatmul.mubr.msk.f32.vlgmr.msra.gmra.mxu1 %vm999_vm2, %v13193_v5  ;;  %18736 = vmatmul.mubr.msk.f32.vlgmr.msra.gmra.mxu0 %vm999_vm2, %v13193_v5 }
 0xa55   : > { %19394 = vmatpush3.msra.mxu1 %v13224_v20  ;;  %13301 = vmatprep.mubr.f32.mxu1 %v26057_v15 }
 0xa56   : > { %19395 = vmatprep.subr.mxu1 %v13223_v53  ;;  %13378 = vmatprep.mubr.f32.mxu0 %v26057_v15 }
 0xa57   : > { %19396 = vmatpush3.msra.mxu1 %v13223_v53 }
 0xa58   : > { %18735 = vmatmul.mubr.msk.f32.gmra.mxu1 %vm999_vm2, %v13194_v47  ;;  %18737 = vmatmul.mubr.msk.f32.gmra.mxu0 %vm999_vm2, %v13194_v47 }
 0xa59   : > { %19397 = vmatprep.mubr.msk.f32.mxu1 %vm999_vm2, %v13193_v5  ;;  %13651 = vmatprep.mubr.f32.mxu0 %v26057_v15 }
 0xa5c   : > { %19398 = vmatmul.mubr.msk.f32.vlgmr.msra.gmra.mxu1 %vm999_vm2, %v13194_v47 }
 0xa5d   : > { %13728 = vmatprep.mubr.f32.mxu1 %v26057_v15 }
 0xaa5   : > { %v24139_v21 = vpop.f32.mrf.mxu0 }
 0xaa7   : > { %v24141_v2 = vpop.f32.mrf.mxu0 }
 0xaa9   : > { %v24143_v12 = vpop.f32.mrf.mxu0 }
 0xaab   : > { %v11241_v9 = vpop.f32.mrf.mxu0 }
 0xab7   : > { %v11156_v14 = vpop.f32.mrf.mxu1 }
 0xab9   : > { %v24145_v43 = vpop.f32.mrf.mxu1 }
 0xabb   : > { %v11162_v13 = vpop.f32.mrf.mxu1 }
 0xabd   : > { %v11164_v61 = vpop.f32.mrf.mxu1 }
 0xabf   : > { %v19343_v50 = vpop.f32.mrf.mxu1  ;;  %v11391_v3 = vpop.f32.mrf.mxu0 }
 0xac0   : > { %v24147_v6 = vadd.f32 %v11391_v3, %v11156_v14 }
 0xac1   : > { %v11310_v33 = vpop.f32.mrf.mxu1  ;;  %v24149_v49 = vpop.f32.mrf.mxu0 }
 0xac5   : > { %v11397_v52 = vpop.f32.mrf.mxu0  ;;  %v24151_v29 = vpop.f32.mrf.mxu1 }
 0xac6   : > { %v11398_v25 = vadd.f32 %v11397_v52, %v11162_v13 }
 0xac7   : > { %v11399_v35 = vpop.f32.mrf.mxu0  ;;  %v24153_v60 = vpop.f32.mrf.mxu1 }
 0xac8   : > { %v11400_v17 = vadd.f32 %v11399_v35, %v11164_v61 }
 0xac9   : > { %v24155_v39 = vpop.f32.mrf.mxu1  ;;  %v19350_v44 = vpop.f32.mrf.mxu0 }
 0xaca   : > { %v11551_v58 = vadd.f32 %v19350_v44, %v19343_v50 }
 0xacb   : > { %v11476_v27 = vpop.f32.mrf.mxu1  ;;  %v11545_v22 = vpop.f32.mrf.mxu0 }
 0xacc   : > { %v11477_v42 = vadd.f32 %v11476_v27, %v11241_v9  ;;  %v11546_v62 = vadd.f32 %v11545_v22, %v11310_v33 }
 0xacd   : > { %v24157_v59 = vpop.f32.mrf.mxu1 }
 0xace   : > { %v24159_v54 = vpop.f32.mrf.mxu0 }
 0xacf   : > { %v24161_v24 = vpop.f32.mrf.mxu1 }
 0xad0   : > { %v24163_v19 = vpop.f32.mrf.mxu0 }
 0xad2   : > { %v11665_v8 = vpop.f32.mrf.mxu1 }
 0xad3   : > { %v11827_v0 = vadd.f32 %v11665_v8, %v11398_v25  ;;  %v24165_v1 = vpop.f32.mrf.mxu0 }
 0xad4   : > { %v11667_v63 = vpop.f32.mrf.mxu1 }
 0xad5   : > { %v11828_v46 = vadd.f32 %v11667_v63, %v11400_v17  ;;  %v11744_v40 = vpop.f32.mrf.mxu0 }
 0xad6   : > { %v11830_v41 = vadd.f32 %v11744_v40, %v11477_v42  ;;  %v19357_v34 = vpop.f32.mrf.mxu1 }
 0xad7   : > { %v11831_v26 = vadd.f32 %v19357_v34, %v11551_v58  ;;  %v24167_v38 = vpop.f32.mrf.mxu0 }
 0xad8   : > { %v11813_v37 = vpop.f32.mrf.mxu1 }
 0xad9   : > { %v11826_v56 = vadd.f32 %v11813_v37, %v11546_v62  ;;  %v24169_v48 = vpop.f32.mrf.mxu0 }
 0xadc   : > { %v11943_v18 = vpop.f32.mrf.mxu0  ;;  %v12014_v10 = vpop.f32.mrf.mxu1 }
 0xadd   : > { %v24171_v51 = vadd.f32 %v11943_v18, %v11827_v0 }
 0xade   : > { %v11945_v28 = vpop.f32.mrf.mxu0  ;;  %v12016_v11 = vpop.f32.mrf.mxu1 }
 0xadf   : > { %v12106_v7 = vadd.f32 %v11945_v28, %v11828_v46 }
 0xae0   : > { %v24173_v20 = vpop.f32.mrf.mxu1 }
 0xae1   : > { %v19364_v4 = vpop.f32.mrf.mxu0 }
 0xae2   : > { %v12109_v55 = vadd.f32 %v19364_v4, %v11831_v26  ;;  %v12022_v57 = vpop.f32.mrf.mxu1 }
 0xae3   : > { %v12108_v16 = vadd.f32 %v12022_v57, %v11830_v41  ;;  %v12091_v5 = vpop.f32.mrf.mxu0 }
 0xae4   : > { %v12104_v53 = vadd.f32 %v12091_v5, %v11826_v56  ;;  %v12185_v47 = vpop.f32.mrf.mxu1 }
 0xae5   : > { %v12262_v14 = vpop.f32.mrf.mxu0 }
 0xae6   : > { %v24175_v13 = vpop.f32.mrf.mxu1 }
 0xae7   : > { %v12264_v9 = vpop.f32.mrf.mxu0 }
 0xaeb   : > { %v24177_v61 = vpop.f32.mrf.mxu1  ;;  %v24179_v50 = vpop.f32.mrf.mxu0 }
 0xaed   : > { %v12193_v3 = vpop.f32.mrf.mxu1  ;;  %v12270_v33 = vpop.f32.mrf.mxu0 }
 0xaee   : > { %v12354_v52 = vadd.f32 %v12193_v3, %v12106_v7  ;;  %v24181_v25 = vadd.f32 %v12270_v33, %v12108_v16 }
 0xaef   : > { %v19371_v35 = vpop.f32.mrf.mxu1  ;;  %v12463_v44 = vpop.f32.mrf.mxu0 }
 0xaf0   : > { %v12357_v58 = vadd.f32 %v19371_v35, %v12109_v55  ;;  %v11471_v35 = vadd.f32 %v24153_v60, %v24141_v2 }
 0xaf1   : > { %v12339_v27 = vpop.f32.mrf.mxu1  ;;  %v24183_v22 = vpop.f32.mrf.mxu0 }
 0xaf2   : > { %v12352_v8 = vadd.f32 %v12339_v27, %v12104_v53  ;;  %v11469_v53 = vadd.f32 %v24151_v29, %v24139_v21 }
 0xaf5   : > { %v24185_v17 = vpop.f32.mrf.mxu0  ;;  %v12540_v0 = vpop.f32.mrf.mxu1 }
 0xaf7   : > { %v12471_v42 = vpop.f32.mrf.mxu0  ;;  %v12542_v63 = vpop.f32.mrf.mxu1 }
 0xaf8   : > { %v24187_v46 = vadd.f32 %v12471_v42, %v12354_v52  ;;  %v11822_v42 = vadd.f32 %v24157_v59, %v24147_v6 }
 0xaf9   : > { %v24189_v40 = vpop.f32.mrf.mxu1 }
 0xafa   : > { %v19378_v41 = vpop.f32.mrf.mxu0  ;;  %v12100_v21 = vadd.f32 %v24167_v38, %v11822_v42  ;;  %v24226_v42 = vpop.permute.xlu1 %13472 }
 0xafb   : > { %v12635_v34 = vadd.f32 %v19378_v41, %v12357_v58  ;;  %v24191_v62 = vpop.f32.mrf.mxu1  ;;  %v11824_v58 = vadd.f32 %v24159_v54, %v11469_v53  ;;  %v11825_v41 = vadd.f32 %v24163_v19, %v11471_v35 }
 0xafc   : > { %v12617_v26 = vpop.f32.mrf.mxu0  ;;  %v12348_v2 = vadd.f32 %v12185_v47, %v12100_v21 }
 0xafd   : > { %v12630_v37 = vadd.f32 %v12617_v26, %v12352_v8  ;;  %v12741_v56 = vpop.f32.mrf.mxu1  ;;  %v12102_v26 = vadd.f32 %v12014_v10, %v11824_v58  ;;  %v12103_v29 = vadd.f32 %v12016_v11, %v11825_v41 }
 0xafe   : > { %v12818_v18 = vpop.f32.mrf.mxu0  ;;  %v12626_v19 = vadd.f32 %v12463_v44, %v12348_v2 }
 0xaff   : > { %v24193_v28 = vpop.f32.mrf.mxu1  ;;  %v12351_v60 = vadd.f32 %v12264_v9, %v12103_v29 }
 0xb00   : > { %v12820_v7 = vpop.f32.mrf.mxu0  ;;  %v12904_v35 = vadd.f32 %v12741_v56, %v12626_v19 }
 0xb01   : > { %v12629_v10 = vadd.f32 %v12542_v63, %v12351_v60 }
 0xb02   : > { %v24195_v4 = vpop.f32.mrf.mxu1 }
 0xb03   : > { %v12907_v58 = vadd.f32 %v12820_v7, %v12629_v10 }
 0xb04   : > { %v12824_v55 = vpop.f32.mrf.mxu0  ;;  %v24197_v57 = vpop.f32.mrf.mxu1 }
 0xb06   : > { %v24199_v16 = vpop.f32.mrf.mxu0  ;;  %v19385_v5 = vpop.f32.mrf.mxu1 }
 0xb07   : > { %v12913_v3 = vadd.f32 %v19385_v5, %v12635_v34  ;;  %v12350_v34 = vadd.f32 %v12262_v14, %v12102_v26 }
 0xb08   : > { %v13019_v33 = vpop.f32.mrf.mxu0  ;;  %v12895_v52 = vpop.f32.mrf.mxu1 }
 0xb09   : > { %v12908_v27 = vadd.f32 %v12895_v52, %v12630_v37  ;;  %v12628_v54 = vadd.f32 %v12540_v0, %v12350_v34  ;;  %v11475_v37 = vadd.f32 %v24155_v39, %v24143_v12  ;;  %v11394_v12 = vadd.f32 %v24149_v49, %v24145_v43 }
 0xb0a   : > { %v13021_v8 = vpop.f32.mrf.mxu0  ;;  %v13182_v63 = vadd.f32 %v13019_v33, %v12904_v35 }
 0xb0b   : > { %v12906_v53 = vadd.f32 %v12818_v18, %v12628_v54  ;;  %v11829_v38 = vadd.f32 %v24165_v1, %v11475_v37  ;;  %v11823_v1 = vadd.f32 %v24161_v24, %v11394_v12 }
 0xb0c   : > { %v13096_v15 = vpop.f32.mrf.mxu1  ;;  %v24209_v36 = vpop.f32.mrf.mxu0 }
 0xb0d   : > { %v13184_v47 = vadd.f32 %v13096_v15, %v12906_v53  ;;  %v12107_v44 = vadd.f32 %v24173_v20, %v11829_v38  ;;  %v12101_v43 = vadd.f32 %v24169_v48, %v11823_v1  ;;  %v12353_v53 = vadd.f32 %v24177_v61, %v24171_v51 }
 0xb0e   : > { %v13098_v5 = vpop.f32.mrf.mxu1  ;;  %v24212_v45 = vpop.f32.mrf.mxu0  ;;  %v12634_v61 = vadd.f32 %v24191_v62, %v24181_v25 }
 0xb0f   : > { %v13185_v18 = vadd.f32 %v13098_v5, %v12907_v58  ;;  %v12355_v56 = vadd.f32 %v24179_v50, %v12107_v44  ;;  %v12349_v20 = vadd.f32 %v24175_v13, %v12101_v43  ;;  %v26061_v43 = vld [vmem:[#allocation17_spill] sm:$0xff] }
 0xb10   : > { %v13102_v6 = vpop.f32.mrf.mxu1  ;;  %v19392_v59 = vpop.f32.mrf.mxu0 }
 0xb11   : > { %v24216_v52 = vadd.f32 %v19392_v59, %v12913_v3  ;;  %v12633_v49 = vadd.f32 %v24189_v40, %v12355_v56  ;;  %v12627_v34 = vadd.f32 %v24183_v22, %v12349_v20  ;;  %v24249_v22 = vpop.permute.xlu0 %13477 }
 0xb12   : > { %v24219_v11 = vpop.f32.mrf.mxu1  ;;  %v13173_v14 = vpop.f32.mrf.mxu0 }
 0xb13   : > { %v24221_v9 = vadd.f32 %v13173_v14, %v12908_v27  ;;  %v12911_v33 = vadd.f32 %v12824_v55, %v12633_v49  ;;  %v12905_v48 = vadd.f32 %v24193_v28, %v12627_v34  ;;  %v12631_v14 = vadd.f32 %v24185_v17, %v12353_v53 }
 0xb14   : > { %v13297_v39 = vpop.f32.mrf.mxu1  ;;  %v13374_v0 = vpop.f32.mrf.mxu0  ;;  %v12912_v17 = vadd.f32 %v24199_v16, %v12634_v61  ;;  %v12910_v16 = vadd.f32 %v24197_v57, %v24187_v46  ;;  %v15994_v61 = vld [vmem:[%s25857_s12 + $0x8] sm:$0xff] }
 0xb15   : > { %v13462_v3 = vadd.f32 %v13374_v0, %v13184_v47  ;;  %v13460_v15 = vadd.f32 %v13297_v39, %v13182_v63  ;;  %v13189_v5 = vadd.f32 %v13102_v6, %v12911_v33  ;;  %v13183_v60 = vadd.f32 %v13021_v8, %v12905_v48 }
 0xb16   : > { %v13376_v41 = vpop.f32.mrf.mxu0  ;;  %v13299_v2 = vpop.f32.mrf.mxu1  ;;  %v12909_v35 = vadd.f32 %v24195_v4, %v12631_v14  ;;  %v13190_v12 = vadd.f32 %v24219_v11, %v12912_v17  ;;  %v13188_v44 = vadd.f32 %v24212_v45, %v12910_v16  ;;  %v15993_v17 = vld [vmem:[%s25857_s12] sm:$0xff] }
 0xb17   : > { %v13482_v7 = vadd.f32 %v24226_v42, %v13462_v3  ;;  %v13463_v27 = vadd.f32 %v13376_v41, %v13185_v18  ;;  %v13480_v21 = vadd.f32 %v24226_v42, %v13460_v15  ;;  %v13461_v37 = vadd.f32 %v13299_v2, %v13183_v60  ;;  %v15995_v16 = vld [vmem:[%s25858_s13] sm:$0xff] }
 0xb18   : > { %v13380_v50 = vpop.f32.mrf.mxu0  ;;  %v13303_v58 = vpop.f32.mrf.mxu1  ;;  %v13187_v47 = vadd.f32 %v24209_v36, %v12909_v35  ;;  %v18741_v35 = vld [vmem:[%s25856_s11 + $0x28] sm:$0xff] }
 0xb19   : > { %v13492_v26 = vmax.f32 %v13482_v7, 0.0  ;;  %v13483_v24 = vadd.f32 %v24226_v42, %v13463_v27  ;;  %v13490_v13 = vmax.f32 %v13480_v21, 0.0  ;;  %v13467_v55 = vadd.f32 %v13380_v50, %v13189_v5 }
 0xb1a   : > { %v13481_v8 = vadd.f32 %v24226_v42, %v13461_v37  ;;  %v13465_v51 = vadd.f32 %v13303_v58, %v13187_v47  ;;  %v13382_v4 = vpop.f32.mrf.mxu0  ;;  %v13305_v0 = vpop.f32.mrf.mxu1  ;;  %v18740_v58 = vld [vmem:[%s25856_s11 + $0x20] sm:$0xff] }
 0xb1b   : > { %v24236_v29 = vmul.f32 %v13492_v26, %v19998_v32  ;;  %v13493_v40 = vmax.f32 %v13483_v24, 0.0  ;;  %v24252_v54 = vmul.f32 %v13490_v13, %v19996_v31  ;;  %v13487_v6 = vadd.f32 %v24249_v22, %v13467_v55 }
 0xb1c   : > { %v13491_v19 = vmax.f32 %v13481_v8, 0.0  ;;  %v13485_v36 = vadd.f32 %v24249_v22, %v13465_v51  ;;  %v13468_v62 = vadd.f32 %v13382_v4, %v13190_v12  ;;  %v13466_v63 = vadd.f32 %v13305_v0, %v13188_v44  ;;  %v19399_v1 = vpop.f32.mrf.mxu1  ;;  %v26062_v12 = vld [vmem:[#allocation18_spill] sm:$0xff] }
 0xb1d   : > { %13524 = vrot.lane.b32.xlu0 %v24236_v29, %s19765_s26  ;;  %13558 = vrot.lane.b32.xlu1 %v24236_v29, %s19766_s20  ;;  %v24255_v28 = vmul.f32 %v13493_v40, %v19994_v30  ;;  %v13497_v59 = vmax.f32 %v13487_v6, 0.0  ;;  %v13469_v41 = vadd.f32 %v19399_v1, %v24216_v52  ;;  %vm13570_vm11 = vcmp.lt.s32.totalorder %v26062_v12, 96  ;;  %v13548_v1 = vld [vmem:[#allocation5 + $0x130] sm:$0xff] }
 0xb1e   : > { %v24277_v38 = vmul.f32 %v13491_v19, %v19991_v23  ;;  %v13495_v25 = vmax.f32 %v13485_v36, 0.0  ;;  %v13488_v11 = vadd.f32 %v24249_v22, %v13468_v62  ;;  %v13486_v46 = vadd.f32 %v24249_v22, %v13466_v63  ;;  %v13451_v56 = vpop.f32.mrf.mxu1  ;;  %v15996_v62 = vld [vmem:[%s25858_s13 + $0x8] sm:$0xff] }
 0xb1f   : > { %v24268_v10 = vmul.f32 %v13497_v59, %v19998_v32  ;;  %v13489_v15 = vadd.f32 %v24249_v22, %v13469_v41  ;;  %v13464_v7 = vadd.f32 %v13451_v56, %v24221_v9  ;;  %vm13536_vm12 = vcmp.lt.s32.totalorder %v26062_v12, 100 }
 0xb20   : > { %v24310_v39 = vmul.f32 %v13495_v25, %v19996_v31  ;;  %v13498_v18 = vmax.f32 %v13488_v11, 0.0  ;;  %v13496_v45 = vmax.f32 %v13486_v46, 0.0  ;;  %vm14074_vm13 = vcmp.lt.s32.totalorder %v26062_v12, 92 }
 0xb21   : > { %14341 = vrot.lane.b32.xlu0 %v24236_v29, %s25906_s18  ;;  %14062 = vrot.lane.b32.xlu1 %v24236_v29, %s25904_s30  ;;  %v13499_v27 = vmax.f32 %v13489_v15, 0.0  ;;  %v13484_v52 = vadd.f32 %v24226_v42, %v13464_v7  ;;  %vm14353_vm14 = vcmp.lt.s32.totalorder %v26062_v12, 4  ;;  %vm14880_vm15 = vcmp.lt.s32.totalorder %v26062_v12, 124 }
 0xb22   : > { %v24324_v57 = vmul.f32 %v13498_v18, %v19994_v30  ;;  %v24335_v3 = vmul.f32 %v13496_v45, %v19991_v23  ;;  %vm15159_vm0 = vcmp.lt.s32.totalorder %v26062_v12, 36  ;;  %vm15438_vm10 = vcmp.lt.s32.totalorder %v26062_v12, 32 }
 0xb23   : > { %v24358_v49 = vmul.f32 %v13499_v27, %v26061_v43  ;;  %v13494_v26 = vmax.f32 %v13484_v52, 0.0  ;;  %v26063_v27 = vmov 0.0   ;;  %v13549_v52 = vld [vmem:[#allocation5 + $0x138] sm:$0xff] }
 0xb25   : > { %13562 = vrot.lane.b32.xlu0 %v24255_v28, %s19766_s20  ;;  %13550 = vrot.lane.b32.xlu1 %v24252_v54, %s19766_s20  ;;  %v24365_v9 = vmul.f32 %v13494_v26, %v26061_v43 }
 0xb29   : > { %14066 = vrot.lane.b32.xlu0 %v24255_v28, %s25904_s30  ;;  %13516 = vrot.lane.b32.xlu1 %v24252_v54, %s19765_s26 }
 0xb2d   : > { %13560 = vrot.lane.b32.xlu0 %v24268_v10, %s19766_s20  ;;  %13528 = vrot.lane.b32.xlu1 %v24255_v28, %s19765_s26 }
 0xb31   : > { %13554 = vrot.lane.b32.xlu0 %v24277_v38, %s19766_s20  ;;  %14054 = vrot.lane.b32.xlu1 %v24252_v54, %s25904_s30 }
 0xb35   : > { %13520 = vrot.lane.b32.xlu0 %v24277_v38, %s19765_s26  ;;  %14333 = vrot.lane.b32.xlu1 %v24252_v54, %s25906_s18 }
 0xb39   : > { %14064 = vrot.lane.b32.xlu0 %v24268_v10, %s25904_s30  ;;  %14345 = vrot.lane.b32.xlu1 %v24255_v28, %s25906_s18 }
 0xb3d   : > { %14058 = vrot.lane.b32.xlu0 %v24277_v38, %s25904_s30  ;;  %13526 = vrot.lane.b32.xlu1 %v24268_v10, %s19765_s26  ;;  %s25908_s30 = smov 124  }
 0xb41   : > { %14337 = vrot.lane.b32.xlu0 %v24277_v38, %s25906_s18  ;;  %14343 = vrot.lane.b32.xlu1 %v24268_v10, %s25906_s18  ;;  %s26058_s18 = smov 92  }
 0xb45   : > { %13552 = vrot.lane.b32.xlu0 %v24310_v39, %s19766_s20  ;;  %14870 = vrot.lane.b32.xlu1 %v24268_v10, %s25908_s30 }
 0xb49   : > { %13518 = vrot.lane.b32.xlu0 %v24310_v39, %s19765_s26  ;;  %14864 = vrot.lane.b32.xlu1 %v24277_v38, %s25908_s30  ;;  %s26059_s30 = smov 4  }
 0xb4d   : > { %13530 = vrot.lane.b32.xlu0 %v24324_v57, %s19765_s26  ;;  %13564 = vrot.lane.b32.xlu1 %v24324_v57, %s19766_s20 }
 0xb51   : > { %14056 = vrot.lane.b32.xlu0 %v24310_v39, %s26058_s18  ;;  %14068 = vrot.lane.b32.xlu1 %v24324_v57, %s26058_s18 }
 0xb55   : > { %14335 = vrot.lane.b32.xlu0 %v24310_v39, %s26059_s30  ;;  %13556 = vrot.lane.b32.xlu1 %v24335_v3, %s19766_s20 }
 0xb59   : > { %14347 = vrot.lane.b32.xlu0 %v24324_v57, %s26059_s30  ;;  %13522 = vrot.lane.b32.xlu1 %v24335_v3, %s19765_s26 }
 0xb5d   : > { %14862 = vrot.lane.b32.xlu0 %v24310_v39, %s26060_s1  ;;  %14060 = vrot.lane.b32.xlu1 %v24335_v3, %s26058_s18 }
 0xb61   : > { %14866 = vrot.lane.b32.xlu0 %v24335_v3, %s26060_s1  ;;  %14339 = vrot.lane.b32.xlu1 %v24335_v3, %s26059_s30 }
 0xb65   : > { %13568 = vrot.lane.b32.xlu0 %v24358_v49, %s19766_s20  ;;  %14860 = vrot.lane.b32.xlu1 %v24252_v54, %s26060_s1 }
 0xb69   : > { %14868 = vrot.lane.b32.xlu0 %v24236_v29, %s26060_s1  ;;  %13566 = vrot.lane.b32.xlu1 %v24365_v9, %s19766_s20  ;;  %s19772_s20 = smov 28  }
 0xb6d   : > { %13534 = vrot.lane.b32.xlu0 %v24358_v49, %s19765_s26  ;;  %14878 = vrot.lane.b32.xlu1 %v24358_v49, %s26060_s1 }
 0xb71   : > { %14874 = vrot.lane.b32.xlu0 %v24324_v57, %s26060_s1  ;;  %13532 = vrot.lane.b32.xlu1 %v24365_v9, %s19765_s26  ;;  %s19771_s26 = smov 32  }
 0xb75   : > { %14072 = vrot.lane.b32.xlu0 %v24358_v49, %s26058_s18  ;;  %15149 = vrot.lane.b32.xlu1 %v24268_v10, %s19770_s2 }
 0xb79   : > { %14351 = vrot.lane.b32.xlu0 %v24358_v49, %s26059_s30  ;;  %15153 = vrot.lane.b32.xlu1 %v24324_v57, %s19770_s2 }
 0xb7d   : > { %14872 = vrot.lane.b32.xlu0 %v24255_v28, %s26060_s1  ;;  %14070 = vrot.lane.b32.xlu1 %v24365_v9, %s26058_s18 }
 0xb81   : > { %15145 = vrot.lane.b32.xlu0 %v24335_v3, %s19770_s2  ;;  %15143 = vrot.lane.b32.xlu1 %v24277_v38, %s19770_s2 }
 0xb85   : > { %15141 = vrot.lane.b32.xlu0 %v24310_v39, %s19770_s2  ;;  %14349 = vrot.lane.b32.xlu1 %v24365_v9, %s26059_s30  ;;  %s19528_s30 = smul.u32 80, %s19882_s25  ;;  %s19775_s25 = smov [#allocation7]  }
 0xb87   : > { %s18358_s3 = scalar_lea.hbm %s25861_s16, %s19528_s30 }
 0xb89   : > { %15157 = vrot.lane.b32.xlu0 %v24358_v49, %s19770_s2  ;;  %15139 = vrot.lane.b32.xlu1 %v24252_v54, %s19770_s2 }
 0xb8d   : > { %15147 = vrot.lane.b32.xlu0 %v24236_v29, %s19770_s2  ;;  %15428 = vrot.lane.b32.xlu1 %v24268_v10, %s19771_s26 }
 0xb8f   : > { %v24407_v42 = vpop.permute.xlu0 %13524  ;;  %v24409_v20 = vpop.permute.xlu1 %13558 }
 0xb91   : > { %15151 = vrot.lane.b32.xlu0 %v24255_v28, %s19770_s2  ;;  %15422 = vrot.lane.b32.xlu1 %v24277_v38, %s19771_s26 }
 0xb93   : > { %v24415_v33 = vpop.permute.xlu0 %14341  ;;  %v24417_v21 = vpop.permute.xlu1 %14062 }
 0xb95   : > { %15424 = vrot.lane.b32.xlu0 %v24335_v3, %s19771_s26  ;;  %15418 = vrot.lane.b32.xlu1 %v24252_v54, %s19771_s26 }
 0xb97   : > { %v24423_v24 = vpop.permute.xlu0 %13562  ;;  %v24425_v50 = vpop.permute.xlu1 %13550 }
 0xb98   : > { %v13573_v45 = vsel %vm13570_vm11, %v24409_v20, %v24423_v24 }
 0xb99   : > { %15420 = vrot.lane.b32.xlu0 %v24310_v39, %s19771_s26  ;;  %14876 = vrot.lane.b32.xlu1 %v24365_v9, %s26060_s1 }
 0xb9b   : > { %v24431_v34 = vpop.permute.xlu0 %14066  ;;  %v24433_v5 = vpop.permute.xlu1 %13516 }
 0xb9d   : > { %15426 = vrot.lane.b32.xlu0 %v24236_v29, %s19771_s26  ;;  %15436 = vrot.lane.b32.xlu1 %v24358_v49, %s19771_s26 }
 0xb9f   : > { %v13561_v48 = vpop.permute.xlu0 %13560  ;;  %v24439_v13 = vpop.permute.xlu1 %13528 }
 0xba1   : > { %15432 = vrot.lane.b32.xlu0 %v24324_v57, %s19771_s26  ;;  %15707 = vrot.lane.b32.xlu1 %v24268_v10, %s19772_s20 }
 0xba3   : > { %v24444_v40 = vpop.permute.xlu0 %13554  ;;  %v24446_v55 = vpop.permute.xlu1 %14054 }
 0xba4   : > { %v13575_v41 = vsel %vm13570_vm11, %v24444_v40, %v24409_v20 }
 0xba5   : > { %15430 = vrot.lane.b32.xlu0 %v24255_v28, %s19771_s26  ;;  %15155 = vrot.lane.b32.xlu1 %v24365_v9, %s19770_s2 }
 0xba7   : > { %v24452_v2 = vpop.permute.xlu0 %13520  ;;  %v24454_v60 = vpop.permute.xlu1 %14333 }
 0xba9   : > { %15703 = vrot.lane.b32.xlu0 %v24335_v3, %s19772_s20  ;;  %15711 = vrot.lane.b32.xlu1 %v24324_v57, %s19772_s20 }
 0xbab   : > { %v24458_v22 = vpop.permute.xlu0 %14064  ;;  %v24460_v37 = vpop.permute.xlu1 %14345 }
 0xbad   : > { %15699 = vrot.lane.b32.xlu0 %v24310_v39, %s19772_s20  ;;  %15434 = vrot.lane.b32.xlu1 %v24365_v9, %s19771_s26 }
 0xbaf   : > { %v24465_v6 = vpop.permute.xlu0 %14058  ;;  %v24467_v8 = vpop.permute.xlu1 %13526 }
 0xbb1   : > { %15715 = vrot.lane.b32.xlu0 %v24358_v49, %s19772_s20  ;;  %15701 = vrot.lane.b32.xlu1 %v24277_v38, %s19772_s20 }
 0xbb3   : > { %v24471_v59 = vpop.permute.xlu0 %14337  ;;  %v24473_v19 = vpop.permute.xlu1 %14343 }
 0xbb5   : > { %15705 = vrot.lane.b32.xlu0 %v24236_v29, %s19772_s20  ;;  %15697 = vrot.lane.b32.xlu1 %v24252_v54, %s19772_s20 }
 0xbb7   : > { %v13553_v53 = vpop.permute.xlu0 %13552  ;;  %v24477_v14 = vpop.permute.xlu1 %14870 }
 0xbb9   : > { %15709 = vrot.lane.b32.xlu0 %v24255_v28, %s19772_s20  ;;  %15713 = vrot.lane.b32.xlu1 %v24365_v9, %s19772_s20 }
 0xbbb   : > { %v24487_v47 = vpop.permute.xlu0 %13518  ;;  %v24489_v51 = vpop.permute.xlu1 %14864 }
 0xbbd   : > { %15980 = vperm.xlu0 %19619, %v18741_v35   ;;  %15975 = vperm.xlu1 %19620, %v18740_v58  }
 0xbbf   : > { %v24497_v36 = vpop.permute.xlu0 %13530  ;;  %v13565_v4 = vpop.permute.xlu1 %13564 }
 0xbc0   : > { %v13574_v25 = vsel %vm13570_vm11, %v13561_v48, %v13565_v4 }
 0xbc1   : > { %16004 = vperm.xlu0 %19619, %v15994_v61   ;;  %15999 = vperm.xlu1 %19620, %v15993_v17  }
 0xbc2   : > { %13692 = vmatprep.subr.mxu1 %v13574_v25  ;;  %v13577_v25 = vsel %vm13570_vm11, %v24425_v50, %v24444_v40 }
 0xbc3   : > { %v24508_v11 = vpop.permute.xlu0 %14056  ;;  %v24510_v0 = vpop.permute.xlu1 %14068 }
 0xbc5   : > { %16024 = vperm.xlu0 %19619, %v15996_v62   ;;  %16019 = vperm.xlu1 %19620, %v15995_v16  }
 0xbc7   : > { %v24512_v44 = vpop.permute.xlu0 %14335  ;;  %v13557_v63 = vpop.permute.xlu1 %13556 }
 0xbc8   : > { %v13578_v18 = vsel %vm13570_vm11, %v13553_v53, %v13557_v63  ;;  %v13576_v46 = vsel %vm13570_vm11, %v13557_v63, %v13561_v48 }
 0xbc9   : > { %13615 = vmatprep.subr.mxu0 %v13578_v18  ;;  %13693 = vmatpush1.msra.mxu1 %v13576_v46 }
 0xbca   : > { %13694 = vmatprep.subr.mxu1 %v13573_v45 }
 0xbcb   : > { %v24526_v56 = vpop.permute.xlu0 %14347  ;;  %13695 = vmatpush1.msra.mxu1 %v13575_v41  ;;  %v13523_v15 = vpop.permute.xlu1 %13522 }
 0xbcc   : > { %v13544_v7 = vsel %vm13536_vm12, %v24487_v47, %v13523_v15  ;;  %18744 = vmatmul.mubr.msk.f32.vlgmr.msra.gmra.mxu1 %vm999_vm2, %v13548_v1 }
 0xbcd   : > { %13850 = vmatprep.subr.mxu1 %v13544_v7  ;;  %13734 = vmatprep.mubr.f32.mxu1 %v26063_v27 }
 0xbcf   : > { %v24534_v26 = vpop.permute.xlu0 %14862  ;;  %v24536_v48 = vpop.permute.xlu1 %14060 }
 0xbd0   : > { %18745 = vmatmul.mubr.msk.f32.gmra.mxu1 %vm999_vm2, %v13549_v52 }
 0xbd1   : > { %13886 = vmatprep.mubr.f32.mxu1 %v26063_v27 }
 0xbd3   : > { %v24540_v20 = vpop.permute.xlu0 %14866  ;;  %v24542_v35 = vpop.permute.xlu1 %14339 }
 0xbd7   : > { %v13569_v58 = vpop.permute.xlu0 %13568  ;;  %v24544_v61 = vpop.permute.xlu1 %14860 }
 0xbd8   : > { %v13580_v17 = vsel %vm13570_vm11, %v13569_v58, %v13553_v53  ;;  %v13572_v18 = vsel %vm13570_vm11, %v13565_v4, %v13569_v58  ;;  %v13543_v4 = vsel %vm13536_vm12, %v24433_v5, %v24452_v2  ;;  %v13542_v58 = vsel %vm13536_vm12, %v13523_v15, %v24467_v8  ;;  %v13515_v15 = vld [vmem:[#allocation5 + $0x128] sm:$0xff] }
 0xbd9   : > { %13616 = vmatpush1.msra.mxu0 %v13580_v17 }
 0xbda   : > { %13617 = vmatprep.subr.mxu0 %v13577_v25 }
 0xbdb   : > { %v24552_v62 = vpop.permute.xlu0 %14868  ;;  %v13567_v16 = vpop.permute.xlu1 %13566 }
 0xbdc   : > { %v13579_v63 = vsel %vm13570_vm11, %v13567_v16, %v24425_v50  ;;  %v13571_v40 = vsel %vm13570_vm11, %v24423_v24, %v13567_v16  ;;  %v13540_v24 = vsel %vm13536_vm12, %v24467_v8, %v24497_v36  ;;  %v13541_v8 = vsel %vm13536_vm12, %v24452_v2, %v24407_v42 }
 0xbdd   : > { %13618 = vmatpush1.msra.mxu0 %v13579_v63  ;;  %v14078_v16 = vsel %vm14074_vm13, %v24458_v22, %v24510_v0  ;;  %vm15717_vm11 = vcmp.lt.s32.totalorder %v26062_v12, 28 }
 0xbde   : > { %18742 = vmatmul.mubr.msk.f32.vlgmr.msra.gmra.mxu0 %vm999_vm2, %v13548_v1  ;;  %19400 = vmatprep.subr.mxu0 %v13572_v18 }
 0xbdf   : > { %v13535_v53 = vpop.permute.xlu0 %13534  ;;  %19401 = vmatpush3.msra.mxu0 %v13572_v18  ;;  %v24560_v46 = vpop.permute.xlu1 %14878  ;;  %13657 = vmatprep.mubr.f32.mxu0 %v26063_v27 }
 0xbe0   : > { %19402 = vmatprep.subr.mxu0 %v13571_v40  ;;  %v13546_v50 = vsel %vm13536_vm12, %v13535_v53, %v24487_v47  ;;  %v13514_v47 = vld [vmem:[#allocation5 + $0x120] sm:$0xff]  ;;  %v13538_v17 = vsel %vm13536_vm12, %v24497_v36, %v13535_v53  ;;  %v14080_v53 = vsel %vm14074_vm13, %v24536_v48, %v24458_v22 }
 0xbe1   : > { %19403 = vmatpush3.msra.mxu0 %v13571_v40  ;;  %13851 = vmatpush1.msra.mxu1 %v13546_v50  ;;  %v14077_v50 = vsel %vm14074_vm13, %v24417_v21, %v24431_v34 }
 0xbe2   : > { %18743 = vmatmul.mubr.msk.f32.gmra.mxu0 %vm999_vm2, %v13549_v52  ;;  %13852 = vmatprep.subr.mxu1 %v13543_v4  ;;  %v14052_v4 = vld [vmem:[#allocation5 + $0x140] sm:$0xff] }
 0xbe3   : > { %13927 = vmatprep.subr.mxu0 %v13540_v24  ;;  %v24578_v45 = vpop.permute.xlu0 %14874  ;;  %v13533_v41 = vpop.permute.xlu1 %13532  ;;  %19404 = vmatprep.mubr.msk.f32.mxu0 %vm999_vm2, %v13548_v1  ;;  %v14079_v24 = vsel %vm14074_vm13, %v24465_v6, %v24417_v21 }
 0xbe4   : > { %v13545_v7 = vsel %vm13536_vm12, %v13533_v41, %v24433_v5  ;;  %v13539_v5 = vsel %vm13536_vm12, %v24407_v42, %v24439_v13  ;;  %v13537_v36 = vsel %vm13536_vm12, %v24439_v13, %v13533_v41  ;;  %v14360_v41 = vsel %vm14353_vm14, %v24454_v60, %v24471_v59 }
 0xbe5   : > { %13853 = vmatpush1.msra.mxu1 %v13545_v7  ;;  %v14053_v7 = vld [vmem:[#allocation5 + $0x148] sm:$0xff]  ;;  %vm19773_vm12 = vmmov 0  }
 0xbe6   : > { %19405 = vmatmul.mubr.msk.f32.vlgmr.msra.gmra.mxu0 %vm999_vm2, %v13549_v52  ;;  %18748 = vmatmul.mubr.msk.f32.vlgmr.msra.gmra.mxu1 %vm999_vm2, %v13514_v47  ;;  %v14082_v52 = vsel %vm14074_vm13, %v24508_v11, %v24536_v48 }
 0xbe7   : > { %13928 = vmatpush1.msra.mxu0 %v13542_v58  ;;  %19407 = vmatprep.subr.mxu1 %v13538_v17  ;;  %v14073_v1 = vpop.permute.xlu0 %14072  ;;  %v24596_v25 = vpop.permute.xlu1 %15149 }
 0xbe8   : > { %13929 = vmatprep.subr.mxu0 %v13539_v5  ;;  %19408 = vmatpush3.msra.mxu1 %v13538_v17  ;;  %v14084_v42 = vsel %vm14074_vm13, %v14073_v1, %v24508_v11  ;;  %v14081_v11 = vsel %vm14074_vm13, %v24446_v55, %v24465_v6  ;;  %v14076_v21 = vsel %vm14074_vm13, %v24510_v0, %v14073_v1  ;;  %v14331_v17 = vld [vmem:[#allocation5 + $0x150] sm:$0xff] }
 0xbe9   : > { %13930 = vmatpush1.msra.mxu0 %v13541_v8  ;;  %19409 = vmatprep.subr.mxu1 %v13537_v36  ;;  %v14359_v8 = vsel %vm14353_vm14, %v24542_v35, %v24473_v19 }
 0xbea   : > { %13892 = vmatprep.mubr.f32.mxu1 %v26063_v27  ;;  %13963 = vmatprep.mubr.f32.mxu0 %v26063_v27 }
 0xbeb   : > { %19410 = vmatpush3.msra.mxu1 %v13537_v36  ;;  %14119 = vmatprep.subr.mxu0 %v14082_v52  ;;  %v14352_v13 = vpop.permute.xlu0 %14351  ;;  %v24615_v2 = vpop.permute.xlu1 %15153  ;;  %v14356_v36 = vsel %vm14353_vm14, %v24415_v33, %v24460_v37 }
 0xbec   : > { %18749 = vmatmul.mubr.msk.f32.gmra.mxu1 %vm999_vm2, %v13515_v15  ;;  %18750 = vmatmul.mubr.msk.f32.vlgmr.msra.gmra.mxu0 %vm999_vm2, %v13514_v47  ;;  %v14363_v6 = vsel %vm14353_vm14, %v14352_v13, %v24512_v44  ;;  %v14355_v1 = vsel %vm14353_vm14, %v24526_v56, %v14352_v13  ;;  %v14882_v13 = vsel %vm14880_vm15, %v24578_v45, %v24560_v46 }
 0xbed   : > { %14120 = vmatpush1.msra.mxu0 %v14084_v42  ;;  %14196 = vmatprep.subr.mxu1 %v14078_v16 }
 0xbee   : > { %14121 = vmatprep.subr.mxu0 %v14081_v11  ;;  %13969 = vmatprep.mubr.f32.mxu0 %v26063_v27 }
 0xbef   : > { %19411 = vmatprep.mubr.msk.f32.mxu1 %vm999_vm2, %v13514_v47  ;;  %v24629_v63 = vpop.permute.xlu0 %14872  ;;  %v14071_v18 = vpop.permute.xlu1 %14070 }
 0xbf0   : > { %18751 = vmatmul.mubr.msk.f32.gmra.mxu0 %vm999_vm2, %v13515_v15  ;;  %19412 = vmatmul.mubr.msk.f32.vlgmr.msra.gmra.mxu1 %vm999_vm2, %v13515_v15  ;;  %v14083_v40 = vsel %vm14074_vm13, %v14071_v18, %v24446_v55  ;;  %v14361_v55 = vsel %vm14353_vm14, %v24512_v44, %v24542_v35  ;;  %v14075_v47 = vsel %vm14074_vm13, %v24431_v34, %v14071_v18  ;;  %v14332_v35 = vld [vmem:[#allocation5 + $0x158] sm:$0xff] }
 0xbf1   : > { %14197 = vmatpush1.msra.mxu1 %v14080_v53  ;;  %14122 = vmatpush1.msra.mxu0 %v14083_v40  ;;  %v14357_v34 = vsel %vm14353_vm14, %v24473_v19, %v24526_v56  ;;  %v14358_v19 = vsel %vm14353_vm14, %v24471_v59, %v24415_v33  ;;  %v14611_v59 = vld [vmem:[#allocation5 + $0x168] sm:$0xff] }
 0xbf2   : > { %14198 = vmatprep.subr.mxu1 %v14077_v50  ;;  %14155 = vmatprep.mubr.f32.mxu0 %v26063_v27 }
 0xbf3   : > { %14199 = vmatpush1.msra.mxu1 %v14079_v24  ;;  %14232 = vmatprep.mubr.f32.mxu1 %v26063_v27  ;;  %v24655_v22 = vpop.permute.xlu0 %15145  ;;  %v24657_v48 = vpop.permute.xlu1 %15143 }
 0xbf4   : > { %14398 = vmatprep.subr.mxu1 %v14361_v55  ;;  %18754 = vmatmul.mubr.msk.f32.vlgmr.msra.gmra.mxu0 %vm999_vm2, %v14052_v4 }
 0xbf5   : > { %18756 = vmatmul.mubr.msk.f32.vlgmr.msra.gmra.mxu1 %vm999_vm2, %v14052_v4  ;;  %19414 = vmatprep.subr.mxu0 %v14076_v21 }
 0xbf6   : > { %14399 = vmatpush1.msra.mxu1 %v14363_v6  ;;  %19415 = vmatpush3.msra.mxu0 %v14076_v21  ;;  %v15137_v6 = vld [vmem:[#allocation5 + $0x180] sm:$0xff] }
 0xbf7   : > { %14400 = vmatprep.subr.mxu1 %v14360_v41  ;;  %19416 = vmatprep.subr.mxu0 %v14075_v47  ;;  %v24674_v0 = vpop.permute.xlu0 %15141  ;;  %v14350_v58 = vpop.permute.xlu1 %14349 }
 0xbf8   : > { %14161 = vmatprep.mubr.f32.mxu0 %v26063_v27  ;;  %14238 = vmatprep.mubr.f32.mxu1 %v26063_v27  ;;  %v14362_v44 = vsel %vm14353_vm14, %v14350_v58, %v24454_v60  ;;  %v14354_v56 = vsel %vm14353_vm14, %v24460_v37, %v14350_v58  ;;  %v15138_v58 = vld [vmem:[#allocation5 + $0x188] sm:$0xff] }
 0xbf9   : > { %19417 = vmatpush3.msra.mxu0 %v14075_v47  ;;  %18757 = vmatmul.mubr.msk.f32.gmra.mxu1 %vm999_vm2, %v14053_v7 }
 0xbfa   : > { %18755 = vmatmul.mubr.msk.f32.gmra.mxu0 %vm999_vm2, %v14053_v7  ;;  %14475 = vmatprep.subr.mxu0 %v14357_v34 }
 0xbfb   : > { %19418 = vmatprep.mubr.msk.f32.mxu0 %vm999_vm2, %v14052_v4  ;;  %14401 = vmatpush1.msra.mxu1 %v14362_v44  ;;  %v24691_v60 = vpop.permute.xlu0 %15157  ;;  %v24693_v5 = vpop.permute.xlu1 %15139 }
 0xbfc   : > { %14434 = vmatprep.mubr.f32.mxu1 %v26063_v27  ;;  %19421 = vmatprep.subr.mxu1 %v14355_v1  ;;  %v15161_v50 = vsel %vm15159_vm0, %v24615_v2, %v24691_v60  ;;  %v15166_v55 = vsel %vm15159_vm0, %v24693_v5, %v24657_v48 }
 0xbfd   : > { %18760 = vmatmul.mubr.msk.f32.vlgmr.msra.gmra.mxu1 %vm999_vm2, %v14331_v17 }
 0xbfe   : > { %19419 = vmatmul.mubr.msk.f32.vlgmr.msra.gmra.mxu0 %vm999_vm2, %v14053_v7  ;;  %19422 = vmatpush3.msra.mxu1 %v14355_v1 }
 0xbff   : > { %14476 = vmatpush1.msra.mxu0 %v14359_v8  ;;  %19423 = vmatprep.subr.mxu1 %v14354_v56  ;;  %v24709_v15 = vpop.permute.xlu0 %15147  ;;  %v24711_v52 = vpop.permute.xlu1 %15428  ;;  %v15416_v8 = vld [vmem:[#allocation5 + $0x190] sm:$0xff] }
 0xc00   : > { %14477 = vmatprep.subr.mxu0 %v14356_v36  ;;  %14440 = vmatprep.mubr.f32.mxu1 %v26063_v27  ;;  %v15164_v24 = vsel %vm15159_vm0, %v24657_v48, %v24709_v15  ;;  %v15163_v48 = vsel %vm15159_vm0, %v24596_v25, %v24615_v2 }
 0xc01   : > { %14478 = vmatpush1.msra.mxu0 %v14358_v19  ;;  %14511 = vmatprep.mubr.f32.mxu0 %v26063_v27 }
 0xc02   : > { %19424 = vmatpush3.msra.mxu1 %v14354_v56  ;;  %14646 = vmatprep.subr.mxu0 %v24335_v3 }
 0xc03   : > { %18761 = vmatmul.mubr.msk.f32.gmra.mxu1 %vm999_vm2, %v14332_v35  ;;  %18762 = vmatmul.mubr.msk.f32.vlgmr.msra.gmra.mxu0 %vm999_vm2, %v14331_v17  ;;  %v24722_v37 = vpop.permute.xlu0 %15151  ;;  %v24724_v42 = vpop.permute.xlu1 %15422 }
 0xc04   : > { %14647 = vmatpush1.msra.mxu0 %v24310_v39  ;;  %14723 = vmatprep.subr.mxu1 %v24324_v57  ;;  %v15162_v7 = vsel %vm15159_vm0, %v24709_v15, %v24722_v37 }
 0xc05   : > { %14648 = vmatprep.subr.mxu0 %v24277_v38  ;;  %14517 = vmatprep.mubr.f32.mxu0 %v26063_v27  ;;  %v14610_v38 = vld [vmem:[#allocation5 + $0x160] sm:$0xff] }
 0xc06   : > { %14649 = vmatpush1.msra.mxu0 %v24252_v54  ;;  %19425 = vmatprep.mubr.msk.f32.mxu1 %vm999_vm2, %v14331_v17  ;;  %v14886_v54 = vsel %vm14880_vm15, %v24540_v20, %v24477_v14 }
 0xc07   : > { %19428 = vmatprep.subr.mxu0 %v24358_v49  ;;  %18763 = vmatmul.mubr.msk.f32.gmra.mxu0 %vm999_vm2, %v14332_v35  ;;  %v24734_v3 = vpop.permute.xlu0 %15424  ;;  %v24736_v33 = vpop.permute.xlu1 %15418 }
 0xc08   : > { %19426 = vmatmul.mubr.msk.f32.vlgmr.msra.gmra.mxu1 %vm999_vm2, %v14332_v35  ;;  %14682 = vmatprep.mubr.f32.mxu0 %v26063_v27  ;;  %v15444_v2 = vsel %vm15438_vm10, %v24734_v3, %v24711_v52 }
 0xc09   : > { %14724 = vmatpush1.msra.mxu1 %v24268_v10  ;;  %14759 = vmatprep.mubr.f32.mxu1 %v26063_v27  ;;  %v14887_v10 = vsel %vm14880_vm15, %v24544_v61, %v24489_v51 }
 0xc0a   : > { %14725 = vmatprep.subr.mxu1 %v24255_v28  ;;  %v14888_v28 = vsel %vm14880_vm15, %v24534_v26, %v24540_v20 }
 0xc0b   : > { %14726 = vmatpush1.msra.mxu1 %v24236_v29  ;;  %18766 = vmatmul.mubr.msk.f32.vlgmr.msra.gmra.mxu0 %vm999_vm2, %v14610_v38  ;;  %v24750_v39 = vpop.permute.xlu0 %15420  ;;  %v14877_v57 = vpop.permute.xlu1 %14876  ;;  %v14885_v29 = vsel %vm14880_vm15, %v24489_v51, %v24552_v62  ;;  %v14858_v51 = vld [vmem:[#allocation5 + $0x170] sm:$0xff] }
 0xc0c   : > { %14925 = vmatprep.subr.mxu1 %v14886_v54  ;;  %18768 = vmatmul.mubr.msk.f32.vlgmr.msra.gmra.mxu1 %vm999_vm2, %v14610_v38  ;;  %v14889_v18 = vsel %vm14880_vm15, %v14877_v57, %v24544_v61  ;;  %v15165_v61 = vsel %vm15159_vm0, %v24655_v22, %v24596_v25 }
 0xc0d   : > { %19429 = vmatpush3.msra.mxu0 %v24358_v49  ;;  %14926 = vmatpush1.msra.mxu1 %v14888_v28 }
 0xc0e   : > { %19430 = vmatprep.subr.mxu0 %v24365_v9  ;;  %14927 = vmatprep.subr.mxu1 %v14885_v29 }
 0xc0f   : > { %19431 = vmatpush3.msra.mxu0 %v24365_v9  ;;  %14928 = vmatpush1.msra.mxu1 %v14887_v10  ;;  %v24768_v20 = vpop.permute.xlu0 %15426  ;;  %v24770_v49 = vpop.permute.xlu1 %15436  ;;  %v14890_v9 = vsel %vm14880_vm15, %v24560_v46, %v24534_v26  ;;  %v14884_v26 = vsel %vm14880_vm15, %v24477_v14, %v24578_v45  ;;  %v14881_v46 = vsel %vm14880_vm15, %v24629_v63, %v14877_v57  ;;  %v14859_v45 = vld [vmem:[#allocation5 + $0x178] sm:$0xff] }
 0xc10   : > { %14688 = vmatprep.mubr.f32.mxu0 %v26063_v27  ;;  %14765 = vmatprep.mubr.f32.mxu1 %v26063_v27  ;;  %v14883_v14 = vsel %vm14880_vm15, %v24552_v62, %v24629_v63  ;;  %v15167_v62 = vsel %vm15159_vm0, %v24674_v0, %v24655_v22  ;;  %v15169_v22 = vsel %vm15159_vm0, %v24691_v60, %v24674_v0 }
 0xc11   : > { %15002 = vmatprep.subr.mxu0 %v14882_v13  ;;  %19435 = vmatprep.subr.mxu1 %v14890_v9  ;;  %v15446_v0 = vsel %vm15438_vm10, %v24750_v39, %v24734_v3  ;;  %v15443_v44 = vsel %vm15438_vm10, %v24724_v42, %v24768_v20  ;;  %v15445_v60 = vsel %vm15438_vm10, %v24736_v33, %v24724_v42  ;;  %v15417_v3 = vld [vmem:[#allocation5 + $0x198] sm:$0xff]  ;;  %v15696_v13 = vld [vmem:[#allocation5 + $0x1a8] sm:$0xff] }
 0xc12   : > { %18767 = vmatmul.mubr.msk.f32.gmra.mxu0 %vm999_vm2, %v14611_v59  ;;  %18769 = vmatmul.mubr.msk.f32.gmra.mxu1 %vm999_vm2, %v14611_v59 }
 0xc13   : > { %19432 = vmatprep.mubr.msk.f32.mxu0 %vm999_vm2, %v14610_v38  ;;  %14961 = vmatprep.mubr.f32.mxu1 %v26063_v27  ;;  %v24786_v16 = vpop.permute.xlu0 %15432  ;;  %v24788_v11 = vpop.permute.xlu1 %15707 }
 0xc14   : > { %v15440_v34 = vsel %vm15438_vm10, %v24786_v16, %v24770_v49  ;;  %v15442_v56 = vsel %vm15438_vm10, %v24711_v52, %v24786_v16 }
 0xc16   : > { %19433 = vmatmul.mubr.msk.f32.vlgmr.msra.gmra.mxu0 %vm999_vm2, %v14611_v59  ;;  %18772 = vmatmul.mubr.msk.f32.vlgmr.msra.gmra.mxu1 %vm999_vm2, %v14858_v51 }
 0xc17   : > { %15003 = vmatpush1.msra.mxu0 %v14884_v26  ;;  %19436 = vmatpush3.msra.mxu1 %v14890_v9  ;;  %v24802_v53 = vpop.permute.xlu0 %15430  ;;  %v15156_v40 = vpop.permute.xlu1 %15155 }
 0xc18   : > { %15004 = vmatprep.subr.mxu0 %v14881_v46  ;;  %19437 = vmatprep.subr.mxu1 %v14889_v18  ;;  %v15160_v21 = vsel %vm15159_vm0, %v24722_v37, %v15156_v40  ;;  %v15168_v25 = vsel %vm15159_vm0, %v15156_v40, %v24693_v5  ;;  %v15448_v5 = vsel %vm15438_vm10, %v24770_v49, %v24750_v39 }
 0xc19   : > { %15005 = vmatpush1.msra.mxu0 %v14883_v14  ;;  %19438 = vmatpush3.msra.mxu1 %v14889_v18  ;;  %v15441_v35 = vsel %vm15438_vm10, %v24768_v20, %v24802_v53  ;;  %v15695_v20 = vld [vmem:[#allocation5 + $0x1a0] sm:$0xff] }
 0xc1a   : > { %14967 = vmatprep.mubr.f32.mxu1 %v26063_v27  ;;  %15038 = vmatprep.mubr.f32.mxu0 %v26063_v27 }
 0xc1b   : > { %15204 = vmatprep.subr.mxu0 %v15165_v61  ;;  %15281 = vmatprep.subr.mxu1 %v15161_v50  ;;  %v24825_v63 = vpop.permute.xlu0 %15703  ;;  %v24827_v4 = vpop.permute.xlu1 %15711 }
 0xc1c   : > { %18773 = vmatmul.mubr.msk.f32.gmra.mxu1 %vm999_vm2, %v14859_v45  ;;  %18774 = vmatmul.mubr.msk.f32.vlgmr.msra.gmra.mxu0 %vm999_vm2, %v14858_v51  ;;  %v15723_v37 = vsel %vm15717_vm11, %v24825_v63, %v24788_v11  ;;  %v15721_v10 = vsel %vm15717_vm11, %v24788_v11, %v24827_v4 }
 0xc1d   : > { %15205 = vmatpush1.msra.mxu0 %v15167_v62  ;;  %15044 = vmatprep.mubr.f32.mxu0 %v26063_v27 }
 0xc1e   : > { %15206 = vmatprep.subr.mxu0 %v15164_v24  ;;  %19439 = vmatprep.mubr.msk.f32.mxu1 %vm999_vm2, %v14858_v51 }
 0xc1f   : > { %15207 = vmatpush1.msra.mxu0 %v15166_v55  ;;  %v24855_v41 = vpop.permute.xlu0 %15699  ;;  %v15435_v47 = vpop.permute.xlu1 %15434 }
 0xc20   : > { %19442 = vmatprep.subr.mxu0 %v15169_v22  ;;  %18775 = vmatmul.mubr.msk.f32.gmra.mxu0 %vm999_vm2, %v14859_v45  ;;  %v15439_v36 = vsel %vm15438_vm10, %v24802_v53, %v15435_v47  ;;  %v15447_v52 = vsel %vm15438_vm10, %v15435_v47, %v24736_v33  ;;  %v15725_v33 = vsel %vm15717_vm11, %v24855_v41, %v24825_v63 }
 0xc21   : > { %19440 = vmatmul.mubr.msk.f32.vlgmr.msra.gmra.mxu1 %vm999_vm2, %v14859_v45  ;;  %15240 = vmatprep.mubr.f32.mxu0 %v26063_v27 }
 0xc22   : > { %15282 = vmatpush1.msra.mxu1 %v15163_v48  ;;  %15317 = vmatprep.mubr.f32.mxu1 %v26063_v27 }
 0xc23   : > { %15283 = vmatprep.subr.mxu1 %v15160_v21  ;;  %v15716_v17 = vpop.permute.xlu0 %15715  ;;  %v15702_v1 = vpop.permute.xlu1 %15701 }
 0xc24   : > { %18778 = vmatmul.mubr.msk.f32.vlgmr.msra.gmra.mxu0 %vm999_vm2, %v15137_v6  ;;  %15284 = vmatpush1.msra.mxu1 %v15162_v7  ;;  %v15719_v42 = vsel %vm15717_vm11, %v24827_v4, %v15716_v17  ;;  %v15727_v28 = vsel %vm15717_vm11, %v15716_v17, %v24855_v41 }
 0xc25   : > { %19443 = vmatpush3.msra.mxu0 %v15169_v22  ;;  %18780 = vmatmul.mubr.msk.f32.vlgmr.msra.gmra.mxu1 %vm999_vm2, %v15137_v6 }
 0xc26   : > { %19444 = vmatprep.subr.mxu0 %v15168_v25  ;;  %15483 = vmatprep.subr.mxu1 %v15444_v2 }
 0xc27   : > { %19445 = vmatpush3.msra.mxu0 %v15168_v25  ;;  %15484 = vmatpush1.msra.mxu1 %v15446_v0  ;;  %v15706_v15 = vpop.permute.xlu0 %15705  ;;  %v15698_v19 = vpop.permute.xlu1 %15697 }
 0xc28   : > { %15246 = vmatprep.mubr.f32.mxu0 %v26063_v27  ;;  %15485 = vmatprep.subr.mxu1 %v15443_v44  ;;  %v15722_v38 = vsel %vm15717_vm11, %v15702_v1, %v15706_v15  ;;  %v15724_v54 = vsel %vm15717_vm11, %v15698_v19, %v15702_v1 }
 0xc29   : > { %15560 = vmatprep.subr.mxu0 %v15440_v34  ;;  %18779 = vmatmul.mubr.msk.f32.gmra.mxu0 %vm999_vm2, %v15138_v58 }
 0xc2a   : > { %15323 = vmatprep.mubr.f32.mxu1 %v26063_v27  ;;  %15486 = vmatpush1.msra.mxu1 %v15445_v60 }
 0xc2b   : > { %18781 = vmatmul.mubr.msk.f32.gmra.mxu1 %vm999_vm2, %v15138_v58  ;;  %19449 = vmatprep.subr.mxu1 %v15448_v5  ;;  %v15710_v39 = vpop.permute.xlu0 %15709  ;;  %v15714_v57 = vpop.permute.xlu1 %15713 }
 0xc2c   : > { %19446 = vmatprep.mubr.msk.f32.mxu0 %vm999_vm2, %v15137_v6  ;;  %15519 = vmatprep.mubr.f32.mxu1 %v26063_v27  ;;  %v15718_v29 = vsel %vm15717_vm11, %v15710_v39, %v15714_v57  ;;  %v15720_v59 = vsel %vm15717_vm11, %v15706_v15, %v15710_v39  ;;  %v15726_v49 = vsel %vm15717_vm11, %v15714_v57, %v15698_v19 }
 0xc2d   : > { %19447 = vmatmul.mubr.msk.f32.vlgmr.msra.gmra.mxu0 %vm999_vm2, %v15138_v58 }
 0xc2e   : > { %15561 = vmatpush1.msra.mxu0 %v15442_v56  ;;  %15596 = vmatprep.mubr.f32.mxu0 %v26063_v27 }
 0xc2f   : > { %18784 = vmatmul.mubr.msk.f32.vlgmr.msra.gmra.mxu1 %vm999_vm2, %v15416_v8  ;;  %15562 = vmatprep.subr.mxu0 %v15439_v36 }
 0xc30   : > { %19450 = vmatpush3.msra.mxu1 %v15448_v5  ;;  %15563 = vmatpush1.msra.mxu0 %v15441_v35 }
 0xc31   : > { %19451 = vmatprep.subr.mxu1 %v15447_v52  ;;  %15762 = vmatprep.subr.mxu0 %v15723_v37 }
 0xc32   : > { %19452 = vmatpush3.msra.mxu1 %v15447_v52  ;;  %15525 = vmatprep.mubr.f32.mxu1 %v26063_v27 }
 0xc33   : > { %18786 = vmatmul.mubr.msk.f32.vlgmr.msra.gmra.mxu0 %vm999_vm2, %v15416_v8  ;;  %15839 = vmatprep.subr.mxu1 %v15719_v42 }
 0xc34   : > { %15763 = vmatpush1.msra.mxu0 %v15725_v33  ;;  %18785 = vmatmul.mubr.msk.f32.gmra.mxu1 %vm999_vm2, %v15417_v3 }
 0xc35   : > { %15602 = vmatprep.mubr.f32.mxu0 %v26063_v27  ;;  %15764 = vmatprep.subr.mxu0 %v15722_v38 }
 0xc36   : > { %19453 = vmatprep.mubr.msk.f32.mxu1 %vm999_vm2, %v15416_v8  ;;  %15765 = vmatpush1.msra.mxu0 %v15724_v54 }
 0xc37   : > { %18787 = vmatmul.mubr.msk.f32.gmra.mxu0 %vm999_vm2, %v15417_v3  ;;  %19456 = vmatprep.subr.mxu0 %v15727_v28 }
 0xc38   : > { %19454 = vmatmul.mubr.msk.f32.vlgmr.msra.gmra.mxu1 %vm999_vm2, %v15417_v3  ;;  %15798 = vmatprep.mubr.f32.mxu0 %v26063_v27 }
 0xc39   : > { %15840 = vmatpush1.msra.mxu1 %v15721_v10  ;;  %15875 = vmatprep.mubr.f32.mxu1 %v26063_v27 }
 0xc3a   : > { %15841 = vmatprep.subr.mxu1 %v15718_v29 }
 0xc3b   : > { %18790 = vmatmul.mubr.msk.f32.vlgmr.msra.gmra.mxu0 %vm999_vm2, %v15695_v20  ;;  %15842 = vmatpush1.msra.mxu1 %v15720_v59 }
 0xc3c   : > { %19457 = vmatpush3.msra.mxu0 %v15727_v28  ;;  %18792 = vmatmul.mubr.msk.f32.vlgmr.msra.gmra.mxu1 %vm999_vm2, %v15695_v20 }
 0xc3d   : > { %19458 = vmatprep.subr.mxu0 %v15726_v49  ;;  %15804 = vmatprep.mubr.f32.mxu0 %v26063_v27 }
 0xc3e   : > { %19459 = vmatpush3.msra.mxu0 %v15726_v49  ;;  %15881 = vmatprep.mubr.f32.mxu1 %v26063_v27 }
 0xc3f   : > { %18791 = vmatmul.mubr.msk.f32.gmra.mxu0 %vm999_vm2, %v15696_v13 }
 0xc40   : > { %18793 = vmatmul.mubr.msk.f32.gmra.mxu1 %vm999_vm2, %v15696_v13  ;;  %19460 = vmatprep.mubr.msk.f32.mxu0 %vm999_vm2, %v15695_v20 }
 0xc41   : > { %16188 = vmatprep.mubr.f32.mxu1 %v26063_v27 }
 0xc43   : > { %19461 = vmatmul.mubr.msk.f32.vlgmr.msra.gmra.mxu0 %vm999_vm2, %v15696_v13 }
 0xc44   : > { %16259 = vmatprep.mubr.f32.mxu0 %v26063_v27 }
 0xc8c   : > { %v24961_v9 = vpop.f32.mrf.mxu1 }
 0xc8e   : > { %v24963_v51 = vpop.f32.mrf.mxu1 }
 0xc90   : > { %v13736_v11 = vpop.f32.mrf.mxu1 }
 0xc92   : > { %v13738_v18 = vpop.f32.mrf.mxu1 }
 0xc9e   : > { %v13653_v16 = vpop.f32.mrf.mxu0 }
 0xca0   : > { %v13655_v26 = vpop.f32.mrf.mxu0 }
 0xca2   : > { %v13659_v46 = vpop.f32.mrf.mxu0 }
 0xca4   : > { %v13661_v53 = vpop.f32.mrf.mxu0 }
 0xca6   : > { %v19406_v40 = vpop.f32.mrf.mxu0  ;;  %v13888_v14 = vpop.f32.mrf.mxu1 }
 0xca7   : > { %v24965_v45 = vadd.f32 %v13888_v14, %v13653_v16 }
 0xca8   : > { %v13807_v61 = vpop.f32.mrf.mxu0  ;;  %v13890_v50 = vpop.f32.mrf.mxu1 }
 0xca9   : > { %v13891_v62 = vadd.f32 %v13890_v50, %v13655_v26 }
 0xcac   : > { %v13894_v63 = vpop.f32.mrf.mxu1  ;;  %v24967_v4 = vpop.f32.mrf.mxu0 }
 0xcad   : > { %v13895_v24 = vadd.f32 %v13894_v63, %v13659_v46 }
 0xcae   : > { %v13896_v55 = vpop.f32.mrf.mxu1  ;;  %v24969_v22 = vpop.f32.mrf.mxu0 }
 0xcaf   : > { %v13897_v21 = vadd.f32 %v13896_v55, %v13661_v53 }
 0xcb0   : > { %v13971_v48 = vpop.f32.mrf.mxu0  ;;  %v19413_v6 = vpop.f32.mrf.mxu1 }
 0xcb1   : > { %v13972_v41 = vadd.f32 %v13971_v48, %v13736_v11  ;;  %v14048_v47 = vadd.f32 %v19413_v6, %v19406_v40 }
 0xcb2   : > { %v13973_v7 = vpop.f32.mrf.mxu0  ;;  %v14042_v25 = vpop.f32.mrf.mxu1 }
 0xcb3   : > { %v13974_v2 = vadd.f32 %v13973_v7, %v13738_v18  ;;  %v14043_v0 = vadd.f32 %v14042_v25, %v13807_v61 }
 0xcb4   : > { %v24971_v58 = vpop.f32.mrf.mxu0 }
 0xcb5   : > { %v24973_v44 = vpop.f32.mrf.mxu1 }
 0xcb6   : > { %v14159_v34 = vpop.f32.mrf.mxu0 }
 0xcb7   : > { %v14321_v17 = vadd.f32 %v14159_v34, %v13891_v62  ;;  %v24975_v1 = vpop.f32.mrf.mxu1 }
 0xcb9   : > { %v14240_v60 = vpop.f32.mrf.mxu1 }
 0xcba   : > { %v14163_v5 = vpop.f32.mrf.mxu0  ;;  %v24977_v8 = vadd.f32 %v14240_v60, %v13972_v41 }
 0xcbb   : > { %v14325_v56 = vadd.f32 %v14163_v5, %v13895_v24  ;;  %v14242_v36 = vpop.f32.mrf.mxu1 }
 0xcbc   : > { %v14165_v15 = vpop.f32.mrf.mxu0  ;;  %v14328_v19 = vadd.f32 %v14242_v36, %v13974_v2 }
 0xcbd   : > { %v14326_v35 = vadd.f32 %v14165_v15, %v13897_v21  ;;  %v24979_v52 = vpop.f32.mrf.mxu1 }
 0xcbe   : > { %v19420_v37 = vpop.f32.mrf.mxu0 }
 0xcbf   : > { %v14329_v42 = vadd.f32 %v19420_v37, %v14048_v47  ;;  %v14438_v3 = vpop.f32.mrf.mxu1 }
 0xcc0   : > { %v14311_v38 = vpop.f32.mrf.mxu0  ;;  %v24981_v33 = vadd.f32 %v14438_v3, %v14321_v17 }
 0xcc1   : > { %v14324_v54 = vadd.f32 %v14311_v38, %v14043_v0 }
 0xcc3   : > { %v14442_v39 = vpop.f32.mrf.mxu1  ;;  %v24983_v57 = vpop.f32.mrf.mxu0 }
 0xcc4   : > { %v14604_v28 = vadd.f32 %v14442_v39, %v14325_v56 }
 0xcc5   : > { %v14444_v29 = vpop.f32.mrf.mxu1  ;;  %v24985_v10 = vpop.f32.mrf.mxu0 }
 0xcc6   : > { %v14605_v59 = vadd.f32 %v14444_v29, %v14326_v35 }
 0xcc7   : > { %v24987_v20 = vpop.f32.mrf.mxu0 }
 0xcc8   : > { %v19427_v49 = vpop.f32.mrf.mxu1 }
 0xcc9   : > { %v14608_v13 = vadd.f32 %v19427_v49, %v14329_v42  ;;  %v14521_v16 = vpop.f32.mrf.mxu0 }
 0xcca   : > { %v14607_v11 = vadd.f32 %v14521_v16, %v14328_v19  ;;  %v14590_v26 = vpop.f32.mrf.mxu1 }
 0xccb   : > { %v14603_v46 = vadd.f32 %v14590_v26, %v14324_v54  ;;  %v14684_v18 = vpop.f32.mrf.mxu0 }
 0xccc   : > { %v14761_v53 = vpop.f32.mrf.mxu1 }
 0xccd   : > { %v24989_v40 = vpop.f32.mrf.mxu0 }
 0xcce   : > { %v24991_v14 = vpop.f32.mrf.mxu1 }
 0xcd2   : > { %v14690_v61 = vpop.f32.mrf.mxu0  ;;  %v24993_v50 = vpop.f32.mrf.mxu1 }
 0xcd3   : > { %v14852_v62 = vadd.f32 %v14690_v61, %v14604_v28  ;;  %v13966_v61 = vadd.f32 %v24967_v4, %v24961_v9  ;;  %v13968_v9 = vadd.f32 %v24969_v22, %v24963_v51 }
 0xcd4   : > { %v14692_v63 = vpop.f32.mrf.mxu0  ;;  %v14769_v24 = vpop.f32.mrf.mxu1 }
 0xcd5   : > { %v14853_v55 = vadd.f32 %v14692_v63, %v14605_v59  ;;  %v14855_v21 = vadd.f32 %v14769_v24, %v14607_v11  ;;  %v14320_v24 = vadd.f32 %v24971_v58, %v24965_v45  ;;  %v25018_v45 = vpop.permute.xlu1 %15975 }
 0xcd6   : > { %v19434_v48 = vpop.f32.mrf.mxu0  ;;  %v14963_v6 = vpop.f32.mrf.mxu1 }
 0xcd7   : > { %v14856_v41 = vadd.f32 %v19434_v48, %v14608_v13 }
 0xcd8   : > { %v14838_v47 = vpop.f32.mrf.mxu0  ;;  %v24995_v7 = vpop.f32.mrf.mxu1 }
 0xcd9   : > { %v14851_v25 = vadd.f32 %v14838_v47, %v14603_v46 }
 0xcdc   : > { %v14969_v2 = vpop.f32.mrf.mxu1  ;;  %v15040_v0 = vpop.f32.mrf.mxu0 }
 0xcdd   : > { %v15131_v34 = vadd.f32 %v14969_v2, %v14852_v62 }
 0xcde   : > { %v14971_v17 = vpop.f32.mrf.mxu1  ;;  %v15042_v60 = vpop.f32.mrf.mxu0 }
 0xcdf   : > { %v15132_v5 = vadd.f32 %v14971_v17, %v14853_v55 }
 0xce0   : > { %v24997_v56 = vpop.f32.mrf.mxu0 }
 0xce1   : > { %v19441_v36 = vpop.f32.mrf.mxu1 }
 0xce2   : > { %v15135_v15 = vadd.f32 %v19441_v36, %v14856_v41  ;;  %v15048_v19 = vpop.f32.mrf.mxu0  ;;  %v14599_v41 = vadd.f32 %v24979_v52, %v14320_v24  ;;  %v14323_v36 = vadd.f32 %v24975_v1, %v13968_v9 }
 0xce3   : > { %v15134_v35 = vadd.f32 %v15048_v19, %v14855_v21  ;;  %v15117_v37 = vpop.f32.mrf.mxu1  ;;  %v14322_v21 = vadd.f32 %v24973_v44, %v13966_v61 }
 0xce4   : > { %v15130_v42 = vadd.f32 %v15117_v37, %v14851_v25  ;;  %v15242_v3 = vpop.f32.mrf.mxu0  ;;  %v14847_v2 = vadd.f32 %v14684_v18, %v14599_v41 }
 0xce5   : > { %v15319_v38 = vpop.f32.mrf.mxu1  ;;  %v14601_v47 = vadd.f32 %v24983_v57, %v14322_v21 }
 0xce6   : > { %v24999_v54 = vpop.f32.mrf.mxu0  ;;  %v15126_v58 = vadd.f32 %v14963_v6, %v14847_v2 }
 0xce7   : > { %v15321_v39 = vpop.f32.mrf.mxu1  ;;  %v14849_v4 = vadd.f32 %v14761_v53, %v14601_v47 }
 0xce8   : > { %v15405_v19 = vadd.f32 %v15242_v3, %v15126_v58 }
 0xce9   : > { %v15248_v28 = vpop.f32.mrf.mxu0 }
 0xcea   : > { %v15410_v29 = vadd.f32 %v15248_v28, %v15131_v34 }
 0xceb   : > { %v25001_v59 = vpop.f32.mrf.mxu1  ;;  %v15250_v49 = vpop.f32.mrf.mxu0 }
 0xcec   : > { %v15411_v13 = vadd.f32 %v15250_v49, %v15132_v5 }
 0xced   : > { %v15327_v16 = vpop.f32.mrf.mxu1  ;;  %v19448_v11 = vpop.f32.mrf.mxu0 }
 0xcee   : > { %v25003_v26 = vadd.f32 %v15327_v16, %v15134_v35  ;;  %v15414_v46 = vadd.f32 %v19448_v11, %v15135_v15  ;;  %v15128_v15 = vadd.f32 %v15040_v0, %v14849_v4  ;;  %v14602_v35 = vadd.f32 %v24985_v10, %v14323_v36  ;;  %v25031_v0 = vpop.permute.xlu1 %15999 }
 0xcef   : > { %v15521_v62 = vpop.f32.mrf.mxu1  ;;  %v15396_v63 = vpop.f32.mrf.mxu0 }
 0xcf0   : > { %v15409_v55 = vadd.f32 %v15396_v63, %v15130_v42  ;;  %v15407_v37 = vadd.f32 %v15319_v38, %v15128_v15  ;;  %v15684_v53 = vadd.f32 %v15521_v62, %v15405_v19  ;;  %v14850_v6 = vadd.f32 %v24991_v14, %v14602_v35 }
 0xcf1   : > { %v25010_v48 = vpop.f32.mrf.mxu1 }
 0xcf2   : > { %v25036_v14 = vpop.permute.xlu1 %16019 }
 0xcf3   : > { %v15598_v25 = vpop.f32.mrf.mxu0 }
 0xcf4   : > { %v15527_v34 = vpop.f32.mrf.mxu1  ;;  %v15686_v28 = vadd.f32 %v15598_v25, %v15407_v37 }
 0xcf5   : > { %v25016_v17 = vadd.f32 %v15527_v34, %v15410_v29  ;;  %v15600_v5 = vpop.f32.mrf.mxu0 }
 0xcf6   : > { %v15529_v44 = vpop.f32.mrf.mxu1 }
 0xcf7   : > { %v25021_v52 = vadd.f32 %v15529_v44, %v15411_v13  ;;  %v15604_v57 = vpop.f32.mrf.mxu0  ;;  %v15129_v13 = vadd.f32 %v15042_v60, %v14850_v6  ;;  %v14606_v60 = vadd.f32 %v24987_v20, %v24977_v8  ;;  %v14848_v8 = vadd.f32 %v24989_v40, %v24981_v33 }
 0xcf8   : > { %v19455_v18 = vpop.f32.mrf.mxu1 }
 0xcf9   : > { %v25024_v51 = vadd.f32 %v19455_v18, %v15414_v46  ;;  %v25026_v22 = vpop.f32.mrf.mxu0  ;;  %v15408_v10 = vadd.f32 %v15321_v39, %v15129_v13  ;;  %v14854_v39 = vadd.f32 %v24993_v50, %v14606_v60  ;;  %v15127_v4 = vadd.f32 %v24995_v7, %v14848_v8 }
 0xcfa   : > { %v15675_v42 = vpop.f32.mrf.mxu1 }
 0xcfb   : > { %v25029_v29 = vadd.f32 %v15675_v42, %v15409_v55  ;;  %v15800_v1 = vpop.f32.mrf.mxu0  ;;  %v15687_v61 = vadd.f32 %v15600_v5, %v15408_v10  ;;  %v15133_v2 = vadd.f32 %v24997_v56, %v14854_v39  ;;  %v25062_v56 = vpop.permute.xlu0 %15980  ;;  %v15406_v58 = vadd.f32 %v24999_v54, %v15127_v4 }
 0xcfc   : > { %v15963_v49 = vadd.f32 %v15800_v1, %v15684_v53  ;;  %v15877_v3 = vpop.f32.mrf.mxu1 }
 0xcfd   : > { %v15965_v16 = vadd.f32 %v15877_v3, %v15686_v28  ;;  %v15412_v20 = vadd.f32 %v25001_v59, %v15133_v2  ;;  %v15802_v44 = vpop.f32.mrf.mxu0  ;;  %v15685_v7 = vadd.f32 %v25010_v48, %v15406_v58 }
 0xcfe   : > { %v15983_v38 = vadd.f32 %v25018_v45, %v15963_v49  ;;  %v15879_v46 = vpop.f32.mrf.mxu1 }
 0xcff   : > { %v15985_v11 = vadd.f32 %v25018_v45, %v15965_v16  ;;  %v15966_v55 = vadd.f32 %v15879_v46, %v15687_v61  ;;  %v15691_v5 = vadd.f32 %v15604_v57, %v15412_v20  ;;  %v15964_v36 = vadd.f32 %v15802_v44, %v15685_v7  ;;  %v25075_v54 = vpop.permute.xlu0 %16004  ;;  %v15806_v3 = vpop.f32.mrf.mxu0 }
 0xd00   : > { %v16007_v63 = vmul.f32 %v25031_v0, %v15983_v38  ;;  %v15883_v9 = vpop.f32.mrf.mxu1  ;;  %v15692_v16 = vadd.f32 %v25026_v22, %v25003_v26 }
 0xd01   : > { %v16009_v62 = vmul.f32 %v25031_v0, %v15985_v11  ;;  %v15986_v25 = vadd.f32 %v25018_v45, %v15966_v55  ;;  %v15970_v59 = vadd.f32 %v15883_v9, %v15691_v5  ;;  %v15984_v48 = vadd.f32 %v25018_v45, %v15964_v36 }
 0xd02   : > { %v16027_v41 = vadd.f32 %v25036_v14, %v16007_v63  ;;  %v15885_v13 = vpop.f32.mrf.mxu1 }
 0xd03   : > { %v16029_v24 = vadd.f32 %v25036_v14, %v16009_v62  ;;  %v16010_v34 = vmul.f32 %v25031_v0, %v15986_v25  ;;  %v15990_v57 = vadd.f32 %v25062_v56, %v15970_v59  ;;  %v25090_v35 = vpop.permute.xlu0 %16024  ;;  %v16008_v37 = vmul.f32 %v25031_v0, %v15984_v48  ;;  %v15808_v62 = vpop.f32.mrf.mxu0 }
 0xd04   : > { %v16037_v50 = vmax.f32 %v16027_v41, 0.0  ;;  %v15971_v38 = vadd.f32 %v15885_v13, %v15692_v16  ;;  %v16057_v13 = vld [vmem:[%s25860_s15] sm:$0xff] }
 0xd05   : > { %v16039_v21 = vmax.f32 %v16029_v24, 0.0  ;;  %v16030_v40 = vadd.f32 %v25036_v14, %v16010_v34  ;;  %v16014_v18 = vmul.f32 %v25075_v54, %v15990_v57  ;;  %v16028_v42 = vadd.f32 %v25036_v14, %v16008_v37  ;;  %v19462_v39 = vpop.f32.mrf.mxu0 }
 0xd06   : > { %v25066_v33 = vmul.f32 %v16037_v50, %v19996_v31  ;;  %v15991_v11 = vadd.f32 %v25062_v56, %v15971_v38  ;;  %v15969_v24 = vadd.f32 %v15808_v62, %v25021_v52  ;;  %v15972_v25 = vadd.f32 %v19462_v39, %v25024_v51 }
 0xd07   : > { %v25045_v47 = vmul.f32 %v16039_v21, %v19998_v32  ;;  %v16040_v15 = vmax.f32 %v16030_v40, 0.0  ;;  %v16034_v53 = vadd.f32 %v25090_v35, %v16014_v18  ;;  %v16038_v28 = vmax.f32 %v16028_v42, 0.0  ;;  %v15954_v8 = vpop.f32.mrf.mxu0 }
 0xd08   : > { %v16015_v22 = vmul.f32 %v25075_v54, %v15991_v11  ;;  %v15989_v60 = vadd.f32 %v25062_v56, %v15969_v24  ;;  %v15992_v2 = vadd.f32 %v25062_v56, %v15972_v25  ;;  %v15967_v20 = vadd.f32 %v15954_v8, %v25029_v29 }
 0xd09   : > { %16067 = vrot.lane.b32.xlu0 %v25045_v47, %s26040_s29  ;;  %16099 = vrot.lane.b32.xlu1 %v25045_v47, %s26064_s4  ;;  %v25083_v19 = vmul.f32 %v16040_v15, %v19994_v30  ;;  %v16044_v6 = vmax.f32 %v16034_v53, 0.0  ;;  %v25111_v49 = vmul.f32 %v16038_v28, %v19991_v23 }
 0xd0a   : > { %v16035_v61 = vadd.f32 %v25090_v35, %v16015_v22  ;;  %v15987_v50 = vadd.f32 %v25018_v45, %v15967_v20 }
 0xd0b   : > { %v25104_v1 = vmul.f32 %v16044_v6, %v19998_v32  ;;  %v15968_v32 = vadd.f32 %v15806_v3, %v25016_v17 }
 0xd0c   : > { %v16045_v55 = vmax.f32 %v16035_v61, 0.0  ;;  %v16011_v9 = vmul.f32 %v25031_v0, %v15987_v50 }
 0xd0d   : > { %16813 = vrot.lane.b32.xlu0 %v25045_v47, %s26042_s28  ;;  %16561 = vrot.lane.b32.xlu1 %v25045_v47, %s26041_s19  ;;  %v15988_v10 = vadd.f32 %v25062_v56, %v15968_v32 }
 0xd0e   : > { %v25160_v21 = vmul.f32 %v16045_v55, %v19994_v30  ;;  %v16031_v45 = vadd.f32 %v25036_v14, %v16011_v9 }
 0xd0f   : > { %v16012_v17 = vmul.f32 %v25075_v54, %v15988_v10 }
 0xd10   : > { %v16041_v4 = vmax.f32 %v16031_v45, 0.0 }
 0xd11   : > { %17287 = vrot.lane.b32.xlu0 %v25045_v47, %s26053_s21  ;;  %16091 = vrot.lane.b32.xlu1 %v25066_v33, %s26064_s4  ;;  %v16032_v26 = vadd.f32 %v25090_v35, %v16012_v17 }
 0xd12   : > { %v25223_v0 = vmul.f32 %v16041_v4, %v26061_v43 }
 0xd13   : > { %v16042_v46 = vmax.f32 %v16032_v26, 0.0 }
 0xd15   : > { %17539 = vrot.lane.b32.xlu0 %v25045_v47, %s25990_s17  ;;  %16059 = vrot.lane.b32.xlu1 %v25066_v33, %s26040_s29  ;;  %v25151_v63 = vmul.f32 %v16042_v46, %v19996_v31  ;;  %v16013_v31 = vmul.f32 %v25075_v54, %v15989_v60 }
 0xd17   : > { %v16033_v52 = vadd.f32 %v25090_v35, %v16013_v31 }
 0xd19   : > { %16103 = vrot.lane.b32.xlu0 %v25083_v19, %s26064_s4  ;;  %16071 = vrot.lane.b32.xlu1 %v25083_v19, %s26040_s29  ;;  %v16043_v30 = vmax.f32 %v16033_v52, 0.0 }
 0xd1b   : > { %v25181_v41 = vmul.f32 %v16043_v30, %v19991_v23  ;;  %v16016_v23 = vmul.f32 %v25075_v54, %v15992_v2 }
 0xd1d   : > { %16565 = vrot.lane.b32.xlu0 %v25083_v19, %s26041_s19  ;;  %16553 = vrot.lane.b32.xlu1 %v25066_v33, %s26041_s19  ;;  %v16036_v51 = vadd.f32 %v25090_v35, %v16016_v23 }
 0xd1f   : > { %v16046_v34 = vmax.f32 %v16036_v51, 0.0 }
 0xd21   : > { %17291 = vrot.lane.b32.xlu0 %v25083_v19, %s26053_s21  ;;  %16805 = vrot.lane.b32.xlu1 %v25066_v33, %s26042_s28  ;;  %v25211_v29 = vmul.f32 %v16046_v34, %v26061_v43 }
 0xd25   : > { %16101 = vrot.lane.b32.xlu0 %v25104_v1, %s26064_s4  ;;  %16817 = vrot.lane.b32.xlu1 %v25083_v19, %s26042_s28 }
 0xd29   : > { %16095 = vrot.lane.b32.xlu0 %v25111_v49, %s26064_s4  ;;  %17279 = vrot.lane.b32.xlu1 %v25066_v33, %s26053_s21 }
 0xd2d   : > { %16063 = vrot.lane.b32.xlu0 %v25111_v49, %s26040_s29  ;;  %17543 = vrot.lane.b32.xlu1 %v25083_v19, %s25990_s17 }
 0xd31   : > { %16069 = vrot.lane.b32.xlu0 %v25104_v1, %s26040_s29  ;;  %17531 = vrot.lane.b32.xlu1 %v25066_v33, %s25990_s17 }
 0xd35   : > { %16563 = vrot.lane.b32.xlu0 %v25104_v1, %s26041_s19  ;;  %17289 = vrot.lane.b32.xlu1 %v25104_v1, %s26053_s21 }
 0xd39   : > { %16557 = vrot.lane.b32.xlu0 %v25111_v49, %s26041_s19  ;;  %17283 = vrot.lane.b32.xlu1 %v25111_v49, %s26053_s21 }
 0xd3d   : > { %16809 = vrot.lane.b32.xlu0 %v25111_v49, %s26042_s28  ;;  %17541 = vrot.lane.b32.xlu1 %v25104_v1, %s25990_s17 }
 0xd41   : > { %16815 = vrot.lane.b32.xlu0 %v25104_v1, %s26042_s28  ;;  %17535 = vrot.lane.b32.xlu1 %v25111_v49, %s25990_s17 }
 0xd45   : > { %16093 = vrot.lane.b32.xlu0 %v25151_v63, %s26064_s4  ;;  %17793 = vrot.lane.b32.xlu1 %v25104_v1, %s25962_s23 }
 0xd49   : > { %16061 = vrot.lane.b32.xlu0 %v25151_v63, %s26040_s29  ;;  %16105 = vrot.lane.b32.xlu1 %v25160_v21, %s26064_s4 }
 0xd4d   : > { %16555 = vrot.lane.b32.xlu0 %v25151_v63, %s26041_s19  ;;  %16073 = vrot.lane.b32.xlu1 %v25160_v21, %s26040_s29 }
 0xd51   : > { %16807 = vrot.lane.b32.xlu0 %v25151_v63, %s26042_s28  ;;  %16567 = vrot.lane.b32.xlu1 %v25160_v21, %s26041_s19 }
 0xd55   : > { %17281 = vrot.lane.b32.xlu0 %v25151_v63, %s26053_s21  ;;  %16819 = vrot.lane.b32.xlu1 %v25160_v21, %s26042_s28 }
 0xd59   : > { %17293 = vrot.lane.b32.xlu0 %v25160_v21, %s26053_s21  ;;  %16097 = vrot.lane.b32.xlu1 %v25181_v41, %s26064_s4 }
 0xd5d   : > { %17545 = vrot.lane.b32.xlu0 %v25160_v21, %s25990_s17  ;;  %16065 = vrot.lane.b32.xlu1 %v25181_v41, %s26040_s29 }
 0xd61   : > { %17533 = vrot.lane.b32.xlu0 %v25151_v63, %s25990_s17  ;;  %16559 = vrot.lane.b32.xlu1 %v25181_v41, %s26041_s19 }
 0xd65   : > { %17285 = vrot.lane.b32.xlu0 %v25181_v41, %s26053_s21  ;;  %16811 = vrot.lane.b32.xlu1 %v25181_v41, %s26042_s28 }
 0xd69   : > { %17537 = vrot.lane.b32.xlu0 %v25181_v41, %s25990_s17  ;;  %17787 = vrot.lane.b32.xlu1 %v25111_v49, %s25962_s23 }
 0xd6d   : > { %17789 = vrot.lane.b32.xlu0 %v25181_v41, %s25962_s23  ;;  %17297 = vrot.lane.b32.xlu1 %v25211_v29, %s26053_s21 }
 0xd71   : > { %16109 = vrot.lane.b32.xlu0 %v25211_v29, %s26064_s4  ;;  %17549 = vrot.lane.b32.xlu1 %v25211_v29, %s25990_s17 }
 0xd75   : > { %16077 = vrot.lane.b32.xlu0 %v25211_v29, %s26040_s29  ;;  %16107 = vrot.lane.b32.xlu1 %v25223_v0, %s26064_s4 }
 0xd79   : > { %17785 = vrot.lane.b32.xlu0 %v25151_v63, %s25962_s23  ;;  %16075 = vrot.lane.b32.xlu1 %v25223_v0, %s26040_s29 }
 0xd7b   : > { %v25233_v14 = vpop.permute.xlu0 %16067  ;;  %v25235_v5 = vpop.permute.xlu1 %16099 }
 0xd7d   : > { %16571 = vrot.lane.b32.xlu0 %v25211_v29, %s26041_s19  ;;  %17783 = vrot.lane.b32.xlu1 %v25066_v33, %s25962_s23 }
 0xd7f   : > { %v25241_v43 = vpop.permute.xlu0 %16813  ;;  %v25243_v56 = vpop.permute.xlu1 %16561 }
 0xd81   : > { %16823 = vrot.lane.b32.xlu0 %v25211_v29, %s26042_s28  ;;  %16569 = vrot.lane.b32.xlu1 %v25223_v0, %s26041_s19 }
 0xd83   : > { %v25249_v58 = vpop.permute.xlu0 %17287  ;;  %v25251_v40 = vpop.permute.xlu1 %16091 }
 0xd85   : > { %17791 = vrot.lane.b32.xlu0 %v25045_v47, %s25962_s23  ;;  %16821 = vrot.lane.b32.xlu1 %v25223_v0, %s26042_s28 }
 0xd87   : > { %v25257_v59 = vpop.permute.xlu0 %17539  ;;  %v25259_v44 = vpop.permute.xlu1 %16059 }
 0xd88   : > { %26065 = vst [vmem:[#allocation25_spill] sm:$0xff] %v25257_v59 }
 0xd89   : > { %17797 = vrot.lane.b32.xlu0 %v25160_v21, %s25962_s23  ;;  %17801 = vrot.lane.b32.xlu1 %v25211_v29, %s25962_s23 }
 0xd8b   : > { %v25265_v7 = vpop.permute.xlu0 %16103  ;;  %v25267_v36 = vpop.permute.xlu1 %16071 }
 0xd8d   : > { %17795 = vrot.lane.b32.xlu0 %v25083_v19, %s25962_s23  ;;  %18045 = vrot.lane.b32.xlu1 %v25104_v1, %s26055_s27 }
 0xd8f   : > { %v25273_v15 = vpop.permute.xlu0 %16565  ;;  %v25275_v57 = vpop.permute.xlu1 %16553 }
 0xd91   : > { %18041 = vrot.lane.b32.xlu0 %v25181_v41, %s26055_s27  ;;  %17295 = vrot.lane.b32.xlu1 %v25223_v0, %s26053_s21  ;;  %s542_s21 = sand.u32 1, %s19733_s22  }
 0xd92   : > { %s18346_s18 = scalar_lea.sflag [#allocation4], %s542_s21 }
 0xd93   : > { %v25281_v54 = vpop.permute.xlu0 %17291  ;;  %v25283_v48 = vpop.permute.xlu1 %16805 }
 0xd95   : > { %18049 = vrot.lane.b32.xlu0 %v25160_v21, %s26055_s27  ;;  %18053 = vrot.lane.b32.xlu1 %v25211_v29, %s26055_s27 }
 0xd97   : > { %v16102_v18 = vpop.permute.xlu0 %16101  ;;  %v25289_v35 = vpop.permute.xlu1 %16817 }
 0xd99   : > { %17547 = vrot.lane.b32.xlu0 %v25223_v0, %s25990_s17  ;;  %18039 = vrot.lane.b32.xlu1 %v25111_v49, %s26055_s27 }
 0xd9b   : > { %v25295_v37 = vpop.permute.xlu0 %16095  ;;  %v25297_v53 = vpop.permute.xlu1 %17279 }
 0xd9d   : > { %18037 = vrot.lane.b32.xlu0 %v25151_v63, %s26055_s27  ;;  %17799 = vrot.lane.b32.xlu1 %v25223_v0, %s25962_s23  ;;  %s19677_s23 = sshll.u32 %s19775_s25, 4  ;;  %s19678_s23 = int_to_ptr.vmem [resolvable:$false] %s19677_s23 }
 0xd9e   : > { %s19679_s17 = scalar_lea.vmem %s19678_s23, 160 }
 0xd9f   : > { %v25303_v42 = vpop.permute.xlu0 %16063  ;;  %v25305_v6 = vpop.permute.xlu1 %17543 }
 0xda0   : > { %26066 = vst [vmem:[#allocation26_spill] sm:$0xff] %v25305_v6  ;;  %v25311_v28 = vsel %vm954_vm3, %v25303_v42, %v25233_v14 }
 0xda1   : > { %18043 = vrot.lane.b32.xlu0 %v25045_v47, %s26055_s27  ;;  %18047 = vrot.lane.b32.xlu1 %v25083_v19, %s26055_s27 }
 0xda3   : > { %v25317_v3 = vpop.permute.xlu0 %16069  ;;  %v25319_v32 = vpop.permute.xlu1 %17531 }
 0xda4   : > { %26067 = vst [vmem:[#allocation19_spill] sm:$0xff] %v25319_v32 }
 0xda5   : > { %18051 = vrot.lane.b32.xlu0 %v25223_v0, %s26055_s27  ;;  %18035 = vrot.lane.b32.xlu1 %v25066_v33, %s26055_s27  ;;  %s19526_s27 = smul.u32 5, %s542_s21 }
 0xda7   : > { %v25328_v16 = vpop.permute.xlu0 %16563  ;;  %v25330_v10 = vpop.permute.xlu1 %17289  ;;  %s544_s26 = scalar_lea.vmem [#allocation7], %s19526_s27 }
 0xda8   : > { %s18360_s20 = sshll.u32 %s544_s26, 4  ;;  %s18361_s20 = int_to_ptr.vmem [resolvable:$true] %s18360_s20 }
 0xda9   : > { %18287 = vperm.xlu0 %19619, %v16057_v13   ;;  %v16113_v13 = vsel %vm988_vm1, %v25235_v5, %v25265_v7  ;;  %s19673_s4 = scalar_lea.vmem %s18361_s20, 80  ;;  %p19680_p11 = scmp.lt.s32.totalorder %s18361_s20, %s19678_s23 }
 0xdaa   : > { %p19674_p10 = scmp.ne.s32.totalorder %s18361_s20, %s19673_s4  ;;  %p19681_p0 = scmp.lt.s32.totalorder %s19679_s17, %s19673_s4 }
 0xdab   : > { %v25332_v38 = vpop.permute.xlu0 %16557  ;;  %v25334_v17 = vpop.permute.xlu1 %17283 }
 0xdac   : > { %v25340_v11 = vsel %vm1493_vm4, %v25332_v38, %v25243_v56  ;;  %v25346_v26 = vsel %vm2299_vm6, %v25334_v17, %v25249_v58  ;;  %p19675_p12 = pnand %p19674_p10, %p19899_p5  ;;  %p19682_p1 = por %p19681_p0, %p19680_p11 }
 0xdae   : > { %p19676_p8 = pneg %p19675_p12 }
 0xdaf   : > { %v25348_v22 = vpop.permute.xlu0 %16809  ;;  %v25350_v46 = vpop.permute.xlu1 %17541 }
 0xdb0   : > { %26068 = vst [vmem:[#allocation21_spill] sm:$0xff] %v25350_v46  ;;  %v25356_v61 = vsel %vm1772_vm5, %v25348_v22, %v25241_v43  ;;  %p19683_p3 = pnand %p19682_p1, %p19676_p8 }
 0xdb3   : > { %v25358_v62 = vpop.permute.xlu0 %16815  ;;  %v25360_v24 = vpop.permute.xlu1 %17535 }
 0xdb4   : > { %26069 = vst [vmem:[#allocation24_spill] sm:$0xff] %v25360_v24  ;;  %v25366_v55 = vsel %vm2578_vm7, %v25360_v24, %v25257_v59 }
 0xdb5   : > { %26070 = vst [vmem:[#allocation31_spill] sm:$0xff] %v25366_v55 }
 0xdb7   : > { %v16094_v60 = vpop.permute.xlu0 %16093  ;;  %v25368_v31 = vpop.permute.xlu1 %17793 }
 0xdb8   : > { %26071 = vst [vmem:[#allocation35_spill] sm:$0xff] %v25368_v31  ;;  %v16115_v31 = vsel %vm988_vm1, %v25295_v37, %v25235_v5 }
 0xdbb   : > { %v16062_v52 = vpop.permute.xlu0 %16061  ;;  %v16106_v30 = vpop.permute.xlu1 %16105 }
 0xdbc   : > { %v16114_v39 = vsel %vm988_vm1, %v16102_v18, %v16106_v30 }
 0xdbd   : > { %16223 = vmatprep.subr.mxu0 %v16114_v39  ;;  %v18796_v39 = vld [vmem:[%s25859_s14 + $0x8] sm:$0xff] }
 0xdbf   : > { %v25372_v25 = vpop.permute.xlu0 %16555  ;;  %v25374_v2 = vpop.permute.xlu1 %16073 }
 0xdc3   : > { %v25376_v8 = vpop.permute.xlu0 %16807  ;;  %v25378_v23 = vpop.permute.xlu1 %16567 }
 0xdc7   : > { %v25380_v20 = vpop.permute.xlu0 %17281  ;;  %v25382_v51 = vpop.permute.xlu1 %16819 }
 0xdcb   : > { %v25384_v50 = vpop.permute.xlu0 %17293  ;;  %v16098_v34 = vpop.permute.xlu1 %16097 }
 0xdcc   : > { %v25390_v9 = vsel %vm2299_vm6, %v25330_v10, %v25384_v50  ;;  %v16116_v45 = vsel %vm988_vm1, %v16098_v34, %v16102_v18  ;;  %v16118_v4 = vsel %vm988_vm1, %v16094_v60, %v16098_v34 }
 0xdcd   : > { %16152 = vmatprep.subr.mxu1 %v16118_v4  ;;  %16224 = vmatpush1.msra.mxu0 %v16116_v45 }
 0xdce   : > { %16225 = vmatprep.subr.mxu0 %v16113_v13 }
 0xdcf   : > { %v25407_v18 = vpop.permute.xlu0 %17545  ;;  %16226 = vmatpush1.msra.mxu0 %v16115_v31  ;;  %v16066_v34 = vpop.permute.xlu1 %16065 }
 0xdd0   : > { %26072 = vst [vmem:[#allocation23_spill] sm:$0xff] %v25407_v18  ;;  %v25413_v45 = vsel %vm2578_vm7, %v25350_v46, %v25407_v18  ;;  %v16086_v4 = vsel %vm954_vm3, %v16062_v52, %v16066_v34  ;;  %18798 = vmatmul.mubr.msk.f32.vlgmr.msra.gmra.mxu0 %vm999_vm2, %v18796_v39 }
 0xdd1   : > { %26073 = vst [vmem:[#allocation29_spill] sm:$0xff] %v25413_v45  ;;  %16367 = vmatprep.subr.mxu0 %v16086_v4  ;;  %16403 = vmatprep.mubr.f32.mxu0 %v26063_v27 }
 0xdd3   : > { %v25419_v5 = vpop.permute.xlu0 %17533  ;;  %v16560_v13 = vpop.permute.xlu1 %16559 }
 0xdd4   : > { %26074 = vst [vmem:[#allocation22_spill] sm:$0xff] %v25419_v5  ;;  %v16117_v5 = vsel %vm988_vm1, %v25251_v40, %v25295_v37  ;;  %v16085_v37 = vsel %vm954_vm3, %v25259_v44, %v25303_v42 }
 0xdd7   : > { %v25421_v59 = vpop.permute.xlu0 %17285  ;;  %v25423_v31 = vpop.permute.xlu1 %16811 }
 0xddb   : > { %v25425_v55 = vpop.permute.xlu0 %17537  ;;  %v25427_v32 = vpop.permute.xlu1 %17787 }
 0xddc   : > { %26075 = vst [vmem:[#allocation33_spill] sm:$0xff] %v25425_v55  ;;  %26076 = vst [vmem:[#allocation32_spill] sm:$0xff] %v25427_v32 }
 0xddf   : > { %v25429_v24 = vpop.permute.xlu0 %17789  ;;  %v25431_v45 = vpop.permute.xlu1 %17297 }
 0xde0   : > { %26077 = vst [vmem:[#allocation30_spill] sm:$0xff] %v25429_v24 }
 0xde3   : > { %v16110_v6 = vpop.permute.xlu0 %16109  ;;  %v25433_v18 = vpop.permute.xlu1 %17549 }
 0xde4   : > { %v16120_v4 = vsel %vm988_vm1, %v16110_v6, %v16094_v60  ;;  %v16112_v60 = vsel %vm988_vm1, %v16106_v30, %v16110_v6  ;;  %v16081_v30 = vsel %vm954_vm3, %v25233_v14, %v25267_v36  ;;  %v16580_v14 = vsel %vm1493_vm4, %v25372_v25, %v16560_v13 }
 0xde5   : > { %16153 = vmatpush1.msra.mxu1 %v16120_v4  ;;  %v16579_v4 = vsel %vm1493_vm4, %v25275_v57, %v25332_v38 }
 0xde6   : > { %16154 = vmatprep.subr.mxu1 %v16117_v5 }
 0xde7   : > { %v16078_v55 = vpop.permute.xlu0 %16077  ;;  %v16108_v46 = vpop.permute.xlu1 %16107 }
 0xde8   : > { %v16088_v32 = vsel %vm954_vm3, %v16078_v55, %v16062_v52  ;;  %v16119_v24 = vsel %vm988_vm1, %v16108_v46, %v25251_v40  ;;  %v16058_v40 = vld [vmem:[%s25859_s14] sm:$0xff]  ;;  %v16111_v6 = vsel %vm988_vm1, %v25265_v7, %v16108_v46  ;;  %v16082_v7 = vsel %vm954_vm3, %v25317_v3, %v25374_v2 }
 0xde9   : > { %16155 = vmatpush1.msra.mxu1 %v16119_v24  ;;  %16368 = vmatpush1.msra.mxu0 %v16088_v32  ;;  %v16080_v42 = vsel %vm954_vm3, %v25374_v2, %v16078_v55 }
 0xdea   : > { %18797 = vmatmul.mubr.msk.f32.vlgmr.msra.gmra.mxu1 %vm999_vm2, %v18796_v39  ;;  %19463 = vmatprep.subr.mxu1 %v26063_v27 }
 0xdeb   : > { %16369 = vmatprep.subr.mxu0 %v16085_v37  ;;  %v25454_v52 = vpop.permute.xlu0 %17785  ;;  %19464 = vmatpush3.msra.mxu1 %v16112_v60  ;;  %v16076_v5 = vpop.permute.xlu1 %16075  ;;  %v16831_v37 = vsel %vm1772_vm5, %v25283_v48, %v25348_v22 }
 0xdec   : > { %v16087_v32 = vsel %vm954_vm3, %v16076_v5, %v25259_v44  ;;  %19465 = vmatprep.subr.mxu1 %v26063_v27  ;;  %19467 = vmatprep.mubr.msk.f32.mxu1 %vm19773_vm12, %v26063_v27  ;;  %v16084_v44 = vsel %vm954_vm3, %v16066_v34, %v25317_v3  ;;  %v16079_v3 = vsel %vm954_vm3, %v25267_v36, %v16076_v5 }
 0xded   : > { %19466 = vmatpush3.msra.mxu1 %v16111_v6  ;;  %16370 = vmatpush1.msra.mxu0 %v16087_v32  ;;  %v16576_v36 = vsel %vm1493_vm4, %v25328_v16, %v25378_v23  ;;  %v16827_v6 = vsel %vm1772_vm5, %v25241_v43, %v25289_v35  ;;  %v18811_v43 = vld [vmem:[%s25859_s14 + $0x20] sm:$0xff] }
 0xdee   : > { %19468 = vmatmul.mubr.msk.f32.vlgmr.msra.gmra.mxu1 %vm999_vm2, %v18796_v39  ;;  %18800 = vmatmul.mubr.msk.f32.vlgmr.msra.gmra.mxu0 %vm999_vm2, %v16058_v40 }
 0xdef   : > { %16438 = vmatprep.subr.mxu1 %v16082_v7  ;;  %19470 = vmatprep.subr.mxu0 %v26063_v27  ;;  %v16572_v46 = vpop.permute.xlu0 %16571  ;;  %v25481_v24 = vpop.permute.xlu1 %17783  ;;  %v26083_v7 = vld [vmem:[#allocation29_spill] sm:$0xff] }
 0xdf0   : > { %16439 = vmatpush1.msra.mxu1 %v16084_v44  ;;  %19471 = vmatpush3.msra.mxu0 %v16080_v42  ;;  %v16582_v39 = vsel %vm1493_vm4, %v16572_v46, %v25372_v25  ;;  %v18803_v25 = vld [vmem:[%s25859_s14 + $0x10] sm:$0xff] }
 0xdf1   : > { %16440 = vmatprep.subr.mxu1 %v16081_v30  ;;  %19472 = vmatprep.subr.mxu0 %v26063_v27  ;;  %v18819_v44 = vld [vmem:[%s25859_s14 + $0x30] sm:$0xff] }
 0xdf2   : > { %16441 = vmatpush1.msra.mxu1 %v25311_v28  ;;  %16474 = vmatprep.mubr.f32.mxu1 %v26063_v27  ;;  %v16578_v28 = vsel %vm1493_vm4, %v16560_v13, %v25328_v16  ;;  %v16575_v16 = vsel %vm1493_vm4, %v25243_v56, %v25273_v15  ;;  %v16832_v56 = vsel %vm1772_vm5, %v25376_v8, %v25423_v31  ;;  %v26084_v42 = vld [vmem:[#allocation24_spill] sm:$0xff] }
 0xdf3   : > { %19473 = vmatpush3.msra.mxu0 %v16079_v3  ;;  %19474 = vmatprep.mubr.msk.f32.mxu0 %vm19773_vm12, %v26063_v27  ;;  %v16824_v55 = vpop.permute.xlu0 %16823  ;;  %v16570_v2 = vpop.permute.xlu1 %16569  ;;  %v26086_v3 = vld [vmem:[#allocation31_spill] sm:$0xff] }
 0xdf4   : > { %18801 = vmatmul.mubr.msk.f32.vlgmr.msra.gmra.mxu1 %vm999_vm2, %v16058_v40  ;;  %19475 = vmatmul.mubr.msk.f32.vlgmr.msra.gmra.mxu0 %vm999_vm2, %v16058_v40  ;;  %v16581_v34 = vsel %vm1493_vm4, %v16570_v2, %v25275_v57  ;;  %v16574_v57 = vsel %vm1493_vm4, %v25378_v23, %v16572_v46  ;;  %v16834_v38 = vsel %vm1772_vm5, %v16824_v55, %v25376_v8  ;;  %v18807_v8 = vld [vmem:[%s25859_s14 + $0x18] sm:$0xff]  ;;  %v26085_v46 = vld [vmem:[#allocation19_spill] sm:$0xff] }
 0xdf5   : > { %16614 = vmatprep.subr.mxu1 %v16580_v14  ;;  %16685 = vmatprep.subr.mxu0 %v16576_v36  ;;  %v16573_v23 = vsel %vm1493_vm4, %v25273_v15, %v16570_v2  ;;  %v16828_v15 = vsel %vm1772_vm5, %v25358_v62, %v25382_v51  ;;  %v16826_v22 = vsel %vm1772_vm5, %v25382_v51, %v16824_v55  ;;  %v26087_v2 = vld [vmem:[#allocation25_spill] sm:$0xff] }
 0xdf6   : > { %16615 = vmatpush1.msra.mxu1 %v16582_v39  ;;  %16686 = vmatpush1.msra.mxu0 %v16578_v28  ;;  %v17557_v30 = vsel %vm2578_vm7, %v26085_v46, %v26084_v42  ;;  %v26088_v39 = vld [vmem:[#allocation35_spill] sm:$0xff] }
 0xdf7   : > { %16616 = vmatprep.subr.mxu1 %v16579_v4  ;;  %16687 = vmatprep.subr.mxu0 %v16575_v16  ;;  %v16822_v13 = vpop.permute.xlu1 %16821  ;;  %v25525_v60 = vpop.permute.xlu0 %17791 }
 0xdf8   : > { %16617 = vmatpush1.msra.mxu1 %v16581_v34  ;;  %16650 = vmatprep.mubr.f32.mxu1 %v26063_v27  ;;  %v26089_v34 = vld [vmem:[#allocation30_spill] sm:$0xff] }
 0xdf9   : > { %16688 = vmatpush1.msra.mxu0 %v25340_v11  ;;  %16721 = vmatprep.mubr.f32.mxu0 %v26063_v27  ;;  %v16833_v11 = vsel %vm1772_vm5, %v16822_v13, %v25283_v48  ;;  %v16830_v48 = vsel %vm1772_vm5, %v25423_v31, %v25358_v62  ;;  %v16825_v62 = vsel %vm1772_vm5, %v25289_v35, %v16822_v13 }
 0xdfa   : > { %18804 = vmatmul.mubr.msk.f32.vlgmr.msra.gmra.mxu1 %vm999_vm2, %v18803_v25  ;;  %18805 = vmatmul.mubr.msk.f32.vlgmr.msra.gmra.mxu0 %vm999_vm2, %v18803_v25  ;;  %v17808_v4 = vsel %vm2857_vm8, %v26089_v34, %v26088_v39  ;;  %v17810_v16 = vsel %vm2857_vm8, %v25454_v52, %v26089_v34 }
 0xdfb   : > { %19477 = vmatprep.subr.mxu1 %v26063_v27  ;;  %16866 = vmatprep.subr.mxu0 %v16832_v56  ;;  %v25556_v5 = vpop.permute.xlu1 %17801  ;;  %v25560_v40 = vpop.permute.xlu0 %17797 }
 0xdfc   : > { %19478 = vmatpush3.msra.mxu1 %v16574_v57  ;;  %16867 = vmatpush1.msra.mxu0 %v16834_v38 }
 0xdfd   : > { %19479 = vmatprep.subr.mxu1 %v26063_v27  ;;  %16868 = vmatprep.subr.mxu0 %v16831_v37  ;;  %v17804_v37 = vsel %vm2857_vm8, %v25560_v40, %v25556_v5 }
 0xdfe   : > { %19480 = vmatpush3.msra.mxu1 %v16573_v23  ;;  %19481 = vmatprep.mubr.msk.f32.mxu1 %vm19773_vm12, %v26063_v27  ;;  %v17806_v23 = vsel %vm2857_vm8, %v26088_v39, %v25560_v40 }
 0xdff   : > { %16869 = vmatpush1.msra.mxu0 %v16833_v11  ;;  %16902 = vmatprep.mubr.f32.mxu0 %v26063_v27  ;;  %v25582_v32 = vpop.permute.xlu1 %18045  ;;  %v25589_v51 = vpop.permute.xlu0 %17795  ;;  %v18823_v11 = vld [vmem:[%s25859_s14 + $0x38] sm:$0xff] }
 0xe00   : > { %19482 = vmatmul.mubr.msk.f32.vlgmr.msra.gmra.mxu1 %vm999_vm2, %v18803_v25  ;;  %18808 = vmatmul.mubr.msk.f32.vlgmr.msra.gmra.mxu0 %vm999_vm2, %v18807_v8  ;;  %v26090_v25 = vld [vmem:[#allocation32_spill] sm:$0xff]  ;;  %v17805_v40 = vsel %vm2857_vm8, %v25525_v60, %v25589_v51 }
 0xe01   : > { %16937 = vmatprep.subr.mxu1 %v16828_v15  ;;  %19484 = vmatprep.subr.mxu0 %v26063_v27  ;;  %v17807_v13 = vsel %vm2857_vm8, %v26090_v25, %v25525_v60  ;;  %v17809_v57 = vsel %vm2857_vm8, %v25481_v24, %v26090_v25  ;;  %v17812_v15 = vsel %vm2857_vm8, %v25556_v5, %v25454_v52 }
 0xe02   : > { %16938 = vmatpush1.msra.mxu1 %v16830_v48  ;;  %19485 = vmatpush3.msra.mxu0 %v16826_v22 }
 0xe03   : > { %16939 = vmatprep.subr.mxu1 %v16827_v6  ;;  %19486 = vmatprep.subr.mxu0 %v26063_v27  ;;  %v17296_v35 = vpop.permute.xlu1 %17295 }
 0xe04   : > { %16940 = vmatpush1.msra.mxu1 %v25356_v61  ;;  %16973 = vmatprep.mubr.f32.mxu1 %v26063_v27 }
 0xe05   : > { %19487 = vmatpush3.msra.mxu0 %v16825_v62  ;;  %19488 = vmatprep.mubr.msk.f32.mxu0 %vm19773_vm12, %v26063_v27 }
 0xe06   : > { %18809 = vmatmul.mubr.msk.f32.vlgmr.msra.gmra.mxu1 %vm999_vm2, %v18807_v8  ;;  %19489 = vmatmul.mubr.msk.f32.vlgmr.msra.gmra.mxu0 %vm999_vm2, %v18807_v8 }
 0xe07   : > { %17088 = vmatprep.subr.mxu1 %v25181_v41  ;;  %17159 = vmatprep.subr.mxu0 %v25160_v21  ;;  %v25606_v41 = vpop.permute.xlu0 %18041  ;;  %v17300_v21 = vsel %vm2299_vm6, %v25384_v50, %v25431_v45  ;;  %v26081_v50 = vld [vmem:[#allocation22_spill] sm:$0xff] }
 0xe08   : > { %17089 = vmatpush1.msra.mxu1 %v25151_v63  ;;  %17160 = vmatpush1.msra.mxu0 %v25104_v1  ;;  %v25627_v1 = vpop.permute.xlu1 %18053  ;;  %v17560_v28 = vsel %vm2578_vm7, %v25433_v18, %v26081_v50  ;;  %v18060_v60 = vsel %vm3136_vm9, %v25606_v41, %v25582_v32 }
 0xe09   : > { %17090 = vmatprep.subr.mxu1 %v25111_v49  ;;  %17161 = vmatprep.subr.mxu0 %v25083_v19  ;;  %v17304_v19 = vsel %vm2299_vm6, %v25421_v59, %v25330_v10  ;;  %v17305_v49 = vsel %vm2299_vm6, %v25297_v53, %v25334_v17  ;;  %v17307_v17 = vsel %vm2299_vm6, %v17296_v35, %v25297_v53 }
 0xe0a   : > { %17091 = vmatpush1.msra.mxu1 %v25066_v33  ;;  %17124 = vmatprep.mubr.f32.mxu1 %v26063_v27  ;;  %v17306_v33 = vsel %vm2299_vm6, %v25380_v20, %v25421_v59  ;;  %v17301_v59 = vsel %vm2299_vm6, %v25249_v58, %v25281_v54  ;;  %v26078_v58 = vld [vmem:[#allocation21_spill] sm:$0xff] }
 0xe0b   : > { %17162 = vmatpush1.msra.mxu0 %v25045_v47  ;;  %17195 = vmatprep.mubr.f32.mxu0 %v26063_v27  ;;  %v18815_v47 = vld [vmem:[%s25859_s14 + $0x28] sm:$0xff]  ;;  %v25636_v63 = vpop.permute.xlu0 %18049 }
 0xe0c   : > { %18812 = vmatmul.mubr.msk.f32.vlgmr.msra.gmra.mxu1 %vm999_vm2, %v18811_v43  ;;  %18813 = vmatmul.mubr.msk.f32.vlgmr.msra.gmra.mxu0 %vm999_vm2, %v18811_v43  ;;  %v25659_v10 = vpop.permute.xlu1 %18039  ;;  %v18056_v6 = vsel %vm3136_vm9, %v25636_v63, %v25627_v1 }
 0xe0d   : > { %19491 = vmatprep.subr.mxu1 %v26063_v27  ;;  %17340 = vmatprep.subr.mxu0 %v17304_v19 }
 0xe0e   : > { %19492 = vmatpush3.msra.mxu1 %v25211_v29  ;;  %17341 = vmatpush1.msra.mxu0 %v17306_v33  ;;  %v17308_v29 = vsel %vm2299_vm6, %v25431_v45, %v25380_v20  ;;  %v26080_v20 = vld [vmem:[#allocation23_spill] sm:$0xff]  ;;  %v26082_v45 = vld [vmem:[#allocation26_spill] sm:$0xff] }
 0xe0f   : > { %19493 = vmatprep.subr.mxu1 %v26063_v27  ;;  %17342 = vmatprep.subr.mxu0 %v25346_v26  ;;  %v17548_v26 = vpop.permute.xlu0 %17547  ;;  %v17552_v53 = vsel %vm2578_vm7, %v26080_v20, %v25433_v18  ;;  %v17553_v14 = vsel %vm2578_vm7, %v26087_v2, %v26082_v45 }
 0xe10   : > { %19494 = vmatpush3.msra.mxu1 %v25223_v0  ;;  %19495 = vmatprep.mubr.msk.f32.mxu1 %vm19773_vm12, %v26063_v27  ;;  %v17299_v0 = vsel %vm2299_vm6, %v25281_v54, %v17296_v35  ;;  %v26079_v54 = vld [vmem:[#allocation33_spill] sm:$0xff]  ;;  %v17551_v31 = vsel %vm2578_vm7, %v26082_v45, %v17548_v26  ;;  %v17800_v55 = vpop.permute.xlu1 %17799  ;;  %v17559_v18 = vsel %vm2578_vm7, %v17548_v26, %v26085_v46  ;;  %v18827_v35 = vld [vmem:[%s25859_s14 + $0x40] sm:$0xff] }
 0xe11   : > { %17343 = vmatpush1.msra.mxu0 %v17305_v49  ;;  %17376 = vmatprep.mubr.f32.mxu0 %v26063_v27  ;;  %v17556_v61 = vsel %vm2578_vm7, %v26079_v54, %v26078_v58  ;;  %v17803_v8 = vsel %vm2857_vm8, %v25589_v51, %v17800_v55  ;;  %v17811_v22 = vsel %vm2857_vm8, %v17800_v55, %v25481_v24 }
 0xe12   : > { %19496 = vmatmul.mubr.msk.f32.vlgmr.msra.gmra.mxu1 %vm999_vm2, %v18811_v43  ;;  %18816 = vmatmul.mubr.msk.f32.vlgmr.msra.gmra.mxu0 %vm999_vm2, %v18815_v47  ;;  %v18058_v43 = vsel %vm3136_vm9, %v25582_v32, %v25636_v63 }
 0xe13   : > { %17411 = vmatprep.subr.mxu1 %v17300_v21  ;;  %19498 = vmatprep.subr.mxu0 %v26063_v27  ;;  %v25698_v36 = vpop.permute.xlu0 %18037 }
 0xe14   : > { %17412 = vmatpush1.msra.mxu1 %v25390_v9  ;;  %19499 = vmatpush3.msra.mxu0 %v17308_v29  ;;  %v17558_v9 = vsel %vm2578_vm7, %v26081_v50, %v26079_v54  ;;  %v18048_v56 = vpop.permute.xlu1 %18047  ;;  %v18062_v5 = vsel %vm3136_vm9, %v25698_v36, %v25606_v41  ;;  %v18064_v32 = vsel %vm3136_vm9, %v25627_v1, %v25698_v36 }
 0xe15   : > { %17413 = vmatprep.subr.mxu1 %v17299_v0  ;;  %19500 = vmatprep.subr.mxu0 %v26063_v27 }
 0xe16   : > { %17414 = vmatpush1.msra.mxu1 %v17301_v59  ;;  %17447 = vmatprep.mubr.f32.mxu1 %v26063_v27 }
 0xe17   : > { %19501 = vmatpush3.msra.mxu0 %v17307_v17  ;;  %19502 = vmatprep.mubr.msk.f32.mxu0 %vm19773_vm12, %v26063_v27  ;;  %v18044_v38 = vpop.permute.xlu0 %18043 }
 0xe18   : > { %18817 = vmatmul.mubr.msk.f32.vlgmr.msra.gmra.mxu1 %vm999_vm2, %v18815_v47  ;;  %19503 = vmatmul.mubr.msk.f32.vlgmr.msra.gmra.mxu0 %vm999_vm2, %v18815_v47  ;;  %v18036_v48 = vpop.permute.xlu1 %18035  ;;  %v18059_v62 = vsel %vm3136_vm9, %v25659_v10, %v18044_v38  ;;  %v18057_v41 = vsel %vm3136_vm9, %v18044_v38, %v18048_v56 }
 0xe19   : > { %17592 = vmatprep.subr.mxu1 %v17556_v61  ;;  %17663 = vmatprep.subr.mxu0 %v17552_v53  ;;  %v18061_v24 = vsel %vm3136_vm9, %v18036_v48, %v25659_v10 }
 0xe1a   : > { %17593 = vmatpush1.msra.mxu1 %v17558_v9  ;;  %17664 = vmatpush1.msra.mxu0 %v26083_v7 }
 0xe1b   : > { %17594 = vmatprep.subr.mxu1 %v26086_v3  ;;  %17628 = vmatprep.mubr.f32.mxu1 %v26063_v27  ;;  %v18052_v52 = vpop.permute.xlu0 %18051 }
 0xe1c   : > { %17595 = vmatpush1.msra.mxu1 %v17557_v30  ;;  %17665 = vmatprep.subr.mxu0 %v17551_v31  ;;  %v18055_v51 = vsel %vm3136_vm9, %v18048_v56, %v18052_v52  ;;  %v18063_v19 = vsel %vm3136_vm9, %v18052_v52, %v18036_v48 }
 0xe1d   : > { %18820 = vmatmul.mubr.msk.f32.vlgmr.msra.gmra.mxu1 %vm999_vm2, %v18819_v44  ;;  %17666 = vmatpush1.msra.mxu0 %v17553_v14 }
 0xe1e   : > { %17699 = vmatprep.mubr.f32.mxu0 %v26063_v27  ;;  %19505 = vmatprep.subr.mxu1 %v26063_v27 }
 0xe1f   : > { %18821 = vmatmul.mubr.msk.f32.vlgmr.msra.gmra.mxu0 %vm999_vm2, %v18819_v44  ;;  %19506 = vmatpush3.msra.mxu1 %v17560_v28 }
 0xe20   : > { %17844 = vmatprep.subr.mxu0 %v17808_v4  ;;  %19507 = vmatprep.subr.mxu1 %v26063_v27 }
 0xe21   : > { %17845 = vmatpush1.msra.mxu0 %v17810_v16  ;;  %19508 = vmatpush3.msra.mxu1 %v17559_v18 }
 0xe22   : > { %19509 = vmatprep.mubr.msk.f32.mxu1 %vm19773_vm12, %v26063_v27  ;;  %17846 = vmatprep.subr.mxu0 %v17807_v13 }
 0xe23   : > { %19510 = vmatmul.mubr.msk.f32.vlgmr.msra.gmra.mxu1 %vm999_vm2, %v18819_v44  ;;  %17847 = vmatpush1.msra.mxu0 %v17809_v57 }
 0xe24   : > { %17880 = vmatprep.mubr.f32.mxu0 %v26063_v27  ;;  %17915 = vmatprep.subr.mxu1 %v17804_v37 }
 0xe25   : > { %18824 = vmatmul.mubr.msk.f32.vlgmr.msra.gmra.mxu0 %vm999_vm2, %v18823_v11  ;;  %17916 = vmatpush1.msra.mxu1 %v17806_v23 }
 0xe26   : > { %19512 = vmatprep.subr.mxu0 %v26063_v27  ;;  %17917 = vmatprep.subr.mxu1 %v17803_v8 }
 0xe27   : > { %19513 = vmatpush3.msra.mxu0 %v17812_v15  ;;  %17918 = vmatpush1.msra.mxu1 %v17805_v40 }
 0xe28   : > { %17951 = vmatprep.mubr.f32.mxu1 %v26063_v27  ;;  %19514 = vmatprep.subr.mxu0 %v26063_v27 }
 0xe29   : > { %18825 = vmatmul.mubr.msk.f32.vlgmr.msra.gmra.mxu1 %vm999_vm2, %v18823_v11  ;;  %19515 = vmatpush3.msra.mxu0 %v17811_v22 }
 0xe2a   : > { %19516 = vmatprep.mubr.msk.f32.mxu0 %vm19773_vm12, %v26063_v27  ;;  %18096 = vmatprep.subr.mxu1 %v18060_v60 }
 0xe2b   : > { %19517 = vmatmul.mubr.msk.f32.vlgmr.msra.gmra.mxu0 %vm999_vm2, %v18823_v11  ;;  %18097 = vmatpush1.msra.mxu1 %v18062_v5 }
 0xe2c   : > { %18167 = vmatprep.subr.mxu0 %v18056_v6  ;;  %18098 = vmatprep.subr.mxu1 %v18059_v62 }
 0xe2d   : > { %18168 = vmatpush1.msra.mxu0 %v18058_v43  ;;  %18099 = vmatpush1.msra.mxu1 %v18061_v24 }
 0xe2e   : > { %18132 = vmatprep.mubr.f32.mxu1 %v26063_v27  ;;  %18169 = vmatprep.subr.mxu0 %v18055_v51 }
 0xe2f   : > { %18828 = vmatmul.mubr.msk.f32.vlgmr.msra.gmra.mxu1 %vm999_vm2, %v18827_v35  ;;  %18170 = vmatpush1.msra.mxu0 %v18057_v41 }
 0xe30   : > { %18203 = vmatprep.mubr.f32.mxu0 %v26063_v27  ;;  %19519 = vmatprep.subr.mxu1 %v26063_v27 }
 0xe31   : > { %18829 = vmatmul.mubr.msk.f32.vlgmr.msra.gmra.mxu0 %vm999_vm2, %v18827_v35  ;;  %19520 = vmatpush3.msra.mxu1 %v18064_v32 }
 0xe32   : > { %19521 = vmatprep.subr.mxu1 %v26063_v27  ;;  %19523 = vmatprep.mubr.msk.f32.mxu1 %vm19773_vm12, %v26063_v27 }
 0xe33   : > { %19522 = vmatpush3.msra.mxu1 %v18063_v19 }
 0xe34   : > { %19524 = vmatmul.mubr.msk.f32.vlgmr.msra.gmra.mxu1 %vm999_vm2, %v18827_v35 }
 0xe90   : > { %v16261_v33 = vpop.f32.mrf.mxu0 }
 0xe92   : > { %v16263_v1 = vpop.f32.mrf.mxu0 }
 0xeaa   : > { %v16190_v47 = vpop.f32.mrf.mxu1 }
 0xeac   : > { %v16192_v49 = vpop.f32.mrf.mxu1 }
 0xeae   : > { %v16332_v63 = vpop.f32.mrf.mxu1  ;;  %v16405_v21 = vpop.f32.mrf.mxu0 }
 0xeaf   : > { %v16406_v13 = vadd.f32 %v16405_v21, %v16190_v47 }
 0xeb0   : > { %v19469_v29 = vpop.f32.mrf.mxu1  ;;  %v16407_v0 = vpop.f32.mrf.mxu0 }
 0xeb1   : > { %v16408_v57 = vadd.f32 %v16407_v0, %v16192_v49  ;;  %v19774_v49 = vmov 1966171168  }
 0xeb4   : > { %v16476_v59 = vpop.f32.mrf.mxu1  ;;  %v16547_v10 = vpop.f32.mrf.mxu0 }
 0xeb5   : > { %v16477_v38 = vadd.f32 %v16476_v59, %v16261_v33  ;;  %v16548_v22 = vadd.f32 %v16547_v10, %v16332_v63 }
 0xeb6   : > { %v16478_v12 = vpop.f32.mrf.mxu1  ;;  %v19476_v17 = vpop.f32.mrf.mxu0 }
 0xeb7   : > { %v16479_v8 = vadd.f32 %v16478_v12, %v16263_v1  ;;  %v18303_v1 = vunpack.c.l.s4 %v19774_v49 }
 0xeba   : > { %v16652_v26 = vpop.f32.mrf.mxu1  ;;  %v16723_v58 = vpop.f32.mrf.mxu0 }
 0xebb   : > { %v16798_v11 = vadd.f32 %v16652_v26, %v16406_v13  ;;  %v16800_v15 = vadd.f32 %v16723_v58, %v16477_v38 }
 0xebc   : > { %v16654_v54 = vpop.f32.mrf.mxu1  ;;  %v16725_v61 = vpop.f32.mrf.mxu0 }
 0xebd   : > { %v16799_v40 = vadd.f32 %v16654_v54, %v16408_v57  ;;  %v16801_v60 = vadd.f32 %v16725_v61, %v16479_v8 }
 0xec0   : > { %v16794_v27 = vpop.f32.mrf.mxu1  ;;  %v16904_v20 = vpop.f32.mrf.mxu0 }
 0xec1   : > { %v17050_v48 = vadd.f32 %v16904_v20, %v16798_v11  ;;  %v16802_v62 = vadd.f32 %v16794_v27, %v16548_v22  ;;  %v18304_v27 = vunpack.c.0.s8 %v18303_v1 }
 0xec2   : > { %v19483_v53 = vpop.f32.mrf.mxu1  ;;  %v16906_v50 = vpop.f32.mrf.mxu0 }
 0xec3   : > { %v17051_v5 = vadd.f32 %v16906_v50, %v16799_v40  ;;  %v26092_v40 = vlaneseq }
 0xec5   : > { %vm18342_vm1 = vcmp.lt.s32.totalorder %v26092_v40, 640 }
 0xec6   : > { %v16975_v9 = vpop.f32.mrf.mxu1  ;;  %v17046_v45 = vpop.f32.mrf.mxu0 }
 0xec7   : > { %v17052_v24 = vadd.f32 %v16975_v9, %v16800_v15  ;;  %v17054_v19 = vadd.f32 %v17046_v45, %v16802_v62 }
 0xec8   : > { %v16977_v31 = vpop.f32.mrf.mxu1  ;;  %v19490_v7 = vpop.f32.mrf.mxu0 }
 0xec9   : > { %v17053_v43 = vadd.f32 %v16977_v31, %v16801_v60 }
 0xecc   : > { %v17126_v44 = vpop.f32.mrf.mxu1  ;;  %v17197_v42 = vpop.f32.mrf.mxu0 }
 0xecd   : > { %v17272_v6 = vadd.f32 %v17126_v44, %v17050_v48  ;;  %v17274_v35 = vadd.f32 %v17197_v42, %v17052_v24 }
 0xece   : > { %v17128_v46 = vpop.f32.mrf.mxu1  ;;  %v17199_v30 = vpop.f32.mrf.mxu0 }
 0xecf   : > { %v17273_v41 = vadd.f32 %v17128_v46, %v17051_v5  ;;  %v17275_v21 = vadd.f32 %v17199_v30, %v17053_v43  ;;  %v18288_v30 = vpop.permute.xlu0 %18287 }
 0xed2   : > { %v17268_v3 = vpop.f32.mrf.mxu1  ;;  %v17378_v55 = vpop.f32.mrf.mxu0 }
 0xed3   : > { %v17524_v32 = vadd.f32 %v17378_v55, %v17272_v6  ;;  %v17276_v59 = vadd.f32 %v17268_v3, %v17054_v19 }
 0xed4   : > { %v19497_v2 = vpop.f32.mrf.mxu1  ;;  %v17380_v14 = vpop.f32.mrf.mxu0 }
 0xed5   : > { %v17525_v29 = vadd.f32 %v17380_v14, %v17273_v41 }
 0xed8   : > { %v17449_v36 = vpop.f32.mrf.mxu1  ;;  %v17520_v28 = vpop.f32.mrf.mxu0 }
 0xed9   : > { %v17526_v0 = vadd.f32 %v17449_v36, %v17274_v35  ;;  %v17528_v54 = vadd.f32 %v17520_v28, %v17276_v59  ;;  %v26091_v36 = vld [vmem:[#allocation16_spill] sm:$0xff] }
 0xeda   : > { %v17451_v39 = vpop.f32.mrf.mxu1  ;;  %v19504_v34 = vpop.f32.mrf.mxu0  ;;  %v18307_v28 = vsub.s32 %v18304_v27, %v26091_v36 }
 0xedb   : > { %v17527_v12 = vadd.f32 %v17451_v39, %v17275_v21 }
 0xedd   : > { %v17630_v4 = vpop.f32.mrf.mxu1 }
 0xede   : > { %v17776_v63 = vadd.f32 %v17630_v4, %v17524_v32 }
 0xedf   : > { %v17701_v16 = vpop.f32.mrf.mxu0  ;;  %v17632_v18 = vpop.f32.mrf.mxu1 }
 0xee0   : > { %v17778_v17 = vadd.f32 %v17701_v16, %v17526_v0  ;;  %v17777_v26 = vadd.f32 %v17632_v18, %v17525_v29 }
 0xee1   : > { %v17703_v25 = vpop.f32.mrf.mxu0 }
 0xee2   : > { %v17779_v20 = vadd.f32 %v17703_v25, %v17527_v12 }
 0xee3   : > { %v17772_v56 = vpop.f32.mrf.mxu1 }
 0xee4   : > { %v17780_v45 = vadd.f32 %v17772_v56, %v17528_v54 }
 0xee5   : > { %v17882_v37 = vpop.f32.mrf.mxu0  ;;  %v19511_v23 = vpop.f32.mrf.mxu1 }
 0xee6   : > { %v18028_v58 = vadd.f32 %v17882_v37, %v17776_v63 }
 0xee7   : > { %v17884_v52 = vpop.f32.mrf.mxu0 }
 0xee8   : > { %v18029_v53 = vadd.f32 %v17884_v52, %v17777_v26 }
 0xee9   : > { %v17953_v51 = vpop.f32.mrf.mxu1 }
 0xeea   : > { %v18030_v50 = vadd.f32 %v17953_v51, %v17778_v17 }
 0xeeb   : > { %v18024_v33 = vpop.f32.mrf.mxu0  ;;  %v17955_v47 = vpop.f32.mrf.mxu1 }
 0xeec   : > { %v18031_v44 = vadd.f32 %v17955_v47, %v17779_v20  ;;  %v18032_v3 = vadd.f32 %v18024_v33, %v17780_v45 }
 0xeed   : > { %v19518_v10 = vpop.f32.mrf.mxu0 }
 0xeef   : > { %v18134_v61 = vpop.f32.mrf.mxu1 }
 0xef0   : > { %v18280_v9 = vadd.f32 %v18134_v61, %v18028_v58 }
 0xef1   : > { %v18205_v31 = vpop.f32.mrf.mxu0  ;;  %v18136_v7 = vpop.f32.mrf.mxu1 }
 0xef2   : > { %v18282_v42 = vadd.f32 %v18205_v31, %v18030_v50  ;;  %v18281_v46 = vadd.f32 %v18136_v7, %v18029_v53  ;;  %v18290_v2 = vadd.f32 %v18288_v30, %v18280_v9 }
 0xef3   : > { %v18207_v55 = vpop.f32.mrf.mxu0 }
 0xef4   : > { %v18291_v14 = vadd.f32 %v18288_v30, %v18281_v46  ;;  %v18283_v39 = vadd.f32 %v18207_v55, %v18031_v44  ;;  %v18276_v34 = vpop.f32.mrf.mxu1  ;;  %v18292_v16 = vadd.f32 %v18288_v30, %v18282_v42 }
 0xef5   : > { %v18284_v4 = vadd.f32 %v18276_v34, %v18032_v3 }
 0xef6   : > { %v18300_v18 = vcombine.low %v18290_v2, %v18291_v14  ;;  %v18293_v25 = vadd.f32 %v18288_v30, %v18283_v39  ;;  %v19525_v13 = vpop.f32.mrf.mxu1 }
 0xef7   : > { %v18294_v56 = vadd.f32 %v18288_v30, %v18284_v4 }
 0xef8   : > { %v18308_v57 = vrot.slane %v18300_v18, %v18307_v28  ;;  %v18301_v38 = vcombine.low %v18292_v16, %v18293_v25 }
 0xef9   : > { %v18322_v37 = vrot.slane %v18294_v56, %v18307_v28 }
 0xefa   : > { %v18315_v11 = vrot.slane %v18301_v38, %v18307_v28 }
 0xefb   : > { %v18337_v15 = vrot.slane %v18322_v37, %v18307_v28 }
 0xefc   : > { %v18323_v23 = vcombine.low %v18308_v57, %v18315_v11 }
 0xefe   : > { %v18330_v8 = vrot.slane %v18323_v23, %v18307_v28 }
 0xf00   : > { %v18338_v48 = vcombine.low %v18330_v8, %v18337_v15 }
 0xf02   : > { %18344 = vst.msk [vmem:[%s544_s26] sm:$0x1f] %vm18342_vm1, %v18338_v48 }
 0xf03   : > { %19686 = shalt.err (!%p19683_p3)
}
 0xf04   : > { %s19687_s29 = scalar_lea.hbm %s18358_s3, 80  ;;  %s19691_s21 = scalar_lea.hbm %s25861_s16, 160 }
 0xf05   : > { %p19688_p2 = scmp.ne.s32.totalorder %s18358_s3, %s19687_s29  ;;  %p19692_p7 = scmp.lt.s32.totalorder %s18358_s3, %s25861_s16 }
 0xf06   : > { %p19693_p6 = scmp.lt.s32.totalorder %s19691_s21, %s19687_s29 }
 0xf07   : > { %p19689_p4 = pnand %p19688_p2, %p19899_p5 }
 0xf08   : > { %p19694_p9 = por %p19693_p6, %p19692_p7 }
 0xf09   : > { %p19690_p13 = pneg %p19689_p4 }
 0xf0b   : > { %p19695_p10 = pnand %p19694_p9, %p19690_p13 }
 0xf0d   : > { %19698 = shalt.err (!%p19695_p10)
}
 0xf0e   : > { %19537 = dma.vmem_to_hbm [thread:$0]  (%p19899_p5), %s18361_s20, 80, %s18358_s3, %s18346_s18  }
 0xf0f PF: > { %s26093_s26 = sld [smem:[#allocation11_spill]]  ;;  %p19554_p12 = scmp.ge.s32.totalorder %s19741_s24, 2 }
 0xf10   : > { %s26094_s1 = sld [smem:[#allocation15_spill]] }
 0xf15   : > { %s18372_s2 = sand.u32 1, %s26093_s26  }
 0xf16   : > { %p26095_p8 = scmp.ne.s32.totalorder %s26094_s1, 0  ;;  %s18373_s4 = scalar_lea.sflag [#allocation4], %s18372_s2 }
 0xf18   : > { %p19547_p11 = pnand %p19554_p12, %p26095_p8 }
 0xf1a   : > { %p19548_p0 = pneg %p19547_p11 }
 0xf1c   : > { %19724 = dma.done.wait (%p19548_p0), %s18373_s4, 80  }
 0xf1d   : > { %19726 = vsyncadd (%p19548_p0), %s18373_s4, 4294967216  ;;  %s26096_s24 = sld [smem:[#allocation13_spill]]  ;;  %s26099_s21 = smov %s19733_s22 }
 0xf1e   : > { %s26097_s25 = sld [smem:[#allocation12_spill]] }
 0xf1f   : > { %s26098_s23 = sld [smem:[#allocation14_spill]] }
 0xf23   : > { %p28_p1 = scmp.ge.s32.totalorder %s26096_s24, 4  }
 0xf24   : > { %s26100_s22 = smov %s26097_s25 }
 0xf25   :  { %30 = sbr.rel (!%p28_p1) target bundleno = 11 (0xb), region = 196 }
 0xf2a   :  { %18378 = vsyncpa [#allocation3], 1 }
 0xf2b   :  { %18380 = vsyncpa [#allocation3 + $0x1], 1 }
 0xf2c   :  { %18381 = vsyncpa [#allocation6], 1 }
 0xf2d   :  { %18382 = vsyncpa [#allocation4], 1 }
 0xf2e   :  { %18384 = vsyncpa [#allocation4 + $0x1], 1 }

</bundles_post_ra>
